<compile_context>
chip_gen: v7x
topology: tpu7x:2x2x1
jax: 0.10.0
libtpu: 0.0.40
codegen_flags: <defaults>
</compile_context>

<pallas_src>
import functools
import math
from dataclasses import dataclass

import jax
import jax.numpy as jnp
from jax import lax
from jax.experimental import pallas as pl
from jax.experimental.pallas import tpu as pltpu


# =============================================================================
# Small tiling helpers
# =============================================================================
def _row_block(m, pref=256):
    """Row-tile size: 256 rows when large, otherwise the 8-aligned full size."""
    if m >= pref:
        return pref
    return max(8, ((m + 7) // 8) * 8)


def _pad_rows(x, tm):
    m = x.shape[0]
    mp = ((m + tm - 1) // tm) * tm
    if mp != m:
        x = jnp.pad(x, ((0, mp - m), (0, 0)))
    return x, m, mp


# =============================================================================
# Fused LayerNorm + matmul (+ activation) kernel, M (and optionally N) tiled
# =============================================================================
def _ln_matmul_kernel(x_ref, g_ref, b_ref, w_ref, bias_ref, o_ref, *,
                      act, use_ln, eps):
    x = x_ref[...]
    if use_ln:
        mu = jnp.mean(x, axis=-1, keepdims=True)
        xc = x - mu
        var = jnp.mean(xc * xc, axis=-1, keepdims=True)
        x = xc * lax.rsqrt(var + eps) * g_ref[...] + b_ref[...]
    y = jnp.dot(x.astype(jnp.bfloat16), w_ref[...],
                preferred_element_type=jnp.float32) + bias_ref[...]
    if act == "relu":
        y = jnp.maximum(y, 0.0)
    elif act == "glu":
        h = y.shape[-1] // 2
        a, gate = y[:, :h], y[:, h:]
        y = a * pl.reciprocal(1.0 + jnp.exp(-gate), approx=True)
    o_ref[...] = y


def ln_matmul(x, w, b, *, ln=None, act="none"):
    """out = act( (LN?)(x) @ w + b ); x:(M,K) f32, w:(K,N) -> bf16 in kernel."""
    M, K = x.shape
    N = w.shape[1]
    tm = _row_block(M)
    xp, m0, mp = _pad_rows(x, tm)
    # N tiling only when lane-aligned and big (e.g. a real vocab projection).
    tn = N
    if act != "glu" and N % 128 == 0 and N > 512:
        for cand in (512, 256, 128):
            if N % cand == 0:
                tn = cand
                break
    out_n = N // 2 if act == "glu" else N
    out_tn = tn // 2 if act == "glu" else tn
    use_ln = ln is not None
    g, bln = ln if use_ln else (jnp.ones((K,), jnp.float32),
                                jnp.zeros((K,), jnp.float32))
    out = pl.pallas_call(
        functools.partial(_ln_matmul_kernel, act=act, use_ln=use_ln, eps=1e-5),
        out_shape=jax.ShapeDtypeStruct((mp, out_n), jnp.float32),
        grid=(mp // tm, N // tn),
        in_specs=[
            pl.BlockSpec((tm, K), lambda i, j: (i, 0)),
            pl.BlockSpec((1, K), lambda i, j: (0, 0)),
            pl.BlockSpec((1, K), lambda i, j: (0, 0)),
            pl.BlockSpec((K, tn), lambda i, j: (0, j)),
            pl.BlockSpec((1, tn), lambda i, j: (0, j)),
        ],
        out_specs=pl.BlockSpec((tm, out_tn), lambda i, j: (i, j)),
        compiler_params=pltpu.CompilerParams(
            dimension_semantics=("parallel", "parallel")),
    )(xp, g.reshape(1, K), bln.reshape(1, K), w.astype(jnp.bfloat16),
      b.reshape(1, N))
    return out[:m0]


# =============================================================================
# Fused LN + FFN (w1 + act + w2) + residual (+ optional post-LN) kernel
# =============================================================================
def _ffn_kernel(x_ref, g_ref, b_ref, w1_ref, b1_ref, w2_ref, b2_ref,
                gp_ref, bp_ref, o_ref, *, act, res_scale, post_ln, eps):
    x = x_ref[...]
    mu = jnp.mean(x, axis=-1, keepdims=True)
    xc = x - mu
    var = jnp.mean(xc * xc, axis=-1, keepdims=True)
    h = xc * lax.rsqrt(var + eps) * g_ref[...] + b_ref[...]
    h = jnp.dot(h.astype(jnp.bfloat16), w1_ref[...],
                preferred_element_type=jnp.float32) + b1_ref[...]
    if act == "silu":
        h = h * pl.reciprocal(1.0 + jnp.exp(-h), approx=True)
    else:  # relu
        h = jnp.maximum(h, 0.0)
    h = jnp.dot(h.astype(jnp.bfloat16), w2_ref[...],
                preferred_element_type=jnp.float32) + b2_ref[...]
    y = x + res_scale * h
    if post_ln:
        mu = jnp.mean(y, axis=-1, keepdims=True)
        yc = y - mu
        var = jnp.mean(yc * yc, axis=-1, keepdims=True)
        y = yc * lax.rsqrt(var + eps) * gp_ref[...] + bp_ref[...]
    o_ref[...] = y


def fused_ffn(x, g, b, w1, b1, w2, b2, *, act, res_scale, post_ln=None):
    M, D = x.shape
    F = w1.shape[1]
    tm = _row_block(M)
    xp, m0, mp = _pad_rows(x, tm)
    use_post = post_ln is not None
    gp, bp = post_ln if use_post else (jnp.ones((D,), jnp.float32),
                                       jnp.zeros((D,), jnp.float32))
    out = pl.pallas_call(
        functools.partial(_ffn_kernel, act=act, res_scale=res_scale,
                          post_ln=use_post, eps=1e-5),
        out_shape=jax.ShapeDtypeStruct((mp, D), jnp.float32),
        grid=(mp // tm,),
        in_specs=[
            pl.BlockSpec((tm, D), lambda i: (i, 0)),
            pl.BlockSpec((1, D), lambda i: (0, 0)),
            pl.BlockSpec((1, D), lambda i: (0, 0)),
            pl.BlockSpec((D, F), lambda i: (0, 0)),
            pl.BlockSpec((1, F), lambda i: (0, 0)),
            pl.BlockSpec((F, D), lambda i: (0, 0)),
            pl.BlockSpec((1, D), lambda i: (0, 0)),
            pl.BlockSpec((1, D), lambda i: (0, 0)),
            pl.BlockSpec((1, D), lambda i: (0, 0)),
        ],
        out_specs=pl.BlockSpec((tm, D), lambda i: (i, 0)),
        compiler_params=pltpu.CompilerParams(dimension_semantics=("parallel",)),
    )(xp, g.reshape(1, D), b.reshape(1, D), w1.astype(jnp.bfloat16),
      b1.reshape(1, F), w2.astype(jnp.bfloat16), b2.reshape(1, D),
      gp.reshape(1, D), bp.reshape(1, D))
    return out[:m0]


# =============================================================================
# Fused (LN?) + projection, writing head-split (B, H, T, dk) outputs directly
# (removes the XLA (0,2,1,3) transposes around attention)
# =============================================================================
def _proj_heads_kernel(x_ref, g_ref, b_ref, w_ref, bias_ref, *out_refs,
                       n_out, n_head, dk, use_ln, eps, out_dtype):
    x = x_ref[0]
    if use_ln:
        mu = jnp.mean(x, axis=-1, keepdims=True)
        xc = x - mu
        var = jnp.mean(xc * xc, axis=-1, keepdims=True)
        x = xc * lax.rsqrt(var + eps) * g_ref[...] + b_ref[...]
    y = jnp.dot(x.astype(jnp.bfloat16), w_ref[...],
                preferred_element_type=jnp.float32) + bias_ref[...]
    d_out = n_head * dk
    for j in range(n_out):
        for hh in range(n_head):
            lo = j * d_out + hh * dk
            out_refs[j][0, hh, :, :] = y[:, lo:lo + dk].astype(out_dtype)


def proj_heads(x, w, b, n_head, *, ln=None, n_out=1, out_dtype=jnp.bfloat16):
    """x:(B,T,K) -> n_out tensors of shape (B, H, T, dk), dtype bf16."""
    B, T, K = x.shape
    N = w.shape[1]
    d_out = N // n_out
    dk = d_out // n_head
    use_ln = ln is not None
    g, bln = ln if use_ln else (jnp.ones((K,), jnp.float32),
                                jnp.zeros((K,), jnp.float32))
    kern = functools.partial(_proj_heads_kernel, n_out=n_out, n_head=n_head,
                             dk=dk, use_ln=use_ln, eps=1e-5, out_dtype=out_dtype)
    out_shape = tuple(jax.ShapeDtypeStruct((B, n_head, T, dk), out_dtype)
                      for _ in range(n_out))
    out_specs = tuple(pl.BlockSpec((1, n_head, T, dk), lambda bb: (bb, 0, 0, 0))
                      for _ in range(n_out))
    outs = pl.pallas_call(
        kern, out_shape=out_shape, grid=(B,),
        in_specs=[
            pl.BlockSpec((1, T, K), lambda bb: (bb, 0, 0)),
            pl.BlockSpec((1, K), lambda bb: (0, 0)),
            pl.BlockSpec((1, K), lambda bb: (0, 0)),
            pl.BlockSpec((K, N), lambda bb: (0, 0)),
            pl.BlockSpec((1, N), lambda bb: (0, 0)),
        ],
        out_specs=out_specs,
        compiler_params=pltpu.CompilerParams(dimension_semantics=("parallel",)),
    )(x, g.reshape(1, K), bln.reshape(1, K), w.astype(jnp.bfloat16),
      b.reshape(1, N))
    if not isinstance(outs, (tuple, list)):
        outs = (outs,)
    return tuple(outs)


# =============================================================================
# Relative-position scores: bd_full = (q + pos_v) @ pproj^T   (MXU, per batch)
# =============================================================================
def _rel_scores_kernel(q_ref, p_ref, pv_ref, o_ref):
    q = q_ref[0].astype(jnp.float32) + pv_ref[...][:, None, :]    # (H, T, dk)
    o_ref[0] = jnp.einsum("hqd,hnd->hqn", q.astype(jnp.bfloat16), p_ref[...],
                          preferred_element_type=jnp.float32)


def rel_pos_scores(q, pproj, pos_v):
    B, H, T, dk = q.shape
    L = pproj.shape[1]                      # 2T-1
    return pl.pallas_call(
        _rel_scores_kernel,
        out_shape=jax.ShapeDtypeStruct((B, H, T, L), jnp.float32),
        grid=(B,),
        in_specs=[
            pl.BlockSpec((1, H, T, dk), lambda b: (b, 0, 0, 0)),
            pl.BlockSpec((H, L, dk), lambda b: (0, 0, 0)),
            pl.BlockSpec((H, dk), lambda b: (0, 0)),
        ],
        out_specs=pl.BlockSpec((1, H, T, L), lambda b: (b, 0, 0, 0)),
        compiler_params=pltpu.CompilerParams(dimension_semantics=("parallel",)),
    )(q, pproj, pos_v)


def _rel_shift(bd):
    """Transformer-XL rel-shift: (B,H,T,2T-1) -> (B,H,T,T).  Pure layout glue."""
    B, H, T, _ = bd.shape
    bd = jnp.pad(bd, ((0, 0), (0, 0), (0, 0), (1, 0)))
    bd = bd.reshape(B, H, 2 * T, T)[:, :, 1:, :]
    bd = bd.reshape(B, H, T, 2 * T - 1)[..., :T]
    return bd


# =============================================================================
# Multi-head attention kernel (all heads per program; masks built in-kernel)
# =============================================================================
def _attn_kernel(q_ref, k_ref, v_ref, m_ref, *rest, scale, causal, rel):
    if rel:
        bd_ref, u_ref, o_ref = rest
    else:
        (o_ref,) = rest
    q = q_ref[0]                            # (H, Tq, dk) bf16
    k = k_ref[0]
    v = v_ref[0]
    if rel:
        q = (q.astype(jnp.float32) + u_ref[...][:, None, :]).astype(jnp.bfloat16)
    s = jnp.einsum("hqd,hkd->hqk", q, k, preferred_element_type=jnp.float32)
    if rel:
        s = (s + bd_ref[0]) * scale
    else:
        s = s * scale
    kmask = m_ref[0]                        # (1, Tk) f32: 1 valid / 0 pad
    s = s + (1.0 - kmask) * jnp.float32(-1e9)
    if causal:
        Tq, Tk = s.shape[1], s.shape[2]
        row = lax.broadcasted_iota(jnp.int32, (Tq, Tk), 0)
        col = lax.broadcasted_iota(jnp.int32, (Tq, Tk), 1)
        s = jnp.where((col <= row)[None, :, :], s, jnp.float32(-1e9))
    s = s - jnp.max(s, axis=-1, keepdims=True)
    p = jnp.exp(s)
    p = p * pl.reciprocal(jnp.sum(p, axis=-1, keepdims=True), approx=True)
    o_ref[0] = jnp.einsum("hqk,hkd->hqd", p.astype(v.dtype), v,
                          preferred_element_type=jnp.float32)


def attention(q, k, v, key_mask, *, scale, causal=False, bd=None, pos_u=None):
    """q,k,v: (B,H,T,dk) bf16; key_mask: (B,Tk) f32; returns (B,H,Tq,dk) f32."""
    B, H, Tq, dk = q.shape
    Tk = k.shape[2]
    rel = bd is not None
    inputs = [q, k, v, key_mask.reshape(B, 1, Tk)]
    in_specs = [
        pl.BlockSpec((1, H, Tq, dk), lambda b: (b, 0, 0, 0)),
        pl.BlockSpec((1, H, Tk, dk), lambda b: (b, 0, 0, 0)),
        pl.BlockSpec((1, H, Tk, dk), lambda b: (b, 0, 0, 0)),
        pl.BlockSpec((1, 1, Tk), lambda b: (b, 0, 0)),
    ]
    if rel:
        inputs += [bd, pos_u]
        in_specs += [
            pl.BlockSpec((1, H, Tq, Tk), lambda b: (b, 0, 0, 0)),
            pl.BlockSpec((H, dk), lambda b: (0, 0)),
        ]
    return pl.pallas_call(
        functools.partial(_attn_kernel, scale=scale, causal=causal, rel=rel),
        out_shape=jax.ShapeDtypeStruct((B, H, Tq, dk), jnp.float32),
        grid=(B,),
        in_specs=in_specs,
        out_specs=pl.BlockSpec((1, H, Tq, dk), lambda b: (b, 0, 0, 0)),
        compiler_params=pltpu.CompilerParams(dimension_semantics=("parallel",)),
    )(*inputs)


# =============================================================================
# Attention output projection (+ residual), consuming (B, H, T, dk) directly
# =============================================================================
def _attn_out_kernel(o_ref, res_ref, w_ref, b_ref, out_ref, *, n_head):
    acc = res_ref[0] + b_ref[...]
    o = o_ref[0]                            # (H, T, dk) f32
    for hh in range(n_head):
        acc = acc + jnp.dot(o[hh].astype(jnp.bfloat16), w_ref[hh],
                            preferred_element_type=jnp.float32)
    out_ref[0] = acc


def attn_out_proj(o, residual, wo, bo):
    B, H, T, dk = o.shape
    D = residual.shape[-1]
    return pl.pallas_call(
        functools.partial(_attn_out_kernel, n_head=H),
        out_shape=jax.ShapeDtypeStruct((B, T, D), jnp.float32),
        grid=(B,),
        in_specs=[
            pl.BlockSpec((1, H, T, dk), lambda b: (b, 0, 0, 0)),
            pl.BlockSpec((1, T, D), lambda b: (b, 0, 0)),
            pl.BlockSpec((H, dk, D), lambda b: (0, 0, 0)),
            pl.BlockSpec((1, D), lambda b: (0, 0)),
        ],
        out_specs=pl.BlockSpec((1, T, D), lambda b: (b, 0, 0)),
        compiler_params=pltpu.CompilerParams(dimension_semantics=("parallel",)),
    )(o, residual, wo.reshape(H, dk, D).astype(jnp.bfloat16), bo.reshape(1, D))


# =============================================================================
# Conformer conv module tail: depthwise conv + BN(eval) + swish + pw2 + residual
# =============================================================================
def _conv_module_kernel(xp_ref, dw_ref, cb_ref, bg_ref, bb_ref, w2_ref, b2_ref,
                        res_ref, o_ref, *, K, T):
    x = xp_ref[0]                           # (T+K-1, D) halo-padded, time-major
    w = dw_ref[...]                         # (K, D)
    acc = x[0:T, :] * w[0:1, :]
    for k in range(1, K):                   # depthwise conv = K shifted VPU MACs
        acc = acc + x[k:k + T, :] * w[k:k + 1, :]
    y = acc + cb_ref[...]
    y = y * bg_ref[...] + bb_ref[...]       # BatchNorm1d (eval) affine
    y = y * pl.reciprocal(1.0 + jnp.exp(-y), approx=True)          # swish
    out = res_ref[0] + jnp.dot(y.astype(jnp.bfloat16), w2_ref[...],
                               preferred_element_type=jnp.float32) + b2_ref[...]
    o_ref[0] = out


def conv_module(x_pad, dw_w, dw_b, bn_scale, bn_shift, pw2_w, pw2_b,
                residual, K, T):
    B, Tp, D = x_pad.shape
    return pl.pallas_call(
        functools.partial(_conv_module_kernel, K=K, T=T),
        out_shape=jax.ShapeDtypeStruct((B, T, D), jnp.float32),
        grid=(B,),
        in_specs=[
            pl.BlockSpec((1, Tp, D), lambda b: (b, 0, 0)),
            pl.BlockSpec((K, D), lambda b: (0, 0)),
            pl.BlockSpec((1, D), lambda b: (0, 0)),
            pl.BlockSpec((1, D), lambda b: (0, 0)),
            pl.BlockSpec((1, D), lambda b: (0, 0)),
            pl.BlockSpec((D, D), lambda b: (0, 0)),
            pl.BlockSpec((1, D), lambda b: (0, 0)),
            pl.BlockSpec((1, T, D), lambda b: (b, 0, 0)),
        ],
        out_specs=pl.BlockSpec((1, T, D), lambda b: (b, 0, 0)),
        compiler_params=pltpu.CompilerParams(dimension_semantics=("parallel",)),
    )(x_pad, dw_w, dw_b.reshape(1, D), bn_scale.reshape(1, D),
      bn_shift.reshape(1, D), pw2_w.astype(jnp.bfloat16), pw2_b.reshape(1, D),
      residual)


# =============================================================================
# Glue (layout plumbing only: im2col, PE tables, masks, rel-shift)
# =============================================================================
def _im2col(x, k, s):
    # x: (B, C, H, W) NCHW -> (B, H', W', C*k*k), patch features ordered (c,kh,kw)
    B, C, H, W = x.shape
    Ho = (H - k) // s + 1
    Wo = (W - k) // s + 1
    cols = []
    for kh in range(k):
        for kw in range(k):
            cols.append(x[:, :, kh:kh + s * Ho:s, kw:kw + s * Wo:s])
    p = jnp.stack(cols, axis=2).reshape(B, C * k * k, Ho, Wo)
    return p.transpose(0, 2, 3, 1)


def _sinusoid_pe(positions, d_model):
    inv = jnp.exp(-jnp.arange(0, d_model, 2, dtype=jnp.float32)
                  * (math.log(10000.0) / d_model))
    ang = positions[:, None] * inv[None, :]
    pe = jnp.zeros((positions.shape[0], d_model), jnp.float32)
    pe = pe.at[:, 0::2].set(jnp.sin(ang))
    pe = pe.at[:, 1::2].set(jnp.cos(ang))
    return pe


def conv2d_subsampling(p, x):
    # PyTorch Conv2d(1->D, 3, s=2) x2 (NCHW) expressed as im2col + Pallas matmul.
    B, T, F = x.shape
    D = p["w1"].shape[0]
    xc = x[:, None, :, :]
    p1 = _im2col(xc, 3, 2)                                  # (B, T1, F1, 9)
    T1, F1 = p1.shape[1], p1.shape[2]
    w1 = p["w1"].reshape(D, -1).T
    h1 = ln_matmul(p1.reshape(-1, 9), w1, p["b1"], act="relu")
    h1 = h1.reshape(B, T1, F1, D).transpose(0, 3, 1, 2)     # (B, D, T1, F1)
    p2 = _im2col(h1, 3, 2)                                  # (B, T2, F2, D*9)
    T2, F2 = p2.shape[1], p2.shape[2]
    w2 = p["w2"].reshape(D, -1).T
    h2 = ln_matmul(p2.reshape(-1, D * 9), w2, p["b2"], act="relu")
    # match torch .transpose(1,2).view(b,t,c*f): channel-major feature ordering
    h2 = h2.reshape(B, T2, F2, D).transpose(0, 1, 3, 2).reshape(B, T2, D * F2)
    out = ln_matmul(h2.reshape(-1, D * F2), p["wout"], p["bout"])
    return out.reshape(B, T2, D)


# =============================================================================
# Encoder / decoder
# =============================================================================
def _conformer_block(lp, x, pos_emb, key_mask, pad, cfg):
    B, T, D = x.shape
    H = cfg.n_head
    dk = D // H
    scale = 1.0 / math.sqrt(dk)

    # macaron FFN (half-step residual), fused LN+w1+silu+w2+residual
    f = lp["ffn1"]
    x = fused_ffn(x.reshape(-1, D), f["ln_g"], f["ln_b"], f["w1"], f["b1"],
                  f["w2"], f["b2"], act="silu", res_scale=0.5).reshape(B, T, D)

    # relative-position multi-head self-attention
    m = lp["mhsa"]
    wqkv = jnp.concatenate([m["wq"], m["wk"], m["wv"]], axis=1)
    bqkv = jnp.concatenate([m["bq"], m["bk"], m["bv"]])
    q, k, v = proj_heads(x, wqkv, bqkv, H, ln=(m["ln_g"], m["ln_b"]), n_out=3)
    (pproj,) = proj_heads(pos_emb[None], m["wpos"],
                          jnp.zeros((D,), jnp.float32), H, n_out=1)
    pproj = pproj[0]                                        # (H, 2T-1, dk)
    bd = _rel_shift(rel_pos_scores(q, pproj, m["pos_v"]))   # (B, H, T, T)
    o = attention(q, k, v, key_mask, scale=scale, causal=False,
                  bd=bd, pos_u=m["pos_u"])
    x = attn_out_proj(o, x, m["wo"], m["bo"])

    # convolution module (LN+pw1+GLU kernel, then fused dwconv+BN+swish+pw2+res)
    c = lp["conv"]
    h = ln_matmul(x.reshape(-1, D), c["pw1_w"], c["pw1_b"],
                  ln=(c["ln_g"], c["ln_b"]), act="glu")
    h = h.reshape(B, T, D) * pad                            # zero padded frames
    halo = (cfg.kernel_size - 1) // 2
    h_pad = jnp.pad(h, ((0, 0), (halo, halo), (0, 0)))
    bn_scale = c["bn_g"] / jnp.sqrt(1.0 + 1e-5)             # eval stats mean=0,var=1
    x = conv_module(h_pad, c["dw_w"], c["dw_b"], bn_scale, c["bn_b"],
                    c["pw2_w"], c["pw2_b"], x, cfg.kernel_size, T)

    # second FFN (half-step) with the block's final LayerNorm fused as post-LN
    f = lp["ffn2"]
    x = fused_ffn(x.reshape(-1, D), f["ln_g"], f["ln_b"], f["w1"], f["b1"],
                  f["w2"], f["b2"], act="silu", res_scale=0.5,
                  post_ln=(lp["ln_g"], lp["ln_b"]))
    return x.reshape(B, T, D)


def conformer_encoder(params, x, input_lengths, cfg):
    B, T_in, _ = x.shape
    D = cfg.d_model
    src_mask = (jnp.arange(T_in)[None, :] < input_lengths[:, None])[:, None, :]
    enc = conv2d_subsampling(params["sub"], x)              # (B, T', D)
    mask = src_mask[:, :, :-2:2][:, :, :-2:2]               # subsampled (B,1,T')
    out_lengths = jnp.sum(mask[:, 0, :], axis=-1).astype(jnp.int32)
    T = enc.shape[1]
    rel_pos = jnp.arange(T - 1, -T, -1, dtype=jnp.float32)  # T-1 .. -(T-1)
    pos_emb = _sinusoid_pe(rel_pos, D)                      # (2T-1, D)
    key_mask = mask[:, 0, :].astype(jnp.float32)            # (B, T)
    pad = key_mask[:, :, None]                              # (B, T, 1)
    for lp in params["layers"]:
        enc = _conformer_block(lp, enc, pos_emb, key_mask, pad, cfg)
    return enc, out_lengths, mask


def transformer_decoder(params, padded_target, enc_out, enc_mask, cfg):
    B, T_enc, D = enc_out.shape
    H = cfg.n_head
    dk = D // H
    scale = 1.0 / math.sqrt(dk)

    ys_in = padded_target[:, :-1]                           # teacher-forcing input
    Td = ys_in.shape[1]
    emb = params["emb"][ys_in]                              # embedding gather (glue)
    pe = _sinusoid_pe(jnp.arange(Td, dtype=jnp.float32), D)
    x = emb * math.sqrt(D) + pe[None]                       # (B, Td, D)

    self_kmask = (ys_in != cfg.pad_id).astype(jnp.float32)  # (B, Td)
    cross_kmask = enc_mask[:, 0, :].astype(jnp.float32)     # (B, T_enc)

    for lp in params["layers"]:
        # masked self-attention (causal mask built in-kernel from iota)
        wqkv = jnp.concatenate([lp["sa_wq"], lp["sa_wk"], lp["sa_wv"]], axis=1)
        bqkv = jnp.concatenate([lp["sa_bq"], lp["sa_bk"], lp["sa_bv"]])
        q, k, v = proj_heads(x, wqkv, bqkv, H, ln=(lp["ln1_g"], lp["ln1_b"]),
                             n_out=3)
        o = attention(q, k, v, self_kmask, scale=scale, causal=True)
        x = attn_out_proj(o, x, lp["sa_wo"], lp["sa_bo"])

        # cross-attention over encoder memory
        (q,) = proj_heads(x, lp["ca_wq"], lp["ca_bq"], H,
                          ln=(lp["ln2_g"], lp["ln2_b"]), n_out=1)
        wkv = jnp.concatenate([lp["ca_wk"], lp["ca_wv"]], axis=1)
        bkv = jnp.concatenate([lp["ca_bk"], lp["ca_bv"]])
        k, v = proj_heads(enc_out, wkv, bkv, H, n_out=2)
        o = attention(q, k, v, cross_kmask, scale=scale, causal=False)
        x = attn_out_proj(o, x, lp["ca_wo"], lp["ca_bo"])

        # position-wise FFN (full residual, relu)
        x = fused_ffn(x.reshape(-1, D), lp["ln3_g"], lp["ln3_b"], lp["ff_w1"],
                      lp["ff_b1"], lp["ff_w2"], lp["ff_b2"], act="relu",
                      res_scale=1.0).reshape(B, Td, D)

    # final LN fused with the tied output projection (weight = emb, no bias)
    logits = ln_matmul(x.reshape(-1, D), params["emb"].T,
                       jnp.zeros((cfg.odim,), jnp.float32),
                       ln=(params["ln_g"], params["ln_b"]))
    return logits.reshape(B, Td, cfg.odim)


def fireredasr_aed_forward(params, padded_input, input_lengths, padded_target,
                           target_lengths, cfg):
    del target_lengths  # only used by the training loss in the reference module
    enc_out, _, enc_mask = conformer_encoder(params["enc"], padded_input,
                                             input_lengths, cfg)
    logits = transformer_decoder(params["dec"], padded_target, enc_out,
                                 enc_mask, cfg)
    return logits, enc_out


# =============================================================================
# Deterministic parameter init (synthetic; matches module shape conventions)
# =============================================================================
@dataclass
class AedConfig:
    idim: int = 16
    odim: int = 50
    n_layers_enc: int = 2
    n_head: int = 4
    d_model: int = 32
    residual_dropout: float = 0.1
    dropout_rate: float = 0.1
    kernel_size: int = 7
    pe_maxlen: int = 512
    n_layers_dec: int = 2
    sos_id: int = 1
    eos_id: int = 2
    pad_id: int = 0


def init_params(key, cfg):
    D, H, V, K = cfg.d_model, cfg.n_head, cfg.odim, cfg.kernel_size
    dk = D // H
    ff = 4 * D
    fsub = ((cfg.idim - 1) // 2 - 1) // 2
    it = iter(jax.random.split(key, 256))

    def w(shape, scale=0.02):
        return scale * jax.random.normal(next(it), shape, dtype=jnp.float32)

    def ones(*s):
        return jnp.ones(s, jnp.float32)

    def zeros(*s):
        return jnp.zeros(s, jnp.float32)

    def ffn():
        return dict(ln_g=ones(D), ln_b=zeros(D), w1=w((D, ff)), b1=zeros(ff),
                    w2=w((ff, D)), b2=zeros(D))

    enc_layers = []
    for _ in range(cfg.n_layers_enc):
        enc_layers.append(dict(
            ffn1=ffn(),
            mhsa=dict(ln_g=ones(D), ln_b=zeros(D),
                      wq=w((D, D)), bq=zeros(D), wk=w((D, D)), bk=zeros(D),
                      wv=w((D, D)), bv=zeros(D), wpos=w((D, D)),
                      pos_u=w((H, dk)), pos_v=w((H, dk)),
                      wo=w((D, D)), bo=zeros(D)),
            conv=dict(ln_g=ones(D), ln_b=zeros(D),
                      pw1_w=w((D, 2 * D)), pw1_b=zeros(2 * D),
                      dw_w=w((K, D)), dw_b=zeros(D),
                      bn_g=ones(D), bn_b=zeros(D),
                      pw2_w=w((D, D)), pw2_b=zeros(D)),
            ffn2=ffn(),
            ln_g=ones(D), ln_b=zeros(D),
        ))
    enc = dict(
        sub=dict(w1=w((D, 1, 3, 3)), b1=zeros(D),
                 w2=w((D, D, 3, 3)), b2=zeros(D),
                 wout=w((D * fsub, D)), bout=zeros(D)),
        layers=enc_layers,
    )

    dec_layers = []
    for _ in range(cfg.n_layers_dec):
        dec_layers.append(dict(
            ln1_g=ones(D), ln1_b=zeros(D),
            sa_wq=w((D, D)), sa_bq=zeros(D), sa_wk=w((D, D)), sa_bk=zeros(D),
            sa_wv=w((D, D)), sa_bv=zeros(D), sa_wo=w((D, D)), sa_bo=zeros(D),
            ln2_g=ones(D), ln2_b=zeros(D),
            ca_wq=w((D, D)), ca_bq=zeros(D), ca_wk=w((D, D)), ca_bk=zeros(D),
            ca_wv=w((D, D)), ca_bv=zeros(D), ca_wo=w((D, D)), ca_bo=zeros(D),
            ln3_g=ones(D), ln3_b=zeros(D),
            ff_w1=w((D, ff)), ff_b1=zeros(ff), ff_w2=w((ff, D)), ff_b2=zeros(D),
        ))
    dec = dict(emb=w((V, D), scale=1.0 / math.sqrt(D)), layers=dec_layers,
               ln_g=ones(D), ln_b=zeros(D))

    return dict(enc=enc, dec=dec)


# =============================================================================
if __name__ == "__main__":
    cfg = AedConfig()
    key = jax.random.PRNGKey(0)
    pkey, xkey, tkey = jax.random.split(key, 3)
    params = init_params(pkey, cfg)

    B, T_in, T_tgt = 2, 20, 6
    input_lengths = jnp.array([20, 10], dtype=jnp.int32)
    padded_input = jax.random.normal(xkey, (B, T_in, cfg.idim), jnp.float32)
    # zero the padded frames (inputs come zero-padded in the reference pipeline)
    padded_input = padded_input * (jnp.arange(T_in)[None, :, None]
                                   < input_lengths[:, None, None])

    tgt = jax.random.randint(tkey, (B, T_tgt), 3, cfg.odim, dtype=jnp.int32)
    padded_target = tgt.at[:, 0].set(cfg.sos_id)
    padded_target = padded_target.at[0, 5].set(cfg.eos_id)
    padded_target = padded_target.at[1, 3].set(cfg.eos_id)
    padded_target = padded_target.at[1, 4].set(cfg.pad_id)
    padded_target = padded_target.at[1, 5].set(cfg.pad_id)
    target_lengths = jnp.array([6, 4], dtype=jnp.int32)

    fwd = jax.jit(functools.partial(fireredasr_aed_forward, cfg=cfg))
    logits, enc_out = fwd(params, padded_input, input_lengths, padded_target,
                          target_lengths)
    jax.block_until_ready((logits, enc_out))

    assert logits.shape == (B, T_tgt - 1, cfg.odim), logits.shape
    assert enc_out.shape == (B, 4, cfg.d_model), enc_out.shape
    assert bool(jnp.all(jnp.isfinite(logits))) and bool(jnp.all(jnp.isfinite(enc_out)))
    print("KERNEL_OK")
</pallas_src>

<mosaic_0001>
module attributes {stable_mosaic.version = 11 : i64} {
  func.func @_ln_matmul_kernel(%arg0: i32, %arg1: i32, %arg2: memref<128x9xf32, #tpu.memory_space<vmem>>, %arg3: memref<1x9xf32, #tpu.memory_space<vmem>>, %arg4: memref<1x9xf32, #tpu.memory_space<vmem>>, %arg5: memref<9x32xbf16, #tpu.memory_space<vmem>>, %arg6: memref<1x32xf32, #tpu.memory_space<vmem>>, %arg7: memref<128x32xf32, #tpu.memory_space<vmem>>) attributes {dimension_semantics = [#tpu.dimension_semantics<parallel>, #tpu.dimension_semantics<parallel>], iteration_bounds = array<i64: 1, 1>, scalar_prefetch = 0 : i64, scratch_operands = 0 : i64, tpu.core_type = #tpu.core_type<tc>, window_params = [{transform_indices = @transform_0, window_bounds = array<i64: 128, 9>}, {pipeline_mode = #tpu.pipeline_mode<synchronous>, transform_indices = @transform_1, window_bounds = array<i64: 1, 9>}, {pipeline_mode = #tpu.pipeline_mode<synchronous>, transform_indices = @transform_2, window_bounds = array<i64: 1, 9>}, {transform_indices = @transform_3, window_bounds = array<i64: 9, 32>}, {transform_indices = @transform_4, window_bounds = array<i64: 1, 32>}, {transform_indices = @transform_5, window_bounds = array<i64: 128, 32>}]} {
    %c0 = arith.constant 0 : index
    %c0_0 = arith.constant 0 : index
    %0 = vector.load %arg2[%c0, %c0_0] : memref<128x9xf32, #tpu.memory_space<vmem>>, vector<128x9xf32>
    %1 = arith.truncf %0 : vector<128x9xf32> to vector<128x9xbf16>
    %c0_1 = arith.constant 0 : index
    %c0_2 = arith.constant 0 : index
    %2 = vector.load %arg5[%c0_1, %c0_2] : memref<9x32xbf16, #tpu.memory_space<vmem>>, vector<9x32xbf16>
    %cst = arith.constant dense<0.000000e+00> : vector<128x32xf32>
    %3 = tpu.matmul %1, %2, %cst {dimension_numbers = #tpu.dot_dimension_numbers<[1], [0], [0], [1], [0, 0, 1, 1], [], []>} : vector<128x9xbf16>, vector<9x32xbf16>, vector<128x32xf32> -> vector<128x32xf32>
    %c0_3 = arith.constant 0 : index
    %c0_4 = arith.constant 0 : index
    %4 = vector.load %arg6[%c0_3, %c0_4] : memref<1x32xf32, #tpu.memory_space<vmem>>, vector<1x32xf32>
    %5 = vector.broadcast %4 : vector<1x32xf32> to vector<128x32xf32>
    %6 = arith.addf %3, %5 : vector<128x32xf32>
    %cst_5 = arith.constant 0.000000e+00 : f32
    %7 = vector.broadcast %cst_5 : f32 to vector<128x32xf32>
    %8 = arith.maximumf %6, %7 : vector<128x32xf32>
    %c0_6 = arith.constant 0 : index
    %c0_7 = arith.constant 0 : index
    %9 = vector.load %arg7[%c0_6, %c0_7] : memref<128x32xf32, #tpu.memory_space<vmem>>, vector<128x32xf32>
    tpu.vector_store %arg7[%c0_6, %c0_7], %8 {strides = array<i32>} : memref<128x32xf32, #tpu.memory_space<vmem>>, vector<128x32xf32>,
    return
  }
  func.func @transform_0(%arg0: i32, %arg1: i32) -> (i32, i32) {
    %c0_i32 = arith.constant 0 : i32
    %c0_i32_0 = arith.constant 0 : i32
    return %arg0, %c0_i32 : i32, i32
  }
  func.func @transform_1(%arg0: i32, %arg1: i32) -> (i32, i32) {
    %c0_i32 = arith.constant 0 : i32
    %c0_i32_0 = arith.constant 0 : i32
    %c0_i32_1 = arith.constant 0 : i32
    return %c0_i32, %c0_i32_0 : i32, i32
  }
  func.func @transform_2(%arg0: i32, %arg1: i32) -> (i32, i32) {
    %c0_i32 = arith.constant 0 : i32
    %c0_i32_0 = arith.constant 0 : i32
    %c0_i32_1 = arith.constant 0 : i32
    return %c0_i32, %c0_i32_0 : i32, i32
  }
  func.func @transform_3(%arg0: i32, %arg1: i32) -> (i32, i32) {
    %c0_i32 = arith.constant 0 : i32
    %c0_i32_0 = arith.constant 0 : i32
    return %c0_i32, %arg1 : i32, i32
  }
  func.func @transform_4(%arg0: i32, %arg1: i32) -> (i32, i32) {
    %c0_i32 = arith.constant 0 : i32
    %c0_i32_0 = arith.constant 0 : i32
    return %c0_i32, %arg1 : i32, i32
  }
  func.func @transform_5(%arg0: i32, %arg1: i32) -> (i32, i32) {
    %c0_i32 = arith.constant 0 : i32
    return %arg0, %arg1 : i32, i32
  }
}

module attributes {stable_mosaic.version = 11 : i64} {
  func.func @_ln_matmul_kernel(%arg0: i32, %arg1: i32, %arg2: memref<24x288xf32, #tpu.memory_space<vmem>>, %arg3: memref<1x288xf32, #tpu.memory_space<vmem>>, %arg4: memref<1x288xf32, #tpu.memory_space<vmem>>, %arg5: memref<288x32xbf16, #tpu.memory_space<vmem>>, %arg6: memref<1x32xf32, #tpu.memory_space<vmem>>, %arg7: memref<24x32xf32, #tpu.memory_space<vmem>>) attributes {dimension_semantics = [#tpu.dimension_semantics<parallel>, #tpu.dimension_semantics<parallel>], iteration_bounds = array<i64: 1, 1>, scalar_prefetch = 0 : i64, scratch_operands = 0 : i64, tpu.core_type = #tpu.core_type<tc>, window_params = [{transform_indices = @transform_0, window_bounds = array<i64: 24, 288>}, {pipeline_mode = #tpu.pipeline_mode<synchronous>, transform_indices = @transform_1, window_bounds = array<i64: 1, 288>}, {pipeline_mode = #tpu.pipeline_mode<synchronous>, transform_indices = @transform_2, window_bounds = array<i64: 1, 288>}, {transform_indices = @transform_3, window_bounds = array<i64: 288, 32>}, {transform_indices = @transform_4, window_bounds = array<i64: 1, 32>}, {transform_indices = @transform_5, window_bounds = array<i64: 24, 32>}]} {
    %c0 = arith.constant 0 : index
    %c0_0 = arith.constant 0 : index
    %0 = vector.load %arg2[%c0, %c0_0] : memref<24x288xf32, #tpu.memory_space<vmem>>, vector<24x288xf32>
    %1 = arith.truncf %0 : vector<24x288xf32> to vector<24x288xbf16>
    %c0_1 = arith.constant 0 : index
    %c0_2 = arith.constant 0 : index
    %2 = vector.load %arg5[%c0_1, %c0_2] : memref<288x32xbf16, #tpu.memory_space<vmem>>, vector<288x32xbf16>
    %cst = arith.constant dense<0.000000e+00> : vector<24x32xf32>
    %3 = tpu.matmul %1, %2, %cst {dimension_numbers = #tpu.dot_dimension_numbers<[1], [0], [0], [1], [0, 0, 1, 1], [], []>} : vector<24x288xbf16>, vector<288x32xbf16>, vector<24x32xf32> -> vector<24x32xf32>
    %c0_3 = arith.constant 0 : index
    %c0_4 = arith.constant 0 : index
    %4 = vector.load %arg6[%c0_3, %c0_4] : memref<1x32xf32, #tpu.memory_space<vmem>>, vector<1x32xf32>
    %5 = vector.broadcast %4 : vector<1x32xf32> to vector<24x32xf32>
    %6 = arith.addf %3, %5 : vector<24x32xf32>
    %cst_5 = arith.constant 0.000000e+00 : f32
    %7 = vector.broadcast %cst_5 : f32 to vector<24x32xf32>
    %8 = arith.maximumf %6, %7 : vector<24x32xf32>
    %c0_6 = arith.constant 0 : index
    %c0_7 = arith.constant 0 : index
    %9 = vector.load %arg7[%c0_6, %c0_7] : memref<24x32xf32, #tpu.memory_space<vmem>>, vector<24x32xf32>
    tpu.vector_store %arg7[%c0_6, %c0_7], %8 {strides = array<i32>} : memref<24x32xf32, #tpu.memory_space<vmem>>, vector<24x32xf32>,
    return
  }
  func.func @transform_0(%arg0: i32, %arg1: i32) -> (i32, i32) {
    %c0_i32 = arith.constant 0 : i32
    %c0_i32_0 = arith.constant 0 : i32
    return %arg0, %c0_i32 : i32, i32
  }
  func.func @transform_1(%arg0: i32, %arg1: i32) -> (i32, i32) {
    %c0_i32 = arith.constant 0 : i32
    %c0_i32_0 = arith.constant 0 : i32
    %c0_i32_1 = arith.constant 0 : i32
    return %c0_i32, %c0_i32_0 : i32, i32
  }
  func.func @transform_2(%arg0: i32, %arg1: i32) -> (i32, i32) {
    %c0_i32 = arith.constant 0 : i32
    %c0_i32_0 = arith.constant 0 : i32
    %c0_i32_1 = arith.constant 0 : i32
    return %c0_i32, %c0_i32_0 : i32, i32
  }
  func.func @transform_3(%arg0: i32, %arg1: i32) -> (i32, i32) {
    %c0_i32 = arith.constant 0 : i32
    %c0_i32_0 = arith.constant 0 : i32
    return %c0_i32, %arg1 : i32, i32
  }
  func.func @transform_4(%arg0: i32, %arg1: i32) -> (i32, i32) {
    %c0_i32 = arith.constant 0 : i32
    %c0_i32_0 = arith.constant 0 : i32
    return %c0_i32, %arg1 : i32, i32
  }
  func.func @transform_5(%arg0: i32, %arg1: i32) -> (i32, i32) {
    %c0_i32 = arith.constant 0 : i32
    return %arg0, %arg1 : i32, i32
  }
}

module attributes {stable_mosaic.version = 11 : i64} {
  func.func @_ln_matmul_kernel(%arg0: i32, %arg1: i32, %arg2: memref<8x96xf32, #tpu.memory_space<vmem>>, %arg3: memref<1x96xf32, #tpu.memory_space<vmem>>, %arg4: memref<1x96xf32, #tpu.memory_space<vmem>>, %arg5: memref<96x32xbf16, #tpu.memory_space<vmem>>, %arg6: memref<1x32xf32, #tpu.memory_space<vmem>>, %arg7: memref<8x32xf32, #tpu.memory_space<vmem>>) attributes {dimension_semantics = [#tpu.dimension_semantics<parallel>, #tpu.dimension_semantics<parallel>], iteration_bounds = array<i64: 1, 1>, scalar_prefetch = 0 : i64, scratch_operands = 0 : i64, tpu.core_type = #tpu.core_type<tc>, window_params = [{transform_indices = @transform_0, window_bounds = array<i64: 8, 96>}, {pipeline_mode = #tpu.pipeline_mode<synchronous>, transform_indices = @transform_1, window_bounds = array<i64: 1, 96>}, {pipeline_mode = #tpu.pipeline_mode<synchronous>, transform_indices = @transform_2, window_bounds = array<i64: 1, 96>}, {transform_indices = @transform_3, window_bounds = array<i64: 96, 32>}, {transform_indices = @transform_4, window_bounds = array<i64: 1, 32>}, {transform_indices = @transform_5, window_bounds = array<i64: 8, 32>}]} {
    %c0 = arith.constant 0 : index
    %c0_0 = arith.constant 0 : index
    %0 = vector.load %arg2[%c0, %c0_0] : memref<8x96xf32, #tpu.memory_space<vmem>>, vector<8x96xf32>
    %1 = arith.truncf %0 : vector<8x96xf32> to vector<8x96xbf16>
    %c0_1 = arith.constant 0 : index
    %c0_2 = arith.constant 0 : index
    %2 = vector.load %arg5[%c0_1, %c0_2] : memref<96x32xbf16, #tpu.memory_space<vmem>>, vector<96x32xbf16>
    %cst = arith.constant dense<0.000000e+00> : vector<8x32xf32>
    %3 = tpu.matmul %1, %2, %cst {dimension_numbers = #tpu.dot_dimension_numbers<[1], [0], [0], [1], [0, 0, 1, 1], [], []>} : vector<8x96xbf16>, vector<96x32xbf16>, vector<8x32xf32> -> vector<8x32xf32>
    %c0_3 = arith.constant 0 : index
    %c0_4 = arith.constant 0 : index
    %4 = vector.load %arg6[%c0_3, %c0_4] : memref<1x32xf32, #tpu.memory_space<vmem>>, vector<1x32xf32>
    %5 = vector.broadcast %4 : vector<1x32xf32> to vector<8x32xf32>
    %6 = arith.addf %3, %5 : vector<8x32xf32>
    %c0_5 = arith.constant 0 : index
    %c0_6 = arith.constant 0 : index
    %7 = vector.load %arg7[%c0_5, %c0_6] : memref<8x32xf32, #tpu.memory_space<vmem>>, vector<8x32xf32>
    tpu.vector_store %arg7[%c0_5, %c0_6], %6 {strides = array<i32>} : memref<8x32xf32, #tpu.memory_space<vmem>>, vector<8x32xf32>,
    return
  }
  func.func @transform_0(%arg0: i32, %arg1: i32) -> (i32, i32) {
    %c0_i32 = arith.constant 0 : i32
    %c0_i32_0 = arith.constant 0 : i32
    return %arg0, %c0_i32 : i32, i32
  }
  func.func @transform_1(%arg0: i32, %arg1: i32) -> (i32, i32) {
    %c0_i32 = arith.constant 0 : i32
    %c0_i32_0 = arith.constant 0 : i32
    %c0_i32_1 = arith.constant 0 : i32
    return %c0_i32, %c0_i32_0 : i32, i32
  }
  func.func @transform_2(%arg0: i32, %arg1: i32) -> (i32, i32) {
    %c0_i32 = arith.constant 0 : i32
    %c0_i32_0 = arith.constant 0 : i32
    %c0_i32_1 = arith.constant 0 : i32
    return %c0_i32, %c0_i32_0 : i32, i32
  }
  func.func @transform_3(%arg0: i32, %arg1: i32) -> (i32, i32) {
    %c0_i32 = arith.constant 0 : i32
    %c0_i32_0 = arith.constant 0 : i32
    return %c0_i32, %arg1 : i32, i32
  }
  func.func @transform_4(%arg0: i32, %arg1: i32) -> (i32, i32) {
    %c0_i32 = arith.constant 0 : i32
    %c0_i32_0 = arith.constant 0 : i32
    return %c0_i32, %arg1 : i32, i32
  }
  func.func @transform_5(%arg0: i32, %arg1: i32) -> (i32, i32) {
    %c0_i32 = arith.constant 0 : i32
    return %arg0, %arg1 : i32, i32
  }
}

module attributes {stable_mosaic.version = 11 : i64} {
  func.func @_ffn_kernel(%arg0: i32, %arg1: memref<8x32xf32, #tpu.memory_space<vmem>>, %arg2: memref<1x32xf32, #tpu.memory_space<vmem>>, %arg3: memref<1x32xf32, #tpu.memory_space<vmem>>, %arg4: memref<32x128xbf16, #tpu.memory_space<vmem>>, %arg5: memref<1x128xf32, #tpu.memory_space<vmem>>, %arg6: memref<128x32xbf16, #tpu.memory_space<vmem>>, %arg7: memref<1x32xf32, #tpu.memory_space<vmem>>, %arg8: memref<1x32xf32, #tpu.memory_space<vmem>>, %arg9: memref<1x32xf32, #tpu.memory_space<vmem>>, %arg10: memref<8x32xf32, #tpu.memory_space<vmem>>) attributes {dimension_semantics = [#tpu.dimension_semantics<parallel>], iteration_bounds = array<i64: 1>, scalar_prefetch = 0 : i64, scratch_operands = 0 : i64, tpu.core_type = #tpu.core_type<tc>, window_params = [{transform_indices = @transform_0, window_bounds = array<i64: 8, 32>}, {pipeline_mode = #tpu.pipeline_mode<synchronous>, transform_indices = @transform_1, window_bounds = array<i64: 1, 32>}, {pipeline_mode = #tpu.pipeline_mode<synchronous>, transform_indices = @transform_2, window_bounds = array<i64: 1, 32>}, {pipeline_mode = #tpu.pipeline_mode<synchronous>, transform_indices = @transform_3, window_bounds = array<i64: 32, 128>}, {pipeline_mode = #tpu.pipeline_mode<synchronous>, transform_indices = @transform_4, window_bounds = array<i64: 1, 128>}, {pipeline_mode = #tpu.pipeline_mode<synchronous>, transform_indices = @transform_5, window_bounds = array<i64: 128, 32>}, {pipeline_mode = #tpu.pipeline_mode<synchronous>, transform_indices = @transform_6, window_bounds = array<i64: 1, 32>}, {pipeline_mode = #tpu.pipeline_mode<synchronous>, transform_indices = @transform_7, window_bounds = array<i64: 1, 32>}, {pipeline_mode = #tpu.pipeline_mode<synchronous>, transform_indices = @transform_8, window_bounds = array<i64: 1, 32>}, {transform_indices = @transform_9, window_bounds = array<i64: 8, 32>}]} {
    %c0 = arith.constant 0 : index
    %c0_0 = arith.constant 0 : index
    %0 = vector.load %arg1[%c0, %c0_0] : memref<8x32xf32, #tpu.memory_space<vmem>>, vector<8x32xf32>
    %cst = arith.constant dense<0.000000e+00> : vector<8xf32>
    %1 = vector.multi_reduction <add>, %0, %cst [1] : vector<8x32xf32> to vector<8xf32>
    %2 = vector.shape_cast %1 : vector<8xf32> to vector<8x1xf32>
    %cst_1 = arith.constant 3.200000e+01 : f32
    %3 = vector.broadcast %cst_1 : f32 to vector<8x1xf32>
    %4 = arith.divf %2, %3 : vector<8x1xf32>
    %5 = vector.broadcast %4 : vector<8x1xf32> to vector<8x32xf32>
    %6 = arith.subf %0, %5 : vector<8x32xf32>
    %7 = arith.mulf %6, %6 : vector<8x32xf32>
    %cst_2 = arith.constant dense<0.000000e+00> : vector<8xf32>
    %8 = vector.multi_reduction <add>, %7, %cst_2 [1] : vector<8x32xf32> to vector<8xf32>
    %9 = vector.shape_cast %8 : vector<8xf32> to vector<8x1xf32>
    %cst_3 = arith.constant 3.200000e+01 : f32
    %10 = vector.broadcast %cst_3 : f32 to vector<8x1xf32>
    %11 = arith.divf %9, %10 : vector<8x1xf32>
    %cst_4 = arith.constant 9.99999974E-6 : f32
    %12 = vector.broadcast %cst_4 : f32 to vector<8x1xf32>
    %13 = arith.addf %11, %12 : vector<8x1xf32>
    %14 = math.rsqrt %13 : vector<8x1xf32>
    %15 = vector.broadcast %14 : vector<8x1xf32> to vector<8x32xf32>
    %16 = arith.mulf %6, %15 : vector<8x32xf32>
    %c0_5 = arith.constant 0 : index
    %c0_6 = arith.constant 0 : index
    %17 = vector.load %arg2[%c0_5, %c0_6] : memref<1x32xf32, #tpu.memory_space<vmem>>, vector<1x32xf32>
    %18 = vector.broadcast %17 : vector<1x32xf32> to vector<8x32xf32>
    %19 = arith.mulf %16, %18 : vector<8x32xf32>
    %c0_7 = arith.constant 0 : index
    %c0_8 = arith.constant 0 : index
    %20 = vector.load %arg3[%c0_7, %c0_8] : memref<1x32xf32, #tpu.memory_space<vmem>>, vector<1x32xf32>
    %21 = vector.broadcast %20 : vector<1x32xf32> to vector<8x32xf32>
    %22 = arith.addf %19, %21 : vector<8x32xf32>
    %23 = arith.truncf %22 : vector<8x32xf32> to vector<8x32xbf16>
    %c0_9 = arith.constant 0 : index
    %c0_10 = arith.constant 0 : index
    %24 = vector.load %arg4[%c0_9, %c0_10] : memref<32x128xbf16, #tpu.memory_space<vmem>>, vector<32x128xbf16>
    %cst_11 = arith.constant dense<0.000000e+00> : vector<8x128xf32>
    %25 = tpu.matmul %23, %24, %cst_11 {dimension_numbers = #tpu.dot_dimension_numbers<[1], [0], [0], [1], [0, 0, 1, 1], [], []>} : vector<8x32xbf16>, vector<32x128xbf16>, vector<8x128xf32> -> vector<8x128xf32>
    %c0_12 = arith.constant 0 : index
    %c0_13 = arith.constant 0 : index
    %26 = vector.load %arg5[%c0_12, %c0_13] : memref<1x128xf32, #tpu.memory_space<vmem>>, vector<1x128xf32>
    %27 = vector.broadcast %26 : vector<1x128xf32> to vector<8x128xf32>
    %28 = arith.addf %25, %27 : vector<8x128xf32>
    %cst_14 = arith.constant 0.000000e+00 : f32
    %29 = vector.broadcast %cst_14 : f32 to vector<8x128xf32>
    %30 = arith.subf %29, %28 : vector<8x128xf32>
    %31 = math.exp %30 : vector<8x128xf32>
    %cst_15 = arith.constant 1.000000e+00 : f32
    %32 = vector.broadcast %cst_15 : f32 to vector<8x128xf32>
    %33 = arith.addf %32, %31 : vector<8x128xf32>
    %34 = tpu.reciprocal %33 {approx = true} : vector<8x128xf32> -> vector<8x128xf32>
    %35 = arith.mulf %28, %34 : vector<8x128xf32>
    %36 = arith.truncf %35 : vector<8x128xf32> to vector<8x128xbf16>
    %c0_16 = arith.constant 0 : index
    %c0_17 = arith.constant 0 : index
    %37 = vector.load %arg6[%c0_16, %c0_17] : memref<128x32xbf16, #tpu.memory_space<vmem>>, vector<128x32xbf16>
    %cst_18 = arith.constant dense<0.000000e+00> : vector<8x32xf32>
    %38 = tpu.matmul %36, %37, %cst_18 {dimension_numbers = #tpu.dot_dimension_numbers<[1], [0], [0], [1], [0, 0, 1, 1], [], []>} : vector<8x128xbf16>, vector<128x32xbf16>, vector<8x32xf32> -> vector<8x32xf32>
    %c0_19 = arith.constant 0 : index
    %c0_20 = arith.constant 0 : index
    %39 = vector.load %arg7[%c0_19, %c0_20] : memref<1x32xf32, #tpu.memory_space<vmem>>, vector<1x32xf32>
    %40 = vector.broadcast %39 : vector<1x32xf32> to vector<8x32xf32>
    %41 = arith.addf %38, %40 : vector<8x32xf32>
    %cst_21 = arith.constant 5.000000e-01 : f32
    %42 = vector.broadcast %cst_21 : f32 to vector<8x32xf32>
    %43 = arith.mulf %42, %41 : vector<8x32xf32>
    %44 = arith.addf %0, %43 : vector<8x32xf32>
    %c0_22 = arith.constant 0 : index
    %c0_23 = arith.constant 0 : index
    %45 = vector.load %arg10[%c0_22, %c0_23] : memref<8x32xf32, #tpu.memory_space<vmem>>, vector<8x32xf32>
    tpu.vector_store %arg10[%c0_22, %c0_23], %44 {strides = array<i32>} : memref<8x32xf32, #tpu.memory_space<vmem>>, vector<8x32xf32>,
    return
  }
  func.func @transform_0(%arg0: i32) -> (i32, i32) {
    %c0_i32 = arith.constant 0 : i32
    %c0_i32_0 = arith.constant 0 : i32
    return %arg0, %c0_i32 : i32, i32
  }
  func.func @transform_1(%arg0: i32) -> (i32, i32) {
    %c0_i32 = arith.constant 0 : i32
    %c0_i32_0 = arith.constant 0 : i32
    %c0_i32_1 = arith.constant 0 : i32
    return %c0_i32, %c0_i32_0 : i32, i32
  }
  func.func @transform_2(%arg0: i32) -> (i32, i32) {
    %c0_i32 = arith.constant 0 : i32
    %c0_i32_0 = arith.constant 0 : i32
    %c0_i32_1 = arith.constant 0 : i32
    return %c0_i32, %c0_i32_0 : i32, i32
  }
  func.func @transform_3(%arg0: i32) -> (i32, i32) {
    %c0_i32 = arith.constant 0 : i32
    %c0_i32_0 = arith.constant 0 : i32
    %c0_i32_1 = arith.constant 0 : i32
    return %c0_i32, %c0_i32_0 : i32, i32
  }
  func.func @transform_4(%arg0: i32) -> (i32, i32) {
    %c0_i32 = arith.constant 0 : i32
    %c0_i32_0 = arith.constant 0 : i32
    %c0_i32_1 = arith.constant 0 : i32
    return %c0_i32, %c0_i32_0 : i32, i32
  }
  func.func @transform_5(%arg0: i32) -> (i32, i32) {
    %c0_i32 = arith.constant 0 : i32
    %c0_i32_0 = arith.constant 0 : i32
    %c0_i32_1 = arith.constant 0 : i32
    return %c0_i32, %c0_i32_0 : i32, i32
  }
  func.func @transform_6(%arg0: i32) -> (i32, i32) {
    %c0_i32 = arith.constant 0 : i32
    %c0_i32_0 = arith.constant 0 : i32
    %c0_i32_1 = arith.constant 0 : i32
    return %c0_i32, %c0_i32_0 : i32, i32
  }
  func.func @transform_7(%arg0: i32) -> (i32, i32) {
    %c0_i32 = arith.constant 0 : i32
    %c0_i32_0 = arith.constant 0 : i32
    %c0_i32_1 = arith.constant 0 : i32
    return %c0_i32, %c0_i32_0 : i32, i32
  }
  func.func @transform_8(%arg0: i32) -> (i32, i32) {
    %c0_i32 = arith.constant 0 : i32
    %c0_i32_0 = arith.constant 0 : i32
    %c0_i32_1 = arith.constant 0 : i32
    return %c0_i32, %c0_i32_0 : i32, i32
  }
  func.func @transform_9(%arg0: i32) -> (i32, i32) {
    %c0_i32 = arith.constant 0 : i32
    %c0_i32_0 = arith.constant 0 : i32
    return %arg0, %c0_i32 : i32, i32
  }
}

module attributes {stable_mosaic.version = 11 : i64} {
  func.func @_proj_heads_kernel(%arg0: i32, %arg1: memref<1x4x32xf32, #tpu.memory_space<vmem>>, %arg2: memref<1x32xf32, #tpu.memory_space<vmem>>, %arg3: memref<1x32xf32, #tpu.memory_space<vmem>>, %arg4: memref<32x96xbf16, #tpu.memory_space<vmem>>, %arg5: memref<1x96xf32, #tpu.memory_space<vmem>>, %arg6: memref<1x4x4x8xbf16, #tpu.memory_space<vmem>>, %arg7: memref<1x4x4x8xbf16, #tpu.memory_space<vmem>>, %arg8: memref<1x4x4x8xbf16, #tpu.memory_space<vmem>>) attributes {dimension_semantics = [#tpu.dimension_semantics<parallel>], iteration_bounds = array<i64: 2>, scalar_prefetch = 0 : i64, scratch_operands = 0 : i64, tpu.core_type = #tpu.core_type<tc>, window_params = [{transform_indices = @transform_0, window_bounds = array<i64: 1, 4, 32>}, {pipeline_mode = #tpu.pipeline_mode<synchronous>, transform_indices = @transform_1, window_bounds = array<i64: 1, 32>}, {pipeline_mode = #tpu.pipeline_mode<synchronous>, transform_indices = @transform_2, window_bounds = array<i64: 1, 32>}, {pipeline_mode = #tpu.pipeline_mode<synchronous>, transform_indices = @transform_3, window_bounds = array<i64: 32, 96>}, {pipeline_mode = #tpu.pipeline_mode<synchronous>, transform_indices = @transform_4, window_bounds = array<i64: 1, 96>}, {transform_indices = @transform_5, window_bounds = array<i64: 1, 4, 4, 8>}, {transform_indices = @transform_6, window_bounds = array<i64: 1, 4, 4, 8>}, {transform_indices = @transform_7, window_bounds = array<i64: 1, 4, 4, 8>}]} {
    %c0 = arith.constant 0 : index
    %c0_0 = arith.constant 0 : index
    %c0_1 = arith.constant 0 : index
    %0 = vector.load %arg1[%c0, %c0_0, %c0_1] : memref<1x4x32xf32, #tpu.memory_space<vmem>>, vector<1x4x32xf32>
    %1 = vector.shape_cast %0 : vector<1x4x32xf32> to vector<4x32xf32>
    %cst = arith.constant dense<0.000000e+00> : vector<4xf32>
    %2 = vector.multi_reduction <add>, %1, %cst [1] : vector<4x32xf32> to vector<4xf32>
    %3 = vector.shape_cast %2 : vector<4xf32> to vector<4x1xf32>
    %cst_2 = arith.constant 3.200000e+01 : f32
    %4 = vector.broadcast %cst_2 : f32 to vector<4x1xf32>
    %5 = arith.divf %3, %4 : vector<4x1xf32>
    %6 = vector.broadcast %5 : vector<4x1xf32> to vector<4x32xf32>
    %7 = arith.subf %1, %6 : vector<4x32xf32>
    %8 = arith.mulf %7, %7 : vector<4x32xf32>
    %cst_3 = arith.constant dense<0.000000e+00> : vector<4xf32>
    %9 = vector.multi_reduction <add>, %8, %cst_3 [1] : vector<4x32xf32> to vector<4xf32>
    %10 = vector.shape_cast %9 : vector<4xf32> to vector<4x1xf32>
    %cst_4 = arith.constant 3.200000e+01 : f32
    %11 = vector.broadcast %cst_4 : f32 to vector<4x1xf32>
    %12 = arith.divf %10, %11 : vector<4x1xf32>
    %cst_5 = arith.constant 9.99999974E-6 : f32
    %13 = vector.broadcast %cst_5 : f32 to vector<4x1xf32>
    %14 = arith.addf %12, %13 : vector<4x1xf32>
    %15 = math.rsqrt %14 : vector<4x1xf32>
    %16 = vector.broadcast %15 : vector<4x1xf32> to vector<4x32xf32>
    %17 = arith.mulf %7, %16 : vector<4x32xf32>
    %c0_6 = arith.constant 0 : index
    %c0_7 = arith.constant 0 : index
    %18 = vector.load %arg2[%c0_6, %c0_7] : memref<1x32xf32, #tpu.memory_space<vmem>>, vector<1x32xf32>
    %19 = vector.broadcast %18 : vector<1x32xf32> to vector<4x32xf32>
    %20 = arith.mulf %17, %19 : vector<4x32xf32>
    %c0_8 = arith.constant 0 : index
    %c0_9 = arith.constant 0 : index
    %21 = vector.load %arg3[%c0_8, %c0_9] : memref<1x32xf32, #tpu.memory_space<vmem>>, vector<1x32xf32>
    %22 = vector.broadcast %21 : vector<1x32xf32> to vector<4x32xf32>
    %23 = arith.addf %20, %22 : vector<4x32xf32>
    %24 = arith.truncf %23 : vector<4x32xf32> to vector<4x32xbf16>
    %c0_10 = arith.constant 0 : index
    %c0_11 = arith.constant 0 : index
    %25 = vector.load %arg4[%c0_10, %c0_11] : memref<32x96xbf16, #tpu.memory_space<vmem>>, vector<32x96xbf16>
    %cst_12 = arith.constant dense<0.000000e+00> : vector<4x96xf32>
    %26 = tpu.matmul %24, %25, %cst_12 {dimension_numbers = #tpu.dot_dimension_numbers<[1], [0], [0], [1], [0, 0, 1, 1], [], []>} : vector<4x32xbf16>, vector<32x96xbf16>, vector<4x96xf32> -> vector<4x96xf32>
    %c0_13 = arith.constant 0 : index
    %c0_14 = arith.constant 0 : index
    %27 = vector.load %arg5[%c0_13, %c0_14] : memref<1x96xf32, #tpu.memory_space<vmem>>, vector<1x96xf32>
    %28 = vector.broadcast %27 : vector<1x96xf32> to vector<4x96xf32>
    %29 = arith.addf %26, %28 : vector<4x96xf32>
    %30 = vector.extract_strided_slice %29 {offsets = [0, 0], sizes = [4, 8], strides = [1, 1]} : vector<4x96xf32> to vector<4x8xf32>
    %31 = arith.truncf %30 : vector<4x8xf32> to vector<4x8xbf16>
    %c0_15 = arith.constant 0 : index
    %c0_16 = arith.constant 0 : index
    %c0_17 = arith.constant 0 : index
    %c0_18 = arith.constant 0 : index
    %32 = vector.load %arg6[%c0_15, %c0_16, %c0_17, %c0_18] : memref<1x4x4x8xbf16, #tpu.memory_space<vmem>>, vector<1x1x4x8xbf16>
    %33 = vector.shape_cast %32 : vector<1x1x4x8xbf16> to vector<4x8xbf16>
    %34 = vector.shape_cast %31 : vector<4x8xbf16> to vector<1x1x4x8xbf16>
    tpu.vector_store %arg6[%c0_15, %c0_16, %c0_17, %c0_18], %34 {strides = array<i32>} : memref<1x4x4x8xbf16, #tpu.memory_space<vmem>>, vector<1x1x4x8xbf16>,
    %35 = vector.extract_strided_slice %29 {offsets = [0, 8], sizes = [4, 8], strides = [1, 1]} : vector<4x96xf32> to vector<4x8xf32>
    %36 = arith.truncf %35 : vector<4x8xf32> to vector<4x8xbf16>
    %c0_19 = arith.constant 0 : index
    %c1 = arith.constant 1 : index
    %c0_20 = arith.constant 0 : index
    %c0_21 = arith.constant 0 : index
    %37 = vector.load %arg6[%c0_19, %c1, %c0_20, %c0_21] : memref<1x4x4x8xbf16, #tpu.memory_space<vmem>>, vector<1x1x4x8xbf16>
    %38 = vector.shape_cast %37 : vector<1x1x4x8xbf16> to vector<4x8xbf16>
    %39 = vector.shape_cast %36 : vector<4x8xbf16> to vector<1x1x4x8xbf16>
    tpu.vector_store %arg6[%c0_19, %c1, %c0_20, %c0_21], %39 {strides = array<i32>} : memref<1x4x4x8xbf16, #tpu.memory_space<vmem>>, vector<1x1x4x8xbf16>,
    %40 = vector.extract_strided_slice %29 {offsets = [0, 16], sizes = [4, 8], strides = [1, 1]} : vector<4x96xf32> to vector<4x8xf32>
    %41 = arith.truncf %40 : vector<4x8xf32> to vector<4x8xbf16>
    %c0_22 = arith.constant 0 : index
    %c2 = arith.constant 2 : index
    %c0_23 = arith.constant 0 : index
    %c0_24 = arith.constant 0 : index
    %42 = vector.load %arg6[%c0_22, %c2, %c0_23, %c0_24] : memref<1x4x4x8xbf16, #tpu.memory_space<vmem>>, vector<1x1x4x8xbf16>
    %43 = vector.shape_cast %42 : vector<1x1x4x8xbf16> to vector<4x8xbf16>
    %44 = vector.shape_cast %41 : vector<4x8xbf16> to vector<1x1x4x8xbf16>
    tpu.vector_store %arg6[%c0_22, %c2, %c0_23, %c0_24], %44 {strides = array<i32>} : memref<1x4x4x8xbf16, #tpu.memory_space<vmem>>, vector<1x1x4x8xbf16>,
    %45 = vector.extract_strided_slice %29 {offsets = [0, 24], sizes = [4, 8], strides = [1, 1]} : vector<4x96xf32> to vector<4x8xf32>
    %46 = arith.truncf %45 : vector<4x8xf32> to vector<4x8xbf16>
    %c0_25 = arith.constant 0 : index
    %c3 = arith.constant 3 : index
    %c0_26 = arith.constant 0 : index
    %c0_27 = arith.constant 0 : index
    %47 = vector.load %arg6[%c0_25, %c3, %c0_26, %c0_27] : memref<1x4x4x8xbf16, #tpu.memory_space<vmem>>, vector<1x1x4x8xbf16>
    %48 = vector.shape_cast %47 : vector<1x1x4x8xbf16> to vector<4x8xbf16>
    %49 = vector.shape_cast %46 : vector<4x8xbf16> to vector<1x1x4x8xbf16>
    tpu.vector_store %arg6[%c0_25, %c3, %c0_26, %c0_27], %49 {strides = array<i32>} : memref<1x4x4x8xbf16, #tpu.memory_space<vmem>>, vector<1x1x4x8xbf16>,
    %50 = vector.extract_strided_slice %29 {offsets = [0, 32], sizes = [4, 8], strides = [1, 1]} : vector<4x96xf32> to vector<4x8xf32>
    %51 = arith.truncf %50 : vector<4x8xf32> to vector<4x8xbf16>
    %c0_28 = arith.constant 0 : index
    %c0_29 = arith.constant 0 : index
    %c0_30 = arith.constant 0 : index
    %c0_31 = arith.constant 0 : index
    %52 = vector.load %arg7[%c0_28, %c0_29, %c0_30, %c0_31] : memref<1x4x4x8xbf16, #tpu.memory_space<vmem>>, vector<1x1x4x8xbf16>
    %53 = vector.shape_cast %52 : vector<1x1x4x8xbf16> to vector<4x8xbf16>
    %54 = vector.shape_cast %51 : vector<4x8xbf16> to vector<1x1x4x8xbf16>
    tpu.vector_store %arg7[%c0_28, %c0_29, %c0_30, %c0_31], %54 {strides = array<i32>} : memref<1x4x4x8xbf16, #tpu.memory_space<vmem>>, vector<1x1x4x8xbf16>,
    %55 = vector.extract_strided_slice %29 {offsets = [0, 40], sizes = [4, 8], strides = [1, 1]} : vector<4x96xf32> to vector<4x8xf32>
    %56 = arith.truncf %55 : vector<4x8xf32> to vector<4x8xbf16>
    %c0_32 = arith.constant 0 : index
    %c1_33 = arith.constant 1 : index
    %c0_34 = arith.constant 0 : index
    %c0_35 = arith.constant 0 : index
    %57 = vector.load %arg7[%c0_32, %c1_33, %c0_34, %c0_35] : memref<1x4x4x8xbf16, #tpu.memory_space<vmem>>, vector<1x1x4x8xbf16>
    %58 = vector.shape_cast %57 : vector<1x1x4x8xbf16> to vector<4x8xbf16>
    %59 = vector.shape_cast %56 : vector<4x8xbf16> to vector<1x1x4x8xbf16>
    tpu.vector_store %arg7[%c0_32, %c1_33, %c0_34, %c0_35], %59 {strides = array<i32>} : memref<1x4x4x8xbf16, #tpu.memory_space<vmem>>, vector<1x1x4x8xbf16>,
    %60 = vector.extract_strided_slice %29 {offsets = [0, 48], sizes = [4, 8], strides = [1, 1]} : vector<4x96xf32> to vector<4x8xf32>
    %61 = arith.truncf %60 : vector<4x8xf32> to vector<4x8xbf16>
    %c0_36 = arith.constant 0 : index
    %c2_37 = arith.constant 2 : index
    %c0_38 = arith.constant 0 : index
    %c0_39 = arith.constant 0 : index
    %62 = vector.load %arg7[%c0_36, %c2_37, %c0_38, %c0_39] : memref<1x4x4x8xbf16, #tpu.memory_space<vmem>>, vector<1x1x4x8xbf16>
    %63 = vector.shape_cast %62 : vector<1x1x4x8xbf16> to vector<4x8xbf16>
    %64 = vector.shape_cast %61 : vector<4x8xbf16> to vector<1x1x4x8xbf16>
    tpu.vector_store %arg7[%c0_36, %c2_37, %c0_38, %c0_39], %64 {strides = array<i32>} : memref<1x4x4x8xbf16, #tpu.memory_space<vmem>>, vector<1x1x4x8xbf16>,
    %65 = vector.extract_strided_slice %29 {offsets = [0, 56], sizes = [4, 8], strides = [1, 1]} : vector<4x96xf32> to vector<4x8xf32>
    %66 = arith.truncf %65 : vector<4x8xf32> to vector<4x8xbf16>
    %c0_40 = arith.constant 0 : index
    %c3_41 = arith.constant 3 : index
    %c0_42 = arith.constant 0 : index
    %c0_43 = arith.constant 0 : index
    %67 = vector.load %arg7[%c0_40, %c3_41, %c0_42, %c0_43] : memref<1x4x4x8xbf16, #tpu.memory_space<vmem>>, vector<1x1x4x8xbf16>
    %68 = vector.shape_cast %67 : vector<1x1x4x8xbf16> to vector<4x8xbf16>
    %69 = vector.shape_cast %66 : vector<4x8xbf16> to vector<1x1x4x8xbf16>
    tpu.vector_store %arg7[%c0_40, %c3_41, %c0_42, %c0_43], %69 {strides = array<i32>} : memref<1x4x4x8xbf16, #tpu.memory_space<vmem>>, vector<1x1x4x8xbf16>,
    %70 = vector.extract_strided_slice %29 {offsets = [0, 64], sizes = [4, 8], strides = [1, 1]} : vector<4x96xf32> to vector<4x8xf32>
    %71 = arith.truncf %70 : vector<4x8xf32> to vector<4x8xbf16>
    %c0_44 = arith.constant 0 : index
    %c0_45 = arith.constant 0 : index
    %c0_46 = arith.constant 0 : index
    %c0_47 = arith.constant 0 : index
    %72 = vector.load %arg8[%c0_44, %c0_45, %c0_46, %c0_47] : memref<1x4x4x8xbf16, #tpu.memory_space<vmem>>, vector<1x1x4x8xbf16>
    %73 = vector.shape_cast %72 : vector<1x1x4x8xbf16> to vector<4x8xbf16>
    %74 = vector.shape_cast %71 : vector<4x8xbf16> to vector<1x1x4x8xbf16>
    tpu.vector_store %arg8[%c0_44, %c0_45, %c0_46, %c0_47], %74 {strides = array<i32>} : memref<1x4x4x8xbf16, #tpu.memory_space<vmem>>, vector<1x1x4x8xbf16>,
    %75 = vector.extract_strided_slice %29 {offsets = [0, 72], sizes = [4, 8], strides = [1, 1]} : vector<4x96xf32> to vector<4x8xf32>
    %76 = arith.truncf %75 : vector<4x8xf32> to vector<4x8xbf16>
    %c0_48 = arith.constant 0 : index
    %c1_49 = arith.constant 1 : index
    %c0_50 = arith.constant 0 : index
    %c0_51 = arith.constant 0 : index
    %77 = vector.load %arg8[%c0_48, %c1_49, %c0_50, %c0_51] : memref<1x4x4x8xbf16, #tpu.memory_space<vmem>>, vector<1x1x4x8xbf16>
    %78 = vector.shape_cast %77 : vector<1x1x4x8xbf16> to vector<4x8xbf16>
    %79 = vector.shape_cast %76 : vector<4x8xbf16> to vector<1x1x4x8xbf16>
    tpu.vector_store %arg8[%c0_48, %c1_49, %c0_50, %c0_51], %79 {strides = array<i32>} : memref<1x4x4x8xbf16, #tpu.memory_space<vmem>>, vector<1x1x4x8xbf16>,
    %80 = vector.extract_strided_slice %29 {offsets = [0, 80], sizes = [4, 8], strides = [1, 1]} : vector<4x96xf32> to vector<4x8xf32>
    %81 = arith.truncf %80 : vector<4x8xf32> to vector<4x8xbf16>
    %c0_52 = arith.constant 0 : index
    %c2_53 = arith.constant 2 : index
    %c0_54 = arith.constant 0 : index
    %c0_55 = arith.constant 0 : index
    %82 = vector.load %arg8[%c0_52, %c2_53, %c0_54, %c0_55] : memref<1x4x4x8xbf16, #tpu.memory_space<vmem>>, vector<1x1x4x8xbf16>
    %83 = vector.shape_cast %82 : vector<1x1x4x8xbf16> to vector<4x8xbf16>
    %84 = vector.shape_cast %81 : vector<4x8xbf16> to vector<1x1x4x8xbf16>
    tpu.vector_store %arg8[%c0_52, %c2_53, %c0_54, %c0_55], %84 {strides = array<i32>} : memref<1x4x4x8xbf16, #tpu.memory_space<vmem>>, vector<1x1x4x8xbf16>,
    %85 = vector.extract_strided_slice %29 {offsets = [0, 88], sizes = [4, 8], strides = [1, 1]} : vector<4x96xf32> to vector<4x8xf32>
    %86 = arith.truncf %85 : vector<4x8xf32> to vector<4x8xbf16>
    %c0_56 = arith.constant 0 : index
    %c3_57 = arith.constant 3 : index
    %c0_58 = arith.constant 0 : index
    %c0_59 = arith.constant 0 : index
    %87 = vector.load %arg8[%c0_56, %c3_57, %c0_58, %c0_59] : memref<1x4x4x8xbf16, #tpu.memory_space<vmem>>, vector<1x1x4x8xbf16>
    %88 = vector.shape_cast %87 : vector<1x1x4x8xbf16> to vector<4x8xbf16>
    %89 = vector.shape_cast %86 : vector<4x8xbf16> to vector<1x1x4x8xbf16>
    tpu.vector_store %arg8[%c0_56, %c3_57, %c0_58, %c0_59], %89 {strides = array<i32>} : memref<1x4x4x8xbf16, #tpu.memory_space<vmem>>, vector<1x1x4x8xbf16>,
    return
  }
  func.func @transform_0(%arg0: i32) -> (i32, i32, i32) {
    %c0_i32 = arith.constant 0 : i32
    %c0_i32_0 = arith.constant 0 : i32
    %c0_i32_1 = arith.constant 0 : i32
    return %arg0, %c0_i32, %c0_i32_0 : i32, i32, i32
  }
  func.func @transform_1(%arg0: i32) -> (i32, i32) {
    %c0_i32 = arith.constant 0 : i32
    %c0_i32_0 = arith.constant 0 : i32
    %c0_i32_1 = arith.constant 0 : i32
    return %c0_i32, %c0_i32_0 : i32, i32
  }
  func.func @transform_2(%arg0: i32) -> (i32, i32) {
    %c0_i32 = arith.constant 0 : i32
    %c0_i32_0 = arith.constant 0 : i32
    %c0_i32_1 = arith.constant 0 : i32
    return %c0_i32, %c0_i32_0 : i32, i32
  }
  func.func @transform_3(%arg0: i32) -> (i32, i32) {
    %c0_i32 = arith.constant 0 : i32
    %c0_i32_0 = arith.constant 0 : i32
    %c0_i32_1 = arith.constant 0 : i32
    return %c0_i32, %c0_i32_0 : i32, i32
  }
  func.func @transform_4(%arg0: i32) -> (i32, i32) {
    %c0_i32 = arith.constant 0 : i32
    %c0_i32_0 = arith.constant 0 : i32
    %c0_i32_1 = arith.constant 0 : i32
    return %c0_i32, %c0_i32_0 : i32, i32
  }
  func.func @transform_5(%arg0: i32) -> (i32, i32, i32, i32) {
    %c0_i32 = arith.constant 0 : i32
    %c0_i32_0 = arith.constant 0 : i32
    %c0_i32_1 = arith.constant 0 : i32
    %c0_i32_2 = arith.constant 0 : i32
    return %arg0, %c0_i32, %c0_i32_0, %c0_i32_1 : i32, i32, i32, i32
  }
  func.func @transform_6(%arg0: i32) -> (i32, i32, i32, i32) {
    %c0_i32 = arith.constant 0 : i32
    %c0_i32_0 = arith.constant 0 : i32
    %c0_i32_1 = arith.constant 0 : i32
    %c0_i32_2 = arith.constant 0 : i32
    return %arg0, %c0_i32, %c0_i32_0, %c0_i32_1 : i32, i32, i32, i32
  }
  func.func @transform_7(%arg0: i32) -> (i32, i32, i32, i32) {
    %c0_i32 = arith.constant 0 : i32
    %c0_i32_0 = arith.constant 0 : i32
    %c0_i32_1 = arith.constant 0 : i32
    %c0_i32_2 = arith.constant 0 : i32
    return %arg0, %c0_i32, %c0_i32_0, %c0_i32_1 : i32, i32, i32, i32
  }
}

module attributes {stable_mosaic.version = 11 : i64} {
  func.func @_rel_scores_kernel(%arg0: i32, %arg1: memref<1x4x4x8xbf16, #tpu.memory_space<vmem>>, %arg2: memref<4x7x8xbf16, #tpu.memory_space<vmem>>, %arg3: memref<4x8xf32, #tpu.memory_space<vmem>>, %arg4: memref<1x4x4x7xf32, #tpu.memory_space<vmem>>) attributes {dimension_semantics = [#tpu.dimension_semantics<parallel>], iteration_bounds = array<i64: 2>, scalar_prefetch = 0 : i64, scratch_operands = 0 : i64, tpu.core_type = #tpu.core_type<tc>, window_params = [{transform_indices = @transform_0, window_bounds = array<i64: 1, 4, 4, 8>}, {pipeline_mode = #tpu.pipeline_mode<synchronous>, transform_indices = @transform_1, window_bounds = array<i64: 4, 7, 8>}, {pipeline_mode = #tpu.pipeline_mode<synchronous>, transform_indices = @transform_2, window_bounds = array<i64: 4, 8>}, {transform_indices = @transform_3, window_bounds = array<i64: 1, 4, 4, 7>}]} {
    %c0 = arith.constant 0 : index
    %c0_0 = arith.constant 0 : index
    %c0_1 = arith.constant 0 : index
    %c0_2 = arith.constant 0 : index
    %0 = vector.load %arg1[%c0, %c0_0, %c0_1, %c0_2] : memref<1x4x4x8xbf16, #tpu.memory_space<vmem>>, vector<1x4x4x8xbf16>
    %1 = vector.shape_cast %0 : vector<1x4x4x8xbf16> to vector<4x4x8xbf16>
    %2 = arith.extf %1 : vector<4x4x8xbf16> to vector<4x4x8xf32>
    %c0_3 = arith.constant 0 : index
    %c0_4 = arith.constant 0 : index
    %3 = vector.load %arg3[%c0_3, %c0_4] : memref<4x8xf32, #tpu.memory_space<vmem>>, vector<4x8xf32>
    %4 = vector.shape_cast %3 : vector<4x8xf32> to vector<4x1x8xf32>
    %5 = vector.broadcast %4 : vector<4x1x8xf32> to vector<4x4x8xf32>
    %6 = arith.addf %2, %5 : vector<4x4x8xf32>
    %7 = arith.truncf %6 : vector<4x4x8xf32> to vector<4x4x8xbf16>
    %c0_5 = arith.constant 0 : index
    %c0_6 = arith.constant 0 : index
    %c0_7 = arith.constant 0 : index
    %8 = vector.load %arg2[%c0_5, %c0_6, %c0_7] : memref<4x7x8xbf16, #tpu.memory_space<vmem>>, vector<4x7x8xbf16>
    "tpu.trace_start"() <{level = 10 : i32, message = "hqd,hnd->hqn"}> : () -> ()
    %cst = arith.constant dense<0.000000e+00> : vector<4x4x7xf32>
    %9 = tpu.matmul %7, %8, %cst {dimension_numbers = #tpu.dot_dimension_numbers<[2], [2], [1], [1], [0, 0, 0, 1, 1, 1], [0], [0]>} : vector<4x4x8xbf16>, vector<4x7x8xbf16>, vector<4x4x7xf32> -> vector<4x4x7xf32>
    "tpu.trace_stop"() : () -> ()
    %c0_8 = arith.constant 0 : index
    %c0_9 = arith.constant 0 : index
    %c0_10 = arith.constant 0 : index
    %c0_11 = arith.constant 0 : index
    %10 = vector.load %arg4[%c0_8, %c0_9, %c0_10, %c0_11] : memref<1x4x4x7xf32, #tpu.memory_space<vmem>>, vector<1x4x4x7xf32>
    %11 = vector.shape_cast %10 : vector<1x4x4x7xf32> to vector<4x4x7xf32>
    %12 = vector.shape_cast %9 : vector<4x4x7xf32> to vector<1x4x4x7xf32>
    tpu.vector_store %arg4[%c0_8, %c0_9, %c0_10, %c0_11], %12 {strides = array<i32>} : memref<1x4x4x7xf32, #tpu.memory_space<vmem>>, vector<1x4x4x7xf32>,
    return
  }
  func.func @transform_0(%arg0: i32) -> (i32, i32, i32, i32) {
    %c0_i32 = arith.constant 0 : i32
    %c0_i32_0 = arith.constant 0 : i32
    %c0_i32_1 = arith.constant 0 : i32
    %c0_i32_2 = arith.constant 0 : i32
    return %arg0, %c0_i32, %c0_i32_0, %c0_i32_1 : i32, i32, i32, i32
  }
  func.func @transform_1(%arg0: i32) -> (i32, i32, i32) {
    %c0_i32 = arith.constant 0 : i32
    %c0_i32_0 = arith.constant 0 : i32
    %c0_i32_1 = arith.constant 0 : i32
    %c0_i32_2 = arith.constant 0 : i32
    return %c0_i32, %c0_i32_0, %c0_i32_1 : i32, i32, i32
  }
  func.func @transform_2(%arg0: i32) -> (i32, i32) {
    %c0_i32 = arith.constant 0 : i32
    %c0_i32_0 = arith.constant 0 : i32
    %c0_i32_1 = arith.constant 0 : i32
    return %c0_i32, %c0_i32_0 : i32, i32
  }
  func.func @transform_3(%arg0: i32) -> (i32, i32, i32, i32) {
    %c0_i32 = arith.constant 0 : i32
    %c0_i32_0 = arith.constant 0 : i32
    %c0_i32_1 = arith.constant 0 : i32
    %c0_i32_2 = arith.constant 0 : i32
    return %arg0, %c0_i32, %c0_i32_0, %c0_i32_1 : i32, i32, i32, i32
  }
}

module attributes {stable_mosaic.version = 11 : i64} {
  func.func @_proj_heads_kernel(%arg0: i32, %arg1: memref<1x7x32xf32, #tpu.memory_space<vmem>>, %arg2: memref<1x32xf32, #tpu.memory_space<vmem>>, %arg3: memref<1x32xf32, #tpu.memory_space<vmem>>, %arg4: memref<32x32xbf16, #tpu.memory_space<vmem>>, %arg5: memref<1x32xf32, #tpu.memory_space<vmem>>, %arg6: memref<1x4x7x8xbf16, #tpu.memory_space<vmem>>) attributes {dimension_semantics = [#tpu.dimension_semantics<parallel>], iteration_bounds = array<i64: 1>, scalar_prefetch = 0 : i64, scratch_operands = 0 : i64, tpu.core_type = #tpu.core_type<tc>, window_params = [{transform_indices = @transform_0, window_bounds = array<i64: 1, 7, 32>}, {pipeline_mode = #tpu.pipeline_mode<synchronous>, transform_indices = @transform_1, window_bounds = array<i64: 1, 32>}, {pipeline_mode = #tpu.pipeline_mode<synchronous>, transform_indices = @transform_2, window_bounds = array<i64: 1, 32>}, {pipeline_mode = #tpu.pipeline_mode<synchronous>, transform_indices = @transform_3, window_bounds = array<i64: 32, 32>}, {pipeline_mode = #tpu.pipeline_mode<synchronous>, transform_indices = @transform_4, window_bounds = array<i64: 1, 32>}, {transform_indices = @transform_5, window_bounds = array<i64: 1, 4, 7, 8>}]} {
    %c0 = arith.constant 0 : index
    %c0_0 = arith.constant 0 : index
    %c0_1 = arith.constant 0 : index
    %0 = vector.load %arg1[%c0, %c0_0, %c0_1] : memref<1x7x32xf32, #tpu.memory_space<vmem>>, vector<1x7x32xf32>
    %1 = vector.shape_cast %0 : vector<1x7x32xf32> to vector<7x32xf32>
    %2 = arith.truncf %1 : vector<7x32xf32> to vector<7x32xbf16>
    %c0_2 = arith.constant 0 : index
    %c0_3 = arith.constant 0 : index
    %3 = vector.load %arg4[%c0_2, %c0_3] : memref<32x32xbf16, #tpu.memory_space<vmem>>, vector<32x32xbf16>
    %cst = arith.constant dense<0.000000e+00> : vector<7x32xf32>
    %4 = tpu.matmul %2, %3, %cst {dimension_numbers = #tpu.dot_dimension_numbers<[1], [0], [0], [1], [0, 0, 1, 1], [], []>} : vector<7x32xbf16>, vector<32x32xbf16>, vector<7x32xf32> -> vector<7x32xf32>
    %c0_4 = arith.constant 0 : index
    %c0_5 = arith.constant 0 : index
    %5 = vector.load %arg5[%c0_4, %c0_5] : memref<1x32xf32, #tpu.memory_space<vmem>>, vector<1x32xf32>
    %6 = vector.broadcast %5 : vector<1x32xf32> to vector<7x32xf32>
    %7 = arith.addf %4, %6 : vector<7x32xf32>
    %8 = vector.extract_strided_slice %7 {offsets = [0, 0], sizes = [7, 8], strides = [1, 1]} : vector<7x32xf32> to vector<7x8xf32>
    %9 = arith.truncf %8 : vector<7x8xf32> to vector<7x8xbf16>
    %c0_6 = arith.constant 0 : index
    %c0_7 = arith.constant 0 : index
    %c0_8 = arith.constant 0 : index
    %c0_9 = arith.constant 0 : index
    %10 = vector.load %arg6[%c0_6, %c0_7, %c0_8, %c0_9] : memref<1x4x7x8xbf16, #tpu.memory_space<vmem>>, vector<1x1x7x8xbf16>
    %11 = vector.shape_cast %10 : vector<1x1x7x8xbf16> to vector<7x8xbf16>
    %12 = vector.shape_cast %9 : vector<7x8xbf16> to vector<1x1x7x8xbf16>
    tpu.vector_store %arg6[%c0_6, %c0_7, %c0_8, %c0_9], %12 {strides = array<i32>} : memref<1x4x7x8xbf16, #tpu.memory_space<vmem>>, vector<1x1x7x8xbf16>,
    %13 = vector.extract_strided_slice %7 {offsets = [0, 8], sizes = [7, 8], strides = [1, 1]} : vector<7x32xf32> to vector<7x8xf32>
    %14 = arith.truncf %13 : vector<7x8xf32> to vector<7x8xbf16>
    %c0_10 = arith.constant 0 : index
    %c1 = arith.constant 1 : index
    %c0_11 = arith.constant 0 : index
    %c0_12 = arith.constant 0 : index
    %15 = vector.load %arg6[%c0_10, %c1, %c0_11, %c0_12] : memref<1x4x7x8xbf16, #tpu.memory_space<vmem>>, vector<1x1x7x8xbf16>
    %16 = vector.shape_cast %15 : vector<1x1x7x8xbf16> to vector<7x8xbf16>
    %17 = vector.shape_cast %14 : vector<7x8xbf16> to vector<1x1x7x8xbf16>
    tpu.vector_store %arg6[%c0_10, %c1, %c0_11, %c0_12], %17 {strides = array<i32>} : memref<1x4x7x8xbf16, #tpu.memory_space<vmem>>, vector<1x1x7x8xbf16>,
    %18 = vector.extract_strided_slice %7 {offsets = [0, 16], sizes = [7, 8], strides = [1, 1]} : vector<7x32xf32> to vector<7x8xf32>
    %19 = arith.truncf %18 : vector<7x8xf32> to vector<7x8xbf16>
    %c0_13 = arith.constant 0 : index
    %c2 = arith.constant 2 : index
    %c0_14 = arith.constant 0 : index
    %c0_15 = arith.constant 0 : index
    %20 = vector.load %arg6[%c0_13, %c2, %c0_14, %c0_15] : memref<1x4x7x8xbf16, #tpu.memory_space<vmem>>, vector<1x1x7x8xbf16>
    %21 = vector.shape_cast %20 : vector<1x1x7x8xbf16> to vector<7x8xbf16>
    %22 = vector.shape_cast %19 : vector<7x8xbf16> to vector<1x1x7x8xbf16>
    tpu.vector_store %arg6[%c0_13, %c2, %c0_14, %c0_15], %22 {strides = array<i32>} : memref<1x4x7x8xbf16, #tpu.memory_space<vmem>>, vector<1x1x7x8xbf16>,
    %23 = vector.extract_strided_slice %7 {offsets = [0, 24], sizes = [7, 8], strides = [1, 1]} : vector<7x32xf32> to vector<7x8xf32>
    %24 = arith.truncf %23 : vector<7x8xf32> to vector<7x8xbf16>
    %c0_16 = arith.constant 0 : index
    %c3 = arith.constant 3 : index
    %c0_17 = arith.constant 0 : index
    %c0_18 = arith.constant 0 : index
    %25 = vector.load %arg6[%c0_16, %c3, %c0_17, %c0_18] : memref<1x4x7x8xbf16, #tpu.memory_space<vmem>>, vector<1x1x7x8xbf16>
    %26 = vector.shape_cast %25 : vector<1x1x7x8xbf16> to vector<7x8xbf16>
    %27 = vector.shape_cast %24 : vector<7x8xbf16> to vector<1x1x7x8xbf16>
    tpu.vector_store %arg6[%c0_16, %c3, %c0_17, %c0_18], %27 {strides = array<i32>} : memref<1x4x7x8xbf16, #tpu.memory_space<vmem>>, vector<1x1x7x8xbf16>,
    return
  }
  func.func @transform_0(%arg0: i32) -> (i32, i32, i32) {
    %c0_i32 = arith.constant 0 : i32
    %c0_i32_0 = arith.constant 0 : i32
    %c0_i32_1 = arith.constant 0 : i32
    return %arg0, %c0_i32, %c0_i32_0 : i32, i32, i32
  }
  func.func @transform_1(%arg0: i32) -> (i32, i32) {
    %c0_i32 = arith.constant 0 : i32
    %c0_i32_0 = arith.constant 0 : i32
    %c0_i32_1 = arith.constant 0 : i32
    return %c0_i32, %c0_i32_0 : i32, i32
  }
  func.func @transform_2(%arg0: i32) -> (i32, i32) {
    %c0_i32 = arith.constant 0 : i32
    %c0_i32_0 = arith.constant 0 : i32
    %c0_i32_1 = arith.constant 0 : i32
    return %c0_i32, %c0_i32_0 : i32, i32
  }
  func.func @transform_3(%arg0: i32) -> (i32, i32) {
    %c0_i32 = arith.constant 0 : i32
    %c0_i32_0 = arith.constant 0 : i32
    %c0_i32_1 = arith.constant 0 : i32
    return %c0_i32, %c0_i32_0 : i32, i32
  }
  func.func @transform_4(%arg0: i32) -> (i32, i32) {
    %c0_i32 = arith.constant 0 : i32
    %c0_i32_0 = arith.constant 0 : i32
    %c0_i32_1 = arith.constant 0 : i32
    return %c0_i32, %c0_i32_0 : i32, i32
  }
  func.func @transform_5(%arg0: i32) -> (i32, i32, i32, i32) {
    %c0_i32 = arith.constant 0 : i32
    %c0_i32_0 = arith.constant 0 : i32
    %c0_i32_1 = arith.constant 0 : i32
    %c0_i32_2 = arith.constant 0 : i32
    return %arg0, %c0_i32, %c0_i32_0, %c0_i32_1 : i32, i32, i32, i32
  }
}

module attributes {stable_mosaic.version = 11 : i64} {
  func.func @_attn_kernel(%arg0: i32, %arg1: memref<1x4x4x8xbf16, #tpu.memory_space<vmem>>, %arg2: memref<1x4x4x8xbf16, #tpu.memory_space<vmem>>, %arg3: memref<1x4x4x8xbf16, #tpu.memory_space<vmem>>, %arg4: memref<1x1x4xf32, #tpu.memory_space<vmem>>, %arg5: memref<1x4x4x4xf32, #tpu.memory_space<vmem>>, %arg6: memref<4x8xf32, #tpu.memory_space<vmem>>, %arg7: memref<1x4x4x8xf32, #tpu.memory_space<vmem>>) attributes {dimension_semantics = [#tpu.dimension_semantics<parallel>], iteration_bounds = array<i64: 2>, scalar_prefetch = 0 : i64, scratch_operands = 0 : i64, tpu.core_type = #tpu.core_type<tc>, window_params = [{transform_indices = @transform_0, window_bounds = array<i64: 1, 4, 4, 8>}, {transform_indices = @transform_1, window_bounds = array<i64: 1, 4, 4, 8>}, {transform_indices = @transform_2, window_bounds = array<i64: 1, 4, 4, 8>}, {transform_indices = @transform_3, window_bounds = array<i64: 1, 1, 4>}, {transform_indices = @transform_4, window_bounds = array<i64: 1, 4, 4, 4>}, {pipeline_mode = #tpu.pipeline_mode<synchronous>, transform_indices = @transform_5, window_bounds = array<i64: 4, 8>}, {transform_indices = @transform_6, window_bounds = array<i64: 1, 4, 4, 8>}]} {
    %c0 = arith.constant 0 : index
    %c0_0 = arith.constant 0 : index
    %c0_1 = arith.constant 0 : index
    %c0_2 = arith.constant 0 : index
    %0 = vector.load %arg1[%c0, %c0_0, %c0_1, %c0_2] : memref<1x4x4x8xbf16, #tpu.memory_space<vmem>>, vector<1x4x4x8xbf16>
    %1 = vector.shape_cast %0 : vector<1x4x4x8xbf16> to vector<4x4x8xbf16>
    %c0_3 = arith.constant 0 : index
    %c0_4 = arith.constant 0 : index
    %c0_5 = arith.constant 0 : index
    %c0_6 = arith.constant 0 : index
    %2 = vector.load %arg2[%c0_3, %c0_4, %c0_5, %c0_6] : memref<1x4x4x8xbf16, #tpu.memory_space<vmem>>, vector<1x4x4x8xbf16>
    %3 = vector.shape_cast %2 : vector<1x4x4x8xbf16> to vector<4x4x8xbf16>
    %c0_7 = arith.constant 0 : index
    %c0_8 = arith.constant 0 : index
    %c0_9 = arith.constant 0 : index
    %c0_10 = arith.constant 0 : index
    %4 = vector.load %arg3[%c0_7, %c0_8, %c0_9, %c0_10] : memref<1x4x4x8xbf16, #tpu.memory_space<vmem>>, vector<1x4x4x8xbf16>
    %5 = vector.shape_cast %4 : vector<1x4x4x8xbf16> to vector<4x4x8xbf16>
    %6 = arith.extf %1 : vector<4x4x8xbf16> to vector<4x4x8xf32>
    %c0_11 = arith.constant 0 : index
    %c0_12 = arith.constant 0 : index
    %7 = vector.load %arg6[%c0_11, %c0_12] : memref<4x8xf32, #tpu.memory_space<vmem>>, vector<4x8xf32>
    %8 = vector.shape_cast %7 : vector<4x8xf32> to vector<4x1x8xf32>
    %9 = vector.broadcast %8 : vector<4x1x8xf32> to vector<4x4x8xf32>
    %10 = arith.addf %6, %9 : vector<4x4x8xf32>
    %11 = arith.truncf %10 : vector<4x4x8xf32> to vector<4x4x8xbf16>
    "tpu.trace_start"() <{level = 10 : i32, message = "hqd,hkd->hqk"}> : () -> ()
    %cst = arith.constant dense<0.000000e+00> : vector<4x4x4xf32>
    %12 = tpu.matmul %11, %3, %cst {dimension_numbers = #tpu.dot_dimension_numbers<[2], [2], [1], [1], [0, 0, 0, 1, 1, 1], [0], [0]>} : vector<4x4x8xbf16>, vector<4x4x8xbf16>, vector<4x4x4xf32> -> vector<4x4x4xf32>
    "tpu.trace_stop"() : () -> ()
    %c0_13 = arith.constant 0 : index
    %c0_14 = arith.constant 0 : index
    %c0_15 = arith.constant 0 : index
    %c0_16 = arith.constant 0 : index
    %13 = vector.load %arg5[%c0_13, %c0_14, %c0_15, %c0_16] : memref<1x4x4x4xf32, #tpu.memory_space<vmem>>, vector<1x4x4x4xf32>
    %14 = vector.shape_cast %13 : vector<1x4x4x4xf32> to vector<4x4x4xf32>
    %15 = arith.addf %12, %14 : vector<4x4x4xf32>
    %cst_17 = arith.constant 0.353553385 : f32
    %16 = vector.broadcast %cst_17 : f32 to vector<4x4x4xf32>
    %17 = arith.mulf %15, %16 : vector<4x4x4xf32>
    %c0_18 = arith.constant 0 : index
    %c0_19 = arith.constant 0 : index
    %c0_20 = arith.constant 0 : index
    %18 = vector.load %arg4[%c0_18, %c0_19, %c0_20] : memref<1x1x4xf32, #tpu.memory_space<vmem>>, vector<1x1x4xf32>
    %19 = vector.shape_cast %18 : vector<1x1x4xf32> to vector<1x4xf32>
    %cst_21 = arith.constant 1.000000e+00 : f32
    %20 = vector.broadcast %cst_21 : f32 to vector<1x4xf32>
    %21 = arith.subf %20, %19 : vector<1x4xf32>
    %cst_22 = arith.constant -1.000000e+09 : f32
    %22 = vector.broadcast %cst_22 : f32 to vector<1x4xf32>
    %23 = arith.mulf %21, %22 : vector<1x4xf32>
    %24 = vector.shape_cast %23 : vector<1x4xf32> to vector<1x1x4xf32>
    %25 = vector.broadcast %24 : vector<1x1x4xf32> to vector<4x4x4xf32>
    %26 = arith.addf %17, %25 : vector<4x4x4xf32>
    %cst_23 = arith.constant dense<0xFF800000> : vector<4x4xf32>
    %27 = vector.multi_reduction <maximumf>, %26, %cst_23 [2] : vector<4x4x4xf32> to vector<4x4xf32>
    %28 = vector.shape_cast %27 : vector<4x4xf32> to vector<4x4x1xf32>
    %29 = vector.broadcast %28 : vector<4x4x1xf32> to vector<4x4x4xf32>
    %30 = arith.subf %26, %29 : vector<4x4x4xf32>
    %31 = math.exp %30 : vector<4x4x4xf32>
    %cst_24 = arith.constant dense<0.000000e+00> : vector<4x4xf32>
    %32 = vector.multi_reduction <add>, %31, %cst_24 [2] : vector<4x4x4xf32> to vector<4x4xf32>
    %33 = vector.shape_cast %32 : vector<4x4xf32> to vector<4x4x1xf32>
    %34 = tpu.reciprocal %33 {approx = true} : vector<4x4x1xf32> -> vector<4x4x1xf32>
    %35 = vector.broadcast %34 : vector<4x4x1xf32> to vector<4x4x4xf32>
    %36 = arith.mulf %31, %35 : vector<4x4x4xf32>
    %37 = arith.truncf %36 : vector<4x4x4xf32> to vector<4x4x4xbf16>
    "tpu.trace_start"() <{level = 10 : i32, message = "hqk,hkd->hqd"}> : () -> ()
    %cst_25 = arith.constant dense<0.000000e+00> : vector<4x4x8xf32>
    %38 = tpu.matmul %37, %5, %cst_25 {dimension_numbers = #tpu.dot_dimension_numbers<[2], [1], [1], [2], [0, 0, 0, 1, 1, 2], [0], [0]>} : vector<4x4x4xbf16>, vector<4x4x8xbf16>, vector<4x4x8xf32> -> vector<4x4x8xf32>
    "tpu.trace_stop"() : () -> ()
    %c0_26 = arith.constant 0 : index
    %c0_27 = arith.constant 0 : index
    %c0_28 = arith.constant 0 : index
    %c0_29 = arith.constant 0 : index
    %39 = vector.load %arg7[%c0_26, %c0_27, %c0_28, %c0_29] : memref<1x4x4x8xf32, #tpu.memory_space<vmem>>, vector<1x4x4x8xf32>
    %40 = vector.shape_cast %39 : vector<1x4x4x8xf32> to vector<4x4x8xf32>
    %41 = vector.shape_cast %38 : vector<4x4x8xf32> to vector<1x4x4x8xf32>
    tpu.vector_store %arg7[%c0_26, %c0_27, %c0_28, %c0_29], %41 {strides = array<i32>} : memref<1x4x4x8xf32, #tpu.memory_space<vmem>>, vector<1x4x4x8xf32>,
    return
  }
  func.func @transform_0(%arg0: i32) -> (i32, i32, i32, i32) {
    %c0_i32 = arith.constant 0 : i32
    %c0_i32_0 = arith.constant 0 : i32
    %c0_i32_1 = arith.constant 0 : i32
    %c0_i32_2 = arith.constant 0 : i32
    return %arg0, %c0_i32, %c0_i32_0, %c0_i32_1 : i32, i32, i32, i32
  }
  func.func @transform_1(%arg0: i32) -> (i32, i32, i32, i32) {
    %c0_i32 = arith.constant 0 : i32
    %c0_i32_0 = arith.constant 0 : i32
    %c0_i32_1 = arith.constant 0 : i32
    %c0_i32_2 = arith.constant 0 : i32
    return %arg0, %c0_i32, %c0_i32_0, %c0_i32_1 : i32, i32, i32, i32
  }
  func.func @transform_2(%arg0: i32) -> (i32, i32, i32, i32) {
    %c0_i32 = arith.constant 0 : i32
    %c0_i32_0 = arith.constant 0 : i32
    %c0_i32_1 = arith.constant 0 : i32
    %c0_i32_2 = arith.constant 0 : i32
    return %arg0, %c0_i32, %c0_i32_0, %c0_i32_1 : i32, i32, i32, i32
  }
  func.func @transform_3(%arg0: i32) -> (i32, i32, i32) {
    %c0_i32 = arith.constant 0 : i32
    %c0_i32_0 = arith.constant 0 : i32
    %c0_i32_1 = arith.constant 0 : i32
    return %arg0, %c0_i32, %c0_i32_0 : i32, i32, i32
  }
  func.func @transform_4(%arg0: i32) -> (i32, i32, i32, i32) {
    %c0_i32 = arith.constant 0 : i32
    %c0_i32_0 = arith.constant 0 : i32
    %c0_i32_1 = arith.constant 0 : i32
    %c0_i32_2 = arith.constant 0 : i32
    return %arg0, %c0_i32, %c0_i32_0, %c0_i32_1 : i32, i32, i32, i32
  }
  func.func @transform_5(%arg0: i32) -> (i32, i32) {
    %c0_i32 = arith.constant 0 : i32
    %c0_i32_0 = arith.constant 0 : i32
    %c0_i32_1 = arith.constant 0 : i32
    return %c0_i32, %c0_i32_0 : i32, i32
  }
  func.func @transform_6(%arg0: i32) -> (i32, i32, i32, i32) {
    %c0_i32 = arith.constant 0 : i32
    %c0_i32_0 = arith.constant 0 : i32
    %c0_i32_1 = arith.constant 0 : i32
    %c0_i32_2 = arith.constant 0 : i32
    return %arg0, %c0_i32, %c0_i32_0, %c0_i32_1 : i32, i32, i32, i32
  }
}

module attributes {stable_mosaic.version = 11 : i64} {
  func.func @_attn_out_kernel(%arg0: i32, %arg1: memref<1x4x4x8xf32, #tpu.memory_space<vmem>>, %arg2: memref<1x4x32xf32, #tpu.memory_space<vmem>>, %arg3: memref<4x8x32xbf16, #tpu.memory_space<vmem>>, %arg4: memref<1x32xf32, #tpu.memory_space<vmem>>, %arg5: memref<1x4x32xf32, #tpu.memory_space<vmem>>) attributes {dimension_semantics = [#tpu.dimension_semantics<parallel>], iteration_bounds = array<i64: 2>, scalar_prefetch = 0 : i64, scratch_operands = 0 : i64, tpu.core_type = #tpu.core_type<tc>, window_params = [{transform_indices = @transform_0, window_bounds = array<i64: 1, 4, 4, 8>}, {transform_indices = @transform_1, window_bounds = array<i64: 1, 4, 32>}, {pipeline_mode = #tpu.pipeline_mode<synchronous>, transform_indices = @transform_2, window_bounds = array<i64: 4, 8, 32>}, {pipeline_mode = #tpu.pipeline_mode<synchronous>, transform_indices = @transform_3, window_bounds = array<i64: 1, 32>}, {transform_indices = @transform_4, window_bounds = array<i64: 1, 4, 32>}]} {
    %c0 = arith.constant 0 : index
    %c0_0 = arith.constant 0 : index
    %c0_1 = arith.constant 0 : index
    %0 = vector.load %arg2[%c0, %c0_0, %c0_1] : memref<1x4x32xf32, #tpu.memory_space<vmem>>, vector<1x4x32xf32>
    %1 = vector.shape_cast %0 : vector<1x4x32xf32> to vector<4x32xf32>
    %c0_2 = arith.constant 0 : index
    %c0_3 = arith.constant 0 : index
    %2 = vector.load %arg4[%c0_2, %c0_3] : memref<1x32xf32, #tpu.memory_space<vmem>>, vector<1x32xf32>
    %3 = vector.broadcast %2 : vector<1x32xf32> to vector<4x32xf32>
    %4 = arith.addf %1, %3 : vector<4x32xf32>
    %c0_4 = arith.constant 0 : index
    %c0_5 = arith.constant 0 : index
    %c0_6 = arith.constant 0 : index
    %c0_7 = arith.constant 0 : index
    %5 = vector.load %arg1[%c0_4, %c0_5, %c0_6, %c0_7] : memref<1x4x4x8xf32, #tpu.memory_space<vmem>>, vector<1x4x4x8xf32>
    %6 = vector.shape_cast %5 : vector<1x4x4x8xf32> to vector<4x4x8xf32>
    %7 = vector.extract_strided_slice %6 {offsets = [0, 0, 0], sizes = [1, 4, 8], strides = [1, 1, 1]} : vector<4x4x8xf32> to vector<1x4x8xf32>
    %8 = vector.shape_cast %7 : vector<1x4x8xf32> to vector<4x8xf32>
    %9 = arith.truncf %8 : vector<4x8xf32> to vector<4x8xbf16>
    %c0_8 = arith.constant 0 : index
    %c0_9 = arith.constant 0 : index
    %c0_10 = arith.constant 0 : index
    %10 = vector.load %arg3[%c0_8, %c0_9, %c0_10] : memref<4x8x32xbf16, #tpu.memory_space<vmem>>, vector<1x8x32xbf16>
    %11 = vector.shape_cast %10 : vector<1x8x32xbf16> to vector<8x32xbf16>
    %cst = arith.constant dense<0.000000e+00> : vector<4x32xf32>
    %12 = tpu.matmul %9, %11, %cst {dimension_numbers = #tpu.dot_dimension_numbers<[1], [0], [0], [1], [0, 0, 1, 1], [], []>} : vector<4x8xbf16>, vector<8x32xbf16>, vector<4x32xf32> -> vector<4x32xf32>
    %13 = arith.addf %4, %12 : vector<4x32xf32>
    %14 = vector.extract_strided_slice %6 {offsets = [1, 0, 0], sizes = [1, 4, 8], strides = [1, 1, 1]} : vector<4x4x8xf32> to vector<1x4x8xf32>
    %15 = vector.shape_cast %14 : vector<1x4x8xf32> to vector<4x8xf32>
    %16 = arith.truncf %15 : vector<4x8xf32> to vector<4x8xbf16>
    %c1 = arith.constant 1 : index
    %c0_11 = arith.constant 0 : index
    %c0_12 = arith.constant 0 : index
    %17 = vector.load %arg3[%c1, %c0_11, %c0_12] : memref<4x8x32xbf16, #tpu.memory_space<vmem>>, vector<1x8x32xbf16>
    %18 = vector.shape_cast %17 : vector<1x8x32xbf16> to vector<8x32xbf16>
    %cst_13 = arith.constant dense<0.000000e+00> : vector<4x32xf32>
    %19 = tpu.matmul %16, %18, %cst_13 {dimension_numbers = #tpu.dot_dimension_numbers<[1], [0], [0], [1], [0, 0, 1, 1], [], []>} : vector<4x8xbf16>, vector<8x32xbf16>, vector<4x32xf32> -> vector<4x32xf32>
    %20 = arith.addf %13, %19 : vector<4x32xf32>
    %21 = vector.extract_strided_slice %6 {offsets = [2, 0, 0], sizes = [1, 4, 8], strides = [1, 1, 1]} : vector<4x4x8xf32> to vector<1x4x8xf32>
    %22 = vector.shape_cast %21 : vector<1x4x8xf32> to vector<4x8xf32>
    %23 = arith.truncf %22 : vector<4x8xf32> to vector<4x8xbf16>
    %c2 = arith.constant 2 : index
    %c0_14 = arith.constant 0 : index
    %c0_15 = arith.constant 0 : index
    %24 = vector.load %arg3[%c2, %c0_14, %c0_15] : memref<4x8x32xbf16, #tpu.memory_space<vmem>>, vector<1x8x32xbf16>
    %25 = vector.shape_cast %24 : vector<1x8x32xbf16> to vector<8x32xbf16>
    %cst_16 = arith.constant dense<0.000000e+00> : vector<4x32xf32>
    %26 = tpu.matmul %23, %25, %cst_16 {dimension_numbers = #tpu.dot_dimension_numbers<[1], [0], [0], [1], [0, 0, 1, 1], [], []>} : vector<4x8xbf16>, vector<8x32xbf16>, vector<4x32xf32> -> vector<4x32xf32>
    %27 = arith.addf %20, %26 : vector<4x32xf32>
    %28 = vector.extract_strided_slice %6 {offsets = [3, 0, 0], sizes = [1, 4, 8], strides = [1, 1, 1]} : vector<4x4x8xf32> to vector<1x4x8xf32>
    %29 = vector.shape_cast %28 : vector<1x4x8xf32> to vector<4x8xf32>
    %30 = arith.truncf %29 : vector<4x8xf32> to vector<4x8xbf16>
    %c3 = arith.constant 3 : index
    %c0_17 = arith.constant 0 : index
    %c0_18 = arith.constant 0 : index
    %31 = vector.load %arg3[%c3, %c0_17, %c0_18] : memref<4x8x32xbf16, #tpu.memory_space<vmem>>, vector<1x8x32xbf16>
    %32 = vector.shape_cast %31 : vector<1x8x32xbf16> to vector<8x32xbf16>
    %cst_19 = arith.constant dense<0.000000e+00> : vector<4x32xf32>
    %33 = tpu.matmul %30, %32, %cst_19 {dimension_numbers = #tpu.dot_dimension_numbers<[1], [0], [0], [1], [0, 0, 1, 1], [], []>} : vector<4x8xbf16>, vector<8x32xbf16>, vector<4x32xf32> -> vector<4x32xf32>
    %34 = arith.addf %27, %33 : vector<4x32xf32>
    %c0_20 = arith.constant 0 : index
    %c0_21 = arith.constant 0 : index
    %c0_22 = arith.constant 0 : index
    %35 = vector.load %arg5[%c0_20, %c0_21, %c0_22] : memref<1x4x32xf32, #tpu.memory_space<vmem>>, vector<1x4x32xf32>
    %36 = vector.shape_cast %35 : vector<1x4x32xf32> to vector<4x32xf32>
    %37 = vector.shape_cast %34 : vector<4x32xf32> to vector<1x4x32xf32>
    tpu.vector_store %arg5[%c0_20, %c0_21, %c0_22], %37 {strides = array<i32>} : memref<1x4x32xf32, #tpu.memory_space<vmem>>, vector<1x4x32xf32>,
    return
  }
  func.func @transform_0(%arg0: i32) -> (i32, i32, i32, i32) {
    %c0_i32 = arith.constant 0 : i32
    %c0_i32_0 = arith.constant 0 : i32
    %c0_i32_1 = arith.constant 0 : i32
    %c0_i32_2 = arith.constant 0 : i32
    return %arg0, %c0_i32, %c0_i32_0, %c0_i32_1 : i32, i32, i32, i32
  }
  func.func @transform_1(%arg0: i32) -> (i32, i32, i32) {
    %c0_i32 = arith.constant 0 : i32
    %c0_i32_0 = arith.constant 0 : i32
    %c0_i32_1 = arith.constant 0 : i32
    return %arg0, %c0_i32, %c0_i32_0 : i32, i32, i32
  }
  func.func @transform_2(%arg0: i32) -> (i32, i32, i32) {
    %c0_i32 = arith.constant 0 : i32
    %c0_i32_0 = arith.constant 0 : i32
    %c0_i32_1 = arith.constant 0 : i32
    %c0_i32_2 = arith.constant 0 : i32
    return %c0_i32, %c0_i32_0, %c0_i32_1 : i32, i32, i32
  }
  func.func @transform_3(%arg0: i32) -> (i32, i32) {
    %c0_i32 = arith.constant 0 : i32
    %c0_i32_0 = arith.constant 0 : i32
    %c0_i32_1 = arith.constant 0 : i32
    return %c0_i32, %c0_i32_0 : i32, i32
  }
  func.func @transform_4(%arg0: i32) -> (i32, i32, i32) {
    %c0_i32 = arith.constant 0 : i32
    %c0_i32_0 = arith.constant 0 : i32
    %c0_i32_1 = arith.constant 0 : i32
    return %arg0, %c0_i32, %c0_i32_0 : i32, i32, i32
  }
}

module attributes {stable_mosaic.version = 11 : i64} {
  func.func @_ln_matmul_kernel(%arg0: i32, %arg1: i32, %arg2: memref<8x32xf32, #tpu.memory_space<vmem>>, %arg3: memref<1x32xf32, #tpu.memory_space<vmem>>, %arg4: memref<1x32xf32, #tpu.memory_space<vmem>>, %arg5: memref<32x64xbf16, #tpu.memory_space<vmem>>, %arg6: memref<1x64xf32, #tpu.memory_space<vmem>>, %arg7: memref<8x32xf32, #tpu.memory_space<vmem>>) attributes {dimension_semantics = [#tpu.dimension_semantics<parallel>, #tpu.dimension_semantics<parallel>], iteration_bounds = array<i64: 1, 1>, scalar_prefetch = 0 : i64, scratch_operands = 0 : i64, tpu.core_type = #tpu.core_type<tc>, window_params = [{transform_indices = @transform_0, window_bounds = array<i64: 8, 32>}, {pipeline_mode = #tpu.pipeline_mode<synchronous>, transform_indices = @transform_1, window_bounds = array<i64: 1, 32>}, {pipeline_mode = #tpu.pipeline_mode<synchronous>, transform_indices = @transform_2, window_bounds = array<i64: 1, 32>}, {transform_indices = @transform_3, window_bounds = array<i64: 32, 64>}, {transform_indices = @transform_4, window_bounds = array<i64: 1, 64>}, {transform_indices = @transform_5, window_bounds = array<i64: 8, 32>}]} {
    %c0 = arith.constant 0 : index
    %c0_0 = arith.constant 0 : index
    %0 = vector.load %arg2[%c0, %c0_0] : memref<8x32xf32, #tpu.memory_space<vmem>>, vector<8x32xf32>
    %cst = arith.constant dense<0.000000e+00> : vector<8xf32>
    %1 = vector.multi_reduction <add>, %0, %cst [1] : vector<8x32xf32> to vector<8xf32>
    %2 = vector.shape_cast %1 : vector<8xf32> to vector<8x1xf32>
    %cst_1 = arith.constant 3.200000e+01 : f32
    %3 = vector.broadcast %cst_1 : f32 to vector<8x1xf32>
    %4 = arith.divf %2, %3 : vector<8x1xf32>
    %5 = vector.broadcast %4 : vector<8x1xf32> to vector<8x32xf32>
    %6 = arith.subf %0, %5 : vector<8x32xf32>
    %7 = arith.mulf %6, %6 : vector<8x32xf32>
    %cst_2 = arith.constant dense<0.000000e+00> : vector<8xf32>
    %8 = vector.multi_reduction <add>, %7, %cst_2 [1] : vector<8x32xf32> to vector<8xf32>
    %9 = vector.shape_cast %8 : vector<8xf32> to vector<8x1xf32>
    %cst_3 = arith.constant 3.200000e+01 : f32
    %10 = vector.broadcast %cst_3 : f32 to vector<8x1xf32>
    %11 = arith.divf %9, %10 : vector<8x1xf32>
    %cst_4 = arith.constant 9.99999974E-6 : f32
    %12 = vector.broadcast %cst_4 : f32 to vector<8x1xf32>
    %13 = arith.addf %11, %12 : vector<8x1xf32>
    %14 = math.rsqrt %13 : vector<8x1xf32>
    %15 = vector.broadcast %14 : vector<8x1xf32> to vector<8x32xf32>
    %16 = arith.mulf %6, %15 : vector<8x32xf32>
    %c0_5 = arith.constant 0 : index
    %c0_6 = arith.constant 0 : index
    %17 = vector.load %arg3[%c0_5, %c0_6] : memref<1x32xf32, #tpu.memory_space<vmem>>, vector<1x32xf32>
    %18 = vector.broadcast %17 : vector<1x32xf32> to vector<8x32xf32>
    %19 = arith.mulf %16, %18 : vector<8x32xf32>
    %c0_7 = arith.constant 0 : index
    %c0_8 = arith.constant 0 : index
    %20 = vector.load %arg4[%c0_7, %c0_8] : memref<1x32xf32, #tpu.memory_space<vmem>>, vector<1x32xf32>
    %21 = vector.broadcast %20 : vector<1x32xf32> to vector<8x32xf32>
    %22 = arith.addf %19, %21 : vector<8x32xf32>
    %23 = arith.truncf %22 : vector<8x32xf32> to vector<8x32xbf16>
    %c0_9 = arith.constant 0 : index
    %c0_10 = arith.constant 0 : index
    %24 = vector.load %arg5[%c0_9, %c0_10] : memref<32x64xbf16, #tpu.memory_space<vmem>>, vector<32x64xbf16>
    %cst_11 = arith.constant dense<0.000000e+00> : vector<8x64xf32>
    %25 = tpu.matmul %23, %24, %cst_11 {dimension_numbers = #tpu.dot_dimension_numbers<[1], [0], [0], [1], [0, 0, 1, 1], [], []>} : vector<8x32xbf16>, vector<32x64xbf16>, vector<8x64xf32> -> vector<8x64xf32>
    %c0_12 = arith.constant 0 : index
    %c0_13 = arith.constant 0 : index
    %26 = vector.load %arg6[%c0_12, %c0_13] : memref<1x64xf32, #tpu.memory_space<vmem>>, vector<1x64xf32>
    %27 = vector.broadcast %26 : vector<1x64xf32> to vector<8x64xf32>
    %28 = arith.addf %25, %27 : vector<8x64xf32>
    %29 = vector.extract_strided_slice %28 {offsets = [0, 0], sizes = [8, 32], strides = [1, 1]} : vector<8x64xf32> to vector<8x32xf32>
    %30 = vector.extract_strided_slice %28 {offsets = [0, 32], sizes = [8, 32], strides = [1, 1]} : vector<8x64xf32> to vector<8x32xf32>
    %cst_14 = arith.constant 0.000000e+00 : f32
    %31 = vector.broadcast %cst_14 : f32 to vector<8x32xf32>
    %32 = arith.subf %31, %30 : vector<8x32xf32>
    %33 = math.exp %32 : vector<8x32xf32>
    %cst_15 = arith.constant 1.000000e+00 : f32
    %34 = vector.broadcast %cst_15 : f32 to vector<8x32xf32>
    %35 = arith.addf %34, %33 : vector<8x32xf32>
    %36 = tpu.reciprocal %35 {approx = true} : vector<8x32xf32> -> vector<8x32xf32>
    %37 = arith.mulf %29, %36 : vector<8x32xf32>
    %c0_16 = arith.constant 0 : index
    %c0_17 = arith.constant 0 : index
    %38 = vector.load %arg7[%c0_16, %c0_17] : memref<8x32xf32, #tpu.memory_space<vmem>>, vector<8x32xf32>
    tpu.vector_store %arg7[%c0_16, %c0_17], %37 {strides = array<i32>} : memref<8x32xf32, #tpu.memory_space<vmem>>, vector<8x32xf32>,
    return
  }
  func.func @transform_0(%arg0: i32, %arg1: i32) -> (i32, i32) {
    %c0_i32 = arith.constant 0 : i32
    %c0_i32_0 = arith.constant 0 : i32
    return %arg0, %c0_i32 : i32, i32
  }
  func.func @transform_1(%arg0: i32, %arg1: i32) -> (i32, i32) {
    %c0_i32 = arith.constant 0 : i32
    %c0_i32_0 = arith.constant 0 : i32
    %c0_i32_1 = arith.constant 0 : i32
    return %c0_i32, %c0_i32_0 : i32, i32
  }
  func.func @transform_2(%arg0: i32, %arg1: i32) -> (i32, i32) {
    %c0_i32 = arith.constant 0 : i32
    %c0_i32_0 = arith.constant 0 : i32
    %c0_i32_1 = arith.constant 0 : i32
    return %c0_i32, %c0_i32_0 : i32, i32
  }
  func.func @transform_3(%arg0: i32, %arg1: i32) -> (i32, i32) {
    %c0_i32 = arith.constant 0 : i32
    %c0_i32_0 = arith.constant 0 : i32
    return %c0_i32, %arg1 : i32, i32
  }
  func.func @transform_4(%arg0: i32, %arg1: i32) -> (i32, i32) {
    %c0_i32 = arith.constant 0 : i32
    %c0_i32_0 = arith.constant 0 : i32
    return %c0_i32, %arg1 : i32, i32
  }
  func.func @transform_5(%arg0: i32, %arg1: i32) -> (i32, i32) {
    %c0_i32 = arith.constant 0 : i32
    return %arg0, %arg1 : i32, i32
  }
}

module attributes {stable_mosaic.version = 11 : i64} {
  func.func @_conv_module_kernel(%arg0: i32, %arg1: memref<1x10x32xf32, #tpu.memory_space<vmem>>, %arg2: memref<7x32xf32, #tpu.memory_space<vmem>>, %arg3: memref<1x32xf32, #tpu.memory_space<vmem>>, %arg4: memref<1x32xf32, #tpu.memory_space<vmem>>, %arg5: memref<1x32xf32, #tpu.memory_space<vmem>>, %arg6: memref<32x32xbf16, #tpu.memory_space<vmem>>, %arg7: memref<1x32xf32, #tpu.memory_space<vmem>>, %arg8: memref<1x4x32xf32, #tpu.memory_space<vmem>>, %arg9: memref<1x4x32xf32, #tpu.memory_space<vmem>>) attributes {dimension_semantics = [#tpu.dimension_semantics<parallel>], iteration_bounds = array<i64: 2>, scalar_prefetch = 0 : i64, scratch_operands = 0 : i64, tpu.core_type = #tpu.core_type<tc>, window_params = [{transform_indices = @transform_0, window_bounds = array<i64: 1, 10, 32>}, {pipeline_mode = #tpu.pipeline_mode<synchronous>, transform_indices = @transform_1, window_bounds = array<i64: 7, 32>}, {pipeline_mode = #tpu.pipeline_mode<synchronous>, transform_indices = @transform_2, window_bounds = array<i64: 1, 32>}, {pipeline_mode = #tpu.pipeline_mode<synchronous>, transform_indices = @transform_3, window_bounds = array<i64: 1, 32>}, {pipeline_mode = #tpu.pipeline_mode<synchronous>, transform_indices = @transform_4, window_bounds = array<i64: 1, 32>}, {pipeline_mode = #tpu.pipeline_mode<synchronous>, transform_indices = @transform_5, window_bounds = array<i64: 32, 32>}, {pipeline_mode = #tpu.pipeline_mode<synchronous>, transform_indices = @transform_6, window_bounds = array<i64: 1, 32>}, {transform_indices = @transform_7, window_bounds = array<i64: 1, 4, 32>}, {transform_indices = @transform_8, window_bounds = array<i64: 1, 4, 32>}]} {
    %c0 = arith.constant 0 : index
    %c0_0 = arith.constant 0 : index
    %c0_1 = arith.constant 0 : index
    %0 = vector.load %arg1[%c0, %c0_0, %c0_1] : memref<1x10x32xf32, #tpu.memory_space<vmem>>, vector<1x10x32xf32>
    %1 = vector.shape_cast %0 : vector<1x10x32xf32> to vector<10x32xf32>
    %c0_2 = arith.constant 0 : index
    %c0_3 = arith.constant 0 : index
    %2 = vector.load %arg2[%c0_2, %c0_3] : memref<7x32xf32, #tpu.memory_space<vmem>>, vector<7x32xf32>
    %3 = vector.extract_strided_slice %1 {offsets = [0, 0], sizes = [4, 32], strides = [1, 1]} : vector<10x32xf32> to vector<4x32xf32>
    %4 = vector.extract_strided_slice %2 {offsets = [0, 0], sizes = [1, 32], strides = [1, 1]} : vector<7x32xf32> to vector<1x32xf32>
    %5 = vector.broadcast %4 : vector<1x32xf32> to vector<4x32xf32>
    %6 = arith.mulf %3, %5 : vector<4x32xf32>
    %7 = vector.extract_strided_slice %1 {offsets = [1, 0], sizes = [4, 32], strides = [1, 1]} : vector<10x32xf32> to vector<4x32xf32>
    %8 = vector.extract_strided_slice %2 {offsets = [1, 0], sizes = [1, 32], strides = [1, 1]} : vector<7x32xf32> to vector<1x32xf32>
    %9 = vector.broadcast %8 : vector<1x32xf32> to vector<4x32xf32>
    %10 = arith.mulf %7, %9 : vector<4x32xf32>
    %11 = arith.addf %6, %10 : vector<4x32xf32>
    %12 = vector.extract_strided_slice %1 {offsets = [2, 0], sizes = [4, 32], strides = [1, 1]} : vector<10x32xf32> to vector<4x32xf32>
    %13 = vector.extract_strided_slice %2 {offsets = [2, 0], sizes = [1, 32], strides = [1, 1]} : vector<7x32xf32> to vector<1x32xf32>
    %14 = vector.broadcast %13 : vector<1x32xf32> to vector<4x32xf32>
    %15 = arith.mulf %12, %14 : vector<4x32xf32>
    %16 = arith.addf %11, %15 : vector<4x32xf32>
    %17 = vector.extract_strided_slice %1 {offsets = [3, 0], sizes = [4, 32], strides = [1, 1]} : vector<10x32xf32> to vector<4x32xf32>
    %18 = vector.extract_strided_slice %2 {offsets = [3, 0], sizes = [1, 32], strides = [1, 1]} : vector<7x32xf32> to vector<1x32xf32>
    %19 = vector.broadcast %18 : vector<1x32xf32> to vector<4x32xf32>
    %20 = arith.mulf %17, %19 : vector<4x32xf32>
    %21 = arith.addf %16, %20 : vector<4x32xf32>
    %22 = vector.extract_strided_slice %1 {offsets = [4, 0], sizes = [4, 32], strides = [1, 1]} : vector<10x32xf32> to vector<4x32xf32>
    %23 = vector.extract_strided_slice %2 {offsets = [4, 0], sizes = [1, 32], strides = [1, 1]} : vector<7x32xf32> to vector<1x32xf32>
    %24 = vector.broadcast %23 : vector<1x32xf32> to vector<4x32xf32>
    %25 = arith.mulf %22, %24 : vector<4x32xf32>
    %26 = arith.addf %21, %25 : vector<4x32xf32>
    %27 = vector.extract_strided_slice %1 {offsets = [5, 0], sizes = [4, 32], strides = [1, 1]} : vector<10x32xf32> to vector<4x32xf32>
    %28 = vector.extract_strided_slice %2 {offsets = [5, 0], sizes = [1, 32], strides = [1, 1]} : vector<7x32xf32> to vector<1x32xf32>
    %29 = vector.broadcast %28 : vector<1x32xf32> to vector<4x32xf32>
    %30 = arith.mulf %27, %29 : vector<4x32xf32>
    %31 = arith.addf %26, %30 : vector<4x32xf32>
    %32 = vector.extract_strided_slice %1 {offsets = [6, 0], sizes = [4, 32], strides = [1, 1]} : vector<10x32xf32> to vector<4x32xf32>
    %33 = vector.extract_strided_slice %2 {offsets = [6, 0], sizes = [1, 32], strides = [1, 1]} : vector<7x32xf32> to vector<1x32xf32>
    %34 = vector.broadcast %33 : vector<1x32xf32> to vector<4x32xf32>
    %35 = arith.mulf %32, %34 : vector<4x32xf32>
    %36 = arith.addf %31, %35 : vector<4x32xf32>
    %c0_4 = arith.constant 0 : index
    %c0_5 = arith.constant 0 : index
    %37 = vector.load %arg3[%c0_4, %c0_5] : memref<1x32xf32, #tpu.memory_space<vmem>>, vector<1x32xf32>
    %38 = vector.broadcast %37 : vector<1x32xf32> to vector<4x32xf32>
    %39 = arith.addf %36, %38 : vector<4x32xf32>
    %c0_6 = arith.constant 0 : index
    %c0_7 = arith.constant 0 : index
    %40 = vector.load %arg4[%c0_6, %c0_7] : memref<1x32xf32, #tpu.memory_space<vmem>>, vector<1x32xf32>
    %41 = vector.broadcast %40 : vector<1x32xf32> to vector<4x32xf32>
    %42 = arith.mulf %39, %41 : vector<4x32xf32>
    %c0_8 = arith.constant 0 : index
    %c0_9 = arith.constant 0 : index
    %43 = vector.load %arg5[%c0_8, %c0_9] : memref<1x32xf32, #tpu.memory_space<vmem>>, vector<1x32xf32>
    %44 = vector.broadcast %43 : vector<1x32xf32> to vector<4x32xf32>
    %45 = arith.addf %42, %44 : vector<4x32xf32>
    %cst = arith.constant 0.000000e+00 : f32
    %46 = vector.broadcast %cst : f32 to vector<4x32xf32>
    %47 = arith.subf %46, %45 : vector<4x32xf32>
    %48 = math.exp %47 : vector<4x32xf32>
    %cst_10 = arith.constant 1.000000e+00 : f32
    %49 = vector.broadcast %cst_10 : f32 to vector<4x32xf32>
    %50 = arith.addf %49, %48 : vector<4x32xf32>
    %51 = tpu.reciprocal %50 {approx = true} : vector<4x32xf32> -> vector<4x32xf32>
    %52 = arith.mulf %45, %51 : vector<4x32xf32>
    %c0_11 = arith.constant 0 : index
    %c0_12 = arith.constant 0 : index
    %c0_13 = arith.constant 0 : index
    %53 = vector.load %arg8[%c0_11, %c0_12, %c0_13] : memref<1x4x32xf32, #tpu.memory_space<vmem>>, vector<1x4x32xf32>
    %54 = vector.shape_cast %53 : vector<1x4x32xf32> to vector<4x32xf32>
    %55 = arith.truncf %52 : vector<4x32xf32> to vector<4x32xbf16>
    %c0_14 = arith.constant 0 : index
    %c0_15 = arith.constant 0 : index
    %56 = vector.load %arg6[%c0_14, %c0_15] : memref<32x32xbf16, #tpu.memory_space<vmem>>, vector<32x32xbf16>
    %cst_16 = arith.constant dense<0.000000e+00> : vector<4x32xf32>
    %57 = tpu.matmul %55, %56, %cst_16 {dimension_numbers = #tpu.dot_dimension_numbers<[1], [0], [0], [1], [0, 0, 1, 1], [], []>} : vector<4x32xbf16>, vector<32x32xbf16>, vector<4x32xf32> -> vector<4x32xf32>
    %58 = arith.addf %54, %57 : vector<4x32xf32>
    %c0_17 = arith.constant 0 : index
    %c0_18 = arith.constant 0 : index
    %59 = vector.load %arg7[%c0_17, %c0_18] : memref<1x32xf32, #tpu.memory_space<vmem>>, vector<1x32xf32>
    %60 = vector.broadcast %59 : vector<1x32xf32> to vector<4x32xf32>
    %61 = arith.addf %58, %60 : vector<4x32xf32>
    %c0_19 = arith.constant 0 : index
    %c0_20 = arith.constant 0 : index
    %c0_21 = arith.constant 0 : index
    %62 = vector.load %arg9[%c0_19, %c0_20, %c0_21] : memref<1x4x32xf32, #tpu.memory_space<vmem>>, vector<1x4x32xf32>
    %63 = vector.shape_cast %62 : vector<1x4x32xf32> to vector<4x32xf32>
    %64 = vector.shape_cast %61 : vector<4x32xf32> to vector<1x4x32xf32>
    tpu.vector_store %arg9[%c0_19, %c0_20, %c0_21], %64 {strides = array<i32>} : memref<1x4x32xf32, #tpu.memory_space<vmem>>, vector<1x4x32xf32>,
    return
  }
  func.func @transform_0(%arg0: i32) -> (i32, i32, i32) {
    %c0_i32 = arith.constant 0 : i32
    %c0_i32_0 = arith.constant 0 : i32
    %c0_i32_1 = arith.constant 0 : i32
    return %arg0, %c0_i32, %c0_i32_0 : i32, i32, i32
  }
  func.func @transform_1(%arg0: i32) -> (i32, i32) {
    %c0_i32 = arith.constant 0 : i32
    %c0_i32_0 = arith.constant 0 : i32
    %c0_i32_1 = arith.constant 0 : i32
    return %c0_i32, %c0_i32_0 : i32, i32
  }
  func.func @transform_2(%arg0: i32) -> (i32, i32) {
    %c0_i32 = arith.constant 0 : i32
    %c0_i32_0 = arith.constant 0 : i32
    %c0_i32_1 = arith.constant 0 : i32
    return %c0_i32, %c0_i32_0 : i32, i32
  }
  func.func @transform_3(%arg0: i32) -> (i32, i32) {
    %c0_i32 = arith.constant 0 : i32
    %c0_i32_0 = arith.constant 0 : i32
    %c0_i32_1 = arith.constant 0 : i32
    return %c0_i32, %c0_i32_0 : i32, i32
  }
  func.func @transform_4(%arg0: i32) -> (i32, i32) {
    %c0_i32 = arith.constant 0 : i32
    %c0_i32_0 = arith.constant 0 : i32
    %c0_i32_1 = arith.constant 0 : i32
    return %c0_i32, %c0_i32_0 : i32, i32
  }
  func.func @transform_5(%arg0: i32) -> (i32, i32) {
    %c0_i32 = arith.constant 0 : i32
    %c0_i32_0 = arith.constant 0 : i32
    %c0_i32_1 = arith.constant 0 : i32
    return %c0_i32, %c0_i32_0 : i32, i32
  }
  func.func @transform_6(%arg0: i32) -> (i32, i32) {
    %c0_i32 = arith.constant 0 : i32
    %c0_i32_0 = arith.constant 0 : i32
    %c0_i32_1 = arith.constant 0 : i32
    return %c0_i32, %c0_i32_0 : i32, i32
  }
  func.func @transform_7(%arg0: i32) -> (i32, i32, i32) {
    %c0_i32 = arith.constant 0 : i32
    %c0_i32_0 = arith.constant 0 : i32
    %c0_i32_1 = arith.constant 0 : i32
    return %arg0, %c0_i32, %c0_i32_0 : i32, i32, i32
  }
  func.func @transform_8(%arg0: i32) -> (i32, i32, i32) {
    %c0_i32 = arith.constant 0 : i32
    %c0_i32_0 = arith.constant 0 : i32
    %c0_i32_1 = arith.constant 0 : i32
    return %arg0, %c0_i32, %c0_i32_0 : i32, i32, i32
  }
}

module attributes {stable_mosaic.version = 11 : i64} {
  func.func @_ffn_kernel(%arg0: i32, %arg1: memref<8x32xf32, #tpu.memory_space<vmem>>, %arg2: memref<1x32xf32, #tpu.memory_space<vmem>>, %arg3: memref<1x32xf32, #tpu.memory_space<vmem>>, %arg4: memref<32x128xbf16, #tpu.memory_space<vmem>>, %arg5: memref<1x128xf32, #tpu.memory_space<vmem>>, %arg6: memref<128x32xbf16, #tpu.memory_space<vmem>>, %arg7: memref<1x32xf32, #tpu.memory_space<vmem>>, %arg8: memref<1x32xf32, #tpu.memory_space<vmem>>, %arg9: memref<1x32xf32, #tpu.memory_space<vmem>>, %arg10: memref<8x32xf32, #tpu.memory_space<vmem>>) attributes {dimension_semantics = [#tpu.dimension_semantics<parallel>], iteration_bounds = array<i64: 1>, scalar_prefetch = 0 : i64, scratch_operands = 0 : i64, tpu.core_type = #tpu.core_type<tc>, window_params = [{transform_indices = @transform_0, window_bounds = array<i64: 8, 32>}, {pipeline_mode = #tpu.pipeline_mode<synchronous>, transform_indices = @transform_1, window_bounds = array<i64: 1, 32>}, {pipeline_mode = #tpu.pipeline_mode<synchronous>, transform_indices = @transform_2, window_bounds = array<i64: 1, 32>}, {pipeline_mode = #tpu.pipeline_mode<synchronous>, transform_indices = @transform_3, window_bounds = array<i64: 32, 128>}, {pipeline_mode = #tpu.pipeline_mode<synchronous>, transform_indices = @transform_4, window_bounds = array<i64: 1, 128>}, {pipeline_mode = #tpu.pipeline_mode<synchronous>, transform_indices = @transform_5, window_bounds = array<i64: 128, 32>}, {pipeline_mode = #tpu.pipeline_mode<synchronous>, transform_indices = @transform_6, window_bounds = array<i64: 1, 32>}, {pipeline_mode = #tpu.pipeline_mode<synchronous>, transform_indices = @transform_7, window_bounds = array<i64: 1, 32>}, {pipeline_mode = #tpu.pipeline_mode<synchronous>, transform_indices = @transform_8, window_bounds = array<i64: 1, 32>}, {transform_indices = @transform_9, window_bounds = array<i64: 8, 32>}]} {
    %c0 = arith.constant 0 : index
    %c0_0 = arith.constant 0 : index
    %0 = vector.load %arg1[%c0, %c0_0] : memref<8x32xf32, #tpu.memory_space<vmem>>, vector<8x32xf32>
    %cst = arith.constant dense<0.000000e+00> : vector<8xf32>
    %1 = vector.multi_reduction <add>, %0, %cst [1] : vector<8x32xf32> to vector<8xf32>
    %2 = vector.shape_cast %1 : vector<8xf32> to vector<8x1xf32>
    %cst_1 = arith.constant 3.200000e+01 : f32
    %3 = vector.broadcast %cst_1 : f32 to vector<8x1xf32>
    %4 = arith.divf %2, %3 : vector<8x1xf32>
    %5 = vector.broadcast %4 : vector<8x1xf32> to vector<8x32xf32>
    %6 = arith.subf %0, %5 : vector<8x32xf32>
    %7 = arith.mulf %6, %6 : vector<8x32xf32>
    %cst_2 = arith.constant dense<0.000000e+00> : vector<8xf32>
    %8 = vector.multi_reduction <add>, %7, %cst_2 [1] : vector<8x32xf32> to vector<8xf32>
    %9 = vector.shape_cast %8 : vector<8xf32> to vector<8x1xf32>
    %cst_3 = arith.constant 3.200000e+01 : f32
    %10 = vector.broadcast %cst_3 : f32 to vector<8x1xf32>
    %11 = arith.divf %9, %10 : vector<8x1xf32>
    %cst_4 = arith.constant 9.99999974E-6 : f32
    %12 = vector.broadcast %cst_4 : f32 to vector<8x1xf32>
    %13 = arith.addf %11, %12 : vector<8x1xf32>
    %14 = math.rsqrt %13 : vector<8x1xf32>
    %15 = vector.broadcast %14 : vector<8x1xf32> to vector<8x32xf32>
    %16 = arith.mulf %6, %15 : vector<8x32xf32>
    %c0_5 = arith.constant 0 : index
    %c0_6 = arith.constant 0 : index
    %17 = vector.load %arg2[%c0_5, %c0_6] : memref<1x32xf32, #tpu.memory_space<vmem>>, vector<1x32xf32>
    %18 = vector.broadcast %17 : vector<1x32xf32> to vector<8x32xf32>
    %19 = arith.mulf %16, %18 : vector<8x32xf32>
    %c0_7 = arith.constant 0 : index
    %c0_8 = arith.constant 0 : index
    %20 = vector.load %arg3[%c0_7, %c0_8] : memref<1x32xf32, #tpu.memory_space<vmem>>, vector<1x32xf32>
    %21 = vector.broadcast %20 : vector<1x32xf32> to vector<8x32xf32>
    %22 = arith.addf %19, %21 : vector<8x32xf32>
    %23 = arith.truncf %22 : vector<8x32xf32> to vector<8x32xbf16>
    %c0_9 = arith.constant 0 : index
    %c0_10 = arith.constant 0 : index
    %24 = vector.load %arg4[%c0_9, %c0_10] : memref<32x128xbf16, #tpu.memory_space<vmem>>, vector<32x128xbf16>
    %cst_11 = arith.constant dense<0.000000e+00> : vector<8x128xf32>
    %25 = tpu.matmul %23, %24, %cst_11 {dimension_numbers = #tpu.dot_dimension_numbers<[1], [0], [0], [1], [0, 0, 1, 1], [], []>} : vector<8x32xbf16>, vector<32x128xbf16>, vector<8x128xf32> -> vector<8x128xf32>
    %c0_12 = arith.constant 0 : index
    %c0_13 = arith.constant 0 : index
    %26 = vector.load %arg5[%c0_12, %c0_13] : memref<1x128xf32, #tpu.memory_space<vmem>>, vector<1x128xf32>
    %27 = vector.broadcast %26 : vector<1x128xf32> to vector<8x128xf32>
    %28 = arith.addf %25, %27 : vector<8x128xf32>
    %cst_14 = arith.constant 0.000000e+00 : f32
    %29 = vector.broadcast %cst_14 : f32 to vector<8x128xf32>
    %30 = arith.subf %29, %28 : vector<8x128xf32>
    %31 = math.exp %30 : vector<8x128xf32>
    %cst_15 = arith.constant 1.000000e+00 : f32
    %32 = vector.broadcast %cst_15 : f32 to vector<8x128xf32>
    %33 = arith.addf %32, %31 : vector<8x128xf32>
    %34 = tpu.reciprocal %33 {approx = true} : vector<8x128xf32> -> vector<8x128xf32>
    %35 = arith.mulf %28, %34 : vector<8x128xf32>
    %36 = arith.truncf %35 : vector<8x128xf32> to vector<8x128xbf16>
    %c0_16 = arith.constant 0 : index
    %c0_17 = arith.constant 0 : index
    %37 = vector.load %arg6[%c0_16, %c0_17] : memref<128x32xbf16, #tpu.memory_space<vmem>>, vector<128x32xbf16>
    %cst_18 = arith.constant dense<0.000000e+00> : vector<8x32xf32>
    %38 = tpu.matmul %36, %37, %cst_18 {dimension_numbers = #tpu.dot_dimension_numbers<[1], [0], [0], [1], [0, 0, 1, 1], [], []>} : vector<8x128xbf16>, vector<128x32xbf16>, vector<8x32xf32> -> vector<8x32xf32>
    %c0_19 = arith.constant 0 : index
    %c0_20 = arith.constant 0 : index
    %39 = vector.load %arg7[%c0_19, %c0_20] : memref<1x32xf32, #tpu.memory_space<vmem>>, vector<1x32xf32>
    %40 = vector.broadcast %39 : vector<1x32xf32> to vector<8x32xf32>
    %41 = arith.addf %38, %40 : vector<8x32xf32>
    %cst_21 = arith.constant 5.000000e-01 : f32
    %42 = vector.broadcast %cst_21 : f32 to vector<8x32xf32>
    %43 = arith.mulf %42, %41 : vector<8x32xf32>
    %44 = arith.addf %0, %43 : vector<8x32xf32>
    %cst_22 = arith.constant dense<0.000000e+00> : vector<8xf32>
    %45 = vector.multi_reduction <add>, %44, %cst_22 [1] : vector<8x32xf32> to vector<8xf32>
    %46 = vector.shape_cast %45 : vector<8xf32> to vector<8x1xf32>
    %cst_23 = arith.constant 3.200000e+01 : f32
    %47 = vector.broadcast %cst_23 : f32 to vector<8x1xf32>
    %48 = arith.divf %46, %47 : vector<8x1xf32>
    %49 = vector.broadcast %48 : vector<8x1xf32> to vector<8x32xf32>
    %50 = arith.subf %44, %49 : vector<8x32xf32>
    %51 = arith.mulf %50, %50 : vector<8x32xf32>
    %cst_24 = arith.constant dense<0.000000e+00> : vector<8xf32>
    %52 = vector.multi_reduction <add>, %51, %cst_24 [1] : vector<8x32xf32> to vector<8xf32>
    %53 = vector.shape_cast %52 : vector<8xf32> to vector<8x1xf32>
    %cst_25 = arith.constant 3.200000e+01 : f32
    %54 = vector.broadcast %cst_25 : f32 to vector<8x1xf32>
    %55 = arith.divf %53, %54 : vector<8x1xf32>
    %cst_26 = arith.constant 9.99999974E-6 : f32
    %56 = vector.broadcast %cst_26 : f32 to vector<8x1xf32>
    %57 = arith.addf %55, %56 : vector<8x1xf32>
    %58 = math.rsqrt %57 : vector<8x1xf32>
    %59 = vector.broadcast %58 : vector<8x1xf32> to vector<8x32xf32>
    %60 = arith.mulf %50, %59 : vector<8x32xf32>
    %c0_27 = arith.constant 0 : index
    %c0_28 = arith.constant 0 : index
    %61 = vector.load %arg8[%c0_27, %c0_28] : memref<1x32xf32, #tpu.memory_space<vmem>>, vector<1x32xf32>
    %62 = vector.broadcast %61 : vector<1x32xf32> to vector<8x32xf32>
    %63 = arith.mulf %60, %62 : vector<8x32xf32>
    %c0_29 = arith.constant 0 : index
    %c0_30 = arith.constant 0 : index
    %64 = vector.load %arg9[%c0_29, %c0_30] : memref<1x32xf32, #tpu.memory_space<vmem>>, vector<1x32xf32>
    %65 = vector.broadcast %64 : vector<1x32xf32> to vector<8x32xf32>
    %66 = arith.addf %63, %65 : vector<8x32xf32>
    %c0_31 = arith.constant 0 : index
    %c0_32 = arith.constant 0 : index
    %67 = vector.load %arg10[%c0_31, %c0_32] : memref<8x32xf32, #tpu.memory_space<vmem>>, vector<8x32xf32>
    tpu.vector_store %arg10[%c0_31, %c0_32], %66 {strides = array<i32>} : memref<8x32xf32, #tpu.memory_space<vmem>>, vector<8x32xf32>,
    return
  }
  func.func @transform_0(%arg0: i32) -> (i32, i32) {
    %c0_i32 = arith.constant 0 : i32
    %c0_i32_0 = arith.constant 0 : i32
    return %arg0, %c0_i32 : i32, i32
  }
  func.func @transform_1(%arg0: i32) -> (i32, i32) {
    %c0_i32 = arith.constant 0 : i32
    %c0_i32_0 = arith.constant 0 : i32
    %c0_i32_1 = arith.constant 0 : i32
    return %c0_i32, %c0_i32_0 : i32, i32
  }
  func.func @transform_2(%arg0: i32) -> (i32, i32) {
    %c0_i32 = arith.constant 0 : i32
    %c0_i32_0 = arith.constant 0 : i32
    %c0_i32_1 = arith.constant 0 : i32
    return %c0_i32, %c0_i32_0 : i32, i32
  }
  func.func @transform_3(%arg0: i32) -> (i32, i32) {
    %c0_i32 = arith.constant 0 : i32
    %c0_i32_0 = arith.constant 0 : i32
    %c0_i32_1 = arith.constant 0 : i32
    return %c0_i32, %c0_i32_0 : i32, i32
  }
  func.func @transform_4(%arg0: i32) -> (i32, i32) {
    %c0_i32 = arith.constant 0 : i32
    %c0_i32_0 = arith.constant 0 : i32
    %c0_i32_1 = arith.constant 0 : i32
    return %c0_i32, %c0_i32_0 : i32, i32
  }
  func.func @transform_5(%arg0: i32) -> (i32, i32) {
    %c0_i32 = arith.constant 0 : i32
    %c0_i32_0 = arith.constant 0 : i32
    %c0_i32_1 = arith.constant 0 : i32
    return %c0_i32, %c0_i32_0 : i32, i32
  }
  func.func @transform_6(%arg0: i32) -> (i32, i32) {
    %c0_i32 = arith.constant 0 : i32
    %c0_i32_0 = arith.constant 0 : i32
    %c0_i32_1 = arith.constant 0 : i32
    return %c0_i32, %c0_i32_0 : i32, i32
  }
  func.func @transform_7(%arg0: i32) -> (i32, i32) {
    %c0_i32 = arith.constant 0 : i32
    %c0_i32_0 = arith.constant 0 : i32
    %c0_i32_1 = arith.constant 0 : i32
    return %c0_i32, %c0_i32_0 : i32, i32
  }
  func.func @transform_8(%arg0: i32) -> (i32, i32) {
    %c0_i32 = arith.constant 0 : i32
    %c0_i32_0 = arith.constant 0 : i32
    %c0_i32_1 = arith.constant 0 : i32
    return %c0_i32, %c0_i32_0 : i32, i32
  }
  func.func @transform_9(%arg0: i32) -> (i32, i32) {
    %c0_i32 = arith.constant 0 : i32
    %c0_i32_0 = arith.constant 0 : i32
    return %arg0, %c0_i32 : i32, i32
  }
}

module attributes {stable_mosaic.version = 11 : i64} {
  func.func @_proj_heads_kernel(%arg0: i32, %arg1: memref<1x4x32xf32, #tpu.memory_space<vmem>>, %arg2: memref<1x32xf32, #tpu.memory_space<vmem>>, %arg3: memref<1x32xf32, #tpu.memory_space<vmem>>, %arg4: memref<32x64xbf16, #tpu.memory_space<vmem>>, %arg5: memref<1x64xf32, #tpu.memory_space<vmem>>, %arg6: memref<1x4x4x8xbf16, #tpu.memory_space<vmem>>, %arg7: memref<1x4x4x8xbf16, #tpu.memory_space<vmem>>) attributes {dimension_semantics = [#tpu.dimension_semantics<parallel>], iteration_bounds = array<i64: 2>, scalar_prefetch = 0 : i64, scratch_operands = 0 : i64, tpu.core_type = #tpu.core_type<tc>, window_params = [{transform_indices = @transform_0, window_bounds = array<i64: 1, 4, 32>}, {pipeline_mode = #tpu.pipeline_mode<synchronous>, transform_indices = @transform_1, window_bounds = array<i64: 1, 32>}, {pipeline_mode = #tpu.pipeline_mode<synchronous>, transform_indices = @transform_2, window_bounds = array<i64: 1, 32>}, {pipeline_mode = #tpu.pipeline_mode<synchronous>, transform_indices = @transform_3, window_bounds = array<i64: 32, 64>}, {pipeline_mode = #tpu.pipeline_mode<synchronous>, transform_indices = @transform_4, window_bounds = array<i64: 1, 64>}, {transform_indices = @transform_5, window_bounds = array<i64: 1, 4, 4, 8>}, {transform_indices = @transform_6, window_bounds = array<i64: 1, 4, 4, 8>}]} {
    %c0 = arith.constant 0 : index
    %c0_0 = arith.constant 0 : index
    %c0_1 = arith.constant 0 : index
    %0 = vector.load %arg1[%c0, %c0_0, %c0_1] : memref<1x4x32xf32, #tpu.memory_space<vmem>>, vector<1x4x32xf32>
    %1 = vector.shape_cast %0 : vector<1x4x32xf32> to vector<4x32xf32>
    %2 = arith.truncf %1 : vector<4x32xf32> to vector<4x32xbf16>
    %c0_2 = arith.constant 0 : index
    %c0_3 = arith.constant 0 : index
    %3 = vector.load %arg4[%c0_2, %c0_3] : memref<32x64xbf16, #tpu.memory_space<vmem>>, vector<32x64xbf16>
    %cst = arith.constant dense<0.000000e+00> : vector<4x64xf32>
    %4 = tpu.matmul %2, %3, %cst {dimension_numbers = #tpu.dot_dimension_numbers<[1], [0], [0], [1], [0, 0, 1, 1], [], []>} : vector<4x32xbf16>, vector<32x64xbf16>, vector<4x64xf32> -> vector<4x64xf32>
    %c0_4 = arith.constant 0 : index
    %c0_5 = arith.constant 0 : index
    %5 = vector.load %arg5[%c0_4, %c0_5] : memref<1x64xf32, #tpu.memory_space<vmem>>, vector<1x64xf32>
    %6 = vector.broadcast %5 : vector<1x64xf32> to vector<4x64xf32>
    %7 = arith.addf %4, %6 : vector<4x64xf32>
    %8 = vector.extract_strided_slice %7 {offsets = [0, 0], sizes = [4, 8], strides = [1, 1]} : vector<4x64xf32> to vector<4x8xf32>
    %9 = arith.truncf %8 : vector<4x8xf32> to vector<4x8xbf16>
    %c0_6 = arith.constant 0 : index
    %c0_7 = arith.constant 0 : index
    %c0_8 = arith.constant 0 : index
    %c0_9 = arith.constant 0 : index
    %10 = vector.load %arg6[%c0_6, %c0_7, %c0_8, %c0_9] : memref<1x4x4x8xbf16, #tpu.memory_space<vmem>>, vector<1x1x4x8xbf16>
    %11 = vector.shape_cast %10 : vector<1x1x4x8xbf16> to vector<4x8xbf16>
    %12 = vector.shape_cast %9 : vector<4x8xbf16> to vector<1x1x4x8xbf16>
    tpu.vector_store %arg6[%c0_6, %c0_7, %c0_8, %c0_9], %12 {strides = array<i32>} : memref<1x4x4x8xbf16, #tpu.memory_space<vmem>>, vector<1x1x4x8xbf16>,
    %13 = vector.extract_strided_slice %7 {offsets = [0, 8], sizes = [4, 8], strides = [1, 1]} : vector<4x64xf32> to vector<4x8xf32>
    %14 = arith.truncf %13 : vector<4x8xf32> to vector<4x8xbf16>
    %c0_10 = arith.constant 0 : index
    %c1 = arith.constant 1 : index
    %c0_11 = arith.constant 0 : index
    %c0_12 = arith.constant 0 : index
    %15 = vector.load %arg6[%c0_10, %c1, %c0_11, %c0_12] : memref<1x4x4x8xbf16, #tpu.memory_space<vmem>>, vector<1x1x4x8xbf16>
    %16 = vector.shape_cast %15 : vector<1x1x4x8xbf16> to vector<4x8xbf16>
    %17 = vector.shape_cast %14 : vector<4x8xbf16> to vector<1x1x4x8xbf16>
    tpu.vector_store %arg6[%c0_10, %c1, %c0_11, %c0_12], %17 {strides = array<i32>} : memref<1x4x4x8xbf16, #tpu.memory_space<vmem>>, vector<1x1x4x8xbf16>,
    %18 = vector.extract_strided_slice %7 {offsets = [0, 16], sizes = [4, 8], strides = [1, 1]} : vector<4x64xf32> to vector<4x8xf32>
    %19 = arith.truncf %18 : vector<4x8xf32> to vector<4x8xbf16>
    %c0_13 = arith.constant 0 : index
    %c2 = arith.constant 2 : index
    %c0_14 = arith.constant 0 : index
    %c0_15 = arith.constant 0 : index
    %20 = vector.load %arg6[%c0_13, %c2, %c0_14, %c0_15] : memref<1x4x4x8xbf16, #tpu.memory_space<vmem>>, vector<1x1x4x8xbf16>
    %21 = vector.shape_cast %20 : vector<1x1x4x8xbf16> to vector<4x8xbf16>
    %22 = vector.shape_cast %19 : vector<4x8xbf16> to vector<1x1x4x8xbf16>
    tpu.vector_store %arg6[%c0_13, %c2, %c0_14, %c0_15], %22 {strides = array<i32>} : memref<1x4x4x8xbf16, #tpu.memory_space<vmem>>, vector<1x1x4x8xbf16>,
    %23 = vector.extract_strided_slice %7 {offsets = [0, 24], sizes = [4, 8], strides = [1, 1]} : vector<4x64xf32> to vector<4x8xf32>
    %24 = arith.truncf %23 : vector<4x8xf32> to vector<4x8xbf16>
    %c0_16 = arith.constant 0 : index
    %c3 = arith.constant 3 : index
    %c0_17 = arith.constant 0 : index
    %c0_18 = arith.constant 0 : index
    %25 = vector.load %arg6[%c0_16, %c3, %c0_17, %c0_18] : memref<1x4x4x8xbf16, #tpu.memory_space<vmem>>, vector<1x1x4x8xbf16>
    %26 = vector.shape_cast %25 : vector<1x1x4x8xbf16> to vector<4x8xbf16>
    %27 = vector.shape_cast %24 : vector<4x8xbf16> to vector<1x1x4x8xbf16>
    tpu.vector_store %arg6[%c0_16, %c3, %c0_17, %c0_18], %27 {strides = array<i32>} : memref<1x4x4x8xbf16, #tpu.memory_space<vmem>>, vector<1x1x4x8xbf16>,
    %28 = vector.extract_strided_slice %7 {offsets = [0, 32], sizes = [4, 8], strides = [1, 1]} : vector<4x64xf32> to vector<4x8xf32>
    %29 = arith.truncf %28 : vector<4x8xf32> to vector<4x8xbf16>
    %c0_19 = arith.constant 0 : index
    %c0_20 = arith.constant 0 : index
    %c0_21 = arith.constant 0 : index
    %c0_22 = arith.constant 0 : index
    %30 = vector.load %arg7[%c0_19, %c0_20, %c0_21, %c0_22] : memref<1x4x4x8xbf16, #tpu.memory_space<vmem>>, vector<1x1x4x8xbf16>
    %31 = vector.shape_cast %30 : vector<1x1x4x8xbf16> to vector<4x8xbf16>
    %32 = vector.shape_cast %29 : vector<4x8xbf16> to vector<1x1x4x8xbf16>
    tpu.vector_store %arg7[%c0_19, %c0_20, %c0_21, %c0_22], %32 {strides = array<i32>} : memref<1x4x4x8xbf16, #tpu.memory_space<vmem>>, vector<1x1x4x8xbf16>,
    %33 = vector.extract_strided_slice %7 {offsets = [0, 40], sizes = [4, 8], strides = [1, 1]} : vector<4x64xf32> to vector<4x8xf32>
    %34 = arith.truncf %33 : vector<4x8xf32> to vector<4x8xbf16>
    %c0_23 = arith.constant 0 : index
    %c1_24 = arith.constant 1 : index
    %c0_25 = arith.constant 0 : index
    %c0_26 = arith.constant 0 : index
    %35 = vector.load %arg7[%c0_23, %c1_24, %c0_25, %c0_26] : memref<1x4x4x8xbf16, #tpu.memory_space<vmem>>, vector<1x1x4x8xbf16>
    %36 = vector.shape_cast %35 : vector<1x1x4x8xbf16> to vector<4x8xbf16>
    %37 = vector.shape_cast %34 : vector<4x8xbf16> to vector<1x1x4x8xbf16>
    tpu.vector_store %arg7[%c0_23, %c1_24, %c0_25, %c0_26], %37 {strides = array<i32>} : memref<1x4x4x8xbf16, #tpu.memory_space<vmem>>, vector<1x1x4x8xbf16>,
    %38 = vector.extract_strided_slice %7 {offsets = [0, 48], sizes = [4, 8], strides = [1, 1]} : vector<4x64xf32> to vector<4x8xf32>
    %39 = arith.truncf %38 : vector<4x8xf32> to vector<4x8xbf16>
    %c0_27 = arith.constant 0 : index
    %c2_28 = arith.constant 2 : index
    %c0_29 = arith.constant 0 : index
    %c0_30 = arith.constant 0 : index
    %40 = vector.load %arg7[%c0_27, %c2_28, %c0_29, %c0_30] : memref<1x4x4x8xbf16, #tpu.memory_space<vmem>>, vector<1x1x4x8xbf16>
    %41 = vector.shape_cast %40 : vector<1x1x4x8xbf16> to vector<4x8xbf16>
    %42 = vector.shape_cast %39 : vector<4x8xbf16> to vector<1x1x4x8xbf16>
    tpu.vector_store %arg7[%c0_27, %c2_28, %c0_29, %c0_30], %42 {strides = array<i32>} : memref<1x4x4x8xbf16, #tpu.memory_space<vmem>>, vector<1x1x4x8xbf16>,
    %43 = vector.extract_strided_slice %7 {offsets = [0, 56], sizes = [4, 8], strides = [1, 1]} : vector<4x64xf32> to vector<4x8xf32>
    %44 = arith.truncf %43 : vector<4x8xf32> to vector<4x8xbf16>
    %c0_31 = arith.constant 0 : index
    %c3_32 = arith.constant 3 : index
    %c0_33 = arith.constant 0 : index
    %c0_34 = arith.constant 0 : index
    %45 = vector.load %arg7[%c0_31, %c3_32, %c0_33, %c0_34] : memref<1x4x4x8xbf16, #tpu.memory_space<vmem>>, vector<1x1x4x8xbf16>
    %46 = vector.shape_cast %45 : vector<1x1x4x8xbf16> to vector<4x8xbf16>
    %47 = vector.shape_cast %44 : vector<4x8xbf16> to vector<1x1x4x8xbf16>
    tpu.vector_store %arg7[%c0_31, %c3_32, %c0_33, %c0_34], %47 {strides = array<i32>} : memref<1x4x4x8xbf16, #tpu.memory_space<vmem>>, vector<1x1x4x8xbf16>,
    return
  }
  func.func @transform_0(%arg0: i32) -> (i32, i32, i32) {
    %c0_i32 = arith.constant 0 : i32
    %c0_i32_0 = arith.constant 0 : i32
    %c0_i32_1 = arith.constant 0 : i32
    return %arg0, %c0_i32, %c0_i32_0 : i32, i32, i32
  }
  func.func @transform_1(%arg0: i32) -> (i32, i32) {
    %c0_i32 = arith.constant 0 : i32
    %c0_i32_0 = arith.constant 0 : i32
    %c0_i32_1 = arith.constant 0 : i32
    return %c0_i32, %c0_i32_0 : i32, i32
  }
  func.func @transform_2(%arg0: i32) -> (i32, i32) {
    %c0_i32 = arith.constant 0 : i32
    %c0_i32_0 = arith.constant 0 : i32
    %c0_i32_1 = arith.constant 0 : i32
    return %c0_i32, %c0_i32_0 : i32, i32
  }
  func.func @transform_3(%arg0: i32) -> (i32, i32) {
    %c0_i32 = arith.constant 0 : i32
    %c0_i32_0 = arith.constant 0 : i32
    %c0_i32_1 = arith.constant 0 : i32
    return %c0_i32, %c0_i32_0 : i32, i32
  }
  func.func @transform_4(%arg0: i32) -> (i32, i32) {
    %c0_i32 = arith.constant 0 : i32
    %c0_i32_0 = arith.constant 0 : i32
    %c0_i32_1 = arith.constant 0 : i32
    return %c0_i32, %c0_i32_0 : i32, i32
  }
  func.func @transform_5(%arg0: i32) -> (i32, i32, i32, i32) {
    %c0_i32 = arith.constant 0 : i32
    %c0_i32_0 = arith.constant 0 : i32
    %c0_i32_1 = arith.constant 0 : i32
    %c0_i32_2 = arith.constant 0 : i32
    return %arg0, %c0_i32, %c0_i32_0, %c0_i32_1 : i32, i32, i32, i32
  }
  func.func @transform_6(%arg0: i32) -> (i32, i32, i32, i32) {
    %c0_i32 = arith.constant 0 : i32
    %c0_i32_0 = arith.constant 0 : i32
    %c0_i32_1 = arith.constant 0 : i32
    %c0_i32_2 = arith.constant 0 : i32
    return %arg0, %c0_i32, %c0_i32_0, %c0_i32_1 : i32, i32, i32, i32
  }
}

module attributes {stable_mosaic.version = 11 : i64} {
  func.func @_attn_kernel(%arg0: i32, %arg1: memref<1x4x5x8xbf16, #tpu.memory_space<vmem>>, %arg2: memref<1x4x5x8xbf16, #tpu.memory_space<vmem>>, %arg3: memref<1x4x5x8xbf16, #tpu.memory_space<vmem>>, %arg4: memref<1x1x5xf32, #tpu.memory_space<vmem>>, %arg5: memref<1x4x5x8xf32, #tpu.memory_space<vmem>>) attributes {dimension_semantics = [#tpu.dimension_semantics<parallel>], iteration_bounds = array<i64: 2>, scalar_prefetch = 0 : i64, scratch_operands = 0 : i64, tpu.core_type = #tpu.core_type<tc>, window_params = [{transform_indices = @transform_0, window_bounds = array<i64: 1, 4, 5, 8>}, {transform_indices = @transform_1, window_bounds = array<i64: 1, 4, 5, 8>}, {transform_indices = @transform_2, window_bounds = array<i64: 1, 4, 5, 8>}, {transform_indices = @transform_3, window_bounds = array<i64: 1, 1, 5>}, {transform_indices = @transform_4, window_bounds = array<i64: 1, 4, 5, 8>}]} {
    %c0 = arith.constant 0 : index
    %c0_0 = arith.constant 0 : index
    %c0_1 = arith.constant 0 : index
    %c0_2 = arith.constant 0 : index
    %0 = vector.load %arg1[%c0, %c0_0, %c0_1, %c0_2] : memref<1x4x5x8xbf16, #tpu.memory_space<vmem>>, vector<1x4x5x8xbf16>
    %1 = vector.shape_cast %0 : vector<1x4x5x8xbf16> to vector<4x5x8xbf16>
    %c0_3 = arith.constant 0 : index
    %c0_4 = arith.constant 0 : index
    %c0_5 = arith.constant 0 : index
    %c0_6 = arith.constant 0 : index
    %2 = vector.load %arg2[%c0_3, %c0_4, %c0_5, %c0_6] : memref<1x4x5x8xbf16, #tpu.memory_space<vmem>>, vector<1x4x5x8xbf16>
    %3 = vector.shape_cast %2 : vector<1x4x5x8xbf16> to vector<4x5x8xbf16>
    %c0_7 = arith.constant 0 : index
    %c0_8 = arith.constant 0 : index
    %c0_9 = arith.constant 0 : index
    %c0_10 = arith.constant 0 : index
    %4 = vector.load %arg3[%c0_7, %c0_8, %c0_9, %c0_10] : memref<1x4x5x8xbf16, #tpu.memory_space<vmem>>, vector<1x4x5x8xbf16>
    %5 = vector.shape_cast %4 : vector<1x4x5x8xbf16> to vector<4x5x8xbf16>
    "tpu.trace_start"() <{level = 10 : i32, message = "hqd,hkd->hqk"}> : () -> ()
    %cst = arith.constant dense<0.000000e+00> : vector<4x5x5xf32>
    %6 = tpu.matmul %1, %3, %cst {dimension_numbers = #tpu.dot_dimension_numbers<[2], [2], [1], [1], [0, 0, 0, 1, 1, 1], [0], [0]>} : vector<4x5x8xbf16>, vector<4x5x8xbf16>, vector<4x5x5xf32> -> vector<4x5x5xf32>
    "tpu.trace_stop"() : () -> ()
    %cst_11 = arith.constant 0.353553385 : f32
    %7 = vector.broadcast %cst_11 : f32 to vector<4x5x5xf32>
    %8 = arith.mulf %6, %7 : vector<4x5x5xf32>
    %c0_12 = arith.constant 0 : index
    %c0_13 = arith.constant 0 : index
    %c0_14 = arith.constant 0 : index
    %9 = vector.load %arg4[%c0_12, %c0_13, %c0_14] : memref<1x1x5xf32, #tpu.memory_space<vmem>>, vector<1x1x5xf32>
    %10 = vector.shape_cast %9 : vector<1x1x5xf32> to vector<1x5xf32>
    %cst_15 = arith.constant 1.000000e+00 : f32
    %11 = vector.broadcast %cst_15 : f32 to vector<1x5xf32>
    %12 = arith.subf %11, %10 : vector<1x5xf32>
    %cst_16 = arith.constant -1.000000e+09 : f32
    %13 = vector.broadcast %cst_16 : f32 to vector<1x5xf32>
    %14 = arith.mulf %12, %13 : vector<1x5xf32>
    %15 = vector.shape_cast %14 : vector<1x5xf32> to vector<1x1x5xf32>
    %16 = vector.broadcast %15 : vector<1x1x5xf32> to vector<4x5x5xf32>
    %17 = arith.addf %8, %16 : vector<4x5x5xf32>
    %18 = tpu.iota {dimensions = array<i32: 0>} : vector<5x5xi32>
    %19 = tpu.iota {dimensions = array<i32: 1>} : vector<5x5xi32>
    %20 = arith.cmpi sle, %19, %18 : vector<5x5xi32>
    %21 = vector.shape_cast %20 : vector<5x5xi1> to vector<1x5x5xi1>
    %cst_17 = arith.constant -1.000000e+09 : f32
    %22 = vector.shape_cast %21 : vector<1x5x5xi1> to vector<1x5x5xi1>
    %23 = vector.broadcast %22 : vector<1x5x5xi1> to vector<4x5x5xi1>
    %24 = vector.broadcast %cst_17 : f32 to vector<4x5x5xf32>
    %25 = arith.select %23, %17, %24 : vector<4x5x5xi1>, vector<4x5x5xf32>
    %cst_18 = arith.constant dense<0xFF800000> : vector<4x5xf32>
    %26 = vector.multi_reduction <maximumf>, %25, %cst_18 [2] : vector<4x5x5xf32> to vector<4x5xf32>
    %27 = vector.shape_cast %26 : vector<4x5xf32> to vector<4x5x1xf32>
    %28 = vector.broadcast %27 : vector<4x5x1xf32> to vector<4x5x5xf32>
    %29 = arith.subf %25, %28 : vector<4x5x5xf32>
    %30 = math.exp %29 : vector<4x5x5xf32>
    %cst_19 = arith.constant dense<0.000000e+00> : vector<4x5xf32>
    %31 = vector.multi_reduction <add>, %30, %cst_19 [2] : vector<4x5x5xf32> to vector<4x5xf32>
    %32 = vector.shape_cast %31 : vector<4x5xf32> to vector<4x5x1xf32>
    %33 = tpu.reciprocal %32 {approx = true} : vector<4x5x1xf32> -> vector<4x5x1xf32>
    %34 = vector.broadcast %33 : vector<4x5x1xf32> to vector<4x5x5xf32>
    %35 = arith.mulf %30, %34 : vector<4x5x5xf32>
    %36 = arith.truncf %35 : vector<4x5x5xf32> to vector<4x5x5xbf16>
    "tpu.trace_start"() <{level = 10 : i32, message = "hqk,hkd->hqd"}> : () -> ()
    %cst_20 = arith.constant dense<0.000000e+00> : vector<4x5x8xf32>
    %37 = tpu.matmul %36, %5, %cst_20 {dimension_numbers = #tpu.dot_dimension_numbers<[2], [1], [1], [2], [0, 0, 0, 1, 1, 2], [0], [0]>} : vector<4x5x5xbf16>, vector<4x5x8xbf16>, vector<4x5x8xf32> -> vector<4x5x8xf32>
    "tpu.trace_stop"() : () -> ()
    %c0_21 = arith.constant 0 : index
    %c0_22 = arith.constant 0 : index
    %c0_23 = arith.constant 0 : index
    %c0_24 = arith.constant 0 : index
    %38 = vector.load %arg5[%c0_21, %c0_22, %c0_23, %c0_24] : memref<1x4x5x8xf32, #tpu.memory_space<vmem>>, vector<1x4x5x8xf32>
    %39 = vector.shape_cast %38 : vector<1x4x5x8xf32> to vector<4x5x8xf32>
    %40 = vector.shape_cast %37 : vector<4x5x8xf32> to vector<1x4x5x8xf32>
    tpu.vector_store %arg5[%c0_21, %c0_22, %c0_23, %c0_24], %40 {strides = array<i32>} : memref<1x4x5x8xf32, #tpu.memory_space<vmem>>, vector<1x4x5x8xf32>,
    return
  }
  func.func @transform_0(%arg0: i32) -> (i32, i32, i32, i32) {
    %c0_i32 = arith.constant 0 : i32
    %c0_i32_0 = arith.constant 0 : i32
    %c0_i32_1 = arith.constant 0 : i32
    %c0_i32_2 = arith.constant 0 : i32
    return %arg0, %c0_i32, %c0_i32_0, %c0_i32_1 : i32, i32, i32, i32
  }
  func.func @transform_1(%arg0: i32) -> (i32, i32, i32, i32) {
    %c0_i32 = arith.constant 0 : i32
    %c0_i32_0 = arith.constant 0 : i32
    %c0_i32_1 = arith.constant 0 : i32
    %c0_i32_2 = arith.constant 0 : i32
    return %arg0, %c0_i32, %c0_i32_0, %c0_i32_1 : i32, i32, i32, i32
  }
  func.func @transform_2(%arg0: i32) -> (i32, i32, i32, i32) {
    %c0_i32 = arith.constant 0 : i32
    %c0_i32_0 = arith.constant 0 : i32
    %c0_i32_1 = arith.constant 0 : i32
    %c0_i32_2 = arith.constant 0 : i32
    return %arg0, %c0_i32, %c0_i32_0, %c0_i32_1 : i32, i32, i32, i32
  }
  func.func @transform_3(%arg0: i32) -> (i32, i32, i32) {
    %c0_i32 = arith.constant 0 : i32
    %c0_i32_0 = arith.constant 0 : i32
    %c0_i32_1 = arith.constant 0 : i32
    return %arg0, %c0_i32, %c0_i32_0 : i32, i32, i32
  }
  func.func @transform_4(%arg0: i32) -> (i32, i32, i32, i32) {
    %c0_i32 = arith.constant 0 : i32
    %c0_i32_0 = arith.constant 0 : i32
    %c0_i32_1 = arith.constant 0 : i32
    %c0_i32_2 = arith.constant 0 : i32
    return %arg0, %c0_i32, %c0_i32_0, %c0_i32_1 : i32, i32, i32, i32
  }
}

module attributes {stable_mosaic.version = 11 : i64} {
  func.func @_proj_heads_kernel(%arg0: i32, %arg1: memref<1x5x32xf32, #tpu.memory_space<vmem>>, %arg2: memref<1x32xf32, #tpu.memory_space<vmem>>, %arg3: memref<1x32xf32, #tpu.memory_space<vmem>>, %arg4: memref<32x96xbf16, #tpu.memory_space<vmem>>, %arg5: memref<1x96xf32, #tpu.memory_space<vmem>>, %arg6: memref<1x4x5x8xbf16, #tpu.memory_space<vmem>>, %arg7: memref<1x4x5x8xbf16, #tpu.memory_space<vmem>>, %arg8: memref<1x4x5x8xbf16, #tpu.memory_space<vmem>>) attributes {dimension_semantics = [#tpu.dimension_semantics<parallel>], iteration_bounds = array<i64: 2>, scalar_prefetch = 0 : i64, scratch_operands = 0 : i64, tpu.core_type = #tpu.core_type<tc>, window_params = [{transform_indices = @transform_0, window_bounds = array<i64: 1, 5, 32>}, {pipeline_mode = #tpu.pipeline_mode<synchronous>, transform_indices = @transform_1, window_bounds = array<i64: 1, 32>}, {pipeline_mode = #tpu.pipeline_mode<synchronous>, transform_indices = @transform_2, window_bounds = array<i64: 1, 32>}, {pipeline_mode = #tpu.pipeline_mode<synchronous>, transform_indices = @transform_3, window_bounds = array<i64: 32, 96>}, {pipeline_mode = #tpu.pipeline_mode<synchronous>, transform_indices = @transform_4, window_bounds = array<i64: 1, 96>}, {transform_indices = @transform_5, window_bounds = array<i64: 1, 4, 5, 8>}, {transform_indices = @transform_6, window_bounds = array<i64: 1, 4, 5, 8>}, {transform_indices = @transform_7, window_bounds = array<i64: 1, 4, 5, 8>}]} {
    %c0 = arith.constant 0 : index
    %c0_0 = arith.constant 0 : index
    %c0_1 = arith.constant 0 : index
    %0 = vector.load %arg1[%c0, %c0_0, %c0_1] : memref<1x5x32xf32, #tpu.memory_space<vmem>>, vector<1x5x32xf32>
    %1 = vector.shape_cast %0 : vector<1x5x32xf32> to vector<5x32xf32>
    %cst = arith.constant dense<0.000000e+00> : vector<5xf32>
    %2 = vector.multi_reduction <add>, %1, %cst [1] : vector<5x32xf32> to vector<5xf32>
    %3 = vector.shape_cast %2 : vector<5xf32> to vector<5x1xf32>
    %cst_2 = arith.constant 3.200000e+01 : f32
    %4 = vector.broadcast %cst_2 : f32 to vector<5x1xf32>
    %5 = arith.divf %3, %4 : vector<5x1xf32>
    %6 = vector.broadcast %5 : vector<5x1xf32> to vector<5x32xf32>
    %7 = arith.subf %1, %6 : vector<5x32xf32>
    %8 = arith.mulf %7, %7 : vector<5x32xf32>
    %cst_3 = arith.constant dense<0.000000e+00> : vector<5xf32>
    %9 = vector.multi_reduction <add>, %8, %cst_3 [1] : vector<5x32xf32> to vector<5xf32>
    %10 = vector.shape_cast %9 : vector<5xf32> to vector<5x1xf32>
    %cst_4 = arith.constant 3.200000e+01 : f32
    %11 = vector.broadcast %cst_4 : f32 to vector<5x1xf32>
    %12 = arith.divf %10, %11 : vector<5x1xf32>
    %cst_5 = arith.constant 9.99999974E-6 : f32
    %13 = vector.broadcast %cst_5 : f32 to vector<5x1xf32>
    %14 = arith.addf %12, %13 : vector<5x1xf32>
    %15 = math.rsqrt %14 : vector<5x1xf32>
    %16 = vector.broadcast %15 : vector<5x1xf32> to vector<5x32xf32>
    %17 = arith.mulf %7, %16 : vector<5x32xf32>
    %c0_6 = arith.constant 0 : index
    %c0_7 = arith.constant 0 : index
    %18 = vector.load %arg2[%c0_6, %c0_7] : memref<1x32xf32, #tpu.memory_space<vmem>>, vector<1x32xf32>
    %19 = vector.broadcast %18 : vector<1x32xf32> to vector<5x32xf32>
    %20 = arith.mulf %17, %19 : vector<5x32xf32>
    %c0_8 = arith.constant 0 : index
    %c0_9 = arith.constant 0 : index
    %21 = vector.load %arg3[%c0_8, %c0_9] : memref<1x32xf32, #tpu.memory_space<vmem>>, vector<1x32xf32>
    %22 = vector.broadcast %21 : vector<1x32xf32> to vector<5x32xf32>
    %23 = arith.addf %20, %22 : vector<5x32xf32>
    %24 = arith.truncf %23 : vector<5x32xf32> to vector<5x32xbf16>
    %c0_10 = arith.constant 0 : index
    %c0_11 = arith.constant 0 : index
    %25 = vector.load %arg4[%c0_10, %c0_11] : memref<32x96xbf16, #tpu.memory_space<vmem>>, vector<32x96xbf16>
    %cst_12 = arith.constant dense<0.000000e+00> : vector<5x96xf32>
    %26 = tpu.matmul %24, %25, %cst_12 {dimension_numbers = #tpu.dot_dimension_numbers<[1], [0], [0], [1], [0, 0, 1, 1], [], []>} : vector<5x32xbf16>, vector<32x96xbf16>, vector<5x96xf32> -> vector<5x96xf32>
    %c0_13 = arith.constant 0 : index
    %c0_14 = arith.constant 0 : index
    %27 = vector.load %arg5[%c0_13, %c0_14] : memref<1x96xf32, #tpu.memory_space<vmem>>, vector<1x96xf32>
    %28 = vector.broadcast %27 : vector<1x96xf32> to vector<5x96xf32>
    %29 = arith.addf %26, %28 : vector<5x96xf32>
    %30 = vector.extract_strided_slice %29 {offsets = [0, 0], sizes = [5, 8], strides = [1, 1]} : vector<5x96xf32> to vector<5x8xf32>
    %31 = arith.truncf %30 : vector<5x8xf32> to vector<5x8xbf16>
    %c0_15 = arith.constant 0 : index
    %c0_16 = arith.constant 0 : index
    %c0_17 = arith.constant 0 : index
    %c0_18 = arith.constant 0 : index
    %32 = vector.load %arg6[%c0_15, %c0_16, %c0_17, %c0_18] : memref<1x4x5x8xbf16, #tpu.memory_space<vmem>>, vector<1x1x5x8xbf16>
    %33 = vector.shape_cast %32 : vector<1x1x5x8xbf16> to vector<5x8xbf16>
    %34 = vector.shape_cast %31 : vector<5x8xbf16> to vector<1x1x5x8xbf16>
    tpu.vector_store %arg6[%c0_15, %c0_16, %c0_17, %c0_18], %34 {strides = array<i32>} : memref<1x4x5x8xbf16, #tpu.memory_space<vmem>>, vector<1x1x5x8xbf16>,
    %35 = vector.extract_strided_slice %29 {offsets = [0, 8], sizes = [5, 8], strides = [1, 1]} : vector<5x96xf32> to vector<5x8xf32>
    %36 = arith.truncf %35 : vector<5x8xf32> to vector<5x8xbf16>
    %c0_19 = arith.constant 0 : index
    %c1 = arith.constant 1 : index
    %c0_20 = arith.constant 0 : index
    %c0_21 = arith.constant 0 : index
    %37 = vector.load %arg6[%c0_19, %c1, %c0_20, %c0_21] : memref<1x4x5x8xbf16, #tpu.memory_space<vmem>>, vector<1x1x5x8xbf16>
    %38 = vector.shape_cast %37 : vector<1x1x5x8xbf16> to vector<5x8xbf16>
    %39 = vector.shape_cast %36 : vector<5x8xbf16> to vector<1x1x5x8xbf16>
    tpu.vector_store %arg6[%c0_19, %c1, %c0_20, %c0_21], %39 {strides = array<i32>} : memref<1x4x5x8xbf16, #tpu.memory_space<vmem>>, vector<1x1x5x8xbf16>,
    %40 = vector.extract_strided_slice %29 {offsets = [0, 16], sizes = [5, 8], strides = [1, 1]} : vector<5x96xf32> to vector<5x8xf32>
    %41 = arith.truncf %40 : vector<5x8xf32> to vector<5x8xbf16>
    %c0_22 = arith.constant 0 : index
    %c2 = arith.constant 2 : index
    %c0_23 = arith.constant 0 : index
    %c0_24 = arith.constant 0 : index
    %42 = vector.load %arg6[%c0_22, %c2, %c0_23, %c0_24] : memref<1x4x5x8xbf16, #tpu.memory_space<vmem>>, vector<1x1x5x8xbf16>
    %43 = vector.shape_cast %42 : vector<1x1x5x8xbf16> to vector<5x8xbf16>
    %44 = vector.shape_cast %41 : vector<5x8xbf16> to vector<1x1x5x8xbf16>
    tpu.vector_store %arg6[%c0_22, %c2, %c0_23, %c0_24], %44 {strides = array<i32>} : memref<1x4x5x8xbf16, #tpu.memory_space<vmem>>, vector<1x1x5x8xbf16>,
    %45 = vector.extract_strided_slice %29 {offsets = [0, 24], sizes = [5, 8], strides = [1, 1]} : vector<5x96xf32> to vector<5x8xf32>
    %46 = arith.truncf %45 : vector<5x8xf32> to vector<5x8xbf16>
    %c0_25 = arith.constant 0 : index
    %c3 = arith.constant 3 : index
    %c0_26 = arith.constant 0 : index
    %c0_27 = arith.constant 0 : index
    %47 = vector.load %arg6[%c0_25, %c3, %c0_26, %c0_27] : memref<1x4x5x8xbf16, #tpu.memory_space<vmem>>, vector<1x1x5x8xbf16>
    %48 = vector.shape_cast %47 : vector<1x1x5x8xbf16> to vector<5x8xbf16>
    %49 = vector.shape_cast %46 : vector<5x8xbf16> to vector<1x1x5x8xbf16>
    tpu.vector_store %arg6[%c0_25, %c3, %c0_26, %c0_27], %49 {strides = array<i32>} : memref<1x4x5x8xbf16, #tpu.memory_space<vmem>>, vector<1x1x5x8xbf16>,
    %50 = vector.extract_strided_slice %29 {offsets = [0, 32], sizes = [5, 8], strides = [1, 1]} : vector<5x96xf32> to vector<5x8xf32>
    %51 = arith.truncf %50 : vector<5x8xf32> to vector<5x8xbf16>
    %c0_28 = arith.constant 0 : index
    %c0_29 = arith.constant 0 : index
    %c0_30 = arith.constant 0 : index
    %c0_31 = arith.constant 0 : index
    %52 = vector.load %arg7[%c0_28, %c0_29, %c0_30, %c0_31] : memref<1x4x5x8xbf16, #tpu.memory_space<vmem>>, vector<1x1x5x8xbf16>
    %53 = vector.shape_cast %52 : vector<1x1x5x8xbf16> to vector<5x8xbf16>
    %54 = vector.shape_cast %51 : vector<5x8xbf16> to vector<1x1x5x8xbf16>
    tpu.vector_store %arg7[%c0_28, %c0_29, %c0_30, %c0_31], %54 {strides = array<i32>} : memref<1x4x5x8xbf16, #tpu.memory_space<vmem>>, vector<1x1x5x8xbf16>,
    %55 = vector.extract_strided_slice %29 {offsets = [0, 40], sizes = [5, 8], strides = [1, 1]} : vector<5x96xf32> to vector<5x8xf32>
    %56 = arith.truncf %55 : vector<5x8xf32> to vector<5x8xbf16>
    %c0_32 = arith.constant 0 : index
    %c1_33 = arith.constant 1 : index
    %c0_34 = arith.constant 0 : index
    %c0_35 = arith.constant 0 : index
    %57 = vector.load %arg7[%c0_32, %c1_33, %c0_34, %c0_35] : memref<1x4x5x8xbf16, #tpu.memory_space<vmem>>, vector<1x1x5x8xbf16>
    %58 = vector.shape_cast %57 : vector<1x1x5x8xbf16> to vector<5x8xbf16>
    %59 = vector.shape_cast %56 : vector<5x8xbf16> to vector<1x1x5x8xbf16>
    tpu.vector_store %arg7[%c0_32, %c1_33, %c0_34, %c0_35], %59 {strides = array<i32>} : memref<1x4x5x8xbf16, #tpu.memory_space<vmem>>, vector<1x1x5x8xbf16>,
    %60 = vector.extract_strided_slice %29 {offsets = [0, 48], sizes = [5, 8], strides = [1, 1]} : vector<5x96xf32> to vector<5x8xf32>
    %61 = arith.truncf %60 : vector<5x8xf32> to vector<5x8xbf16>
    %c0_36 = arith.constant 0 : index
    %c2_37 = arith.constant 2 : index
    %c0_38 = arith.constant 0 : index
    %c0_39 = arith.constant 0 : index
    %62 = vector.load %arg7[%c0_36, %c2_37, %c0_38, %c0_39] : memref<1x4x5x8xbf16, #tpu.memory_space<vmem>>, vector<1x1x5x8xbf16>
    %63 = vector.shape_cast %62 : vector<1x1x5x8xbf16> to vector<5x8xbf16>
    %64 = vector.shape_cast %61 : vector<5x8xbf16> to vector<1x1x5x8xbf16>
    tpu.vector_store %arg7[%c0_36, %c2_37, %c0_38, %c0_39], %64 {strides = array<i32>} : memref<1x4x5x8xbf16, #tpu.memory_space<vmem>>, vector<1x1x5x8xbf16>,
    %65 = vector.extract_strided_slice %29 {offsets = [0, 56], sizes = [5, 8], strides = [1, 1]} : vector<5x96xf32> to vector<5x8xf32>
    %66 = arith.truncf %65 : vector<5x8xf32> to vector<5x8xbf16>
    %c0_40 = arith.constant 0 : index
    %c3_41 = arith.constant 3 : index
    %c0_42 = arith.constant 0 : index
    %c0_43 = arith.constant 0 : index
    %67 = vector.load %arg7[%c0_40, %c3_41, %c0_42, %c0_43] : memref<1x4x5x8xbf16, #tpu.memory_space<vmem>>, vector<1x1x5x8xbf16>
    %68 = vector.shape_cast %67 : vector<1x1x5x8xbf16> to vector<5x8xbf16>
    %69 = vector.shape_cast %66 : vector<5x8xbf16> to vector<1x1x5x8xbf16>
    tpu.vector_store %arg7[%c0_40, %c3_41, %c0_42, %c0_43], %69 {strides = array<i32>} : memref<1x4x5x8xbf16, #tpu.memory_space<vmem>>, vector<1x1x5x8xbf16>,
    %70 = vector.extract_strided_slice %29 {offsets = [0, 64], sizes = [5, 8], strides = [1, 1]} : vector<5x96xf32> to vector<5x8xf32>
    %71 = arith.truncf %70 : vector<5x8xf32> to vector<5x8xbf16>
    %c0_44 = arith.constant 0 : index
    %c0_45 = arith.constant 0 : index
    %c0_46 = arith.constant 0 : index
    %c0_47 = arith.constant 0 : index
    %72 = vector.load %arg8[%c0_44, %c0_45, %c0_46, %c0_47] : memref<1x4x5x8xbf16, #tpu.memory_space<vmem>>, vector<1x1x5x8xbf16>
    %73 = vector.shape_cast %72 : vector<1x1x5x8xbf16> to vector<5x8xbf16>
    %74 = vector.shape_cast %71 : vector<5x8xbf16> to vector<1x1x5x8xbf16>
    tpu.vector_store %arg8[%c0_44, %c0_45, %c0_46, %c0_47], %74 {strides = array<i32>} : memref<1x4x5x8xbf16, #tpu.memory_space<vmem>>, vector<1x1x5x8xbf16>,
    %75 = vector.extract_strided_slice %29 {offsets = [0, 72], sizes = [5, 8], strides = [1, 1]} : vector<5x96xf32> to vector<5x8xf32>
    %76 = arith.truncf %75 : vector<5x8xf32> to vector<5x8xbf16>
    %c0_48 = arith.constant 0 : index
    %c1_49 = arith.constant 1 : index
    %c0_50 = arith.constant 0 : index
    %c0_51 = arith.constant 0 : index
    %77 = vector.load %arg8[%c0_48, %c1_49, %c0_50, %c0_51] : memref<1x4x5x8xbf16, #tpu.memory_space<vmem>>, vector<1x1x5x8xbf16>
    %78 = vector.shape_cast %77 : vector<1x1x5x8xbf16> to vector<5x8xbf16>
    %79 = vector.shape_cast %76 : vector<5x8xbf16> to vector<1x1x5x8xbf16>
    tpu.vector_store %arg8[%c0_48, %c1_49, %c0_50, %c0_51], %79 {strides = array<i32>} : memref<1x4x5x8xbf16, #tpu.memory_space<vmem>>, vector<1x1x5x8xbf16>,
    %80 = vector.extract_strided_slice %29 {offsets = [0, 80], sizes = [5, 8], strides = [1, 1]} : vector<5x96xf32> to vector<5x8xf32>
    %81 = arith.truncf %80 : vector<5x8xf32> to vector<5x8xbf16>
    %c0_52 = arith.constant 0 : index
    %c2_53 = arith.constant 2 : index
    %c0_54 = arith.constant 0 : index
    %c0_55 = arith.constant 0 : index
    %82 = vector.load %arg8[%c0_52, %c2_53, %c0_54, %c0_55] : memref<1x4x5x8xbf16, #tpu.memory_space<vmem>>, vector<1x1x5x8xbf16>
    %83 = vector.shape_cast %82 : vector<1x1x5x8xbf16> to vector<5x8xbf16>
    %84 = vector.shape_cast %81 : vector<5x8xbf16> to vector<1x1x5x8xbf16>
    tpu.vector_store %arg8[%c0_52, %c2_53, %c0_54, %c0_55], %84 {strides = array<i32>} : memref<1x4x5x8xbf16, #tpu.memory_space<vmem>>, vector<1x1x5x8xbf16>,
    %85 = vector.extract_strided_slice %29 {offsets = [0, 88], sizes = [5, 8], strides = [1, 1]} : vector<5x96xf32> to vector<5x8xf32>
    %86 = arith.truncf %85 : vector<5x8xf32> to vector<5x8xbf16>
    %c0_56 = arith.constant 0 : index
    %c3_57 = arith.constant 3 : index
    %c0_58 = arith.constant 0 : index
    %c0_59 = arith.constant 0 : index
    %87 = vector.load %arg8[%c0_56, %c3_57, %c0_58, %c0_59] : memref<1x4x5x8xbf16, #tpu.memory_space<vmem>>, vector<1x1x5x8xbf16>
    %88 = vector.shape_cast %87 : vector<1x1x5x8xbf16> to vector<5x8xbf16>
    %89 = vector.shape_cast %86 : vector<5x8xbf16> to vector<1x1x5x8xbf16>
    tpu.vector_store %arg8[%c0_56, %c3_57, %c0_58, %c0_59], %89 {strides = array<i32>} : memref<1x4x5x8xbf16, #tpu.memory_space<vmem>>, vector<1x1x5x8xbf16>,
    return
  }
  func.func @transform_0(%arg0: i32) -> (i32, i32, i32) {
    %c0_i32 = arith.constant 0 : i32
    %c0_i32_0 = arith.constant 0 : i32
    %c0_i32_1 = arith.constant 0 : i32
    return %arg0, %c0_i32, %c0_i32_0 : i32, i32, i32
  }
  func.func @transform_1(%arg0: i32) -> (i32, i32) {
    %c0_i32 = arith.constant 0 : i32
    %c0_i32_0 = arith.constant 0 : i32
    %c0_i32_1 = arith.constant 0 : i32
    return %c0_i32, %c0_i32_0 : i32, i32
  }
  func.func @transform_2(%arg0: i32) -> (i32, i32) {
    %c0_i32 = arith.constant 0 : i32
    %c0_i32_0 = arith.constant 0 : i32
    %c0_i32_1 = arith.constant 0 : i32
    return %c0_i32, %c0_i32_0 : i32, i32
  }
  func.func @transform_3(%arg0: i32) -> (i32, i32) {
    %c0_i32 = arith.constant 0 : i32
    %c0_i32_0 = arith.constant 0 : i32
    %c0_i32_1 = arith.constant 0 : i32
    return %c0_i32, %c0_i32_0 : i32, i32
  }
  func.func @transform_4(%arg0: i32) -> (i32, i32) {
    %c0_i32 = arith.constant 0 : i32
    %c0_i32_0 = arith.constant 0 : i32
    %c0_i32_1 = arith.constant 0 : i32
    return %c0_i32, %c0_i32_0 : i32, i32
  }
  func.func @transform_5(%arg0: i32) -> (i32, i32, i32, i32) {
    %c0_i32 = arith.constant 0 : i32
    %c0_i32_0 = arith.constant 0 : i32
    %c0_i32_1 = arith.constant 0 : i32
    %c0_i32_2 = arith.constant 0 : i32
    return %arg0, %c0_i32, %c0_i32_0, %c0_i32_1 : i32, i32, i32, i32
  }
  func.func @transform_6(%arg0: i32) -> (i32, i32, i32, i32) {
    %c0_i32 = arith.constant 0 : i32
    %c0_i32_0 = arith.constant 0 : i32
    %c0_i32_1 = arith.constant 0 : i32
    %c0_i32_2 = arith.constant 0 : i32
    return %arg0, %c0_i32, %c0_i32_0, %c0_i32_1 : i32, i32, i32, i32
  }
  func.func @transform_7(%arg0: i32) -> (i32, i32, i32, i32) {
    %c0_i32 = arith.constant 0 : i32
    %c0_i32_0 = arith.constant 0 : i32
    %c0_i32_1 = arith.constant 0 : i32
    %c0_i32_2 = arith.constant 0 : i32
    return %arg0, %c0_i32, %c0_i32_0, %c0_i32_1 : i32, i32, i32, i32
  }
}

module attributes {stable_mosaic.version = 11 : i64} {
  func.func @_proj_heads_kernel(%arg0: i32, %arg1: memref<1x5x32xf32, #tpu.memory_space<vmem>>, %arg2: memref<1x32xf32, #tpu.memory_space<vmem>>, %arg3: memref<1x32xf32, #tpu.memory_space<vmem>>, %arg4: memref<32x32xbf16, #tpu.memory_space<vmem>>, %arg5: memref<1x32xf32, #tpu.memory_space<vmem>>, %arg6: memref<1x4x5x8xbf16, #tpu.memory_space<vmem>>) attributes {dimension_semantics = [#tpu.dimension_semantics<parallel>], iteration_bounds = array<i64: 2>, scalar_prefetch = 0 : i64, scratch_operands = 0 : i64, tpu.core_type = #tpu.core_type<tc>, window_params = [{transform_indices = @transform_0, window_bounds = array<i64: 1, 5, 32>}, {pipeline_mode = #tpu.pipeline_mode<synchronous>, transform_indices = @transform_1, window_bounds = array<i64: 1, 32>}, {pipeline_mode = #tpu.pipeline_mode<synchronous>, transform_indices = @transform_2, window_bounds = array<i64: 1, 32>}, {pipeline_mode = #tpu.pipeline_mode<synchronous>, transform_indices = @transform_3, window_bounds = array<i64: 32, 32>}, {pipeline_mode = #tpu.pipeline_mode<synchronous>, transform_indices = @transform_4, window_bounds = array<i64: 1, 32>}, {transform_indices = @transform_5, window_bounds = array<i64: 1, 4, 5, 8>}]} {
    %c0 = arith.constant 0 : index
    %c0_0 = arith.constant 0 : index
    %c0_1 = arith.constant 0 : index
    %0 = vector.load %arg1[%c0, %c0_0, %c0_1] : memref<1x5x32xf32, #tpu.memory_space<vmem>>, vector<1x5x32xf32>
    %1 = vector.shape_cast %0 : vector<1x5x32xf32> to vector<5x32xf32>
    %cst = arith.constant dense<0.000000e+00> : vector<5xf32>
    %2 = vector.multi_reduction <add>, %1, %cst [1] : vector<5x32xf32> to vector<5xf32>
    %3 = vector.shape_cast %2 : vector<5xf32> to vector<5x1xf32>
    %cst_2 = arith.constant 3.200000e+01 : f32
    %4 = vector.broadcast %cst_2 : f32 to vector<5x1xf32>
    %5 = arith.divf %3, %4 : vector<5x1xf32>
    %6 = vector.broadcast %5 : vector<5x1xf32> to vector<5x32xf32>
    %7 = arith.subf %1, %6 : vector<5x32xf32>
    %8 = arith.mulf %7, %7 : vector<5x32xf32>
    %cst_3 = arith.constant dense<0.000000e+00> : vector<5xf32>
    %9 = vector.multi_reduction <add>, %8, %cst_3 [1] : vector<5x32xf32> to vector<5xf32>
    %10 = vector.shape_cast %9 : vector<5xf32> to vector<5x1xf32>
    %cst_4 = arith.constant 3.200000e+01 : f32
    %11 = vector.broadcast %cst_4 : f32 to vector<5x1xf32>
    %12 = arith.divf %10, %11 : vector<5x1xf32>
    %cst_5 = arith.constant 9.99999974E-6 : f32
    %13 = vector.broadcast %cst_5 : f32 to vector<5x1xf32>
    %14 = arith.addf %12, %13 : vector<5x1xf32>
    %15 = math.rsqrt %14 : vector<5x1xf32>
    %16 = vector.broadcast %15 : vector<5x1xf32> to vector<5x32xf32>
    %17 = arith.mulf %7, %16 : vector<5x32xf32>
    %c0_6 = arith.constant 0 : index
    %c0_7 = arith.constant 0 : index
    %18 = vector.load %arg2[%c0_6, %c0_7] : memref<1x32xf32, #tpu.memory_space<vmem>>, vector<1x32xf32>
    %19 = vector.broadcast %18 : vector<1x32xf32> to vector<5x32xf32>
    %20 = arith.mulf %17, %19 : vector<5x32xf32>
    %c0_8 = arith.constant 0 : index
    %c0_9 = arith.constant 0 : index
    %21 = vector.load %arg3[%c0_8, %c0_9] : memref<1x32xf32, #tpu.memory_space<vmem>>, vector<1x32xf32>
    %22 = vector.broadcast %21 : vector<1x32xf32> to vector<5x32xf32>
    %23 = arith.addf %20, %22 : vector<5x32xf32>
    %24 = arith.truncf %23 : vector<5x32xf32> to vector<5x32xbf16>
    %c0_10 = arith.constant 0 : index
    %c0_11 = arith.constant 0 : index
    %25 = vector.load %arg4[%c0_10, %c0_11] : memref<32x32xbf16, #tpu.memory_space<vmem>>, vector<32x32xbf16>
    %cst_12 = arith.constant dense<0.000000e+00> : vector<5x32xf32>
    %26 = tpu.matmul %24, %25, %cst_12 {dimension_numbers = #tpu.dot_dimension_numbers<[1], [0], [0], [1], [0, 0, 1, 1], [], []>} : vector<5x32xbf16>, vector<32x32xbf16>, vector<5x32xf32> -> vector<5x32xf32>
    %c0_13 = arith.constant 0 : index
    %c0_14 = arith.constant 0 : index
    %27 = vector.load %arg5[%c0_13, %c0_14] : memref<1x32xf32, #tpu.memory_space<vmem>>, vector<1x32xf32>
    %28 = vector.broadcast %27 : vector<1x32xf32> to vector<5x32xf32>
    %29 = arith.addf %26, %28 : vector<5x32xf32>
    %30 = vector.extract_strided_slice %29 {offsets = [0, 0], sizes = [5, 8], strides = [1, 1]} : vector<5x32xf32> to vector<5x8xf32>
    %31 = arith.truncf %30 : vector<5x8xf32> to vector<5x8xbf16>
    %c0_15 = arith.constant 0 : index
    %c0_16 = arith.constant 0 : index
    %c0_17 = arith.constant 0 : index
    %c0_18 = arith.constant 0 : index
    %32 = vector.load %arg6[%c0_15, %c0_16, %c0_17, %c0_18] : memref<1x4x5x8xbf16, #tpu.memory_space<vmem>>, vector<1x1x5x8xbf16>
    %33 = vector.shape_cast %32 : vector<1x1x5x8xbf16> to vector<5x8xbf16>
    %34 = vector.shape_cast %31 : vector<5x8xbf16> to vector<1x1x5x8xbf16>
    tpu.vector_store %arg6[%c0_15, %c0_16, %c0_17, %c0_18], %34 {strides = array<i32>} : memref<1x4x5x8xbf16, #tpu.memory_space<vmem>>, vector<1x1x5x8xbf16>,
    %35 = vector.extract_strided_slice %29 {offsets = [0, 8], sizes = [5, 8], strides = [1, 1]} : vector<5x32xf32> to vector<5x8xf32>
    %36 = arith.truncf %35 : vector<5x8xf32> to vector<5x8xbf16>
    %c0_19 = arith.constant 0 : index
    %c1 = arith.constant 1 : index
    %c0_20 = arith.constant 0 : index
    %c0_21 = arith.constant 0 : index
    %37 = vector.load %arg6[%c0_19, %c1, %c0_20, %c0_21] : memref<1x4x5x8xbf16, #tpu.memory_space<vmem>>, vector<1x1x5x8xbf16>
    %38 = vector.shape_cast %37 : vector<1x1x5x8xbf16> to vector<5x8xbf16>
    %39 = vector.shape_cast %36 : vector<5x8xbf16> to vector<1x1x5x8xbf16>
    tpu.vector_store %arg6[%c0_19, %c1, %c0_20, %c0_21], %39 {strides = array<i32>} : memref<1x4x5x8xbf16, #tpu.memory_space<vmem>>, vector<1x1x5x8xbf16>,
    %40 = vector.extract_strided_slice %29 {offsets = [0, 16], sizes = [5, 8], strides = [1, 1]} : vector<5x32xf32> to vector<5x8xf32>
    %41 = arith.truncf %40 : vector<5x8xf32> to vector<5x8xbf16>
    %c0_22 = arith.constant 0 : index
    %c2 = arith.constant 2 : index
    %c0_23 = arith.constant 0 : index
    %c0_24 = arith.constant 0 : index
    %42 = vector.load %arg6[%c0_22, %c2, %c0_23, %c0_24] : memref<1x4x5x8xbf16, #tpu.memory_space<vmem>>, vector<1x1x5x8xbf16>
    %43 = vector.shape_cast %42 : vector<1x1x5x8xbf16> to vector<5x8xbf16>
    %44 = vector.shape_cast %41 : vector<5x8xbf16> to vector<1x1x5x8xbf16>
    tpu.vector_store %arg6[%c0_22, %c2, %c0_23, %c0_24], %44 {strides = array<i32>} : memref<1x4x5x8xbf16, #tpu.memory_space<vmem>>, vector<1x1x5x8xbf16>,
    %45 = vector.extract_strided_slice %29 {offsets = [0, 24], sizes = [5, 8], strides = [1, 1]} : vector<5x32xf32> to vector<5x8xf32>
    %46 = arith.truncf %45 : vector<5x8xf32> to vector<5x8xbf16>
    %c0_25 = arith.constant 0 : index
    %c3 = arith.constant 3 : index
    %c0_26 = arith.constant 0 : index
    %c0_27 = arith.constant 0 : index
    %47 = vector.load %arg6[%c0_25, %c3, %c0_26, %c0_27] : memref<1x4x5x8xbf16, #tpu.memory_space<vmem>>, vector<1x1x5x8xbf16>
    %48 = vector.shape_cast %47 : vector<1x1x5x8xbf16> to vector<5x8xbf16>
    %49 = vector.shape_cast %46 : vector<5x8xbf16> to vector<1x1x5x8xbf16>
    tpu.vector_store %arg6[%c0_25, %c3, %c0_26, %c0_27], %49 {strides = array<i32>} : memref<1x4x5x8xbf16, #tpu.memory_space<vmem>>, vector<1x1x5x8xbf16>,
    return
  }
  func.func @transform_0(%arg0: i32) -> (i32, i32, i32) {
    %c0_i32 = arith.constant 0 : i32
    %c0_i32_0 = arith.constant 0 : i32
    %c0_i32_1 = arith.constant 0 : i32
    return %arg0, %c0_i32, %c0_i32_0 : i32, i32, i32
  }
  func.func @transform_1(%arg0: i32) -> (i32, i32) {
    %c0_i32 = arith.constant 0 : i32
    %c0_i32_0 = arith.constant 0 : i32
    %c0_i32_1 = arith.constant 0 : i32
    return %c0_i32, %c0_i32_0 : i32, i32
  }
  func.func @transform_2(%arg0: i32) -> (i32, i32) {
    %c0_i32 = arith.constant 0 : i32
    %c0_i32_0 = arith.constant 0 : i32
    %c0_i32_1 = arith.constant 0 : i32
    return %c0_i32, %c0_i32_0 : i32, i32
  }
  func.func @transform_3(%arg0: i32) -> (i32, i32) {
    %c0_i32 = arith.constant 0 : i32
    %c0_i32_0 = arith.constant 0 : i32
    %c0_i32_1 = arith.constant 0 : i32
    return %c0_i32, %c0_i32_0 : i32, i32
  }
  func.func @transform_4(%arg0: i32) -> (i32, i32) {
    %c0_i32 = arith.constant 0 : i32
    %c0_i32_0 = arith.constant 0 : i32
    %c0_i32_1 = arith.constant 0 : i32
    return %c0_i32, %c0_i32_0 : i32, i32
  }
  func.func @transform_5(%arg0: i32) -> (i32, i32, i32, i32) {
    %c0_i32 = arith.constant 0 : i32
    %c0_i32_0 = arith.constant 0 : i32
    %c0_i32_1 = arith.constant 0 : i32
    %c0_i32_2 = arith.constant 0 : i32
    return %arg0, %c0_i32, %c0_i32_0, %c0_i32_1 : i32, i32, i32, i32
  }
}

module attributes {stable_mosaic.version = 11 : i64} {
  func.func @_attn_out_kernel(%arg0: i32, %arg1: memref<1x4x5x8xf32, #tpu.memory_space<vmem>>, %arg2: memref<1x5x32xf32, #tpu.memory_space<vmem>>, %arg3: memref<4x8x32xbf16, #tpu.memory_space<vmem>>, %arg4: memref<1x32xf32, #tpu.memory_space<vmem>>, %arg5: memref<1x5x32xf32, #tpu.memory_space<vmem>>) attributes {dimension_semantics = [#tpu.dimension_semantics<parallel>], iteration_bounds = array<i64: 2>, scalar_prefetch = 0 : i64, scratch_operands = 0 : i64, tpu.core_type = #tpu.core_type<tc>, window_params = [{transform_indices = @transform_0, window_bounds = array<i64: 1, 4, 5, 8>}, {transform_indices = @transform_1, window_bounds = array<i64: 1, 5, 32>}, {pipeline_mode = #tpu.pipeline_mode<synchronous>, transform_indices = @transform_2, window_bounds = array<i64: 4, 8, 32>}, {pipeline_mode = #tpu.pipeline_mode<synchronous>, transform_indices = @transform_3, window_bounds = array<i64: 1, 32>}, {transform_indices = @transform_4, window_bounds = array<i64: 1, 5, 32>}]} {
    %c0 = arith.constant 0 : index
    %c0_0 = arith.constant 0 : index
    %c0_1 = arith.constant 0 : index
    %0 = vector.load %arg2[%c0, %c0_0, %c0_1] : memref<1x5x32xf32, #tpu.memory_space<vmem>>, vector<1x5x32xf32>
    %1 = vector.shape_cast %0 : vector<1x5x32xf32> to vector<5x32xf32>
    %c0_2 = arith.constant 0 : index
    %c0_3 = arith.constant 0 : index
    %2 = vector.load %arg4[%c0_2, %c0_3] : memref<1x32xf32, #tpu.memory_space<vmem>>, vector<1x32xf32>
    %3 = vector.broadcast %2 : vector<1x32xf32> to vector<5x32xf32>
    %4 = arith.addf %1, %3 : vector<5x32xf32>
    %c0_4 = arith.constant 0 : index
    %c0_5 = arith.constant 0 : index
    %c0_6 = arith.constant 0 : index
    %c0_7 = arith.constant 0 : index
    %5 = vector.load %arg1[%c0_4, %c0_5, %c0_6, %c0_7] : memref<1x4x5x8xf32, #tpu.memory_space<vmem>>, vector<1x4x5x8xf32>
    %6 = vector.shape_cast %5 : vector<1x4x5x8xf32> to vector<4x5x8xf32>
    %7 = vector.extract_strided_slice %6 {offsets = [0, 0, 0], sizes = [1, 5, 8], strides = [1, 1, 1]} : vector<4x5x8xf32> to vector<1x5x8xf32>
    %8 = vector.shape_cast %7 : vector<1x5x8xf32> to vector<5x8xf32>
    %9 = arith.truncf %8 : vector<5x8xf32> to vector<5x8xbf16>
    %c0_8 = arith.constant 0 : index
    %c0_9 = arith.constant 0 : index
    %c0_10 = arith.constant 0 : index
    %10 = vector.load %arg3[%c0_8, %c0_9, %c0_10] : memref<4x8x32xbf16, #tpu.memory_space<vmem>>, vector<1x8x32xbf16>
    %11 = vector.shape_cast %10 : vector<1x8x32xbf16> to vector<8x32xbf16>
    %cst = arith.constant dense<0.000000e+00> : vector<5x32xf32>
    %12 = tpu.matmul %9, %11, %cst {dimension_numbers = #tpu.dot_dimension_numbers<[1], [0], [0], [1], [0, 0, 1, 1], [], []>} : vector<5x8xbf16>, vector<8x32xbf16>, vector<5x32xf32> -> vector<5x32xf32>
    %13 = arith.addf %4, %12 : vector<5x32xf32>
    %14 = vector.extract_strided_slice %6 {offsets = [1, 0, 0], sizes = [1, 5, 8], strides = [1, 1, 1]} : vector<4x5x8xf32> to vector<1x5x8xf32>
    %15 = vector.shape_cast %14 : vector<1x5x8xf32> to vector<5x8xf32>
    %16 = arith.truncf %15 : vector<5x8xf32> to vector<5x8xbf16>
    %c1 = arith.constant 1 : index
    %c0_11 = arith.constant 0 : index
    %c0_12 = arith.constant 0 : index
    %17 = vector.load %arg3[%c1, %c0_11, %c0_12] : memref<4x8x32xbf16, #tpu.memory_space<vmem>>, vector<1x8x32xbf16>
    %18 = vector.shape_cast %17 : vector<1x8x32xbf16> to vector<8x32xbf16>
    %cst_13 = arith.constant dense<0.000000e+00> : vector<5x32xf32>
    %19 = tpu.matmul %16, %18, %cst_13 {dimension_numbers = #tpu.dot_dimension_numbers<[1], [0], [0], [1], [0, 0, 1, 1], [], []>} : vector<5x8xbf16>, vector<8x32xbf16>, vector<5x32xf32> -> vector<5x32xf32>
    %20 = arith.addf %13, %19 : vector<5x32xf32>
    %21 = vector.extract_strided_slice %6 {offsets = [2, 0, 0], sizes = [1, 5, 8], strides = [1, 1, 1]} : vector<4x5x8xf32> to vector<1x5x8xf32>
    %22 = vector.shape_cast %21 : vector<1x5x8xf32> to vector<5x8xf32>
    %23 = arith.truncf %22 : vector<5x8xf32> to vector<5x8xbf16>
    %c2 = arith.constant 2 : index
    %c0_14 = arith.constant 0 : index
    %c0_15 = arith.constant 0 : index
    %24 = vector.load %arg3[%c2, %c0_14, %c0_15] : memref<4x8x32xbf16, #tpu.memory_space<vmem>>, vector<1x8x32xbf16>
    %25 = vector.shape_cast %24 : vector<1x8x32xbf16> to vector<8x32xbf16>
    %cst_16 = arith.constant dense<0.000000e+00> : vector<5x32xf32>
    %26 = tpu.matmul %23, %25, %cst_16 {dimension_numbers = #tpu.dot_dimension_numbers<[1], [0], [0], [1], [0, 0, 1, 1], [], []>} : vector<5x8xbf16>, vector<8x32xbf16>, vector<5x32xf32> -> vector<5x32xf32>
    %27 = arith.addf %20, %26 : vector<5x32xf32>
    %28 = vector.extract_strided_slice %6 {offsets = [3, 0, 0], sizes = [1, 5, 8], strides = [1, 1, 1]} : vector<4x5x8xf32> to vector<1x5x8xf32>
    %29 = vector.shape_cast %28 : vector<1x5x8xf32> to vector<5x8xf32>
    %30 = arith.truncf %29 : vector<5x8xf32> to vector<5x8xbf16>
    %c3 = arith.constant 3 : index
    %c0_17 = arith.constant 0 : index
    %c0_18 = arith.constant 0 : index
    %31 = vector.load %arg3[%c3, %c0_17, %c0_18] : memref<4x8x32xbf16, #tpu.memory_space<vmem>>, vector<1x8x32xbf16>
    %32 = vector.shape_cast %31 : vector<1x8x32xbf16> to vector<8x32xbf16>
    %cst_19 = arith.constant dense<0.000000e+00> : vector<5x32xf32>
    %33 = tpu.matmul %30, %32, %cst_19 {dimension_numbers = #tpu.dot_dimension_numbers<[1], [0], [0], [1], [0, 0, 1, 1], [], []>} : vector<5x8xbf16>, vector<8x32xbf16>, vector<5x32xf32> -> vector<5x32xf32>
    %34 = arith.addf %27, %33 : vector<5x32xf32>
    %c0_20 = arith.constant 0 : index
    %c0_21 = arith.constant 0 : index
    %c0_22 = arith.constant 0 : index
    %35 = vector.load %arg5[%c0_20, %c0_21, %c0_22] : memref<1x5x32xf32, #tpu.memory_space<vmem>>, vector<1x5x32xf32>
    %36 = vector.shape_cast %35 : vector<1x5x32xf32> to vector<5x32xf32>
    %37 = vector.shape_cast %34 : vector<5x32xf32> to vector<1x5x32xf32>
    tpu.vector_store %arg5[%c0_20, %c0_21, %c0_22], %37 {strides = array<i32>} : memref<1x5x32xf32, #tpu.memory_space<vmem>>, vector<1x5x32xf32>,
    return
  }
  func.func @transform_0(%arg0: i32) -> (i32, i32, i32, i32) {
    %c0_i32 = arith.constant 0 : i32
    %c0_i32_0 = arith.constant 0 : i32
    %c0_i32_1 = arith.constant 0 : i32
    %c0_i32_2 = arith.constant 0 : i32
    return %arg0, %c0_i32, %c0_i32_0, %c0_i32_1 : i32, i32, i32, i32
  }
  func.func @transform_1(%arg0: i32) -> (i32, i32, i32) {
    %c0_i32 = arith.constant 0 : i32
    %c0_i32_0 = arith.constant 0 : i32
    %c0_i32_1 = arith.constant 0 : i32
    return %arg0, %c0_i32, %c0_i32_0 : i32, i32, i32
  }
  func.func @transform_2(%arg0: i32) -> (i32, i32, i32) {
    %c0_i32 = arith.constant 0 : i32
    %c0_i32_0 = arith.constant 0 : i32
    %c0_i32_1 = arith.constant 0 : i32
    %c0_i32_2 = arith.constant 0 : i32
    return %c0_i32, %c0_i32_0, %c0_i32_1 : i32, i32, i32
  }
  func.func @transform_3(%arg0: i32) -> (i32, i32) {
    %c0_i32 = arith.constant 0 : i32
    %c0_i32_0 = arith.constant 0 : i32
    %c0_i32_1 = arith.constant 0 : i32
    return %c0_i32, %c0_i32_0 : i32, i32
  }
  func.func @transform_4(%arg0: i32) -> (i32, i32, i32) {
    %c0_i32 = arith.constant 0 : i32
    %c0_i32_0 = arith.constant 0 : i32
    %c0_i32_1 = arith.constant 0 : i32
    return %arg0, %c0_i32, %c0_i32_0 : i32, i32, i32
  }
}

module attributes {stable_mosaic.version = 11 : i64} {
  func.func @_attn_kernel(%arg0: i32, %arg1: memref<1x4x5x8xbf16, #tpu.memory_space<vmem>>, %arg2: memref<1x4x4x8xbf16, #tpu.memory_space<vmem>>, %arg3: memref<1x4x4x8xbf16, #tpu.memory_space<vmem>>, %arg4: memref<1x1x4xf32, #tpu.memory_space<vmem>>, %arg5: memref<1x4x5x8xf32, #tpu.memory_space<vmem>>) attributes {dimension_semantics = [#tpu.dimension_semantics<parallel>], iteration_bounds = array<i64: 2>, scalar_prefetch = 0 : i64, scratch_operands = 0 : i64, tpu.core_type = #tpu.core_type<tc>, window_params = [{transform_indices = @transform_0, window_bounds = array<i64: 1, 4, 5, 8>}, {transform_indices = @transform_1, window_bounds = array<i64: 1, 4, 4, 8>}, {transform_indices = @transform_2, window_bounds = array<i64: 1, 4, 4, 8>}, {transform_indices = @transform_3, window_bounds = array<i64: 1, 1, 4>}, {transform_indices = @transform_4, window_bounds = array<i64: 1, 4, 5, 8>}]} {
    %c0 = arith.constant 0 : index
    %c0_0 = arith.constant 0 : index
    %c0_1 = arith.constant 0 : index
    %c0_2 = arith.constant 0 : index
    %0 = vector.load %arg1[%c0, %c0_0, %c0_1, %c0_2] : memref<1x4x5x8xbf16, #tpu.memory_space<vmem>>, vector<1x4x5x8xbf16>
    %1 = vector.shape_cast %0 : vector<1x4x5x8xbf16> to vector<4x5x8xbf16>
    %c0_3 = arith.constant 0 : index
    %c0_4 = arith.constant 0 : index
    %c0_5 = arith.constant 0 : index
    %c0_6 = arith.constant 0 : index
    %2 = vector.load %arg2[%c0_3, %c0_4, %c0_5, %c0_6] : memref<1x4x4x8xbf16, #tpu.memory_space<vmem>>, vector<1x4x4x8xbf16>
    %3 = vector.shape_cast %2 : vector<1x4x4x8xbf16> to vector<4x4x8xbf16>
    %c0_7 = arith.constant 0 : index
    %c0_8 = arith.constant 0 : index
    %c0_9 = arith.constant 0 : index
    %c0_10 = arith.constant 0 : index
    %4 = vector.load %arg3[%c0_7, %c0_8, %c0_9, %c0_10] : memref<1x4x4x8xbf16, #tpu.memory_space<vmem>>, vector<1x4x4x8xbf16>
    %5 = vector.shape_cast %4 : vector<1x4x4x8xbf16> to vector<4x4x8xbf16>
    "tpu.trace_start"() <{level = 10 : i32, message = "hqd,hkd->hqk"}> : () -> ()
    %cst = arith.constant dense<0.000000e+00> : vector<4x5x4xf32>
    %6 = tpu.matmul %1, %3, %cst {dimension_numbers = #tpu.dot_dimension_numbers<[2], [2], [1], [1], [0, 0, 0, 1, 1, 1], [0], [0]>} : vector<4x5x8xbf16>, vector<4x4x8xbf16>, vector<4x5x4xf32> -> vector<4x5x4xf32>
    "tpu.trace_stop"() : () -> ()
    %cst_11 = arith.constant 0.353553385 : f32
    %7 = vector.broadcast %cst_11 : f32 to vector<4x5x4xf32>
    %8 = arith.mulf %6, %7 : vector<4x5x4xf32>
    %c0_12 = arith.constant 0 : index
    %c0_13 = arith.constant 0 : index
    %c0_14 = arith.constant 0 : index
    %9 = vector.load %arg4[%c0_12, %c0_13, %c0_14] : memref<1x1x4xf32, #tpu.memory_space<vmem>>, vector<1x1x4xf32>
    %10 = vector.shape_cast %9 : vector<1x1x4xf32> to vector<1x4xf32>
    %cst_15 = arith.constant 1.000000e+00 : f32
    %11 = vector.broadcast %cst_15 : f32 to vector<1x4xf32>
    %12 = arith.subf %11, %10 : vector<1x4xf32>
    %cst_16 = arith.constant -1.000000e+09 : f32
    %13 = vector.broadcast %cst_16 : f32 to vector<1x4xf32>
    %14 = arith.mulf %12, %13 : vector<1x4xf32>
    %15 = vector.shape_cast %14 : vector<1x4xf32> to vector<1x1x4xf32>
    %16 = vector.broadcast %15 : vector<1x1x4xf32> to vector<4x5x4xf32>
    %17 = arith.addf %8, %16 : vector<4x5x4xf32>
    %cst_17 = arith.constant dense<0xFF800000> : vector<4x5xf32>
    %18 = vector.multi_reduction <maximumf>, %17, %cst_17 [2] : vector<4x5x4xf32> to vector<4x5xf32>
    %19 = vector.shape_cast %18 : vector<4x5xf32> to vector<4x5x1xf32>
    %20 = vector.broadcast %19 : vector<4x5x1xf32> to vector<4x5x4xf32>
    %21 = arith.subf %17, %20 : vector<4x5x4xf32>
    %22 = math.exp %21 : vector<4x5x4xf32>
    %cst_18 = arith.constant dense<0.000000e+00> : vector<4x5xf32>
    %23 = vector.multi_reduction <add>, %22, %cst_18 [2] : vector<4x5x4xf32> to vector<4x5xf32>
    %24 = vector.shape_cast %23 : vector<4x5xf32> to vector<4x5x1xf32>
    %25 = tpu.reciprocal %24 {approx = true} : vector<4x5x1xf32> -> vector<4x5x1xf32>
    %26 = vector.broadcast %25 : vector<4x5x1xf32> to vector<4x5x4xf32>
    %27 = arith.mulf %22, %26 : vector<4x5x4xf32>
    %28 = arith.truncf %27 : vector<4x5x4xf32> to vector<4x5x4xbf16>
    "tpu.trace_start"() <{level = 10 : i32, message = "hqk,hkd->hqd"}> : () -> ()
    %cst_19 = arith.constant dense<0.000000e+00> : vector<4x5x8xf32>
    %29 = tpu.matmul %28, %5, %cst_19 {dimension_numbers = #tpu.dot_dimension_numbers<[2], [1], [1], [2], [0, 0, 0, 1, 1, 2], [0], [0]>} : vector<4x5x4xbf16>, vector<4x4x8xbf16>, vector<4x5x8xf32> -> vector<4x5x8xf32>
    "tpu.trace_stop"() : () -> ()
    %c0_20 = arith.constant 0 : index
    %c0_21 = arith.constant 0 : index
    %c0_22 = arith.constant 0 : index
    %c0_23 = arith.constant 0 : index
    %30 = vector.load %arg5[%c0_20, %c0_21, %c0_22, %c0_23] : memref<1x4x5x8xf32, #tpu.memory_space<vmem>>, vector<1x4x5x8xf32>
    %31 = vector.shape_cast %30 : vector<1x4x5x8xf32> to vector<4x5x8xf32>
    %32 = vector.shape_cast %29 : vector<4x5x8xf32> to vector<1x4x5x8xf32>
    tpu.vector_store %arg5[%c0_20, %c0_21, %c0_22, %c0_23], %32 {strides = array<i32>} : memref<1x4x5x8xf32, #tpu.memory_space<vmem>>, vector<1x4x5x8xf32>,
    return
  }
  func.func @transform_0(%arg0: i32) -> (i32, i32, i32, i32) {
    %c0_i32 = arith.constant 0 : i32
    %c0_i32_0 = arith.constant 0 : i32
    %c0_i32_1 = arith.constant 0 : i32
    %c0_i32_2 = arith.constant 0 : i32
    return %arg0, %c0_i32, %c0_i32_0, %c0_i32_1 : i32, i32, i32, i32
  }
  func.func @transform_1(%arg0: i32) -> (i32, i32, i32, i32) {
    %c0_i32 = arith.constant 0 : i32
    %c0_i32_0 = arith.constant 0 : i32
    %c0_i32_1 = arith.constant 0 : i32
    %c0_i32_2 = arith.constant 0 : i32
    return %arg0, %c0_i32, %c0_i32_0, %c0_i32_1 : i32, i32, i32, i32
  }
  func.func @transform_2(%arg0: i32) -> (i32, i32, i32, i32) {
    %c0_i32 = arith.constant 0 : i32
    %c0_i32_0 = arith.constant 0 : i32
    %c0_i32_1 = arith.constant 0 : i32
    %c0_i32_2 = arith.constant 0 : i32
    return %arg0, %c0_i32, %c0_i32_0, %c0_i32_1 : i32, i32, i32, i32
  }
  func.func @transform_3(%arg0: i32) -> (i32, i32, i32) {
    %c0_i32 = arith.constant 0 : i32
    %c0_i32_0 = arith.constant 0 : i32
    %c0_i32_1 = arith.constant 0 : i32
    return %arg0, %c0_i32, %c0_i32_0 : i32, i32, i32
  }
  func.func @transform_4(%arg0: i32) -> (i32, i32, i32, i32) {
    %c0_i32 = arith.constant 0 : i32
    %c0_i32_0 = arith.constant 0 : i32
    %c0_i32_1 = arith.constant 0 : i32
    %c0_i32_2 = arith.constant 0 : i32
    return %arg0, %c0_i32, %c0_i32_0, %c0_i32_1 : i32, i32, i32, i32
  }
}

module attributes {stable_mosaic.version = 11 : i64} {
  func.func @_ffn_kernel(%arg0: i32, %arg1: memref<16x32xf32, #tpu.memory_space<vmem>>, %arg2: memref<1x32xf32, #tpu.memory_space<vmem>>, %arg3: memref<1x32xf32, #tpu.memory_space<vmem>>, %arg4: memref<32x128xbf16, #tpu.memory_space<vmem>>, %arg5: memref<1x128xf32, #tpu.memory_space<vmem>>, %arg6: memref<128x32xbf16, #tpu.memory_space<vmem>>, %arg7: memref<1x32xf32, #tpu.memory_space<vmem>>, %arg8: memref<1x32xf32, #tpu.memory_space<vmem>>, %arg9: memref<1x32xf32, #tpu.memory_space<vmem>>, %arg10: memref<16x32xf32, #tpu.memory_space<vmem>>) attributes {dimension_semantics = [#tpu.dimension_semantics<parallel>], iteration_bounds = array<i64: 1>, scalar_prefetch = 0 : i64, scratch_operands = 0 : i64, tpu.core_type = #tpu.core_type<tc>, window_params = [{transform_indices = @transform_0, window_bounds = array<i64: 16, 32>}, {pipeline_mode = #tpu.pipeline_mode<synchronous>, transform_indices = @transform_1, window_bounds = array<i64: 1, 32>}, {pipeline_mode = #tpu.pipeline_mode<synchronous>, transform_indices = @transform_2, window_bounds = array<i64: 1, 32>}, {pipeline_mode = #tpu.pipeline_mode<synchronous>, transform_indices = @transform_3, window_bounds = array<i64: 32, 128>}, {pipeline_mode = #tpu.pipeline_mode<synchronous>, transform_indices = @transform_4, window_bounds = array<i64: 1, 128>}, {pipeline_mode = #tpu.pipeline_mode<synchronous>, transform_indices = @transform_5, window_bounds = array<i64: 128, 32>}, {pipeline_mode = #tpu.pipeline_mode<synchronous>, transform_indices = @transform_6, window_bounds = array<i64: 1, 32>}, {pipeline_mode = #tpu.pipeline_mode<synchronous>, transform_indices = @transform_7, window_bounds = array<i64: 1, 32>}, {pipeline_mode = #tpu.pipeline_mode<synchronous>, transform_indices = @transform_8, window_bounds = array<i64: 1, 32>}, {transform_indices = @transform_9, window_bounds = array<i64: 16, 32>}]} {
    %c0 = arith.constant 0 : index
    %c0_0 = arith.constant 0 : index
    %0 = vector.load %arg1[%c0, %c0_0] : memref<16x32xf32, #tpu.memory_space<vmem>>, vector<16x32xf32>
    %cst = arith.constant dense<0.000000e+00> : vector<16xf32>
    %1 = vector.multi_reduction <add>, %0, %cst [1] : vector<16x32xf32> to vector<16xf32>
    %2 = vector.shape_cast %1 : vector<16xf32> to vector<16x1xf32>
    %cst_1 = arith.constant 3.200000e+01 : f32
    %3 = vector.broadcast %cst_1 : f32 to vector<16x1xf32>
    %4 = arith.divf %2, %3 : vector<16x1xf32>
    %5 = vector.broadcast %4 : vector<16x1xf32> to vector<16x32xf32>
    %6 = arith.subf %0, %5 : vector<16x32xf32>
    %7 = arith.mulf %6, %6 : vector<16x32xf32>
    %cst_2 = arith.constant dense<0.000000e+00> : vector<16xf32>
    %8 = vector.multi_reduction <add>, %7, %cst_2 [1] : vector<16x32xf32> to vector<16xf32>
    %9 = vector.shape_cast %8 : vector<16xf32> to vector<16x1xf32>
    %cst_3 = arith.constant 3.200000e+01 : f32
    %10 = vector.broadcast %cst_3 : f32 to vector<16x1xf32>
    %11 = arith.divf %9, %10 : vector<16x1xf32>
    %cst_4 = arith.constant 9.99999974E-6 : f32
    %12 = vector.broadcast %cst_4 : f32 to vector<16x1xf32>
    %13 = arith.addf %11, %12 : vector<16x1xf32>
    %14 = math.rsqrt %13 : vector<16x1xf32>
    %15 = vector.broadcast %14 : vector<16x1xf32> to vector<16x32xf32>
    %16 = arith.mulf %6, %15 : vector<16x32xf32>
    %c0_5 = arith.constant 0 : index
    %c0_6 = arith.constant 0 : index
    %17 = vector.load %arg2[%c0_5, %c0_6] : memref<1x32xf32, #tpu.memory_space<vmem>>, vector<1x32xf32>
    %18 = vector.broadcast %17 : vector<1x32xf32> to vector<16x32xf32>
    %19 = arith.mulf %16, %18 : vector<16x32xf32>
    %c0_7 = arith.constant 0 : index
    %c0_8 = arith.constant 0 : index
    %20 = vector.load %arg3[%c0_7, %c0_8] : memref<1x32xf32, #tpu.memory_space<vmem>>, vector<1x32xf32>
    %21 = vector.broadcast %20 : vector<1x32xf32> to vector<16x32xf32>
    %22 = arith.addf %19, %21 : vector<16x32xf32>
    %23 = arith.truncf %22 : vector<16x32xf32> to vector<16x32xbf16>
    %c0_9 = arith.constant 0 : index
    %c0_10 = arith.constant 0 : index
    %24 = vector.load %arg4[%c0_9, %c0_10] : memref<32x128xbf16, #tpu.memory_space<vmem>>, vector<32x128xbf16>
    %cst_11 = arith.constant dense<0.000000e+00> : vector<16x128xf32>
    %25 = tpu.matmul %23, %24, %cst_11 {dimension_numbers = #tpu.dot_dimension_numbers<[1], [0], [0], [1], [0, 0, 1, 1], [], []>} : vector<16x32xbf16>, vector<32x128xbf16>, vector<16x128xf32> -> vector<16x128xf32>
    %c0_12 = arith.constant 0 : index
    %c0_13 = arith.constant 0 : index
    %26 = vector.load %arg5[%c0_12, %c0_13] : memref<1x128xf32, #tpu.memory_space<vmem>>, vector<1x128xf32>
    %27 = vector.broadcast %26 : vector<1x128xf32> to vector<16x128xf32>
    %28 = arith.addf %25, %27 : vector<16x128xf32>
    %cst_14 = arith.constant 0.000000e+00 : f32
    %29 = vector.broadcast %cst_14 : f32 to vector<16x128xf32>
    %30 = arith.maximumf %28, %29 : vector<16x128xf32>
    %31 = arith.truncf %30 : vector<16x128xf32> to vector<16x128xbf16>
    %c0_15 = arith.constant 0 : index
    %c0_16 = arith.constant 0 : index
    %32 = vector.load %arg6[%c0_15, %c0_16] : memref<128x32xbf16, #tpu.memory_space<vmem>>, vector<128x32xbf16>
    %cst_17 = arith.constant dense<0.000000e+00> : vector<16x32xf32>
    %33 = tpu.matmul %31, %32, %cst_17 {dimension_numbers = #tpu.dot_dimension_numbers<[1], [0], [0], [1], [0, 0, 1, 1], [], []>} : vector<16x128xbf16>, vector<128x32xbf16>, vector<16x32xf32> -> vector<16x32xf32>
    %c0_18 = arith.constant 0 : index
    %c0_19 = arith.constant 0 : index
    %34 = vector.load %arg7[%c0_18, %c0_19] : memref<1x32xf32, #tpu.memory_space<vmem>>, vector<1x32xf32>
    %35 = vector.broadcast %34 : vector<1x32xf32> to vector<16x32xf32>
    %36 = arith.addf %33, %35 : vector<16x32xf32>
    %cst_20 = arith.constant 1.000000e+00 : f32
    %37 = vector.broadcast %cst_20 : f32 to vector<16x32xf32>
    %38 = arith.mulf %37, %36 : vector<16x32xf32>
    %39 = arith.addf %0, %38 : vector<16x32xf32>
    %c0_21 = arith.constant 0 : index
    %c0_22 = arith.constant 0 : index
    %40 = vector.load %arg10[%c0_21, %c0_22] : memref<16x32xf32, #tpu.memory_space<vmem>>, vector<16x32xf32>
    tpu.vector_store %arg10[%c0_21, %c0_22], %39 {strides = array<i32>} : memref<16x32xf32, #tpu.memory_space<vmem>>, vector<16x32xf32>,
    return
  }
  func.func @transform_0(%arg0: i32) -> (i32, i32) {
    %c0_i32 = arith.constant 0 : i32
    %c0_i32_0 = arith.constant 0 : i32
    return %arg0, %c0_i32 : i32, i32
  }
  func.func @transform_1(%arg0: i32) -> (i32, i32) {
    %c0_i32 = arith.constant 0 : i32
    %c0_i32_0 = arith.constant 0 : i32
    %c0_i32_1 = arith.constant 0 : i32
    return %c0_i32, %c0_i32_0 : i32, i32
  }
  func.func @transform_2(%arg0: i32) -> (i32, i32) {
    %c0_i32 = arith.constant 0 : i32
    %c0_i32_0 = arith.constant 0 : i32
    %c0_i32_1 = arith.constant 0 : i32
    return %c0_i32, %c0_i32_0 : i32, i32
  }
  func.func @transform_3(%arg0: i32) -> (i32, i32) {
    %c0_i32 = arith.constant 0 : i32
    %c0_i32_0 = arith.constant 0 : i32
    %c0_i32_1 = arith.constant 0 : i32
    return %c0_i32, %c0_i32_0 : i32, i32
  }
  func.func @transform_4(%arg0: i32) -> (i32, i32) {
    %c0_i32 = arith.constant 0 : i32
    %c0_i32_0 = arith.constant 0 : i32
    %c0_i32_1 = arith.constant 0 : i32
    return %c0_i32, %c0_i32_0 : i32, i32
  }
  func.func @transform_5(%arg0: i32) -> (i32, i32) {
    %c0_i32 = arith.constant 0 : i32
    %c0_i32_0 = arith.constant 0 : i32
    %c0_i32_1 = arith.constant 0 : i32
    return %c0_i32, %c0_i32_0 : i32, i32
  }
  func.func @transform_6(%arg0: i32) -> (i32, i32) {
    %c0_i32 = arith.constant 0 : i32
    %c0_i32_0 = arith.constant 0 : i32
    %c0_i32_1 = arith.constant 0 : i32
    return %c0_i32, %c0_i32_0 : i32, i32
  }
  func.func @transform_7(%arg0: i32) -> (i32, i32) {
    %c0_i32 = arith.constant 0 : i32
    %c0_i32_0 = arith.constant 0 : i32
    %c0_i32_1 = arith.constant 0 : i32
    return %c0_i32, %c0_i32_0 : i32, i32
  }
  func.func @transform_8(%arg0: i32) -> (i32, i32) {
    %c0_i32 = arith.constant 0 : i32
    %c0_i32_0 = arith.constant 0 : i32
    %c0_i32_1 = arith.constant 0 : i32
    return %c0_i32, %c0_i32_0 : i32, i32
  }
  func.func @transform_9(%arg0: i32) -> (i32, i32) {
    %c0_i32 = arith.constant 0 : i32
    %c0_i32_0 = arith.constant 0 : i32
    return %arg0, %c0_i32 : i32, i32
  }
}

module attributes {stable_mosaic.version = 11 : i64} {
  func.func @_ln_matmul_kernel(%arg0: i32, %arg1: i32, %arg2: memref<16x32xf32, #tpu.memory_space<vmem>>, %arg3: memref<1x32xf32, #tpu.memory_space<vmem>>, %arg4: memref<1x32xf32, #tpu.memory_space<vmem>>, %arg5: memref<32x50xbf16, #tpu.memory_space<vmem>>, %arg6: memref<1x50xf32, #tpu.memory_space<vmem>>, %arg7: memref<16x50xf32, #tpu.memory_space<vmem>>) attributes {dimension_semantics = [#tpu.dimension_semantics<parallel>, #tpu.dimension_semantics<parallel>], iteration_bounds = array<i64: 1, 1>, scalar_prefetch = 0 : i64, scratch_operands = 0 : i64, tpu.core_type = #tpu.core_type<tc>, window_params = [{transform_indices = @transform_0, window_bounds = array<i64: 16, 32>}, {pipeline_mode = #tpu.pipeline_mode<synchronous>, transform_indices = @transform_1, window_bounds = array<i64: 1, 32>}, {pipeline_mode = #tpu.pipeline_mode<synchronous>, transform_indices = @transform_2, window_bounds = array<i64: 1, 32>}, {transform_indices = @transform_3, window_bounds = array<i64: 32, 50>}, {transform_indices = @transform_4, window_bounds = array<i64: 1, 50>}, {transform_indices = @transform_5, window_bounds = array<i64: 16, 50>}]} {
    %c0 = arith.constant 0 : index
    %c0_0 = arith.constant 0 : index
    %0 = vector.load %arg2[%c0, %c0_0] : memref<16x32xf32, #tpu.memory_space<vmem>>, vector<16x32xf32>
    %cst = arith.constant dense<0.000000e+00> : vector<16xf32>
    %1 = vector.multi_reduction <add>, %0, %cst [1] : vector<16x32xf32> to vector<16xf32>
    %2 = vector.shape_cast %1 : vector<16xf32> to vector<16x1xf32>
    %cst_1 = arith.constant 3.200000e+01 : f32
    %3 = vector.broadcast %cst_1 : f32 to vector<16x1xf32>
    %4 = arith.divf %2, %3 : vector<16x1xf32>
    %5 = vector.broadcast %4 : vector<16x1xf32> to vector<16x32xf32>
    %6 = arith.subf %0, %5 : vector<16x32xf32>
    %7 = arith.mulf %6, %6 : vector<16x32xf32>
    %cst_2 = arith.constant dense<0.000000e+00> : vector<16xf32>
    %8 = vector.multi_reduction <add>, %7, %cst_2 [1] : vector<16x32xf32> to vector<16xf32>
    %9 = vector.shape_cast %8 : vector<16xf32> to vector<16x1xf32>
    %cst_3 = arith.constant 3.200000e+01 : f32
    %10 = vector.broadcast %cst_3 : f32 to vector<16x1xf32>
    %11 = arith.divf %9, %10 : vector<16x1xf32>
    %cst_4 = arith.constant 9.99999974E-6 : f32
    %12 = vector.broadcast %cst_4 : f32 to vector<16x1xf32>
    %13 = arith.addf %11, %12 : vector<16x1xf32>
    %14 = math.rsqrt %13 : vector<16x1xf32>
    %15 = vector.broadcast %14 : vector<16x1xf32> to vector<16x32xf32>
    %16 = arith.mulf %6, %15 : vector<16x32xf32>
    %c0_5 = arith.constant 0 : index
    %c0_6 = arith.constant 0 : index
    %17 = vector.load %arg3[%c0_5, %c0_6] : memref<1x32xf32, #tpu.memory_space<vmem>>, vector<1x32xf32>
    %18 = vector.broadcast %17 : vector<1x32xf32> to vector<16x32xf32>
    %19 = arith.mulf %16, %18 : vector<16x32xf32>
    %c0_7 = arith.constant 0 : index
    %c0_8 = arith.constant 0 : index
    %20 = vector.load %arg4[%c0_7, %c0_8] : memref<1x32xf32, #tpu.memory_space<vmem>>, vector<1x32xf32>
    %21 = vector.broadcast %20 : vector<1x32xf32> to vector<16x32xf32>
    %22 = arith.addf %19, %21 : vector<16x32xf32>
    %23 = arith.truncf %22 : vector<16x32xf32> to vector<16x32xbf16>
    %c0_9 = arith.constant 0 : index
    %c0_10 = arith.constant 0 : index
    %24 = vector.load %arg5[%c0_9, %c0_10] : memref<32x50xbf16, #tpu.memory_space<vmem>>, vector<32x50xbf16>
    %cst_11 = arith.constant dense<0.000000e+00> : vector<16x50xf32>
    %25 = tpu.matmul %23, %24, %cst_11 {dimension_numbers = #tpu.dot_dimension_numbers<[1], [0], [0], [1], [0, 0, 1, 1], [], []>} : vector<16x32xbf16>, vector<32x50xbf16>, vector<16x50xf32> -> vector<16x50xf32>
    %c0_12 = arith.constant 0 : index
    %c0_13 = arith.constant 0 : index
    %26 = vector.load %arg6[%c0_12, %c0_13] : memref<1x50xf32, #tpu.memory_space<vmem>>, vector<1x50xf32>
    %27 = vector.broadcast %26 : vector<1x50xf32> to vector<16x50xf32>
    %28 = arith.addf %25, %27 : vector<16x50xf32>
    %c0_14 = arith.constant 0 : index
    %c0_15 = arith.constant 0 : index
    %29 = vector.load %arg7[%c0_14, %c0_15] : memref<16x50xf32, #tpu.memory_space<vmem>>, vector<16x50xf32>
    tpu.vector_store %arg7[%c0_14, %c0_15], %28 {strides = array<i32>} : memref<16x50xf32, #tpu.memory_space<vmem>>, vector<16x50xf32>,
    return
  }
  func.func @transform_0(%arg0: i32, %arg1: i32) -> (i32, i32) {
    %c0_i32 = arith.constant 0 : i32
    %c0_i32_0 = arith.constant 0 : i32
    return %arg0, %c0_i32 : i32, i32
  }
  func.func @transform_1(%arg0: i32, %arg1: i32) -> (i32, i32) {
    %c0_i32 = arith.constant 0 : i32
    %c0_i32_0 = arith.constant 0 : i32
    %c0_i32_1 = arith.constant 0 : i32
    return %c0_i32, %c0_i32_0 : i32, i32
  }
  func.func @transform_2(%arg0: i32, %arg1: i32) -> (i32, i32) {
    %c0_i32 = arith.constant 0 : i32
    %c0_i32_0 = arith.constant 0 : i32
    %c0_i32_1 = arith.constant 0 : i32
    return %c0_i32, %c0_i32_0 : i32, i32
  }
  func.func @transform_3(%arg0: i32, %arg1: i32) -> (i32, i32) {
    %c0_i32 = arith.constant 0 : i32
    %c0_i32_0 = arith.constant 0 : i32
    return %c0_i32, %arg1 : i32, i32
  }
  func.func @transform_4(%arg0: i32, %arg1: i32) -> (i32, i32) {
    %c0_i32 = arith.constant 0 : i32
    %c0_i32_0 = arith.constant 0 : i32
    return %c0_i32, %arg1 : i32, i32
  }
  func.func @transform_5(%arg0: i32, %arg1: i32) -> (i32, i32) {
    %c0_i32 = arith.constant 0 : i32
    return %arg0, %arg1 : i32, i32
  }
}

</mosaic_0001>

<bundles_post_ra>
// kernel: fireredasr_aed_forward.38
= control target key start
LH: loop header
LB: loop body
LE: loop exit
PB: predicated region body
PF: predicated region fallthrough
CT: control target
= control target key end

     0   :  { %vm84_vm0 = vcmask 1043456   ;;  %vm85_vm1 = vcmask 1044480   ;;  %v266_v1 = vmov 65535   ;;  %vm59_vm2 = vcmask 72704   ;;  %s423_s1 = inlined_call_operand.vmem [shape: f32[1,9], index: 1, kind: input, shape index: {}]   ;;  %s424_s2 = inlined_call_operand.vmem [shape: f32[1,9], index: 2, kind: input, shape index: {}]   ;;  %s425_s3 = inlined_call_operand.vmem [shape: bf16[9,32], index: 3, kind: input, shape index: {}]   ;;  %s426_s0 = inlined_call_operand.vmem [shape: f32[128,9], index: 0, kind: input, shape index: {}]   ;;  %s427_s4 = inlined_call_operand.vmem [shape: f32[1,32], index: 4, kind: input, shape index: {}]   ;;  %s428_s5 = inlined_call_operand.vmem [shape: f32[128,32], index: 5, kind: output, shape index: {}]  }
   0x1   :  { %v265_v0 = vld [vmem:[%s425_s3] sm:$0x1f]   ;;  %v86_v2 = vsel %vm84_vm0, 4294967295, %v266_v1  ;;  %v22_v4 = vld [vmem:[%s426_s0 + $0x8] sm:$0xff]  ;;  %v23_v9 = vld [vmem:[%s426_s0 + $0x10] sm:$0xff]  ;;  %vm204_vm3 = vcmask 261120  }
   0x2   :  { %v21_v3 = vld [vmem:[%s426_s0] sm:$0xff]  ;;  %v87_v6 = vsel %vm85_vm1, %v86_v2, 0  ;;  %v30_v8 = vld [vmem:[%s426_s0 + $0x48] sm:$0xff]  ;;  %v24_v10 = vld [vmem:[%s426_s0 + $0x18] sm:$0xff] }
   0x3   :  { %v29_v5 = vld [vmem:[%s426_s0 + $0x40] sm:$0xff]  ;;  %v37_v7 = vpack.c.bf16 %v22_v4, %v21_v3  ;;  %v89_v11 = vand.u32 %v265_v0, %v87_v6  ;;  %v31_v13 = vld [vmem:[%s426_s0 + $0x50] sm:$0xff]  ;;  %v32_v14 = vld [vmem:[%s426_s0 + $0x58] sm:$0xff]  ;;  %v38_v19 = vpack.c.bf16 %v24_v10, %v23_v9 }
   0x4   :  { %v41_v12 = vpack.c.bf16 %v30_v8, %v29_v5  ;;  %v25_v15 = vld [vmem:[%s426_s0 + $0x20] sm:$0xff]  ;;  %v26_v16 = vld [vmem:[%s426_s0 + $0x28] sm:$0xff]  ;;  %v42_v20 = vpack.c.bf16 %v32_v14, %v31_v13  ;;  %v27_v23 = vld [vmem:[%s426_s0 + $0x30] sm:$0xff] }
   0x5   :  { %246 = vmatprep.mubr.msk.bf16.mxu0 %vm59_vm2, %v37_v7  ;;  %v33_v17 = vld [vmem:[%s426_s0 + $0x60] sm:$0xff]  ;;  %v34_v18 = vld [vmem:[%s426_s0 + $0x68] sm:$0xff]  ;;  %244 = vmatprep.subr.bf16.mxu0 %v89_v11  ;;  %v39_v21 = vpack.c.bf16 %v26_v16, %v25_v15  ;;  %v28_v24 = vld [vmem:[%s426_s0 + $0x38] sm:$0xff] }
   0x6   :  { %262 = vmatprep.subr.bf16.mxu1 %v89_v11  ;;  %245 = vmatpush3.bf16.msra.mxu0 %v89_v11  ;;  %v43_v22 = vpack.c.bf16 %v34_v18, %v33_v17  ;;  %v35_v25 = vld [vmem:[%s426_s0 + $0x70] sm:$0xff]  ;;  %v36_v26 = vld [vmem:[%s426_s0 + $0x78] sm:$0xff]  ;;  %v40_v27 = vpack.c.bf16 %v28_v24, %v27_v23  ;;  %v225_v29 = vld [vmem:[%s427_s4] ss:$0 sm:$0xff] }
   0x7   :  { %263 = vmatpush3.bf16.msra.mxu1 %v89_v11  ;;  %254 = vmatprep.mubr.msk.bf16.mxu1 %vm59_vm2, %v41_v12  ;;  %v44_v28 = vpack.c.bf16 %v36_v26, %v35_v25 }
   0x9   :  { %247 = vmatmul.mubr.msk.bf16.vlgmr.msra.gmra.mrb[0].mxu0 %vm59_vm2, %v38_v19 }
   0xa   :  { %255 = vmatmul.mubr.msk.bf16.vlgmr.msra.gmra.mrb[0].mxu1 %vm59_vm2, %v42_v20  ;;  %250 = vmatprep.mubr.msk.bf16.mxu0 %vm59_vm2, %v39_v21 }
   0xb   :  { %258 = vmatprep.mubr.msk.bf16.mxu1 %vm59_vm2, %v43_v22 }
  0x11   :  { %251 = vmatmul.mubr.msk.bf16.gmra.mrb[4].mxu0 %vm59_vm2, %v40_v27 }
  0x12   :  { %259 = vmatmul.mubr.msk.bf16.gmra.mrb[4].mxu1 %vm59_vm2, %v44_v28 }
  0xdc   :  { %v248_v30 = vpop.f32.mrb[0].mxu0 }
  0xdd   :  { %v256_v31 = vpop.f32.mrb[0].mxu1  ;;  %v134_v32 = vadd.f32 %v248_v30, %v225_v29  ;;  %v125_v34 = vpop.f32.mrb[1].mxu0 }
  0xde   :  { %v166_v33 = vadd.f32 %v256_v31, %v225_v29  ;;  %v157_v35 = vpop.f32.mrb[1].mxu1  ;;  %v126_v36 = vadd.f32 %v225_v29, %v125_v34  ;;  %v249_v38 = vpop.f32.mrb[2].mxu0 }
  0xdf   :  { %v158_v37 = vadd.f32 %v225_v29, %v157_v35  ;;  %v257_v39 = vpop.f32.mrb[2].mxu1  ;;  %v190_v40 = vmax.f32 %v134_v32, 0.0  ;;  %v137_v42 = vadd.f32 %v249_v38, %v225_v29  ;;  %v128_v44 = vpop.f32.mrb[3].mxu0 }
  0xe0   :  { %v198_v41 = vmax.f32 %v166_v33, 0.0  ;;  %v169_v43 = vadd.f32 %v257_v39, %v225_v29  ;;  %v160_v45 = vpop.f32.mrb[3].mxu1  ;;  %v188_v46 = vmax.f32 %v126_v36, 0.0  ;;  %v129_v48 = vadd.f32 %v225_v29, %v128_v44 }
  0xe1   :  { %v196_v47 = vmax.f32 %v158_v37, 0.0  ;;  %v161_v49 = vadd.f32 %v225_v29, %v160_v45  ;;  %207 = vst.msk [vmem:[%s428_s5 + $0x10] sm:$0xff] %vm204_vm3, %v190_v40  ;;  %v191_v50 = vmax.f32 %v137_v42, 0.0 }
  0xe2   :  { %215 = vst.msk [vmem:[%s428_s5 + $0x50] sm:$0xff] %vm204_vm3, %v198_v41  ;;  %v199_v51 = vmax.f32 %v169_v43, 0.0  ;;  %205 = vst.msk [vmem:[%s428_s5] sm:$0xff] %vm204_vm3, %v188_v46  ;;  %v189_v52 = vmax.f32 %v129_v48, 0.0 }
  0xe3   :  { %213 = vst.msk [vmem:[%s428_s5 + $0x40] sm:$0xff] %vm204_vm3, %v196_v47  ;;  %v197_v53 = vmax.f32 %v161_v49, 0.0  ;;  %208 = vst.msk [vmem:[%s428_s5 + $0x18] sm:$0xff] %vm204_vm3, %v191_v50 }
  0xe4   :  { %216 = vst.msk [vmem:[%s428_s5 + $0x58] sm:$0xff] %vm204_vm3, %v199_v51  ;;  %206 = vst.msk [vmem:[%s428_s5 + $0x8] sm:$0xff] %vm204_vm3, %v189_v52  ;;  %v252_v54 = vpop.f32.mrb[4].mxu0 }
  0xe5   :  { %214 = vst.msk [vmem:[%s428_s5 + $0x48] sm:$0xff] %vm204_vm3, %v197_v53  ;;  %v260_v55 = vpop.f32.mrb[4].mxu1  ;;  %v150_v56 = vadd.f32 %v252_v54, %v225_v29  ;;  %v141_v58 = vpop.f32.mrb[5].mxu0 }
  0xe6   :  { %v182_v57 = vadd.f32 %v260_v55, %v225_v29  ;;  %v173_v59 = vpop.f32.mrb[5].mxu1  ;;  %v142_v60 = vadd.f32 %v225_v29, %v141_v58  ;;  %v253_v62 = vpop.f32.mrb[6].mxu0 }
  0xe7   :  { %v174_v61 = vadd.f32 %v225_v29, %v173_v59  ;;  %v261_v63 = vpop.f32.mrb[6].mxu1  ;;  %v194_v0 = vmax.f32 %v150_v56, 0.0  ;;  %v153_v2 = vadd.f32 %v253_v62, %v225_v29  ;;  %v144_v4 = vpop.f32.mrb[7].mxu0 }
  0xe8   :  { %v202_v1 = vmax.f32 %v182_v57, 0.0  ;;  %v185_v3 = vadd.f32 %v261_v63, %v225_v29  ;;  %v176_v5 = vpop.f32.mrb[7].mxu1  ;;  %v192_v6 = vmax.f32 %v142_v60, 0.0  ;;  %v145_v8 = vadd.f32 %v225_v29, %v144_v4 }
  0xe9   :  { %v200_v7 = vmax.f32 %v174_v61, 0.0  ;;  %v177_v9 = vadd.f32 %v225_v29, %v176_v5  ;;  %211 = vst.msk [vmem:[%s428_s5 + $0x30] sm:$0xff] %vm204_vm3, %v194_v0  ;;  %v195_v10 = vmax.f32 %v153_v2, 0.0 }
  0xea   :  { %219 = vst.msk [vmem:[%s428_s5 + $0x70] sm:$0xff] %vm204_vm3, %v202_v1  ;;  %v203_v11 = vmax.f32 %v185_v3, 0.0  ;;  %209 = vst.msk [vmem:[%s428_s5 + $0x20] sm:$0xff] %vm204_vm3, %v192_v6  ;;  %v193_v12 = vmax.f32 %v145_v8, 0.0 }
  0xeb   :  { %217 = vst.msk [vmem:[%s428_s5 + $0x60] sm:$0xff] %vm204_vm3, %v200_v7  ;;  %v201_v13 = vmax.f32 %v177_v9, 0.0  ;;  %212 = vst.msk [vmem:[%s428_s5 + $0x38] sm:$0xff] %vm204_vm3, %v195_v10 }
  0xec   :  { %220 = vst.msk [vmem:[%s428_s5 + $0x78] sm:$0xff] %vm204_vm3, %v203_v11  ;;  %210 = vst.msk [vmem:[%s428_s5 + $0x28] sm:$0xff] %vm204_vm3, %v193_v12 }
  0xed   :  { %218 = vst.msk [vmem:[%s428_s5 + $0x68] sm:$0xff] %vm204_vm3, %v201_v13 }

// kernel: fireredasr_aed_forward.39
= control target key start
LH: loop header
LB: loop body
LE: loop exit
PB: predicated region body
PF: predicated region fallthrough
CT: control target
= control target key end

     0   :  { %vm187_vm0 = vcmask 261120   ;;  %s507_s1 = inlined_call_operand.vmem [shape: f32[1,288], index: 1, kind: input, shape index: {}]   ;;  %s508_s2 = inlined_call_operand.vmem [shape: f32[1,288], index: 2, kind: input, shape index: {}]   ;;  %s509_s3 = inlined_call_operand.vmem [shape: bf16[288,32], index: 3, kind: input, shape index: {}]   ;;  %s510_s0 = inlined_call_operand.vmem [shape: f32[24,288], index: 0, kind: input, shape index: {}]   ;;  %s511_s4 = inlined_call_operand.vmem [shape: f32[1,32], index: 4, kind: input, shape index: {}]   ;;  %s512_s5 = inlined_call_operand.vmem [shape: f32[24,32], index: 5, kind: output, shape index: {}]  }
   0x1   :  { %v361_v0 = vld [vmem:[%s509_s3 + $0x40] sm:$0xff]   ;;  %v363_v2 = vld [vmem:[%s509_s3 + $0x48] sm:$0xff]   ;;  %v365_v4 = vld [vmem:[%s509_s3 + $0x50] sm:$0xff]  }
   0x2   :  { %v362_v1 = vld [vmem:[%s509_s3] sm:$0xff]   ;;  %321 = vmatprep.subr.bf16.mxu0 %v361_v0  ;;  %v364_v3 = vld [vmem:[%s509_s3 + $0x8] sm:$0xff]   ;;  %v366_v5 = vld [vmem:[%s509_s3 + $0x10] sm:$0xff]  }
   0x3   :  { %322 = vmatpush3.bf16.msra.mxu0 %v362_v1  ;;  %v367_v6 = vld [vmem:[%s509_s3 + $0x58] sm:$0xff]   ;;  %v369_v8 = vld [vmem:[%s509_s3 + $0x60] sm:$0xff]   ;;  %v371_v11 = vld [vmem:[%s509_s3 + $0x68] sm:$0xff]  }
   0x4   :  { %323 = vmatprep.subr.bf16.mxu0 %v363_v2  ;;  %v368_v7 = vld [vmem:[%s509_s3 + $0x18] sm:$0xff]   ;;  %v370_v9 = vld [vmem:[%s509_s3 + $0x20] sm:$0xff]   ;;  %v22_v12 = vld [vmem:[%s510_s0 + $0x8] sm:$0xff] }
   0x5   :  { %v376_v10 = vld [vmem:[%s509_s3 + $0x80] sm:$0xff]   ;;  %v372_v14 = vld [vmem:[%s509_s3 + $0x28] sm:$0xff]   ;;  %v23_v17 = vld [vmem:[%s510_s0 + $0x10] sm:$0xff] }
   0x6   :  { %353 = vmatprep.subr.bf16.mxu1 %v376_v10  ;;  %v25_v13 = vld [vmem:[%s510_s0 + $0x20] sm:$0xff]  ;;  %v378_v16 = vld [vmem:[%s509_s3 + $0x88] sm:$0xff]   ;;  %v373_v19 = vld [vmem:[%s509_s3 + $0x70] sm:$0xff]  }
   0x7   :  { %324 = vmatpush3.bf16.msra.mxu0 %v364_v3  ;;  %354 = vmatpush3.bf16.msra.mxu1 %v376_v10  ;;  %v31_v15 = vpack.c.bf16 %v25_v13, %v22_v12  ;;  %v26_v18 = vld [vmem:[%s510_s0 + $0x28] sm:$0xff]  ;;  %v29_v21 = vld [vmem:[%s510_s0 + $0x40] sm:$0xff]  ;;  %v374_v23 = vld [vmem:[%s509_s3 + $0x30] sm:$0xff]  }
   0x8   :  { %325 = vmatprep.subr.bf16.mxu0 %v365_v4  ;;  %v32_v20 = vpack.c.bf16 %v26_v18, %v23_v17  ;;  %355 = vmatprep.subr.bf16.mxu1 %v378_v16  ;;  %v35_v22 = vpack.c.bf16 %v29_v21, %v29_v21  ;;  %v375_v24 = vld [vmem:[%s509_s3 + $0x78] sm:$0xff]   ;;  %v21_v26 = vld [vmem:[%s510_s0] sm:$0xff]  ;;  %v27_v31 = vld [vmem:[%s510_s0 + $0x30] sm:$0xff] }
   0x9   :  { %226 = vmatprep.mubr.bf16.mxu0 %v31_v15  ;;  %v377_v25 = vld [vmem:[%s509_s3 + $0x38] sm:$0xff]   ;;  %v33_v32 = vpack.c.bf16 %v27_v31, %v27_v31  ;;  %v300_v39 = vld [vmem:[%s511_s4] ss:$0 sm:$0xff] }
   0xa   :  { %357 = vmatprep.mubr.msk.bf16.mxu1 %vm187_vm0, %v32_v20  ;;  %v24_v27 = vld [vmem:[%s510_s0 + $0x18] sm:$0xff] }
   0xb   :  { %326 = vmatpush3.bf16.msra.mxu0 %v366_v5  ;;  %356 = vmatpush3.bf16.msra.mxu1 %v378_v16  ;;  %v28_v28 = vld [vmem:[%s510_s0 + $0x38] sm:$0xff]  ;;  %v30_v29 = vpack.c.bf16 %v24_v27, %v21_v26 }
   0xc   :  { %327 = vmatprep.subr.bf16.mxu0 %v367_v6  ;;  %v34_v30 = vpack.c.bf16 %v28_v28, %v28_v28 }
   0xe   :  { %358 = vmatmul.mubr.msk.bf16.vlgmr.msra.gmra.mrb[0].mxu1 %vm187_vm0, %v35_v22 }
   0xf   :  { %328 = vmatpush3.bf16.msra.mxu0 %v368_v7 }
  0x10   :  { %329 = vmatprep.subr.bf16.mxu0 %v369_v8 }
  0x13   :  { %330 = vmatpush3.bf16.msra.mxu0 %v370_v9 }
  0x14   :  { %331 = vmatprep.subr.bf16.mxu0 %v371_v11 }
  0x17   :  { %332 = vmatpush3.bf16.msra.mxu0 %v372_v14 }
  0x18   :  { %333 = vmatprep.subr.bf16.mxu0 %v373_v19 }
  0x1b   :  { %334 = vmatpush3.bf16.msra.mxu0 %v374_v23 }
  0x1c   :  { %335 = vmatprep.subr.bf16.mxu0 %v375_v24 }
  0x1f   :  { %336 = vmatpush3.bf16.msra.mxu0 %v377_v25 }
  0x22   :  { %227 = vmatmul.mubr.bf16.vlgmr.msra.gmra.mrb[0].mxu0 %v30_v29 }
  0x23   :  { %234 = vmatprep.mubr.bf16.mxu0 %v34_v30 }
  0x2a   :  { %235 = vmatmul.mubr.bf16.gmra.mrb[4].mxu0 %v33_v32 }
  0xe1   :  { %v359_v33 = vpop.f32.mrb[0].mxu1 }
  0xe2   :  { %v276_v34 = vpop.f32.mrb[1].mxu1 }
  0xe3   :  { %v360_v35 = vpop.f32.mrb[2].mxu1 }
  0xe4   :  { %v279_v36 = vpop.f32.mrb[3].mxu1 }
  0xf5   :  { %v337_v37 = vpop.f32.mrb[0].mxu0 }
  0xf6   :  { %v338_v38 = vpop.f32.mrb[1].mxu0 }
  0xf7   :  { %v339_v40 = vadd.f32 %v338_v38, %v337_v37  ;;  %v340_v41 = vpop.f32.mrb[2].mxu0 }
  0xf8   :  { %v341_v42 = vpop.f32.mrb[3].mxu0 }
  0xf9   :  { %v342_v43 = vadd.f32 %v341_v42, %v340_v41  ;;  %v229_v44 = vadd.f32 %v339_v40, %v300_v39 }
  0xfb   :  { %v277_v45 = vadd.f32 %v276_v34, %v229_v44  ;;  %v232_v46 = vadd.f32 %v342_v43, %v300_v39 }
  0xfd   :  { %v290_v47 = vmax.f32 %v277_v45, 0.0  ;;  %v280_v48 = vadd.f32 %v279_v36, %v232_v46  ;;  %v343_v49 = vpop.f32.mrb[4].mxu0 }
  0xfe   :  { %v344_v50 = vpop.f32.mrb[5].mxu0 }
  0xff   :  { %293 = vst.msk [vmem:[%s512_s5] sm:$0xff] %vm187_vm0, %v290_v47  ;;  %v291_v51 = vmax.f32 %v280_v48, 0.0  ;;  %v345_v52 = vadd.f32 %v344_v50, %v343_v49  ;;  %v346_v53 = vpop.f32.mrb[6].mxu0 }
 0x100   :  { %v347_v54 = vpop.f32.mrb[7].mxu0 }
 0x101   :  { %294 = vst.msk [vmem:[%s512_s5 + $0x8] sm:$0xff] %vm187_vm0, %v291_v51  ;;  %v237_v55 = vadd.f32 %v345_v52, %v300_v39 }
 0x103   :  { %v285_v56 = vadd.f32 %v359_v33, %v237_v55 }
 0x105   :  { %v292_v57 = vmax.f32 %v285_v56, 0.0 }
 0x107   :  { %295 = vst.msk [vmem:[%s512_s5 + $0x10] sm:$0xff] %vm187_vm0, %v292_v57 }

// kernel: fireredasr_aed_forward.40
= control target key start
LH: loop header
LB: loop body
LE: loop exit
PB: predicated region body
PF: predicated region fallthrough
CT: control target
= control target key end

     0   :  { %v167_v0 = vmov 0.0   ;;  %vm168_vm0 = vmmov 0   ;;  %vm78_vm1 = vcmask 785408   ;;  %vm122_vm2 = vcmask 261120   ;;  %s226_s1 = inlined_call_operand.vmem [shape: f32[1,96], index: 1, kind: input, shape index: {}]   ;;  %s227_s2 = inlined_call_operand.vmem [shape: f32[1,96], index: 2, kind: input, shape index: {}]   ;;  %s228_s3 = inlined_call_operand.vmem [shape: bf16[96,32], index: 3, kind: input, shape index: {}]   ;;  %s229_s0 = inlined_call_operand.vmem [shape: f32[8,96], index: 0, kind: input, shape index: {}]   ;;  %s230_s4 = inlined_call_operand.vmem [shape: f32[1,32], index: 4, kind: input, shape index: {}]   ;;  %s231_s5 = inlined_call_operand.vmem [shape: f32[8,32], index: 5, kind: output, shape index: {}]  }
   0x1   :  { %143 = vmatprep.subr.bf16.mxu0 %v167_v0  ;;  %v161_v1 = vld [vmem:[%s228_s3] sm:$0xff]   ;;  %155 = vmatprep.mubr.msk.bf16.mxu0 %vm168_vm0, %v167_v0  ;;  %v162_v2 = vld [vmem:[%s228_s3 + $0x8] sm:$0xff]   ;;  %v163_v3 = vld [vmem:[%s228_s3 + $0x10] sm:$0xff]  }
   0x2   :  { %144 = vmatpush3.bf16.msra.mxu0 %v161_v1  ;;  %v164_v4 = vld [vmem:[%s228_s3 + $0x18] sm:$0xff]   ;;  %v165_v5 = vld [vmem:[%s228_s3 + $0x20] sm:$0xff]   ;;  %v166_v6 = vld [vmem:[%s228_s3 + $0x28] sm:$0xff]  }
   0x3   :  { %145 = vmatprep.subr.bf16.mxu0 %v167_v0  ;;  %v21_v7 = vld [vmem:[%s229_s0] sm:$0xff] }
   0x4   :  { %v22_v8 = vpack.c.bf16 %v21_v7, %v21_v7  ;;  %v128_v9 = vld [vmem:[%s230_s4] ss:$0 sm:$0xff] }
   0x6   :  { %146 = vmatpush3.bf16.msra.mxu0 %v162_v2 }
   0x7   :  { %147 = vmatprep.subr.bf16.mxu0 %v167_v0 }
   0xa   :  { %148 = vmatpush3.bf16.msra.mxu0 %v163_v3 }
   0xb   :  { %149 = vmatprep.subr.bf16.mxu0 %v167_v0 }
   0xe   :  { %150 = vmatpush3.bf16.msra.mxu0 %v164_v4 }
   0xf   :  { %151 = vmatprep.subr.bf16.mxu0 %v167_v0 }
  0x12   :  { %152 = vmatpush3.bf16.msra.mxu0 %v165_v5 }
  0x13   :  { %153 = vmatprep.subr.bf16.mxu0 %v167_v0 }
  0x16   :  { %154 = vmatpush3.bf16.msra.mxu0 %v166_v6 }
  0x19   :  { %156 = vmatmul.mubr.msk.bf16.vlgmr.msra.gmra.mrb[0].mxu0 %vm78_vm1, %v22_v8 }
  0xec   :  { %v116_v10 = vpop.f32.mrb[0].mxu0 }
  0xed   :  { %v117_v11 = vadd.f32 %v128_v9, %v116_v10  ;;  %v157_v12 = vpop.f32.mrb[1].mxu0 }
  0xee   :  { %v119_v13 = vpop.f32.mrb[2].mxu0 }
  0xef   :  { %123 = vst.msk [vmem:[%s231_s5] sm:$0xff] %vm122_vm2, %v117_v11  ;;  %v158_v14 = vpop.f32.mrb[3].mxu0 }

// kernel: fireredasr_aed_forward.41
= control target key start
LH: loop header
LB: loop body
LE: loop exit
PB: predicated region body
PF: predicated region fallthrough
CT: control target
= control target key end

     0   :  { %vm34_vm0 = vcmask 261120   ;;  %v330_v8 = vmov 0.0   ;;  %vm331_vm1 = vmmov 0   ;;  %s439_s0 = inlined_call_operand.vmem [shape: f32[8,32], index: 0, kind: input, shape index: {}]   ;;  %s440_s7 = inlined_call_operand.vmem [shape: f32[1,32], index: 7, kind: input, shape index: {}]   ;;  %s441_s8 = inlined_call_operand.vmem [shape: f32[1,32], index: 8, kind: input, shape index: {}]   ;;  %s442_s3 = inlined_call_operand.vmem [shape: bf16[32,128], index: 3, kind: input, shape index: {}]   ;;  %s443_s1 = inlined_call_operand.vmem [shape: f32[1,32], index: 1, kind: input, shape index: {}]   ;;  %s444_s2 = inlined_call_operand.vmem [shape: f32[1,32], index: 2, kind: input, shape index: {}]   ;;  %s445_s5 = inlined_call_operand.vmem [shape: bf16[128,32], index: 5, kind: input, shape index: {}]   ;;  %s446_s4 = inlined_call_operand.vmem [shape: f32[1,128], index: 4, kind: input, shape index: {}]   ;;  %s447_s6 = inlined_call_operand.vmem [shape: f32[1,32], index: 6, kind: input, shape index: {}]   ;;  %s448_s9 = inlined_call_operand.vmem [shape: f32[8,32], index: 9, kind: output, shape index: {}]  }
   0x1   :  { %v385_v0 = vld [vmem:[%s439_s0] sm:$0xff]  ;;  %284 = vmatprep.subr.bf16.mxu0 %v330_v8  ;;  %292 = vmatprep.subr.bf16.mxu1 %v330_v8  ;;  %v315_v9 = vld [vmem:[%s442_s3 + $0x8] sm:$0xff]   ;;  %v318_v22 = vld [vmem:[%s445_s5 + $0x10] sm:$0xff]  }
   0x2   :  { %v35_v1 = vsel %vm34_vm0, %v385_v0, 0.0  ;;  %v314_v7 = vld [vmem:[%s442_s3] sm:$0xff]   ;;  %288 = vmatprep.mubr.msk.bf16.mxu0 %vm331_vm1, %v330_v8  ;;  %308 = vmatprep.mubr.msk.bf16.mxu1 %vm331_vm1, %v330_v8  ;;  %v317_v21 = vld [vmem:[%s445_s5 + $0x8] sm:$0xff]   ;;  %v319_v23 = vld [vmem:[%s445_s5 + $0x18] sm:$0xff]  }
   0x3   :  { %36 = vadd.xlane.f32.xlu0 %v35_v1  ;;  %285 = vmatpush3.bf16.msra.mxu0 %v314_v7  ;;  %v257_v14 = vld [vmem:[%s443_s1] ss:$0 sm:$0xff]  ;;  %v321_v25 = vld [vmem:[%s445_s5 + $0x28] sm:$0xff]   ;;  %v322_v26 = vld [vmem:[%s445_s5 + $0x30] sm:$0xff]  }
   0x4   :  { %286 = vmatprep.subr.bf16.mxu0 %v330_v8  ;;  %v258_v16 = vld [vmem:[%s444_s2] ss:$0 sm:$0xff]  ;;  %v323_v27 = vld [vmem:[%s445_s5 + $0x38] sm:$0xff]  }
   0x5   :  { %v316_v20 = vld [vmem:[%s445_s5] sm:$0xff]  }
   0x6   :  { %293 = vmatpush3.bf16.msra.mxu1 %v316_v20  ;;  %v320_v24 = vld [vmem:[%s445_s5 + $0x20] sm:$0xff]  }
   0x7   :  { %287 = vmatpush3.bf16.msra.mxu0 %v315_v9  ;;  %294 = vmatprep.subr.bf16.mxu1 %v330_v8  ;;  %v259_v28 = vld [vmem:[%s446_s4] ss:$0 sm:$0xff] }
   0x8   :  { %v263_v41 = vld [vmem:[%s447_s6] ss:$0 sm:$0xff] }
   0xa   :  { %295 = vmatpush3.bf16.msra.mxu1 %v317_v21 }
   0xb   :  { %296 = vmatprep.subr.bf16.mxu1 %v330_v8 }
   0xe   :  { %297 = vmatpush3.bf16.msra.mxu1 %v318_v22 }
   0xf   :  { %298 = vmatprep.subr.bf16.mxu1 %v330_v8 }
  0x12   :  { %299 = vmatpush3.bf16.msra.mxu1 %v319_v23 }
  0x13   :  { %300 = vmatprep.subr.bf16.mxu1 %v330_v8 }
  0x16   :  { %301 = vmatpush3.bf16.msra.mxu1 %v320_v24 }
  0x17   :  { %302 = vmatprep.subr.bf16.mxu1 %v330_v8 }
  0x1a   :  { %303 = vmatpush3.bf16.msra.mxu1 %v321_v25 }
  0x1b   :  { %304 = vmatprep.subr.bf16.mxu1 %v330_v8 }
  0x1e   :  { %305 = vmatpush3.bf16.msra.mxu1 %v322_v26 }
  0x1f   :  { %306 = vmatprep.subr.bf16.mxu1 %v330_v8 }
  0x22   :  { %307 = vmatpush3.bf16.msra.mxu1 %v323_v27 }
  0x90   :  { %v37_v2 = vpop.xlane.xlu0 %36 }
  0x91   :  { %v39_v3 = vmul.f32 0.03125, %v37_v2 }
  0x93   :  { %v40_v4 = vsub.f32 %v385_v0, %v39_v3 }
  0x95   :  { %v41_v5 = vmul.f32 %v40_v4, %v40_v4 }
  0x97   :  { %v42_v6 = vsel %vm34_vm0, %v41_v5, 0.0 }
  0x98   :  { %43 = vadd.xlane.f32.xlu0 %v42_v6 }
 0x125   :  { %v44_v10 = vpop.xlane.xlu0 %43 }
 0x126   :  { %v45_v11 = vmul.f32 0.03125, %v44_v10 }
 0x128   :  { %v46_v12 = vadd.f32 1e-05, %v45_v11 }
 0x12a   :  { %324 = vrsqrt.f32 %v46_v12 }
 0x134   :  { %v325_v13 = vpop.eup %324 }
 0x135   :  { %v48_v15 = vmul.f32 %v325_v13, %v40_v4 }
 0x137   :  { %v56_v17 = vmul.f32 %v257_v14, %v48_v15 }
 0x139   :  { %v64_v18 = vadd.f32 %v258_v16, %v56_v17 }
 0x13b   :  { %v65_v19 = vpack.c.bf16 %v64_v18, %v64_v18 }
 0x13d   :  { %289 = vmatmul.mubr.msk.bf16.vlgmr.msra.gmra.mrb[0].mxu0 %vm34_vm0, %v65_v19 }
 0x210   :  { %v126_v29 = vpop.f32.mrb[0].mxu0 }
 0x211   :  { %v127_v30 = vadd.f32 %v259_v28, %v126_v29  ;;  %v290_v31 = vpop.f32.mrb[1].mxu0 }
 0x212   :  { %v129_v32 = vpop.f32.mrb[2].mxu0 }
 0x213   :  { %v132_v33 = vsub.f32 0.0, %v127_v30  ;;  %v291_v34 = vpop.f32.mrb[3].mxu0 }
 0x215   :  { %v133_v35 = vmul.f32 1.442695, %v132_v33 }
 0x217   :  { %326 = vpow2.f32 %v133_v35 }
 0x221   :  { %v327_v36 = vpop.eup %326 }
 0x222   :  { %v135_v37 = vadd.f32 1.0, %v327_v36 }
 0x224   :  { %328 = vrcp.f32 %v135_v37 }
 0x22e   :  { %v329_v38 = vpop.eup %328 }
 0x22f   :  { %v137_v39 = vmul.f32 %v329_v38, %v127_v30 }
 0x231   :  { %v138_v40 = vpack.c.bf16 %v137_v39, %v137_v39 }
 0x233   :  { %309 = vmatmul.mubr.bf16.vlgmr.msra.gmra.mrb[0].mxu1 %v138_v40 }
 0x306   :  { %v244_v42 = vpop.f32.mrb[0].mxu1 }
 0x307   :  { %v245_v43 = vadd.f32 %v263_v41, %v244_v42  ;;  %v310_v44 = vpop.f32.mrb[1].mxu1 }
 0x308   :  { %v247_v45 = vpop.f32.mrb[2].mxu1 }
 0x309   :  { %v250_v46 = vmul.f32 0.5, %v245_v43  ;;  %v311_v47 = vpop.f32.mrb[3].mxu1 }
 0x30b   :  { %v251_v48 = vadd.f32 %v250_v46, %v385_v0 }
 0x30d   :  { %252 = vst.msk [vmem:[%s448_s9] sm:$0xff] %vm34_vm0, %v251_v48 }

// kernel: fireredasr_aed_forward.42
= control target key start
LH: loop header
LB: loop body
LE: loop exit
PB: predicated region body
PF: predicated region fallthrough
CT: control target
= control target key end

     0   :  { %s718_s24 = smov 0   ;;  %s783_s0 = inlined_call_operand.vmem [shape: f32[2,4,32], index: 0, kind: input, shape index: {}]   ;;  %s784_s1 = inlined_call_operand.vmem [shape: f32[1,32], index: 1, kind: input, shape index: {}]   ;;  %s785_s2 = inlined_call_operand.vmem [shape: f32[1,32], index: 2, kind: input, shape index: {}]   ;;  %s786_s3 = inlined_call_operand.vmem [shape: bf16[32,96], index: 3, kind: input, shape index: {}]   ;;  %s787_s4 = inlined_call_operand.vmem [shape: f32[1,96], index: 4, kind: input, shape index: {}]   ;;  %s788_s5 = inlined_call_operand.vmem [shape: bf16[2,4,4,8], index: 5, kind: output, shape index: {0}]   ;;  %s789_s6 = inlined_call_operand.vmem [shape: bf16[2,4,4,8], index: 6, kind: output, shape index: {1}]   ;;  %s790_s7 = inlined_call_operand.vmem [shape: bf16[2,4,4,8], index: 7, kind: output, shape index: {2}]  }
   0x1 LB: > { %s587_s25 = sadd.s32 4294967295, %s662_s24   ;;  %p591_p0 = scmp.ge.s32.totalorder %s662_s24, 1  ;;  %s662_s24 = sphi %s718_s24, %s18_s24  }
   0x2   : > { %p241_p1 = scmp.lt.s32.totalorder %s662_s24, 3 }
   0x4   : > { %p242_p2 = pnand %p591_p0, %p241_p1 }
   0x5   : > { %p282_p3 = scmp.lt.s32.totalorder (!%p242_p2), %s587_s25, 1  ;;  %vm303_vm0 = vcmask (!%p242_p2), 257024   ;;  %v652_v7 = vld [vmem:[%s786_s3] sm:$0xff] (!%p242_p2)   ;;  %v664_v8 = vmov (!%p242_p2), 0.0   ;;  %vm665_vm1 = vmmov (!%p242_p2), 0   ;;  %v653_v9 = vld [vmem:[%s786_s3 + $0x8] sm:$0xff] (!%p242_p2)   ;;  %v409_v22 = vlaneseq (!%p242_p2) }
   0x6   : > { %245 = sbr.rel (%p242_p2) target bundleno = 698 (0x2ba), region = 40  ;;  %622 = vmatprep.subr.bf16.mxu0 (!%p242_p2), %v664_v8  ;;  %626 = vmatprep.mubr.msk.bf16.mxu0 (!%p242_p2), %vm665_vm1, %v664_v8  ;;  %v599_v14 = vld [vmem:[%s784_s1] ss:$0 sm:$0xff] (!%p242_p2)  ;;  %vm358_vm2 = vcmask (!%p242_p2), 261120   ;;  %v666_v20 = vmov (!%p242_p2), 1983009808  }
   0x7   : > { %623 = vmatpush3.bf16.msra.mxu0 (!%p242_p2), %v652_v7  ;;  %v600_v16 = vld [vmem:[%s785_s2] ss:$0 sm:$0xff] (!%p242_p2)  ;;  %v407_v21 = vunpack.c.l.s4 (!%p242_p2), %v666_v20  ;;  %v410_v24 = vshrl.u32 (!%p242_p2), %v409_v22, 7  ;;  %vm403_vm3 = vcmask (!%p242_p2), 58368   ;;  %s667_s21 = smov (!%p242_p2), 104   ;;  %s668_s22 = smov (!%p242_p2), 120  }
   0x8   : > { %624 = vmatprep.subr.bf16.mxu0 (!%p242_p2), %v664_v8  ;;  %v601_v25 = vld [vmem:[%s787_s4] ss:$0 sm:$0xff] (!%p242_p2)  ;;  %s669_s23 = smov (!%p242_p2), 48   ;;  %s672_s27 = smov (!%p242_p2), 88  }
   0x9   : > { %v408_v23 = vunpack.c.0.s8 (!%p242_p2), %v407_v21  ;;  %s673_s28 = smov (!%p242_p2), 80   ;;  %s675_s30 = smov (!%p242_p2), 64  }
   0xa   : > { %s676_s8 = smov (!%p242_p2), 56   ;;  %s677_s9 = smov (!%p242_p2), 40  }
   0xb   : > { %625 = vmatpush3.bf16.msra.mxu0 (!%p242_p2), %v653_v9  ;;  %v411_v28 = vsub.s32 (!%p242_p2), %v408_v23, %v410_v24 }
   0xd   : > { %s792_s25 = smov (!%p282_p3, %s587_s25), 1 }
   0xe   : > { %s592_s26 = sshll.u32 %s792_s25, 2  ;;  %s748_s17 = sshll.u32 %s792_s25, 3 }
   0xf   : > { %s285_s29 = scalar_lea.vmem %s783_s0, %s592_s26  ;;  %s754_s20 = scalar_lea.vmem %s788_s5, %s748_s17 }
  0x10   : > { %v302_v0 = vld [vmem:[%s285_s29] sm:$0xf]  ;;  %s670_s25 = smov 112   ;;  %s671_s26 = smov 96  }
  0x11   : > { %v304_v1 = vsel %vm303_vm0, %v302_v0, 0.0  ;;  %s674_s29 = smov 72   ;;  %s300_s12 = scalar_lea.vmem %s790_s7, %s748_s17 }
  0x12   : > { %305 = vadd.xlane.f32.xlu0 %v304_v1  ;;  %s295_s15 = scalar_lea.vmem %s789_s6, %s748_s17 }
  0x9f   : > { %v306_v2 = vpop.xlane.xlu0 %305 }
  0xa0   : > { %v308_v3 = vmul.f32 0.03125, %v306_v2 }
  0xa2   : > { %v309_v4 = vsub.f32 %v302_v0, %v308_v3 }
  0xa4   : > { %v310_v5 = vmul.f32 %v309_v4, %v309_v4 }
  0xa6   : > { %v311_v6 = vsel %vm303_vm0, %v310_v5, 0.0 }
  0xa7   : > { %312 = vadd.xlane.f32.xlu0 %v311_v6 }
 0x134   : > { %v313_v10 = vpop.xlane.xlu0 %312 }
 0x135   : > { %v314_v11 = vmul.f32 0.03125, %v313_v10 }
 0x137   : > { %v315_v12 = vadd.f32 1e-05, %v314_v11 }
 0x139   : > { %654 = vrsqrt.f32 %v315_v12 }
 0x143   : > { %v655_v13 = vpop.eup %654 }
 0x144   : > { %v317_v15 = vmul.f32 %v655_v13, %v309_v4 }
 0x146   : > { %v325_v17 = vmul.f32 %v599_v14, %v317_v15 }
 0x148   : > { %v333_v18 = vadd.f32 %v600_v16, %v325_v17 }
 0x14a   : > { %v334_v19 = vpack.c.bf16 %v333_v18, %v333_v18 }
 0x14c   : > { %627 = vmatmul.mubr.msk.bf16.vlgmr.msra.gmra.mrb[0].mxu0 %vm358_vm2, %v334_v19 }
 0x21f   : > { %v396_v26 = vpop.f32.mrb[0].mxu0 }
 0x220   : > { %v397_v27 = vadd.f32 %v601_v25, %v396_v26  ;;  %v628_v29 = vpop.f32.mrb[1].mxu0 }
 0x221   : > { %v399_v30 = vpop.f32.mrb[2].mxu0 }
 0x222   : > { %v402_v31 = vpack.c.bf16 %v397_v27, %v397_v27  ;;  %v629_v32 = vpop.f32.mrb[3].mxu0 }
 0x224   : > { %404 = vst.msk [vmem:[%s754_s20] sm:$0x3] %vm403_vm3, %v402_v31  ;;  %v412_v33 = vrot.slane %v402_v31, %v411_v28 }
 0x226   : > { %423 = vrot.lane.b32.xlu0 %v412_v33, %s667_s21  ;;  %413 = vrot.lane.b32.xlu1 %v412_v33, %s668_s22 }
 0x22a   : > { %456 = vrot.lane.b32.xlu0 %v412_v33, %s669_s23  ;;  %418 = vrot.lane.b32.xlu1 %v412_v33, %s670_s25 }
 0x22e   : > { %428 = vrot.lane.b32.xlu1 %v412_v33, %s671_s26 }
 0x232   : > { %432 = vrot.lane.b32.xlu1 %v412_v33, %s672_s27 }
 0x236   : > { %437 = vrot.lane.b32.xlu1 %v412_v33, %s673_s28 }
 0x23a   : > { %442 = vrot.lane.b32.xlu1 %v412_v33, %s674_s29 }
 0x23e   : > { %447 = vrot.lane.b32.xlu1 %v412_v33, %s675_s30 }
 0x242   : > { %451 = vrot.lane.b32.xlu1 %v412_v33, %s676_s8 }
 0x246   : > { %461 = vrot.lane.b32.xlu1 %v412_v33, %s677_s9 }
 0x298   : > { %v424_v34 = vpop.permute.xlu0 %423  ;;  %v414_v35 = vpop.permute.xlu1 %413 }
 0x299   : > { %607 = vst.msk [vmem:[%s754_s20 + $0x6] sm:$0x3] %vm403_vm3, %v424_v34  ;;  %605 = vst.msk [vmem:[%s754_s20 + $0x2] sm:$0x3] %vm403_vm3, %v414_v35 }
 0x29c   : > { %v457_v36 = vpop.permute.xlu0 %456  ;;  %v419_v37 = vpop.permute.xlu1 %418 }
 0x29d   : > { %612 = vst.msk [vmem:[%s300_s12 + $0x4] sm:$0x3] %vm403_vm3, %v457_v36  ;;  %606 = vst.msk [vmem:[%s754_s20 + $0x4] sm:$0x3] %vm403_vm3, %v419_v37 }
 0x2a0   : > { %v429_v38 = vpop.permute.xlu1 %428 }
 0x2a1   : > { %431 = vst.msk [vmem:[%s295_s15] sm:$0x3] %vm403_vm3, %v429_v38 }
 0x2a4   : > { %v433_v39 = vpop.permute.xlu1 %432 }
 0x2a5   : > { %608 = vst.msk [vmem:[%s295_s15 + $0x2] sm:$0x3] %vm403_vm3, %v433_v39 }
 0x2a8   : > { %v438_v40 = vpop.permute.xlu1 %437 }
 0x2a9   : > { %609 = vst.msk [vmem:[%s295_s15 + $0x4] sm:$0x3] %vm403_vm3, %v438_v40 }
 0x2ac   : > { %v443_v41 = vpop.permute.xlu1 %442 }
 0x2ad   : > { %610 = vst.msk [vmem:[%s295_s15 + $0x6] sm:$0x3] %vm403_vm3, %v443_v41 }
 0x2b0   : > { %v448_v42 = vpop.permute.xlu1 %447 }
 0x2b1   : > { %450 = vst.msk [vmem:[%s300_s12] sm:$0x3] %vm403_vm3, %v448_v42 }
 0x2b4   : > { %v452_v43 = vpop.permute.xlu1 %451 }
 0x2b5   : > { %611 = vst.msk [vmem:[%s300_s12 + $0x2] sm:$0x3] %vm403_vm3, %v452_v43 }
 0x2b8   : > { %v462_v44 = vpop.permute.xlu1 %461 }
 0x2b9   : > { %613 = vst.msk [vmem:[%s300_s12 + $0x6] sm:$0x3] %vm403_vm3, %v462_v44 }
 0x2ba PF: > { %s18_s24 = sadd.s32 1, %s662_s24  }
 0x2bb   : > { %p15_p4 = scmp.ge.s32.totalorder %s18_s24, 4  }
 0x2bd   :  { %17 = sbr.rel (!%p15_p4) target bundleno = 1 (0x1), region = 103 }

// kernel: fireredasr_aed_forward.44
= control target key start
LH: loop header
LB: loop body
LE: loop exit
PB: predicated region body
PF: predicated region fallthrough
CT: control target
= control target key end

     0   :  { %s575_s12 = smov 0   ;;  %s623_s0 = inlined_call_operand.vmem [shape: bf16[2,4,4,8], index: 0, kind: input, shape index: {}]   ;;  %s624_s1 = inlined_call_operand.vmem [shape: bf16[4,7,8], index: 1, kind: input, shape index: {}]   ;;  %s625_s2 = inlined_call_operand.vmem [shape: f32[4,8], index: 2, kind: input, shape index: {}]   ;;  %s626_s3 = inlined_call_operand.vmem [shape: f32[2,4,4,7], index: 3, kind: output, shape index: {}]  }
   0x1 LB: > { %s483_s13 = sadd.s32 4294967295, %s550_s12   ;;  %p487_p0 = scmp.ge.s32.totalorder %s550_s12, 1  ;;  %s550_s12 = sphi %s575_s12, %s13_s12  }
   0x2   : > { %p137_p1 = scmp.lt.s32.totalorder %s550_s12, 3 }
   0x4   : > { %p138_p2 = pnand %p487_p0, %p137_p1 }
   0x5   : > { %v234_v0 = vld [vmem:[%s624_s1] sm:$0xf] (!%p138_p2)  ;;  %vm238_vm0 = vcmask (!%p138_p2), 64512   ;;  %v235_v1 = vld [vmem:[%s624_s1 + $0x4] sm:$0xf] (!%p138_p2)  ;;  %v193_v2 = vlaneseq (!%p138_p2)  ;;  %v552_v3 = vmov (!%p138_p2), 0.0  }
   0x6   : > { %141 = sbr.rel (%p138_p2) target bundleno = 246 (0xf6), region = 32  ;;  %509 = vmatprep.subr.bf16.mxu0 (!%p138_p2), %v552_v3  ;;  %515 = vmatprep.subr.bf16.mxu1 (!%p138_p2), %v552_v3  ;;  %v243_v4 = vsel (!%p138_p2), %vm238_vm0, %v234_v0, 0  ;;  %v289_v5 = vsel (!%p138_p2), %vm238_vm0, %v235_v1, 0  ;;  %p161_p3 = scmp.lt.s32.totalorder (!%p138_p2), %s483_s13, 1  ;;  %v553_v7 = vmov (!%p138_p2), 1966171168  }
   0x7   : > { %510 = vmatpush3.bf16.xpose.msra.mxu0 (!%p138_p2), %v243_v4  ;;  %516 = vmatpush3.bf16.xpose.msra.mxu1 (!%p138_p2), %v289_v5  ;;  %v492_v6 = vld.sshfl [vmem:[%s625_s2] sm:$0x33 pattern:$0x75316420] (!%p138_p2)  ;;  %v191_v8 = vunpack.c.l.s4 (!%p138_p2), %v553_v7  ;;  %v194_v9 = vshrl.u32 (!%p138_p2), %v193_v2, 7  ;;  %vm554_vm1 = vmmov (!%p138_p2), 0  }
   0x8   : > { %511 = vmatprep.mubr.msk.bf16.mxu0 (!%p138_p2), %vm554_vm1, %v552_v3  ;;  %517 = vmatprep.mubr.msk.bf16.mxu1 (!%p138_p2), %vm554_vm1, %v552_v3  ;;  %v189_v11 = vcombine.high (!%p138_p2), %v492_v6, %v492_v6  ;;  %v236_v26 = vld [vmem:[%s624_s1 + $0x8] sm:$0xf] (!%p138_p2)  ;;  %v237_v27 = vld [vmem:[%s624_s1 + $0xc] sm:$0xf] (!%p138_p2)  ;;  %vm423_vm2 = vcmask (!%p138_p2), 52224  }
   0x9   : > { %521 = vmatprep.subr.bf16.mxu0 (!%p138_p2), %v552_v3  ;;  %527 = vmatprep.subr.bf16.mxu1 (!%p138_p2), %v552_v3  ;;  %v192_v10 = vunpack.c.0.s8 (!%p138_p2), %v191_v8  ;;  %v208_v13 = vsub.s32 (!%p138_p2), 0, %v194_v9  ;;  %v335_v36 = vsel (!%p138_p2), %vm238_vm0, %v236_v26, 0  ;;  %v381_v37 = vsel (!%p138_p2), %vm238_vm0, %v237_v27, 0 }
   0xb   : > { %v195_v12 = vsub.s32 (!%p138_p2), %v192_v10, %v194_v9 }
   0xd   : > { %s628_s13 = smov (!%p161_p3, %s483_s13), 1  ;;  %v196_v17 = vrot.slane %v492_v6, %v195_v12  ;;  %v203_v19 = vrot.slane %v189_v11, %v195_v12 }
   0xe   : > { %s499_s20 = sshll.u32 %s628_s13, 3  ;;  %s500_s28 = sshll.u32 %s628_s13, 4 }
   0xf   : > { %s165_s23 = scalar_lea.vmem %s623_s0, %s499_s20  ;;  %v204_v22 = vcombine.high %v196_v17, %v196_v17  ;;  %v209_v23 = vrot.slane %v196_v17, %v208_v13  ;;  %v205_v24 = vcombine.high %v203_v19, %v203_v19  ;;  %v213_v25 = vrot.slane %v203_v19, %v208_v13  ;;  %s170_s4 = scalar_lea.vmem %s626_s3, %s500_s28 }
  0x10   : > { %v172_v14 = vld [vmem:[%s165_s23] sm:$0x3]  ;;  %v173_v15 = vld [vmem:[%s165_s23 + $0x2] sm:$0x3]  ;;  %v174_v20 = vld [vmem:[%s165_s23 + $0x4] sm:$0x3] }
  0x11   : > { %v176_v16 = vunpack.c.l.bf16 %v172_v14  ;;  %v177_v18 = vunpack.c.l.bf16 %v173_v15  ;;  %v175_v21 = vld [vmem:[%s165_s23 + $0x6] sm:$0x3]  ;;  %v178_v28 = vunpack.c.l.bf16 %v174_v20  ;;  %v217_v32 = vrot.slane %v204_v22, %v208_v13 }
  0x12   : > { %v179_v29 = vunpack.c.l.bf16 %v175_v21  ;;  %v221_v33 = vrot.slane %v205_v24, %v208_v13 }
  0x13   : > { %v226_v30 = vadd.f32 %v209_v23, %v176_v16  ;;  %v227_v31 = vadd.f32 %v213_v25, %v177_v18  ;;  %v228_v38 = vadd.f32 %v217_v32, %v178_v28 }
  0x14   : > { %v229_v39 = vadd.f32 %v221_v33, %v179_v29 }
  0x15   : > { %v230_v34 = vpack.c.bf16 %v226_v30, %v226_v30  ;;  %v231_v35 = vpack.c.bf16 %v227_v31, %v227_v31  ;;  %v232_v40 = vpack.c.bf16 %v228_v38, %v228_v38 }
  0x16   : > { %v233_v41 = vpack.c.bf16 %v229_v39, %v229_v39 }
  0x17   : > { %512 = vmatmul.mubr.msk.bf16.vlgmr.msra.gmra.mrb[0].mxu0 %vm238_vm0, %v230_v34  ;;  %518 = vmatmul.mubr.msk.bf16.vlgmr.msra.gmra.mrb[0].mxu1 %vm238_vm0, %v231_v35 }
  0x18   : > { %522 = vmatpush3.bf16.xpose.msra.mxu0 %v335_v36  ;;  %528 = vmatpush3.bf16.xpose.msra.mxu1 %v381_v37 }
  0x19   : > { %523 = vmatprep.mubr.msk.bf16.mxu0 %vm554_vm1, %v552_v3  ;;  %529 = vmatprep.mubr.msk.bf16.mxu1 %vm554_vm1, %v552_v3 }
  0x1f   : > { %524 = vmatmul.mubr.msk.bf16.vlgmr.msra.gmra.mrb[4].mxu0 %vm238_vm0, %v232_v40  ;;  %530 = vmatmul.mubr.msk.bf16.vlgmr.msra.gmra.mrb[4].mxu1 %vm238_vm0, %v233_v41 }
  0xea   : > { %v279_v42 = vpop.f32.mrb[0].mxu0  ;;  %v325_v43 = vpop.f32.mrb[0].mxu1 }
  0xeb   : > { %424 = vst.msk [vmem:[%s170_s4] sm:$0xf] %vm423_vm2, %v279_v42  ;;  %425 = vst.msk [vmem:[%s170_s4 + $0x4] sm:$0xf] %vm423_vm2, %v325_v43  ;;  %v513_v44 = vpop.f32.mrb[1].mxu0  ;;  %v519_v45 = vpop.f32.mrb[1].mxu1 }
  0xec   : > { %v282_v46 = vpop.f32.mrb[2].mxu0  ;;  %v328_v47 = vpop.f32.mrb[2].mxu1 }
  0xed   : > { %v514_v48 = vpop.f32.mrb[3].mxu0  ;;  %v520_v49 = vpop.f32.mrb[3].mxu1 }
  0xf2   : > { %v371_v50 = vpop.f32.mrb[4].mxu0  ;;  %v417_v51 = vpop.f32.mrb[4].mxu1 }
  0xf3   : > { %426 = vst.msk [vmem:[%s170_s4 + $0x8] sm:$0xf] %vm423_vm2, %v371_v50  ;;  %427 = vst.msk [vmem:[%s170_s4 + $0xc] sm:$0xf] %vm423_vm2, %v417_v51  ;;  %v525_v52 = vpop.f32.mrb[5].mxu0  ;;  %v531_v53 = vpop.f32.mrb[5].mxu1 }
  0xf4   : > { %v374_v54 = vpop.f32.mrb[6].mxu0  ;;  %v420_v55 = vpop.f32.mrb[6].mxu1 }
  0xf5   : > { %v526_v56 = vpop.f32.mrb[7].mxu0  ;;  %v532_v57 = vpop.f32.mrb[7].mxu1 }
  0xf6 PF: > { %s13_s12 = sadd.s32 1, %s550_s12  }
  0xf7   : > { %p10_p4 = scmp.ge.s32.totalorder %s13_s12, 4  }
  0xf9   :  { %12 = sbr.rel (!%p10_p4) target bundleno = 1 (0x1), region = 62 }

// kernel: fireredasr_aed_forward.43
= control target key start
LH: loop header
LB: loop body
LE: loop exit
PB: predicated region body
PF: predicated region fallthrough
CT: control target
= control target key end

     0   :  { %v155_v0 = vmov 0.0   ;;  %vm156_vm0 = vmmov 0   ;;  %vm46_vm1 = vcmask 261120   ;;  %vm91_vm2 = vcmask 60416   ;;  %s157_s24 = smov 104   ;;  %s158_s25 = smov 120   ;;  %s238_s1 = inlined_call_operand.vmem [shape: f32[1,32], index: 1, kind: input, shape index: {}]   ;;  %s239_s2 = inlined_call_operand.vmem [shape: f32[1,32], index: 2, kind: input, shape index: {}, may-alias: {2,4}]   ;;  %s240_s3 = inlined_call_operand.vmem [shape: bf16[32,32], index: 3, kind: input, shape index: {}]   ;;  %s241_s0 = inlined_call_operand.vmem [shape: f32[1,7,32], index: 0, kind: input, shape index: {}]   ;;  %s242_s4 = inlined_call_operand.vmem [shape: f32[1,32], index: 4, kind: input, shape index: {}, may-alias: {2,4}]   ;;  %s243_s5 = inlined_call_operand.vmem [shape: bf16[1,4,7,8], index: 5, kind: output, shape index: {}]  }
   0x1   :  { %140 = vmatprep.subr.bf16.mxu0 %v155_v0  ;;  %v153_v1 = vld [vmem:[%s240_s3] sm:$0xff]   ;;  %144 = vmatprep.mubr.msk.bf16.mxu0 %vm156_vm0, %v155_v0  ;;  %v154_v2 = vld [vmem:[%s240_s3 + $0x8] sm:$0xff]   ;;  %vm92_vm3 = vsmask.f32 3328  ;;  %s159_s27 = smov 112  }
   0x2   :  { %141 = vmatpush3.bf16.msra.mxu0 %v153_v1  ;;  %v21_v3 = vld [vmem:[%s241_s0] sm:$0x7f]  ;;  %vm202_vm4 = vmand %vm91_vm2, %vm92_vm3  ;;  %v134_v15 = vld [vmem:[%s243_s5 + $0xc] sm:$0xf] }
   0x3   :  { %142 = vmatprep.subr.bf16.mxu0 %v155_v0  ;;  %v22_v4 = vpack.c.bf16 %v21_v3, %v21_v3  ;;  %v125_v5 = vld [vmem:[%s242_s4] ss:$0 sm:$0xff]  ;;  %v130_v16 = vld [vmem:[%s243_s5 + $0x4] sm:$0xf]  ;;  %v132_v21 = vld [vmem:[%s243_s5 + $0x8] sm:$0xf] }
   0x4   :  { %v94_v11 = vld [vmem:[%s243_s5] sm:$0xf] }
   0x6   :  { %143 = vmatpush3.bf16.msra.mxu0 %v154_v2 }
   0x9   :  { %145 = vmatmul.mubr.msk.bf16.vlgmr.msra.gmra.mrb[0].mxu0 %vm46_vm1, %v22_v4 }
  0xdc   :  { %v84_v6 = vpop.f32.mrb[0].mxu0 }
  0xdd   :  { %v85_v7 = vadd.f32 %v125_v5, %v84_v6  ;;  %v146_v8 = vpop.f32.mrb[1].mxu0 }
  0xde   :  { %v87_v9 = vpop.f32.mrb[2].mxu0 }
  0xdf   :  { %v90_v12 = vpack.c.bf16 %v85_v7, %v85_v7  ;;  %v147_v13 = vpop.f32.mrb[3].mxu0 }
  0xe1   :  { %114 = vrot.lane.b32.xlu1 %v90_v12, %s157_s24  ;;  %100 = vrot.lane.b32.xlu0 %v90_v12, %s158_s25  ;;  %v95_v14 = vsel %vm202_vm4, %v90_v12, %v94_v11 }
  0xe2   :  { %96 = vst [vmem:[%s243_s5] sm:$0xf] %v95_v14 }
  0xe5   :  { %107 = vrot.lane.b32.xlu0 %v90_v12, %s159_s27 }
 0x153   :  { %v115_v17 = vpop.permute.xlu1 %114  ;;  %v101_v18 = vpop.permute.xlu0 %100 }
 0x154   :  { %v119_v19 = vsel %vm202_vm4, %v115_v17, %v134_v15  ;;  %v105_v20 = vsel %vm202_vm4, %v101_v18, %v130_v16 }
 0x155   :  { %135 = vst [vmem:[%s243_s5 + $0xc] sm:$0xf] %v119_v19  ;;  %131 = vst [vmem:[%s243_s5 + $0x4] sm:$0xf] %v105_v20 }
 0x157   :  { %v108_v22 = vpop.permute.xlu0 %107 }
 0x158   :  { %v112_v23 = vsel %vm202_vm4, %v108_v22, %v132_v21 }
 0x159   :  { %133 = vst [vmem:[%s243_s5 + $0x8] sm:$0xf] %v112_v23 }

// kernel: fireredasr_aed_forward.46
= control target key start
LH: loop header
LB: loop body
LE: loop exit
PB: predicated region body
PF: predicated region fallthrough
CT: control target
= control target key end

     0   :  { %s602_s15 = smov 0   ;;  %s653_s0 = inlined_call_operand.vmem [shape: f32[2,4,4,8], index: 0, kind: input, shape index: {}]   ;;  %s654_s1 = inlined_call_operand.vmem [shape: f32[2,4,32], index: 1, kind: input, shape index: {}]   ;;  %s655_s2 = inlined_call_operand.vmem [shape: bf16[4,8,32], index: 2, kind: input, shape index: {}]   ;;  %s656_s3 = inlined_call_operand.vmem [shape: f32[1,32], index: 3, kind: input, shape index: {}]   ;;  %s657_s4 = inlined_call_operand.vmem [shape: f32[2,4,32], index: 4, kind: output, shape index: {}]  }
   0x1 LB: > { %s495_s16 = sadd.s32 4294967295, %s573_s15   ;;  %p499_p0 = scmp.ge.s32.totalorder %s573_s15, 1  ;;  %s573_s15 = sphi %s602_s15, %s14_s15  }
   0x2   : > { %p171_p1 = scmp.lt.s32.totalorder %s573_s15, 3 }
   0x4   : > { %p172_p2 = pnand %p499_p0, %p171_p1 }
   0x5   : > { %v228_v0 = vld [vmem:[%s655_s2] sm:$0xf] (!%p172_p2)  ;;  %vm233_vm0 = vcmask (!%p172_p2), 1043456   ;;  %v508_v1 = vld [vmem:[%s655_s2 + $0x8] sm:$0xf] (!%p172_p2)  ;;  %v575_v2 = vmov (!%p172_p2), 0.0  }
   0x6   : > { %175 = sbr.rel (%p172_p2) target bundleno = 248 (0xf8), region = 36  ;;  %523 = vmatprep.subr.bf16.mxu1 (!%p172_p2), %v575_v2  ;;  %v235_v3 = vsel (!%p172_p2), %vm233_vm0, %v228_v0, 0  ;;  %535 = vmatprep.subr.bf16.mxu0 (!%p172_p2), %v575_v2  ;;  %v335_v4 = vsel (!%p172_p2), %vm233_vm0, %v508_v1, 0  ;;  %p200_p3 = scmp.lt.s32.totalorder (!%p172_p2), %s495_s16, 1  ;;  %vm576_vm1 = vmmov (!%p172_p2), 0   ;;  %vm229_vm2 = vcmask (!%p172_p2), 64512  }
   0x7   : > { %524 = vmatpush3.bf16.msra.mxu1 (!%p172_p2), %v235_v3  ;;  %536 = vmatpush3.bf16.msra.mxu0 (!%p172_p2), %v335_v4  ;;  %v506_v5 = vld [vmem:[%s655_s2 + $0x4] sm:$0xf] (!%p172_p2)  ;;  %v510_v6 = vld [vmem:[%s655_s2 + $0xc] sm:$0xf] (!%p172_p2)  ;;  %v504_v18 = vld [vmem:[%s656_s3] ss:$0 sm:$0xff] (!%p172_p2) }
   0x8   : > { %525 = vmatprep.mubr.msk.bf16.mxu1 (!%p172_p2), %vm576_vm1, %v575_v2  ;;  %529 = vmatprep.subr.bf16.mxu1 (!%p172_p2), %v575_v2  ;;  %v285_v10 = vsel (!%p172_p2), %vm233_vm0, %v506_v5, 0  ;;  %v385_v12 = vsel (!%p172_p2), %vm233_vm0, %v510_v6, 0  ;;  %vm428_vm3 = vcmask (!%p172_p2), 257024  }
   0x9   : > { %537 = vmatprep.mubr.msk.bf16.mxu0 (!%p172_p2), %vm576_vm1, %v575_v2  ;;  %541 = vmatprep.subr.bf16.mxu0 (!%p172_p2), %v575_v2 }
   0xd   : > { %s659_s16 = smov (!%p200_p3, %s495_s16), 1 }
   0xe   : > { %s514_s21 = sshll.u32 %s659_s16, 4  ;;  %s502_s29 = sshll.u32 %s659_s16, 2 }
   0xf   : > { %s204_s28 = scalar_lea.vmem %s653_s0, %s514_s21  ;;  %s208_s6 = scalar_lea.vmem %s654_s1, %s502_s29 }
  0x10   : > { %v223_v7 = vld [vmem:[%s204_s28] sm:$0xf]  ;;  %v225_v8 = vld [vmem:[%s204_s28 + $0x8] sm:$0xf]  ;;  %v224_v13 = vld [vmem:[%s204_s28 + $0x4] sm:$0xf]  ;;  %s212_s11 = scalar_lea.vmem %s657_s4, %s502_s29 }
  0x11   : > { %v227_v9 = vpack.c.bf16 %v223_v7, %v223_v7  ;;  %v328_v11 = vpack.c.bf16 %v225_v8, %v225_v8  ;;  %v226_v14 = vld [vmem:[%s204_s28 + $0xc] sm:$0xf]  ;;  %v278_v15 = vpack.c.bf16 %v224_v13, %v224_v13  ;;  %v214_v17 = vld [vmem:[%s208_s6] sm:$0xf] }
  0x12   : > { %v378_v16 = vpack.c.bf16 %v226_v14, %v226_v14  ;;  %v222_v19 = vadd.f32 %v504_v18, %v214_v17 }
  0x13   : > { %526 = vmatmul.mubr.msk.bf16.vlgmr.msra.gmra.mrb[0].mxu1 %vm229_vm2, %v227_v9  ;;  %538 = vmatmul.mubr.msk.bf16.vlgmr.msra.gmra.mrb[0].mxu0 %vm229_vm2, %v328_v11 }
  0x14   : > { %530 = vmatpush3.bf16.msra.mxu1 %v285_v10  ;;  %542 = vmatpush3.bf16.msra.mxu0 %v385_v12 }
  0x15   : > { %531 = vmatprep.mubr.msk.bf16.mxu1 %vm576_vm1, %v575_v2  ;;  %543 = vmatprep.mubr.msk.bf16.mxu0 %vm576_vm1, %v575_v2 }
  0x1f   : > { %532 = vmatmul.mubr.msk.bf16.vlgmr.msra.gmra.mrb[0].mxu1 %vm229_vm2, %v278_v15  ;;  %544 = vmatmul.mubr.msk.bf16.vlgmr.msra.gmra.mrb[0].mxu0 %vm229_vm2, %v378_v16 }
  0xf2   : > { %v321_v20 = vpop.f32.mrb[0].mxu1  ;;  %v421_v21 = vpop.f32.mrb[0].mxu0 }
  0xf3   : > { %v547_v22 = vadd.f32 %v321_v20, %v222_v19  ;;  %v533_v23 = vpop.f32.mrb[1].mxu1  ;;  %v545_v24 = vpop.f32.mrb[1].mxu0 }
  0xf4   : > { %v324_v25 = vpop.f32.mrb[2].mxu1  ;;  %v424_v26 = vpop.f32.mrb[2].mxu0 }
  0xf5   : > { %v548_v27 = vadd.f32 %v547_v22, %v421_v21  ;;  %v534_v28 = vpop.f32.mrb[3].mxu1  ;;  %v546_v29 = vpop.f32.mrb[3].mxu0 }
  0xf7   : > { %429 = vst.msk [vmem:[%s212_s11] sm:$0xf] %vm428_vm3, %v548_v27 }
  0xf8 PF: > { %s14_s15 = sadd.s32 1, %s573_s15  }
  0xf9   : > { %p11_p4 = scmp.ge.s32.totalorder %s14_s15, 4  }
  0xfb   :  { %13 = sbr.rel (!%p11_p4) target bundleno = 1 (0x1), region = 72 }

// kernel: fireredasr_aed_forward.45
= control target key start
LH: loop header
LB: loop body
LE: loop exit
PB: predicated region body
PF: predicated region fallthrough
CT: control target
= control target key end

     0   :  { %s1111_s21 = smov 0   ;;  %s1205_s0 = inlined_call_operand.vmem [shape: bf16[2,4,4,8], index: 0, kind: input, shape index: {}]   ;;  %s1206_s1 = inlined_call_operand.vmem [shape: bf16[2,4,4,8], index: 1, kind: input, shape index: {}]   ;;  %s1207_s2 = inlined_call_operand.vmem [shape: bf16[2,4,4,8], index: 2, kind: input, shape index: {}]   ;;  %s1208_s3 = inlined_call_operand.vmem [shape: f32[2,1,4], index: 3, kind: input, shape index: {}]   ;;  %s1209_s4 = inlined_call_operand.vmem [shape: f32[2,4,4,4], index: 4, kind: input, shape index: {}]   ;;  %s1210_s5 = inlined_call_operand.vmem [shape: f32[4,8], index: 5, kind: input, shape index: {}]   ;;  %s1211_s6 = inlined_call_operand.vmem [shape: f32[2,4,4,8], index: 6, kind: output, shape index: {}]  }
   0x1 LB: > { %s943_s22 = sadd.s32 4294967295, %s1071_s21   ;;  %p947_p0 = scmp.ge.s32.totalorder %s1071_s21, 1  ;;  %s1071_s21 = sphi %s1111_s21, %s16_s21  }
   0x2   : > { %p250_p1 = scmp.lt.s32.totalorder %s1071_s21, 3 }
   0x4   : > { %p251_p2 = pnand %p947_p0, %p250_p1 }
   0x5   : > { %p298_p3 = scmp.lt.s32.totalorder (!%p251_p2), %s943_s22, 1  ;;  %v1073_v0 = vmov (!%p251_p2), 0.0   ;;  %v958_v1 = vld.sshfl [vmem:[%s1210_s5] sm:$0x33 pattern:$0x75316420] (!%p251_p2)  ;;  %v356_v4 = vlaneseq (!%p251_p2) }
   0x6   : > { %254 = sbr.rel (%p251_p2) target bundleno = 786 (0x312), region = 44  ;;  %990 = vmatprep.subr.bf16.mxu0 (!%p251_p2), %v1073_v0  ;;  %996 = vmatprep.subr.bf16.mxu1 (!%p251_p2), %v1073_v0  ;;  %v1074_v2 = vmov (!%p251_p2), 1966171168   ;;  %vm1075_vm0 = vmmov (!%p251_p2), 0   ;;  %vm401_vm1 = vcmask (!%p251_p2), 64512   ;;  %v352_v7 = vcombine.high (!%p251_p2), %v958_v1, %v958_v1 }
   0x7   : > { %v354_v3 = vunpack.c.l.s4 (!%p251_p2), %v1074_v2  ;;  %992 = vmatprep.mubr.msk.bf16.mxu0 (!%p251_p2), %vm1075_vm0, %v1073_v0  ;;  %998 = vmatprep.mubr.msk.bf16.mxu1 (!%p251_p2), %vm1075_vm0, %v1073_v0  ;;  %v357_v6 = vshrl.u32 (!%p251_p2), %v356_v4, 7  ;;  %vm603_vm2 = vcmask (!%p251_p2), 27648   ;;  %vm656_vm3 = vcmask (!%p251_p2), 1041408  }
   0x8   : > { %vm652_vm4 = vcmask (!%p251_p2), 31744   ;;  %vm838_vm5 = vcmask (!%p251_p2), 60416  }
   0x9   : > { %v355_v5 = vunpack.c.0.s8 (!%p251_p2), %v354_v3  ;;  %v371_v9 = vsub.s32 (!%p251_p2), 0, %v357_v6 }
   0xb   : > { %v358_v8 = vsub.s32 (!%p251_p2), %v355_v5, %v357_v6 }
   0xd   : > { %s1213_s22 = smov (!%p298_p3, %s943_s22), 1  ;;  %v359_v14 = vrot.slane %v958_v1, %v358_v8  ;;  %v366_v19 = vrot.slane %v352_v7, %v358_v8 }
   0xe   : > { %s1131_s25 = sshll.u32 %s1213_s22, 3  ;;  %s315_s10 = scalar_lea.vmem %s1208_s3, %s1213_s22 }
   0xf   : > { %s302_s28 = scalar_lea.vmem %s1205_s0, %s1131_s25  ;;  %s307_s7 = scalar_lea.vmem %s1206_s1, %s1131_s25  ;;  %v367_v21 = vcombine.high %v359_v14, %v359_v14  ;;  %v372_v22 = vrot.slane %v359_v14, %v371_v9  ;;  %v368_v25 = vcombine.high %v366_v19, %v366_v19  ;;  %v376_v26 = vrot.slane %v366_v19, %v371_v9  ;;  %v590_v42 = vld [vmem:[%s315_s10] sm:$0x1] }
  0x10   : > { %v331_v10 = vld [vmem:[%s307_s7] sm:$0x3]  ;;  %v332_v12 = vld [vmem:[%s307_s7 + $0x2] sm:$0x3]  ;;  %v329_v15 = vld [vmem:[%s302_s28 + $0x4] sm:$0x3]  ;;  %s312_s17 = scalar_lea.vmem %s1207_s2, %s1131_s25 }
  0x11   : > { %v406_v11 = vsel %vm401_vm1, %v331_v10, 0  ;;  %v327_v13 = vld [vmem:[%s302_s28] sm:$0x3]  ;;  %v452_v16 = vsel %vm401_vm1, %v332_v12, 0  ;;  %v328_v18 = vld [vmem:[%s302_s28 + $0x2] sm:$0x3]  ;;  %v341_v27 = vunpack.c.l.bf16 %v329_v15  ;;  %v380_v30 = vrot.slane %v367_v21, %v371_v9 }
  0x12   : > { %991 = vmatpush3.bf16.xpose.msra.mxu0 %v406_v11  ;;  %v339_v17 = vunpack.c.l.bf16 %v327_v13  ;;  %v330_v20 = vld [vmem:[%s302_s28 + $0x6] sm:$0x3]  ;;  %997 = vmatpush3.bf16.xpose.msra.mxu1 %v452_v16  ;;  %v340_v23 = vunpack.c.l.bf16 %v328_v18  ;;  %v333_v24 = vld [vmem:[%s307_s7 + $0x4] sm:$0x3]  ;;  %v384_v33 = vrot.slane %v368_v25, %v371_v9  ;;  %s972_s11 = sshll.u32 %s1213_s22, 4  ;;  %v591_v43 = vsub.f32 1.0, %v590_v42 }
  0x13   : > { %1002 = vmatprep.subr.bf16.mxu0 %v1073_v0  ;;  %1008 = vmatprep.subr.bf16.mxu1 %v1073_v0  ;;  %v334_v29 = vld [vmem:[%s307_s7 + $0x6] sm:$0x3]  ;;  %v342_v31 = vunpack.c.l.bf16 %v330_v20  ;;  %v498_v35 = vsel %vm401_vm1, %v333_v24, 0  ;;  %v391_v38 = vadd.f32 %v380_v30, %v341_v27  ;;  %s320_s14 = scalar_lea.vmem %s1209_s4, %s972_s11  ;;  %s325_s20 = scalar_lea.vmem %s1211_s6, %s972_s11 }
  0x14   : > { %v389_v28 = vadd.f32 %v372_v22, %v339_v17  ;;  %v390_v32 = vadd.f32 %v376_v26, %v340_v23  ;;  %v544_v37 = vsel %vm401_vm1, %v334_v29, 0  ;;  %v592_v44 = vmul.f32 -1e+09, %v591_v43  ;;  %v397_v45 = vld [vmem:[%s320_s14] sm:$0xf] }
  0x15   : > { %v392_v39 = vadd.f32 %v384_v33, %v342_v31  ;;  %v395_v40 = vpack.c.bf16 %v391_v38, %v391_v38  ;;  %v398_v46 = vld [vmem:[%s320_s14 + $0x4] sm:$0xf]  ;;  %v399_v61 = vld [vmem:[%s320_s14 + $0x8] sm:$0xf]  ;;  %v400_v1 = vld [vmem:[%s320_s14 + $0xc] sm:$0xf] }
  0x16   : > { %v393_v34 = vpack.c.bf16 %v389_v28, %v389_v28  ;;  %v394_v36 = vpack.c.bf16 %v390_v32, %v390_v32  ;;  %v597_v51 = vrot.slane %v592_v44, %v371_v9  ;;  %v337_v43 = vld [vmem:[%s312_s17 + $0x4] sm:$0x3] }
  0x17   : > { %v396_v41 = vpack.c.bf16 %v392_v39, %v392_v39  ;;  %v335_v39 = vld [vmem:[%s312_s17] sm:$0x3]  ;;  %v750_v44 = vsel %vm656_vm3, %v337_v43, 0 }
  0x19   : > { %993 = vmatmul.mubr.msk.bf16.vlgmr.msra.gmra.mrb[0].mxu0 %vm401_vm1, %v393_v34  ;;  %999 = vmatmul.mubr.msk.bf16.vlgmr.msra.gmra.mrb[0].mxu1 %vm401_vm1, %v394_v36 }
  0x1a   : > { %1003 = vmatpush3.bf16.xpose.msra.mxu0 %v498_v35  ;;  %1009 = vmatpush3.bf16.xpose.msra.mxu1 %v544_v37 }
  0x1b   : > { %1004 = vmatprep.mubr.msk.bf16.mxu0 %vm1075_vm0, %v1073_v0  ;;  %1010 = vmatprep.mubr.msk.bf16.mxu1 %vm1075_vm0, %v1073_v0 }
  0x1c   : > { %1014 = vmatprep.subr.bf16.mxu0 %v1073_v0  ;;  %1020 = vmatprep.subr.bf16.mxu1 %v1073_v0 }
  0x21   : > { %1005 = vmatmul.mubr.msk.bf16.vlgmr.msra.gmra.mrb[4].mxu0 %vm401_vm1, %v395_v40  ;;  %1011 = vmatmul.mubr.msk.bf16.vlgmr.msra.gmra.mrb[4].mxu1 %vm401_vm1, %v396_v41  ;;  %v658_v40 = vsel %vm656_vm3, %v335_v39, 0  ;;  %v336_v41 = vld [vmem:[%s312_s17 + $0x2] sm:$0x3] }
  0x22   : > { %1016 = vmatprep.mubr.msk.bf16.mxu0 %vm1075_vm0, %v1073_v0  ;;  %1022 = vmatprep.mubr.msk.bf16.mxu1 %vm1075_vm0, %v1073_v0  ;;  %v704_v42 = vsel %vm656_vm3, %v336_v41, 0 }
  0x23   : > { %1015 = vmatpush3.bf16.msra.mxu0 %v658_v40  ;;  %1021 = vmatpush3.bf16.msra.mxu1 %v704_v42 }
  0x24   : > { %1026 = vmatprep.subr.bf16.mxu0 %v1073_v0  ;;  %1032 = vmatprep.subr.bf16.mxu1 %v1073_v0 }
  0xec   : > { %v442_v47 = vpop.f32.mrb[0].mxu0  ;;  %v488_v50 = vpop.f32.mrb[0].mxu1 }
  0xed   : > { %v443_v48 = vadd.f32 %v442_v47, %v397_v45  ;;  %v994_v49 = vpop.f32.mrb[1].mxu0  ;;  %v489_v53 = vadd.f32 %v488_v50, %v398_v46  ;;  %v1000_v54 = vpop.f32.mrb[1].mxu1  ;;  %v338_v45 = vld [vmem:[%s312_s17 + $0x6] sm:$0x3] }
  0xee   : > { %v445_v52 = vpop.f32.mrb[2].mxu0  ;;  %v491_v57 = vpop.f32.mrb[2].mxu1  ;;  %v796_v46 = vsel %vm656_vm3, %v338_v45, 0 }
  0xef   : > { %v586_v55 = vmul.f32 0.35355338, %v443_v48  ;;  %v995_v56 = vpop.f32.mrb[3].mxu0  ;;  %v587_v58 = vmul.f32 0.35355338, %v489_v53  ;;  %v1001_v59 = vpop.f32.mrb[3].mxu1 }
  0xf1   : > { %v599_v60 = vadd.f32 %v597_v51, %v586_v55  ;;  %v600_v62 = vadd.f32 %v597_v51, %v587_v58 }
  0xf3   : > { %v604_v63 = vsel %vm603_vm2, %v599_v60, -inf  ;;  %v607_v6 = vsel %vm603_vm2, %v600_v62, -inf }
  0xf4   : > { %605 = vmax.xlane.f32.xlu0 %v604_v63  ;;  %v534_v2 = vpop.f32.mrb[4].mxu0  ;;  %v580_v5 = vpop.f32.mrb[4].mxu1 }
  0xf5   : > { %v535_v3 = vadd.f32 %v534_v2, %v399_v61  ;;  %v1006_v4 = vpop.f32.mrb[5].mxu0  ;;  %v581_v8 = vadd.f32 %v580_v5, %v400_v1  ;;  %v1012_v9 = vpop.f32.mrb[5].mxu1 }
  0xf6   : > { %v537_v7 = vpop.f32.mrb[6].mxu0  ;;  %v583_v12 = vpop.f32.mrb[6].mxu1 }
  0xf7   : > { %v588_v10 = vmul.f32 0.35355338, %v535_v3  ;;  %v1007_v11 = vpop.f32.mrb[7].mxu0  ;;  %v589_v13 = vmul.f32 0.35355338, %v581_v8  ;;  %v1013_v14 = vpop.f32.mrb[7].mxu1 }
  0xf8   : > { %608 = vmax.xlane.f32.xlu0 %v607_v6 }
  0xf9   : > { %v601_v15 = vadd.f32 %v597_v51, %v588_v10  ;;  %v602_v16 = vadd.f32 %v597_v51, %v589_v13 }
  0xfb   : > { %v610_v17 = vsel %vm603_vm2, %v601_v15, -inf  ;;  %v613_v18 = vsel %vm603_vm2, %v602_v16, -inf }
  0xfc   : > { %611 = vmax.xlane.f32.xlu1 %v610_v17 }
 0x100   : > { %614 = vmax.xlane.f32.xlu1 %v613_v18 }
 0x181   : > { %v606_v19 = vpop.xlane.xlu0 %605 }
 0x182   : > { %v616_v20 = vsub.f32 %v599_v60, %v606_v19 }
 0x184   : > { %v620_v21 = vmul.f32 1.442695, %v616_v20 }
 0x185   : > { %v609_v22 = vpop.xlane.xlu0 %608 }
 0x186   : > { %1049 = vpow2.f32 %v620_v21  ;;  %v617_v23 = vsub.f32 %v600_v62, %v609_v22 }
 0x188   : > { %v622_v24 = vmul.f32 1.442695, %v617_v23 }
 0x189   : > { %v612_v25 = vpop.xlane.xlu1 %611 }
 0x18a   : > { %1051 = vpow2.f32 %v622_v24  ;;  %v618_v26 = vsub.f32 %v601_v15, %v612_v25 }
 0x18c   : > { %v624_v27 = vmul.f32 1.442695, %v618_v26 }
 0x18d   : > { %v615_v28 = vpop.xlane.xlu1 %614 }
 0x18e   : > { %1053 = vpow2.f32 %v624_v27  ;;  %v619_v29 = vsub.f32 %v602_v16, %v615_v28 }
 0x190   : > { %v1050_v30 = vpop.eup %1049  ;;  %v626_v31 = vmul.f32 1.442695, %v619_v29 }
 0x191   : > { %v628_v32 = vsel %vm603_vm2, %v1050_v30, 0.0 }
 0x192   : > { %1055 = vpow2.f32 %v626_v31  ;;  %629 = vadd.xlane.f32.xlu0 %v628_v32 }
 0x194   : > { %v1052_v33 = vpop.eup %1051 }
 0x195   : > { %v631_v34 = vsel %vm603_vm2, %v1052_v33, 0.0 }
 0x196   : > { %632 = vadd.xlane.f32.xlu1 %v631_v34 }
 0x198   : > { %v1054_v35 = vpop.eup %1053 }
 0x199   : > { %v634_v36 = vsel %vm603_vm2, %v1054_v35, 0.0 }
 0x19a   : > { %635 = vadd.xlane.f32.xlu0 %v634_v36 }
 0x19c   : > { %v1056_v37 = vpop.eup %1055 }
 0x19d   : > { %v637_v38 = vsel %vm603_vm2, %v1056_v37, 0.0 }
 0x19e   : > { %638 = vadd.xlane.f32.xlu1 %v637_v38 }
 0x21f   : > { %v630_v47 = vpop.xlane.xlu0 %629 }
 0x220   : > { %1057 = vrcp.f32 %v630_v47 }
 0x223   : > { %v633_v48 = vpop.xlane.xlu1 %632 }
 0x224   : > { %1059 = vrcp.f32 %v633_v48 }
 0x227   : > { %v636_v49 = vpop.xlane.xlu0 %635 }
 0x228   : > { %1061 = vrcp.f32 %v636_v49 }
 0x22a   : > { %v1058_v50 = vpop.eup %1057 }
 0x22b   : > { %v644_v51 = vmul.f32 %v1058_v50, %v1050_v30  ;;  %v639_v52 = vpop.xlane.xlu1 %638 }
 0x22c   : > { %1063 = vrcp.f32 %v639_v52 }
 0x22d   : > { %v648_v53 = vpack.c.bf16 %v644_v51, %v644_v51 }
 0x22e   : > { %v1060_v54 = vpop.eup %1059 }
 0x22f   : > { %v645_v55 = vmul.f32 %v1060_v54, %v1052_v33  ;;  %1017 = vmatmul.mubr.msk.bf16.vlgmr.msra.gmra.mrb[8].mxu0 %vm652_vm4, %v648_v53 }
 0x230   : > { %1027 = vmatpush3.bf16.msra.mxu0 %v750_v44  ;;  %1028 = vmatprep.mubr.msk.bf16.mxu0 %vm1075_vm0, %v1073_v0 }
 0x231   : > { %v649_v56 = vpack.c.bf16 %v645_v55, %v645_v55 }
 0x232   : > { %v1062_v57 = vpop.eup %1061 }
 0x233   : > { %v646_v58 = vmul.f32 %v1062_v57, %v1054_v35  ;;  %1023 = vmatmul.mubr.msk.bf16.vlgmr.msra.gmra.mrb[8].mxu1 %vm652_vm4, %v649_v56 }
 0x234   : > { %1033 = vmatpush3.bf16.msra.mxu1 %v796_v46  ;;  %1034 = vmatprep.mubr.msk.bf16.mxu1 %vm1075_vm0, %v1073_v0 }
 0x235   : > { %v650_v59 = vpack.c.bf16 %v646_v58, %v646_v58 }
 0x236   : > { %v1064_v60 = vpop.eup %1063 }
 0x237   : > { %v647_v61 = vmul.f32 %v1064_v60, %v1056_v37  ;;  %1029 = vmatmul.mubr.msk.bf16.vlgmr.msra.gmra.mrb[12].mxu0 %vm652_vm4, %v650_v59 }
 0x239   : > { %v651_v62 = vpack.c.bf16 %v647_v61, %v647_v61 }
 0x23b   : > { %1035 = vmatmul.mubr.msk.bf16.vlgmr.msra.gmra.mrb[12].mxu1 %vm652_vm4, %v651_v62 }
 0x302   : > { %v694_v63 = vpop.f32.mrb[8].mxu0 }
 0x303   : > { %839 = vst.msk [vmem:[%s325_s20] sm:$0xf] %vm838_vm5, %v694_v63  ;;  %v1018_v1 = vpop.f32.mrb[9].mxu0 }
 0x304   : > { %v697_v2 = vpop.f32.mrb[10].mxu0 }
 0x305   : > { %v1019_v0 = vpop.f32.mrb[11].mxu0 }
 0x306   : > { %v740_v3 = vpop.f32.mrb[8].mxu1 }
 0x307   : > { %840 = vst.msk [vmem:[%s325_s20 + $0x4] sm:$0xf] %vm838_vm5, %v740_v3  ;;  %v1024_v4 = vpop.f32.mrb[9].mxu1 }
 0x308   : > { %v743_v5 = vpop.f32.mrb[10].mxu1 }
 0x309   : > { %v1025_v6 = vpop.f32.mrb[11].mxu1 }
 0x30a   : > { %v786_v7 = vpop.f32.mrb[12].mxu0 }
 0x30b   : > { %841 = vst.msk [vmem:[%s325_s20 + $0x8] sm:$0xf] %vm838_vm5, %v786_v7  ;;  %v1030_v8 = vpop.f32.mrb[13].mxu0 }
 0x30c   : > { %v789_v9 = vpop.f32.mrb[14].mxu0 }
 0x30d   : > { %v1031_v10 = vpop.f32.mrb[15].mxu0 }
 0x30e   : > { %v832_v11 = vpop.f32.mrb[12].mxu1 }
 0x30f   : > { %842 = vst.msk [vmem:[%s325_s20 + $0xc] sm:$0xf] %vm838_vm5, %v832_v11  ;;  %v1036_v12 = vpop.f32.mrb[13].mxu1 }
 0x310   : > { %v835_v13 = vpop.f32.mrb[14].mxu1 }
 0x311   : > { %v1037_v14 = vpop.f32.mrb[15].mxu1 }
 0x312 PF: > { %s16_s21 = sadd.s32 1, %s1071_s21  }
 0x313   : > { %p13_p4 = scmp.ge.s32.totalorder %s16_s21, 4  }
 0x315   :  { %15 = sbr.rel (!%p13_p4) target bundleno = 1 (0x1), region = 86 }

// kernel: fireredasr_aed_forward.47
= control target key start
LH: loop header
LB: loop body
LE: loop exit
PB: predicated region body
PF: predicated region fallthrough
CT: control target
= control target key end

     0   :  { %vm22_vm0 = vcmask 261120   ;;  %v163_v8 = vmov 0.0   ;;  %vm164_vm1 = vmmov 0   ;;  %s221_s0 = inlined_call_operand.vmem [shape: f32[8,32], index: 0, kind: input, shape index: {}]   ;;  %s222_s3 = inlined_call_operand.vmem [shape: bf16[32,64], index: 3, kind: input, shape index: {}]   ;;  %s223_s1 = inlined_call_operand.vmem [shape: f32[1,32], index: 1, kind: input, shape index: {}]   ;;  %s224_s2 = inlined_call_operand.vmem [shape: f32[1,32], index: 2, kind: input, shape index: {}]   ;;  %s225_s4 = inlined_call_operand.vmem [shape: f32[1,64], index: 4, kind: input, shape index: {}]   ;;  %s226_s5 = inlined_call_operand.vmem [shape: f32[8,32], index: 5, kind: output, shape index: {}]  }
   0x1   :  { %v21_v0 = vld [vmem:[%s221_s0] sm:$0xff]  ;;  %144 = vmatprep.subr.bf16.mxu0 %v163_v8  ;;  %v156_v9 = vld [vmem:[%s222_s3 + $0x8] sm:$0xff]   ;;  %148 = vmatprep.mubr.msk.bf16.mxu0 %vm164_vm1, %v163_v8 }
   0x2   :  { %v23_v1 = vsel %vm22_vm0, %v21_v0, 0.0  ;;  %v155_v7 = vld [vmem:[%s222_s3] sm:$0xff]  }
   0x3   :  { %24 = vadd.xlane.f32.xlu0 %v23_v1  ;;  %145 = vmatpush3.bf16.msra.mxu0 %v155_v7  ;;  %v135_v14 = vld [vmem:[%s223_s1] ss:$0 sm:$0xff]  ;;  %s165_s1 = smov 96  }
   0x4   :  { %146 = vmatprep.subr.bf16.mxu0 %v163_v8  ;;  %v136_v16 = vld [vmem:[%s224_s2] ss:$0 sm:$0xff] }
   0x5   :  { %v137_v20 = vld [vmem:[%s225_s4] ss:$0 sm:$0xff] }
   0x7   :  { %147 = vmatpush3.bf16.msra.mxu0 %v156_v9 }
  0x90   :  { %v25_v2 = vpop.xlane.xlu0 %24 }
  0x91   :  { %v27_v3 = vmul.f32 0.03125, %v25_v2 }
  0x93   :  { %v28_v4 = vsub.f32 %v21_v0, %v27_v3 }
  0x95   :  { %v29_v5 = vmul.f32 %v28_v4, %v28_v4 }
  0x97   :  { %v30_v6 = vsel %vm22_vm0, %v29_v5, 0.0 }
  0x98   :  { %31 = vadd.xlane.f32.xlu0 %v30_v6 }
 0x125   :  { %v32_v10 = vpop.xlane.xlu0 %31 }
 0x126   :  { %v33_v11 = vmul.f32 0.03125, %v32_v10 }
 0x128   :  { %v34_v12 = vadd.f32 1e-05, %v33_v11 }
 0x12a   :  { %157 = vrsqrt.f32 %v34_v12 }
 0x134   :  { %v158_v13 = vpop.eup %157 }
 0x135   :  { %v36_v15 = vmul.f32 %v158_v13, %v28_v4 }
 0x137   :  { %v44_v17 = vmul.f32 %v135_v14, %v36_v15 }
 0x139   :  { %v52_v18 = vadd.f32 %v136_v16, %v44_v17 }
 0x13b   :  { %v53_v19 = vpack.c.bf16 %v52_v18, %v52_v18 }
 0x13d   :  { %149 = vmatmul.mubr.msk.bf16.vlgmr.msra.gmra.mrb[0].mxu0 %vm22_vm0, %v53_v19 }
 0x210   :  { %v114_v21 = vpop.f32.mrb[0].mxu0 }
 0x211   :  { %v115_v22 = vadd.f32 %v137_v20, %v114_v21  ;;  %v150_v23 = vpop.f32.mrb[1].mxu0 }
 0x212   :  { %v117_v24 = vpop.f32.mrb[2].mxu0 }
 0x213   :  { %v120_v25 = vsub.f32 0.0, %v115_v22  ;;  %v151_v26 = vpop.f32.mrb[3].mxu0 }
 0x215   :  { %v121_v27 = vmul.f32 1.442695, %v120_v25 }
 0x217   :  { %159 = vpow2.f32 %v121_v27 }
 0x221   :  { %v160_v28 = vpop.eup %159 }
 0x222   :  { %v123_v29 = vadd.f32 1.0, %v160_v28 }
 0x224   :  { %161 = vrcp.f32 %v123_v29 }
 0x22e   :  { %v162_v30 = vpop.eup %161 }
 0x22f   :  { %126 = vrot.lane.b32.xlu1 %v162_v30, %s165_s1 }
 0x2a1   :  { %v127_v31 = vpop.permute.xlu1 %126 }
 0x2a2   :  { %v129_v32 = vmul.f32 %v127_v31, %v115_v22 }
 0x2a4   :  { %130 = vst.msk [vmem:[%s226_s5] sm:$0xff] %vm22_vm0, %v129_v32 }

// kernel: fireredasr_aed_forward.48
= control target key start
LH: loop header
LB: loop body
LE: loop exit
PB: predicated region body
PF: predicated region fallthrough
CT: control target
= control target key end

     0   :  { %s663_s27 = smov 0   ;;  %s708_s0 = inlined_call_operand.vmem [shape: f32[2,10,32], index: 0, kind: input, shape index: {}]   ;;  %s709_s1 = inlined_call_operand.vmem [shape: f32[7,32], index: 1, kind: input, shape index: {}]   ;;  %s710_s2 = inlined_call_operand.vmem [shape: f32[1,32], index: 2, kind: input, shape index: {}]   ;;  %s711_s3 = inlined_call_operand.vmem [shape: f32[1,32], index: 3, kind: input, shape index: {}]   ;;  %s712_s4 = inlined_call_operand.vmem [shape: f32[1,32], index: 4, kind: input, shape index: {}]   ;;  %s713_s5 = inlined_call_operand.vmem [shape: bf16[32,32], index: 5, kind: input, shape index: {}]   ;;  %s714_s6 = inlined_call_operand.vmem [shape: f32[1,32], index: 6, kind: input, shape index: {}]   ;;  %s715_s7 = inlined_call_operand.vmem [shape: f32[2,4,32], index: 7, kind: input, shape index: {}]   ;;  %s716_s8 = inlined_call_operand.vmem [shape: f32[2,4,32], index: 8, kind: output, shape index: {}]  }
   0x1 LB: > { %s562_s28 = sadd.s32 4294967295, %s614_s27   ;;  %p566_p0 = scmp.ge.s32.totalorder %s614_s27, 1  ;;  %s614_s27 = sphi %s663_s27, %s18_s27  }
   0x2   : > { %p271_p1 = scmp.lt.s32.totalorder %s614_s27, 3 }
   0x4   : > { %p272_p2 = pnand %p566_p0, %p271_p1 }
   0x5   : > { %v602_v0 = vld [vmem:[%s713_s5] sm:$0xff] (!%p272_p2)   ;;  %v325_v1 = vlaneseq (!%p272_p2)  ;;  %v616_v2 = vmov (!%p272_p2), 0.0   ;;  %v603_v3 = vld [vmem:[%s713_s5 + $0x8] sm:$0xff] (!%p272_p2)   ;;  %vm617_vm0 = vmmov (!%p272_p2), 0   ;;  %p308_p3 = scmp.lt.s32.totalorder (!%p272_p2), %s562_s28, 1  ;;  %vm374_vm1 = vcmask (!%p272_p2), 1042432  }
   0x6   : > { %275 = sbr.rel (%p272_p2) target bundleno = 288 (0x120), region = 52  ;;  %584 = vmatprep.subr.bf16.mxu0 (!%p272_p2), %v616_v2  ;;  %588 = vmatprep.mubr.msk.bf16.mxu0 (!%p272_p2), %vm617_vm0, %v616_v2  ;;  %v324_v5 = vld [vmem:[%s709_s1] sm:$0x7f] (!%p272_p2)  ;;  %vm388_vm2 = vcmask (!%p272_p2), 1041408   ;;  %vm442_vm3 = vcmask (!%p272_p2), 261120   ;;  %vm495_vm4 = vcmask (!%p272_p2), 257024  }
   0x7   : > { %585 = vmatpush3.bf16.msra.mxu0 (!%p272_p2), %v602_v0  ;;  %v326_v4 = vshrl.u32 (!%p272_p2), %v325_v1, 7  ;;  %v571_v46 = vld [vmem:[%s710_s2] ss:$0 sm:$0xff] (!%p272_p2) }
   0x8   : > { %586 = vmatprep.subr.bf16.mxu0 (!%p272_p2), %v616_v2  ;;  %v572_v48 = vld [vmem:[%s711_s3] ss:$0 sm:$0xff] (!%p272_p2) }
   0x9   : > { %v327_v6 = vsub.s32 (!%p272_p2), 0, %v326_v4  ;;  %v332_v7 = vsub.s32 (!%p272_p2), 1, %v326_v4  ;;  %v341_v8 = vsub.s32 (!%p272_p2), 2, %v326_v4  ;;  %v350_v9 = vsub.s32 (!%p272_p2), 3, %v326_v4  ;;  %v573_v50 = vld [vmem:[%s712_s4] ss:$0 sm:$0xff] (!%p272_p2) }
   0xa   : > { %v359_v10 = vsub.s32 (!%p272_p2), 4, %v326_v4  ;;  %v368_v11 = vsub.s32 (!%p272_p2), 5, %v326_v4  ;;  %v382_v12 = vsub.s32 (!%p272_p2), 6, %v326_v4  ;;  %v577_v62 = vld [vmem:[%s714_s6] ss:$0 sm:$0xff] (!%p272_p2) }
   0xb   : > { %587 = vmatpush3.bf16.msra.mxu0 (!%p272_p2), %v603_v3  ;;  %v328_v13 = vrot.slane (!%p272_p2), %v324_v5, %v327_v6  ;;  %v333_v14 = vrot.slane (!%p272_p2), %v324_v5, %v332_v7  ;;  %v342_v15 = vrot.slane (!%p272_p2), %v324_v5, %v341_v8  ;;  %v351_v16 = vrot.slane (!%p272_p2), %v324_v5, %v350_v9 }
   0xc   : > { %v360_v17 = vrot.slane (!%p272_p2), %v324_v5, %v359_v10  ;;  %v369_v18 = vrot.slane (!%p272_p2), %v324_v5, %v368_v11  ;;  %v383_v21 = vrot.slane (!%p272_p2), %v324_v5, %v382_v12 }
   0xd   : > { %s718_s28 = smov (!%p308_p3, %s562_s28), 1 }
   0xe   : > { %s580_s13 = sshll.u32 %s718_s28, 4  ;;  %s569_s23 = sshll.u32 %s718_s28, 2 }
   0xf   : > { %s312_s16 = scalar_lea.vmem %s708_s0, %s580_s13  ;;  %s316_s26 = scalar_lea.vmem %s715_s7, %s569_s23 }
  0x10   : > { %v322_v19 = vld [vmem:[%s312_s16] sm:$0xff]  ;;  %v323_v20 = vld [vmem:[%s312_s16 + $0x8] sm:$0x3]  ;;  %s320_s11 = scalar_lea.vmem %s716_s8, %s569_s23 }
  0x11   : > { %v329_v22 = vmul.f32 %v328_v13, %v322_v19  ;;  %v334_v23 = vmul.f32 %v333_v14, %v322_v19  ;;  %v343_v24 = vmul.f32 %v342_v15, %v322_v19  ;;  %v352_v25 = vmul.f32 %v351_v16, %v322_v19  ;;  %v424_v60 = vld [vmem:[%s316_s26] sm:$0xf] }
  0x12   : > { %v370_v26 = vmul.f32 %v369_v18, %v322_v19  ;;  %v371_v27 = vmul.f32 %v369_v18, %v323_v20  ;;  %v361_v30 = vmul.f32 %v360_v17, %v322_v19  ;;  %v384_v31 = vmul.f32 %v383_v21, %v322_v19 }
  0x13   : > { %v336_v28 = vrot.slane %v334_v23, 1  ;;  %v345_v29 = vrot.slane %v343_v24, 2  ;;  %v385_v32 = vmul.f32 %v383_v21, %v323_v20  ;;  %v354_v34 = vrot.slane %v352_v25, 3 }
  0x14   : > { %v375_v35 = vrot.slane %v370_v26, 5  ;;  %v376_v36 = vrot.slane %v371_v27, 5  ;;  %v363_v38 = vrot.slane %v361_v30, 4  ;;  %v389_v39 = vrot.slane %v384_v31, 6 }
  0x15   : > { %v338_v33 = vadd.f32 %v336_v28, %v329_v22  ;;  %v390_v40 = vrot.slane %v385_v32, 6 }
  0x16   : > { %v377_v42 = vsel %vm374_vm1, %v375_v35, %v376_v36 }
  0x17   : > { %v347_v37 = vadd.f32 %v345_v29, %v338_v33  ;;  %v391_v44 = vsel %vm388_vm2, %v389_v39, %v390_v40 }
  0x19   : > { %v356_v41 = vadd.f32 %v354_v34, %v347_v37 }
  0x1b   : > { %v365_v43 = vadd.f32 %v363_v38, %v356_v41 }
  0x1d   : > { %v379_v45 = vadd.f32 %v377_v42, %v365_v43 }
  0x1f   : > { %v393_v47 = vadd.f32 %v391_v44, %v379_v45 }
  0x21   : > { %v401_v49 = vadd.f32 %v571_v46, %v393_v47 }
  0x23   : > { %v409_v51 = vmul.f32 %v572_v48, %v401_v49 }
  0x25   : > { %v417_v52 = vadd.f32 %v573_v50, %v409_v51 }
  0x27   : > { %v418_v53 = vsub.f32 0.0, %v417_v52 }
  0x29   : > { %v419_v54 = vmul.f32 1.442695, %v418_v53 }
  0x2b   : > { %604 = vpow2.f32 %v419_v54 }
  0x35   : > { %v605_v55 = vpop.eup %604 }
  0x36   : > { %v421_v56 = vadd.f32 1.0, %v605_v55 }
  0x38   : > { %606 = vrcp.f32 %v421_v56 }
  0x42   : > { %v607_v57 = vpop.eup %606 }
  0x43   : > { %v423_v58 = vmul.f32 %v607_v57, %v417_v52 }
  0x45   : > { %v425_v59 = vpack.c.bf16 %v423_v58, %v423_v58 }
  0x47   : > { %589 = vmatmul.mubr.msk.bf16.vlgmr.msra.gmra.mrb[0].mxu0 %vm442_vm3, %v425_v59 }
 0x11a   : > { %v480_v61 = vpop.f32.mrb[0].mxu0 }
 0x11b   : > { %v486_v63 = vadd.f32 %v480_v61, %v424_v60  ;;  %v590_v0 = vpop.f32.mrb[1].mxu0 }
 0x11c   : > { %v483_v1 = vpop.f32.mrb[2].mxu0 }
 0x11d   : > { %v494_v2 = vadd.f32 %v577_v62, %v486_v63  ;;  %v591_v3 = vpop.f32.mrb[3].mxu0 }
 0x11f   : > { %496 = vst.msk [vmem:[%s320_s11] sm:$0xf] %vm495_vm4, %v494_v2 }
 0x120 PF: > { %s18_s27 = sadd.s32 1, %s614_s27  }
 0x121   : > { %p15_p4 = scmp.ge.s32.totalorder %s18_s27, 4  }
 0x123   :  { %17 = sbr.rel (!%p15_p4) target bundleno = 1 (0x1), region = 85 }

// kernel: fireredasr_aed_forward.49
= control target key start
LH: loop header
LB: loop body
LE: loop exit
PB: predicated region body
PF: predicated region fallthrough
CT: control target
= control target key end

     0   :  { %vm34_vm0 = vcmask 261120   ;;  %v363_v8 = vmov 0.0   ;;  %vm364_vm1 = vmmov 0   ;;  %s480_s0 = inlined_call_operand.vmem [shape: f32[8,32], index: 0, kind: input, shape index: {}]   ;;  %s481_s3 = inlined_call_operand.vmem [shape: bf16[32,128], index: 3, kind: input, shape index: {}]   ;;  %s482_s1 = inlined_call_operand.vmem [shape: f32[1,32], index: 1, kind: input, shape index: {}]   ;;  %s483_s2 = inlined_call_operand.vmem [shape: f32[1,32], index: 2, kind: input, shape index: {}]   ;;  %s484_s5 = inlined_call_operand.vmem [shape: bf16[128,32], index: 5, kind: input, shape index: {}]   ;;  %s485_s4 = inlined_call_operand.vmem [shape: f32[1,128], index: 4, kind: input, shape index: {}]   ;;  %s486_s6 = inlined_call_operand.vmem [shape: f32[1,32], index: 6, kind: input, shape index: {}]   ;;  %s487_s7 = inlined_call_operand.vmem [shape: f32[1,32], index: 7, kind: input, shape index: {}]   ;;  %s488_s8 = inlined_call_operand.vmem [shape: f32[1,32], index: 8, kind: input, shape index: {}]   ;;  %s489_s9 = inlined_call_operand.vmem [shape: f32[8,32], index: 9, kind: output, shape index: {}]  }
   0x1   :  { %v418_v0 = vld [vmem:[%s480_s0] sm:$0xff]  ;;  %315 = vmatprep.subr.bf16.mxu0 %v363_v8  ;;  %323 = vmatprep.subr.bf16.mxu1 %v363_v8  ;;  %v346_v9 = vld [vmem:[%s481_s3 + $0x8] sm:$0xff]   ;;  %v349_v22 = vld [vmem:[%s484_s5 + $0x10] sm:$0xff]  }
   0x2   :  { %v35_v1 = vsel %vm34_vm0, %v418_v0, 0.0  ;;  %v345_v7 = vld [vmem:[%s481_s3] sm:$0xff]   ;;  %319 = vmatprep.mubr.msk.bf16.mxu0 %vm364_vm1, %v363_v8  ;;  %339 = vmatprep.mubr.msk.bf16.mxu1 %vm364_vm1, %v363_v8  ;;  %v348_v21 = vld [vmem:[%s484_s5 + $0x8] sm:$0xff]   ;;  %v350_v23 = vld [vmem:[%s484_s5 + $0x18] sm:$0xff]  }
   0x3   :  { %36 = vadd.xlane.f32.xlu0 %v35_v1  ;;  %316 = vmatpush3.bf16.msra.mxu0 %v345_v7  ;;  %v286_v14 = vld [vmem:[%s482_s1] ss:$0 sm:$0xff]  ;;  %v352_v25 = vld [vmem:[%s484_s5 + $0x28] sm:$0xff]   ;;  %v353_v26 = vld [vmem:[%s484_s5 + $0x30] sm:$0xff]  }
   0x4   :  { %317 = vmatprep.subr.bf16.mxu0 %v363_v8  ;;  %v287_v16 = vld [vmem:[%s483_s2] ss:$0 sm:$0xff]  ;;  %v354_v27 = vld [vmem:[%s484_s5 + $0x38] sm:$0xff]  }
   0x5   :  { %v347_v20 = vld [vmem:[%s484_s5] sm:$0xff]  }
   0x6   :  { %324 = vmatpush3.bf16.msra.mxu1 %v347_v20  ;;  %v351_v24 = vld [vmem:[%s484_s5 + $0x20] sm:$0xff]  }
   0x7   :  { %318 = vmatpush3.bf16.msra.mxu0 %v346_v9  ;;  %325 = vmatprep.subr.bf16.mxu1 %v363_v8  ;;  %v288_v28 = vld [vmem:[%s485_s4] ss:$0 sm:$0xff] }
   0x8   :  { %v292_v41 = vld [vmem:[%s486_s6] ss:$0 sm:$0xff] }
   0x9   :  { %v301_v59 = vld [vmem:[%s487_s7] ss:$0 sm:$0xff] }
   0xa   :  { %326 = vmatpush3.bf16.msra.mxu1 %v348_v21  ;;  %v302_v61 = vld [vmem:[%s488_s8] ss:$0 sm:$0xff] }
   0xb   :  { %327 = vmatprep.subr.bf16.mxu1 %v363_v8 }
   0xe   :  { %328 = vmatpush3.bf16.msra.mxu1 %v349_v22 }
   0xf   :  { %329 = vmatprep.subr.bf16.mxu1 %v363_v8 }
  0x12   :  { %330 = vmatpush3.bf16.msra.mxu1 %v350_v23 }
  0x13   :  { %331 = vmatprep.subr.bf16.mxu1 %v363_v8 }
  0x16   :  { %332 = vmatpush3.bf16.msra.mxu1 %v351_v24 }
  0x17   :  { %333 = vmatprep.subr.bf16.mxu1 %v363_v8 }
  0x1a   :  { %334 = vmatpush3.bf16.msra.mxu1 %v352_v25 }
  0x1b   :  { %335 = vmatprep.subr.bf16.mxu1 %v363_v8 }
  0x1e   :  { %336 = vmatpush3.bf16.msra.mxu1 %v353_v26 }
  0x1f   :  { %337 = vmatprep.subr.bf16.mxu1 %v363_v8 }
  0x22   :  { %338 = vmatpush3.bf16.msra.mxu1 %v354_v27 }
  0x90   :  { %v37_v2 = vpop.xlane.xlu0 %36 }
  0x91   :  { %v39_v3 = vmul.f32 0.03125, %v37_v2 }
  0x93   :  { %v40_v4 = vsub.f32 %v418_v0, %v39_v3 }
  0x95   :  { %v41_v5 = vmul.f32 %v40_v4, %v40_v4 }
  0x97   :  { %v42_v6 = vsel %vm34_vm0, %v41_v5, 0.0 }
  0x98   :  { %43 = vadd.xlane.f32.xlu0 %v42_v6 }
 0x125   :  { %v44_v10 = vpop.xlane.xlu0 %43 }
 0x126   :  { %v45_v11 = vmul.f32 0.03125, %v44_v10 }
 0x128   :  { %v46_v12 = vadd.f32 1e-05, %v45_v11 }
 0x12a   :  { %355 = vrsqrt.f32 %v46_v12 }
 0x134   :  { %v356_v13 = vpop.eup %355 }
 0x135   :  { %v48_v15 = vmul.f32 %v356_v13, %v40_v4 }
 0x137   :  { %v56_v17 = vmul.f32 %v286_v14, %v48_v15 }
 0x139   :  { %v64_v18 = vadd.f32 %v287_v16, %v56_v17 }
 0x13b   :  { %v65_v19 = vpack.c.bf16 %v64_v18, %v64_v18 }
 0x13d   :  { %320 = vmatmul.mubr.msk.bf16.vlgmr.msra.gmra.mrb[0].mxu0 %vm34_vm0, %v65_v19 }
 0x210   :  { %v126_v29 = vpop.f32.mrb[0].mxu0 }
 0x211   :  { %v127_v30 = vadd.f32 %v288_v28, %v126_v29  ;;  %v321_v31 = vpop.f32.mrb[1].mxu0 }
 0x212   :  { %v129_v32 = vpop.f32.mrb[2].mxu0 }
 0x213   :  { %v132_v33 = vsub.f32 0.0, %v127_v30  ;;  %v322_v34 = vpop.f32.mrb[3].mxu0 }
 0x215   :  { %v133_v35 = vmul.f32 1.442695, %v132_v33 }
 0x217   :  { %357 = vpow2.f32 %v133_v35 }
 0x221   :  { %v358_v36 = vpop.eup %357 }
 0x222   :  { %v135_v37 = vadd.f32 1.0, %v358_v36 }
 0x224   :  { %359 = vrcp.f32 %v135_v37 }
 0x22e   :  { %v360_v38 = vpop.eup %359 }
 0x22f   :  { %v137_v39 = vmul.f32 %v360_v38, %v127_v30 }
 0x231   :  { %v138_v40 = vpack.c.bf16 %v137_v39, %v137_v39 }
 0x233   :  { %340 = vmatmul.mubr.bf16.vlgmr.msra.gmra.mrb[0].mxu1 %v138_v40 }
 0x306   :  { %v244_v42 = vpop.f32.mrb[0].mxu1 }
 0x307   :  { %v245_v43 = vadd.f32 %v292_v41, %v244_v42  ;;  %v341_v44 = vpop.f32.mrb[1].mxu1 }
 0x308   :  { %v247_v45 = vpop.f32.mrb[2].mxu1 }
 0x309   :  { %v250_v46 = vmul.f32 0.5, %v245_v43  ;;  %v342_v47 = vpop.f32.mrb[3].mxu1 }
 0x30b   :  { %v251_v48 = vadd.f32 %v250_v46, %v418_v0 }
 0x30d   :  { %v252_v49 = vsel %vm34_vm0, %v251_v48, 0.0 }
 0x30e   :  { %253 = vadd.xlane.f32.xlu1 %v252_v49 }
 0x39b   :  { %v254_v50 = vpop.xlane.xlu1 %253 }
 0x39c   :  { %v255_v51 = vmul.f32 0.03125, %v254_v50 }
 0x39e   :  { %v256_v52 = vsub.f32 %v251_v48, %v255_v51 }
 0x3a0   :  { %v257_v53 = vmul.f32 %v256_v52, %v256_v52 }
 0x3a2   :  { %v258_v54 = vsel %vm34_vm0, %v257_v53, 0.0 }
 0x3a3   :  { %259 = vadd.xlane.f32.xlu1 %v258_v54 }
 0x430   :  { %v260_v55 = vpop.xlane.xlu1 %259 }
 0x431   :  { %v261_v56 = vmul.f32 0.03125, %v260_v55 }
 0x433   :  { %v262_v57 = vadd.f32 1e-05, %v261_v56 }
 0x435   :  { %361 = vrsqrt.f32 %v262_v57 }
 0x43f   :  { %v362_v58 = vpop.eup %361 }
 0x440   :  { %v264_v60 = vmul.f32 %v362_v58, %v256_v52 }
 0x442   :  { %v272_v62 = vmul.f32 %v301_v59, %v264_v60 }
 0x444   :  { %v280_v63 = vadd.f32 %v302_v61, %v272_v62 }
 0x446   :  { %281 = vst.msk [vmem:[%s489_s9] sm:$0xff] %vm34_vm0, %v280_v63 }

// kernel: fireredasr_aed_forward.63
= control target key start
LH: loop header
LB: loop body
LE: loop exit
PB: predicated region body
PF: predicated region fallthrough
CT: control target
= control target key end

     0   :  { %s573_s21 = smov 0   ;;  %s618_s0 = inlined_call_operand.vmem [shape: f32[2,4,32], index: 0, kind: input, shape index: {}]   ;;  %s619_s1 = inlined_call_operand.vmem [shape: f32[1,32], index: 1, kind: input, shape index: {}]   ;;  %s620_s2 = inlined_call_operand.vmem [shape: f32[1,32], index: 2, kind: input, shape index: {}]   ;;  %s621_s3 = inlined_call_operand.vmem [shape: bf16[32,64], index: 3, kind: input, shape index: {}]   ;;  %s622_s4 = inlined_call_operand.vmem [shape: f32[1,64], index: 4, kind: input, shape index: {}]   ;;  %s623_s5 = inlined_call_operand.vmem [shape: bf16[2,4,4,8], index: 5, kind: output, shape index: {0}]   ;;  %s624_s6 = inlined_call_operand.vmem [shape: bf16[2,4,4,8], index: 6, kind: output, shape index: {1}]  }
   0x1 LB: > { %s465_s1 = sadd.s32 4294967295, %s526_s21   ;;  %p469_p0 = scmp.ge.s32.totalorder %s526_s21, 1  ;;  %s526_s21 = sphi %s573_s21, %s17_s21  }
   0x2   : > { %p214_p1 = scmp.lt.s32.totalorder %s526_s21, 3 }
   0x4   : > { %p215_p2 = pnand %p469_p0, %p214_p1 }
   0x5   : > { %v518_v0 = vld [vmem:[%s621_s3] sm:$0xff] (!%p215_p2)   ;;  %v528_v1 = vmov (!%p215_p2), 0.0   ;;  %v519_v2 = vld [vmem:[%s621_s3 + $0x8] sm:$0xff] (!%p215_p2)   ;;  %vm529_vm0 = vmmov (!%p215_p2), 0   ;;  %p248_p3 = scmp.lt.s32.totalorder (!%p215_p2), %s465_s1, 1  ;;  %vm288_vm1 = vcmask (!%p215_p2), 261120   ;;  %v339_v7 = vlaneseq (!%p215_p2) }
   0x6   : > { %218 = sbr.rel (%p215_p2) target bundleno = 365 (0x16d), region = 40  ;;  %492 = vmatprep.subr.bf16.mxu0 (!%p215_p2), %v528_v1  ;;  %496 = vmatprep.mubr.msk.bf16.mxu0 (!%p215_p2), %vm529_vm0, %v528_v1  ;;  %v530_v5 = vmov (!%p215_p2), 1983009808   ;;  %v475_v10 = vld [vmem:[%s622_s4] ss:$0 sm:$0xff] (!%p215_p2)  ;;  %vm333_vm2 = vcmask (!%p215_p2), 58368  }
   0x7   : > { %493 = vmatpush3.bf16.msra.mxu0 (!%p215_p2), %v518_v0  ;;  %v337_v6 = vunpack.c.l.s4 (!%p215_p2), %v530_v5  ;;  %v340_v9 = vshrl.u32 (!%p215_p2), %v339_v7, 7  ;;  %s531_s11 = smov (!%p215_p2), 104   ;;  %s532_s12 = smov (!%p215_p2), 120  }
   0x8   : > { %494 = vmatprep.subr.bf16.mxu0 (!%p215_p2), %v528_v1  ;;  %s533_s13 = smov (!%p215_p2), 96   ;;  %s534_s14 = smov (!%p215_p2), 112  }
   0x9   : > { %v338_v8 = vunpack.c.0.s8 (!%p215_p2), %v337_v6  ;;  %s535_s15 = smov (!%p215_p2), 80   ;;  %s536_s16 = smov (!%p215_p2), 88  }
   0xa   : > { %s537_s17 = smov (!%p215_p2), 72  }
   0xb   : > { %495 = vmatpush3.bf16.msra.mxu0 (!%p215_p2), %v519_v2  ;;  %v341_v13 = vsub.s32 (!%p215_p2), %v338_v8, %v340_v9 }
   0xd   : > { %s626_s1 = smov (!%p248_p3, %s465_s1), 1 }
   0xe   : > { %s470_s25 = sshll.u32 %s626_s1, 2  ;;  %s487_s7 = sshll.u32 %s626_s1, 3 }
   0xf   : > { %s251_s28 = scalar_lea.vmem %s618_s0, %s470_s25  ;;  %s256_s10 = scalar_lea.vmem %s623_s5, %s487_s7 }
  0x10   : > { %v263_v3 = vld [vmem:[%s251_s28] sm:$0xf]  ;;  %s261_s20 = scalar_lea.vmem %s624_s6, %s487_s7 }
  0x11   : > { %v264_v4 = vpack.c.bf16 %v263_v3, %v263_v3 }
  0x13   : > { %497 = vmatmul.mubr.msk.bf16.vlgmr.msra.gmra.mrb[0].mxu0 %vm288_vm1, %v264_v4 }
  0xe6   : > { %v326_v11 = vpop.f32.mrb[0].mxu0 }
  0xe7   : > { %v327_v12 = vadd.f32 %v475_v10, %v326_v11  ;;  %v498_v14 = vpop.f32.mrb[1].mxu0 }
  0xe8   : > { %v329_v15 = vpop.f32.mrb[2].mxu0 }
  0xe9   : > { %v332_v16 = vpack.c.bf16 %v327_v12, %v327_v12  ;;  %v499_v17 = vpop.f32.mrb[3].mxu0 }
  0xeb   : > { %334 = vst.msk [vmem:[%s256_s10] sm:$0x3] %vm333_vm2, %v332_v16  ;;  %v342_v18 = vrot.slane %v332_v16, %v341_v13 }
  0xed   : > { %353 = vrot.lane.b32.xlu1 %v342_v18, %s531_s11  ;;  %343 = vrot.lane.b32.xlu0 %v342_v18, %s532_s12 }
  0xf1   : > { %358 = vrot.lane.b32.xlu1 %v342_v18, %s533_s13  ;;  %348 = vrot.lane.b32.xlu0 %v342_v18, %s534_s14 }
  0xf5   : > { %367 = vrot.lane.b32.xlu1 %v342_v18, %s535_s15  ;;  %362 = vrot.lane.b32.xlu0 %v342_v18, %s536_s16 }
  0xf9   : > { %372 = vrot.lane.b32.xlu0 %v342_v18, %s537_s17 }
 0x15f   : > { %v354_v19 = vpop.permute.xlu1 %353  ;;  %v344_v20 = vpop.permute.xlu0 %343 }
 0x160   : > { %481 = vst.msk [vmem:[%s256_s10 + $0x6] sm:$0x3] %vm333_vm2, %v354_v19  ;;  %479 = vst.msk [vmem:[%s256_s10 + $0x2] sm:$0x3] %vm333_vm2, %v344_v20 }
 0x163   : > { %v359_v21 = vpop.permute.xlu1 %358  ;;  %v349_v22 = vpop.permute.xlu0 %348 }
 0x164   : > { %361 = vst.msk [vmem:[%s261_s20] sm:$0x3] %vm333_vm2, %v359_v21  ;;  %480 = vst.msk [vmem:[%s256_s10 + $0x4] sm:$0x3] %vm333_vm2, %v349_v22 }
 0x167   : > { %v368_v23 = vpop.permute.xlu1 %367  ;;  %v363_v24 = vpop.permute.xlu0 %362 }
 0x168   : > { %483 = vst.msk [vmem:[%s261_s20 + $0x4] sm:$0x3] %vm333_vm2, %v368_v23  ;;  %482 = vst.msk [vmem:[%s261_s20 + $0x2] sm:$0x3] %vm333_vm2, %v363_v24 }
 0x16b   : > { %v373_v25 = vpop.permute.xlu0 %372 }
 0x16c   : > { %484 = vst.msk [vmem:[%s261_s20 + $0x6] sm:$0x3] %vm333_vm2, %v373_v25 }
 0x16d PF: > { %s17_s21 = sadd.s32 1, %s526_s21  }
 0x16e   : > { %p14_p4 = scmp.ge.s32.totalorder %s17_s21, 4  }
 0x170   :  { %16 = sbr.rel (!%p14_p4) target bundleno = 1 (0x1), region = 88 }

// kernel: fireredasr_aed_forward.60
= control target key start
LH: loop header
LB: loop body
LE: loop exit
PB: predicated region body
PF: predicated region fallthrough
CT: control target
= control target key end

     0   :  { %s963_s15 = smov 0   ;;  %s1051_s0 = inlined_call_operand.vmem [shape: bf16[2,4,5,8], index: 0, kind: input, shape index: {}]   ;;  %s1052_s1 = inlined_call_operand.vmem [shape: bf16[2,4,5,8], index: 1, kind: input, shape index: {}]   ;;  %s1053_s2 = inlined_call_operand.vmem [shape: bf16[2,4,5,8], index: 2, kind: input, shape index: {}]   ;;  %s1054_s3 = inlined_call_operand.vmem [shape: f32[2,1,5], index: 3, kind: input, shape index: {}]   ;;  %s1055_s4 = inlined_call_operand.vmem [shape: f32[2,4,5,8], index: 4, kind: output, shape index: {}]  }
   0x1 LB: > { %s809_s16 = sadd.s32 4294967295, %s933_s15   ;;  %p813_p0 = scmp.ge.s32.totalorder %s933_s15, 1  ;;  %s933_s15 = sphi %s963_s15, %s14_s15  }
   0x2   : > { %p190_p1 = scmp.lt.s32.totalorder %s933_s15, 3 }
   0x4   : > { %p191_p2 = pnand %p813_p0, %p190_p1 }
   0x5   : > { %p229_p3 = scmp.lt.s32.totalorder (!%p191_p2), %s809_s16, 1  ;;  %v935_v0 = vmov (!%p191_p2), 0.0   ;;  %vm936_vm0 = vmmov (!%p191_p2), 0   ;;  %vm265_vm1 = vcmask (!%p191_p2), 64512   ;;  %v458_v13 = vlaneseq (!%p191_p2) }
   0x6   : > { %194 = sbr.rel (%p191_p2) target bundleno = 785 (0x311), region = 36  ;;  %852 = vmatprep.subr.bf16.mxu0 (!%p191_p2), %v935_v0  ;;  %858 = vmatprep.subr.bf16.mxu1 (!%p191_p2), %v935_v0  ;;  %vm478_vm3 = vcmask (!%p191_p2), 36864   ;;  %vm531_vm4 = vcmask (!%p191_p2), 1041408   ;;  %vm532_vm5 = vcmask (!%p191_p2), 1042432   ;;  %vm527_vm6 = vcmask (!%p191_p2), 39936  }
   0x7   : > { %854 = vmatprep.mubr.msk.bf16.mxu0 (!%p191_p2), %vm936_vm0, %v935_v0  ;;  %860 = vmatprep.mubr.msk.bf16.mxu1 (!%p191_p2), %vm936_vm0, %v935_v0  ;;  %v459_v16 = vshrl.u32 (!%p191_p2), %v458_v13, 7  ;;  %v470_v19 = vand.u32 (!%p191_p2), 127, %v458_v13  ;;  %vm716_vm7 = vcmask (!%p191_p2), 61440  }
   0x9   : > { %v460_v18 = vsub.s32 (!%p191_p2), 0, %v459_v16  ;;  %vm471_vm2 = vcmp.le.s32.totalorder (!%p191_p2), %v470_v19, %v459_v16 }
   0xd   : > { %s1057_s16 = smov (!%p229_p3, %s809_s16), 1 }
   0xe   : > { %s980_s17 = sshll.u32 %s1057_s16, 4  ;;  %s246_s26 = scalar_lea.vmem %s1054_s3, %s1057_s16 }
   0xf   : > { %s238_s20 = scalar_lea.vmem %s1052_s1, %s980_s17  ;;  %s233_s23 = scalar_lea.vmem %s1051_s0, %s980_s17  ;;  %v454_v14 = vld [vmem:[%s246_s26] sm:$0x1] }
  0x10   : > { %v257_v1 = vld [vmem:[%s238_s20] sm:$0x7]  ;;  %v258_v2 = vld [vmem:[%s238_s20 + $0x4] sm:$0x7]  ;;  %v259_v5 = vld [vmem:[%s238_s20 + $0x8] sm:$0x7]  ;;  %s243_s29 = scalar_lea.vmem %s1053_s2, %s980_s17 }
  0x11   : > { %v270_v3 = vsel %vm265_vm1, %v257_v1, 0  ;;  %v316_v4 = vsel %vm265_vm1, %v258_v2, 0  ;;  %v260_v6 = vld [vmem:[%s238_s20 + $0xc] sm:$0x7]  ;;  %v253_v7 = vld [vmem:[%s233_s23] sm:$0x7] }
  0x12   : > { %853 = vmatpush3.bf16.xpose.msra.mxu0 %v270_v3  ;;  %859 = vmatpush3.bf16.xpose.msra.mxu1 %v316_v4  ;;  %v254_v8 = vld [vmem:[%s233_s23 + $0x4] sm:$0x7]  ;;  %v362_v9 = vsel %vm265_vm1, %v259_v5, 0  ;;  %v408_v10 = vsel %vm265_vm1, %v260_v6, 0  ;;  %v255_v11 = vld [vmem:[%s233_s23 + $0x8] sm:$0x7] }
  0x13   : > { %864 = vmatprep.subr.bf16.mxu0 %v935_v0  ;;  %870 = vmatprep.subr.bf16.mxu1 %v935_v0  ;;  %v256_v12 = vld [vmem:[%s233_s23 + $0xc] sm:$0x7]  ;;  %v455_v15 = vsub.f32 1.0, %v454_v14  ;;  %s835_s30 = sshll.u32 %s1057_s16, 5 }
  0x14   : > { %v264_v19 = vld [vmem:[%s243_s29 + $0xc] sm:$0x7]  ;;  %s251_s7 = scalar_lea.vmem %s1055_s4, %s835_s30 }
  0x15   : > { %v456_v17 = vmul.f32 -1e+09, %v455_v15  ;;  %v262_v15 = vld [vmem:[%s243_s29 + $0x4] sm:$0x7] }
  0x17   : > { %v461_v20 = vrot.slane %v456_v17, %v460_v18  ;;  %v263_v17 = vld [vmem:[%s243_s29 + $0x8] sm:$0x7] }
  0x19   : > { %855 = vmatmul.mubr.msk.bf16.vlgmr.msra.gmra.mrb[0].mxu0 %vm265_vm1, %v253_v7  ;;  %861 = vmatmul.mubr.msk.bf16.vlgmr.msra.gmra.mrb[0].mxu1 %vm265_vm1, %v254_v8 }
  0x1a   : > { %865 = vmatpush3.bf16.xpose.msra.mxu0 %v362_v9  ;;  %871 = vmatpush3.bf16.xpose.msra.mxu1 %v408_v10  ;;  %v937_v10 = vmov 65535  }
  0x1b   : > { %866 = vmatprep.mubr.msk.bf16.mxu0 %vm936_vm0, %v935_v0  ;;  %872 = vmatprep.mubr.msk.bf16.mxu1 %vm936_vm0, %v935_v0 }
  0x1c   : > { %876 = vmatprep.subr.bf16.mxu0 %v935_v0  ;;  %882 = vmatprep.subr.bf16.mxu1 %v935_v0 }
  0x21   : > { %867 = vmatmul.mubr.msk.bf16.vlgmr.msra.gmra.mrb[4].mxu0 %vm265_vm1, %v255_v11  ;;  %873 = vmatmul.mubr.msk.bf16.vlgmr.msra.gmra.mrb[4].mxu1 %vm265_vm1, %v256_v12  ;;  %v533_v11 = vsel %vm531_vm4, 4294967295, %v937_v10  ;;  %v261_v12 = vld [vmem:[%s243_s29] sm:$0x7] }
  0x22   : > { %878 = vmatprep.mubr.msk.bf16.mxu0 %vm936_vm0, %v935_v0  ;;  %884 = vmatprep.mubr.msk.bf16.mxu1 %vm936_vm0, %v935_v0  ;;  %v534_v13 = vsel %vm532_vm5, %v533_v11, 0 }
  0x23   : > { %v536_v14 = vand.u32 %v534_v13, %v261_v12  ;;  %v582_v16 = vand.u32 %v534_v13, %v262_v15  ;;  %v628_v18 = vand.u32 %v534_v13, %v263_v17 }
  0x25   : > { %877 = vmatpush3.bf16.msra.mxu0 %v536_v14  ;;  %883 = vmatpush3.bf16.msra.mxu1 %v582_v16 }
  0x26   : > { %888 = vmatprep.subr.bf16.mxu0 %v935_v0  ;;  %894 = vmatprep.subr.bf16.mxu1 %v935_v0 }
  0xec   : > { %v306_v21 = vpop.f32.mrb[0].mxu0  ;;  %v352_v22 = vpop.f32.mrb[0].mxu1 }
  0xed   : > { %v450_v23 = vmul.f32 0.35355338, %v306_v21  ;;  %v856_v24 = vpop.f32.mrb[1].mxu0  ;;  %v451_v25 = vmul.f32 0.35355338, %v352_v22  ;;  %v862_v26 = vpop.f32.mrb[1].mxu1 }
  0xee   : > { %v309_v27 = vpop.f32.mrb[2].mxu0  ;;  %v355_v28 = vpop.f32.mrb[2].mxu1 }
  0xef   : > { %v463_v29 = vadd.f32 %v461_v20, %v450_v23  ;;  %v464_v30 = vadd.f32 %v461_v20, %v451_v25  ;;  %v857_v31 = vpop.f32.mrb[3].mxu0  ;;  %v863_v32 = vpop.f32.mrb[3].mxu1 }
  0xf1   : > { %v474_v33 = vsel %vm471_vm2, %v463_v29, -1e+09  ;;  %v475_v34 = vsel %vm471_vm2, %v464_v30, -1e+09 }
  0xf2   : > { %v479_v35 = vsel %vm478_vm3, %v474_v33, -inf  ;;  %v482_v38 = vsel %vm478_vm3, %v475_v34, -inf }
  0xf3   : > { %480 = vmax.xlane.f32.xlu0 %v479_v35 }
  0xf4   : > { %v398_v36 = vpop.f32.mrb[4].mxu0  ;;  %v444_v37 = vpop.f32.mrb[4].mxu1 }
  0xf5   : > { %v452_v39 = vmul.f32 0.35355338, %v398_v36  ;;  %v868_v40 = vpop.f32.mrb[5].mxu0  ;;  %v453_v41 = vmul.f32 0.35355338, %v444_v37  ;;  %v874_v42 = vpop.f32.mrb[5].mxu1 }
  0xf6   : > { %v401_v43 = vpop.f32.mrb[6].mxu0  ;;  %v447_v44 = vpop.f32.mrb[6].mxu1 }
  0xf7   : > { %v465_v45 = vadd.f32 %v461_v20, %v452_v39  ;;  %v466_v46 = vadd.f32 %v461_v20, %v453_v41  ;;  %483 = vmax.xlane.f32.xlu0 %v482_v38  ;;  %v869_v47 = vpop.f32.mrb[7].mxu0  ;;  %v875_v48 = vpop.f32.mrb[7].mxu1  ;;  %v674_v20 = vand.u32 %v534_v13, %v264_v19 }
  0xf9   : > { %v476_v49 = vsel %vm471_vm2, %v465_v45, -1e+09  ;;  %v477_v50 = vsel %vm471_vm2, %v466_v46, -1e+09 }
  0xfa   : > { %v485_v51 = vsel %vm478_vm3, %v476_v49, -inf  ;;  %v488_v52 = vsel %vm478_vm3, %v477_v50, -inf }
  0xfb   : > { %486 = vmax.xlane.f32.xlu1 %v485_v51 }
  0xff   : > { %489 = vmax.xlane.f32.xlu1 %v488_v52 }
 0x180   : > { %v481_v53 = vpop.xlane.xlu0 %480 }
 0x181   : > { %v491_v54 = vsub.f32 %v474_v33, %v481_v53 }
 0x183   : > { %v495_v55 = vmul.f32 1.442695, %v491_v54 }
 0x184   : > { %v484_v56 = vpop.xlane.xlu0 %483 }
 0x185   : > { %911 = vpow2.f32 %v495_v55  ;;  %v492_v57 = vsub.f32 %v475_v34, %v484_v56 }
 0x187   : > { %v497_v58 = vmul.f32 1.442695, %v492_v57 }
 0x188   : > { %v487_v59 = vpop.xlane.xlu1 %486 }
 0x189   : > { %913 = vpow2.f32 %v497_v58  ;;  %v493_v60 = vsub.f32 %v476_v49, %v487_v59 }
 0x18b   : > { %v499_v61 = vmul.f32 1.442695, %v493_v60 }
 0x18c   : > { %v490_v62 = vpop.xlane.xlu1 %489 }
 0x18d   : > { %915 = vpow2.f32 %v499_v61  ;;  %v494_v63 = vsub.f32 %v477_v50, %v490_v62 }
 0x18f   : > { %v912_v1 = vpop.eup %911  ;;  %v501_v2 = vmul.f32 1.442695, %v494_v63 }
 0x190   : > { %v503_v3 = vsel %vm478_vm3, %v912_v1, 0.0 }
 0x191   : > { %917 = vpow2.f32 %v501_v2  ;;  %504 = vadd.xlane.f32.xlu0 %v503_v3 }
 0x193   : > { %v914_v4 = vpop.eup %913 }
 0x194   : > { %v506_v5 = vsel %vm478_vm3, %v914_v4, 0.0 }
 0x195   : > { %507 = vadd.xlane.f32.xlu1 %v506_v5 }
 0x197   : > { %v916_v6 = vpop.eup %915 }
 0x198   : > { %v509_v7 = vsel %vm478_vm3, %v916_v6, 0.0 }
 0x199   : > { %510 = vadd.xlane.f32.xlu0 %v509_v7 }
 0x19b   : > { %v918_v8 = vpop.eup %917 }
 0x19c   : > { %v512_v9 = vsel %vm478_vm3, %v918_v8, 0.0 }
 0x19d   : > { %513 = vadd.xlane.f32.xlu1 %v512_v9 }
 0x21e   : > { %v505_v21 = vpop.xlane.xlu0 %504 }
 0x21f   : > { %919 = vrcp.f32 %v505_v21 }
 0x222   : > { %v508_v22 = vpop.xlane.xlu1 %507 }
 0x223   : > { %921 = vrcp.f32 %v508_v22 }
 0x226   : > { %v511_v23 = vpop.xlane.xlu0 %510 }
 0x227   : > { %923 = vrcp.f32 %v511_v23 }
 0x229   : > { %v920_v24 = vpop.eup %919 }
 0x22a   : > { %v519_v25 = vmul.f32 %v920_v24, %v912_v1  ;;  %v514_v26 = vpop.xlane.xlu1 %513 }
 0x22b   : > { %925 = vrcp.f32 %v514_v26 }
 0x22c   : > { %v523_v27 = vpack.c.bf16 %v519_v25, %v519_v25 }
 0x22d   : > { %v922_v28 = vpop.eup %921 }
 0x22e   : > { %v520_v29 = vmul.f32 %v922_v28, %v914_v4  ;;  %879 = vmatmul.mubr.msk.bf16.vlgmr.msra.gmra.mrb[8].mxu0 %vm527_vm6, %v523_v27 }
 0x22f   : > { %889 = vmatpush3.bf16.msra.mxu0 %v628_v18  ;;  %890 = vmatprep.mubr.msk.bf16.mxu0 %vm936_vm0, %v935_v0 }
 0x230   : > { %v524_v30 = vpack.c.bf16 %v520_v29, %v520_v29 }
 0x231   : > { %v924_v31 = vpop.eup %923 }
 0x232   : > { %v521_v32 = vmul.f32 %v924_v31, %v916_v6  ;;  %885 = vmatmul.mubr.msk.bf16.vlgmr.msra.gmra.mrb[8].mxu1 %vm527_vm6, %v524_v30 }
 0x233   : > { %895 = vmatpush3.bf16.msra.mxu1 %v674_v20  ;;  %896 = vmatprep.mubr.msk.bf16.mxu1 %vm936_vm0, %v935_v0 }
 0x234   : > { %v525_v33 = vpack.c.bf16 %v521_v32, %v521_v32 }
 0x235   : > { %v926_v34 = vpop.eup %925 }
 0x236   : > { %v522_v35 = vmul.f32 %v926_v34, %v918_v8  ;;  %891 = vmatmul.mubr.msk.bf16.vlgmr.msra.gmra.mrb[12].mxu0 %vm527_vm6, %v525_v33 }
 0x238   : > { %v526_v36 = vpack.c.bf16 %v522_v35, %v522_v35 }
 0x23a   : > { %897 = vmatmul.mubr.msk.bf16.vlgmr.msra.gmra.mrb[12].mxu1 %vm527_vm6, %v526_v36 }
 0x301   : > { %v572_v37 = vpop.f32.mrb[8].mxu0 }
 0x302   : > { %717 = vst.msk [vmem:[%s251_s7] sm:$0x1f] %vm716_vm7, %v572_v37  ;;  %v880_v38 = vpop.f32.mrb[9].mxu0 }
 0x303   : > { %v575_v39 = vpop.f32.mrb[10].mxu0 }
 0x304   : > { %v881_v0 = vpop.f32.mrb[11].mxu0 }
 0x305   : > { %v618_v40 = vpop.f32.mrb[8].mxu1 }
 0x306   : > { %718 = vst.msk [vmem:[%s251_s7 + $0x8] sm:$0x1f] %vm716_vm7, %v618_v40  ;;  %v886_v41 = vpop.f32.mrb[9].mxu1 }
 0x307   : > { %v621_v42 = vpop.f32.mrb[10].mxu1 }
 0x308   : > { %v887_v43 = vpop.f32.mrb[11].mxu1 }
 0x309   : > { %v664_v44 = vpop.f32.mrb[12].mxu0 }
 0x30a   : > { %719 = vst.msk [vmem:[%s251_s7 + $0x10] sm:$0x1f] %vm716_vm7, %v664_v44  ;;  %v892_v45 = vpop.f32.mrb[13].mxu0 }
 0x30b   : > { %v667_v46 = vpop.f32.mrb[14].mxu0 }
 0x30c   : > { %v893_v47 = vpop.f32.mrb[15].mxu0 }
 0x30d   : > { %v710_v48 = vpop.f32.mrb[12].mxu1 }
 0x30e   : > { %720 = vst.msk [vmem:[%s251_s7 + $0x18] sm:$0x1f] %vm716_vm7, %v710_v48  ;;  %v898_v49 = vpop.f32.mrb[13].mxu1 }
 0x30f   : > { %v713_v50 = vpop.f32.mrb[14].mxu1 }
 0x310   : > { %v899_v51 = vpop.f32.mrb[15].mxu1 }
 0x311 PF: > { %s14_s15 = sadd.s32 1, %s933_s15  }
 0x312   : > { %p11_p4 = scmp.ge.s32.totalorder %s14_s15, 4  }
 0x314   :  { %13 = sbr.rel (!%p11_p4) target bundleno = 1 (0x1), region = 75 }

// kernel: fireredasr_aed_forward.62
= control target key start
LH: loop header
LB: loop body
LE: loop exit
PB: predicated region body
PF: predicated region fallthrough
CT: control target
= control target key end

     0   :  { %s505_s18 = smov 0   ;;  %s553_s0 = inlined_call_operand.vmem [shape: f32[2,5,32], index: 0, kind: input, shape index: {}]   ;;  %s554_s1 = inlined_call_operand.vmem [shape: f32[1,32], index: 1, kind: input, shape index: {}]   ;;  %s555_s2 = inlined_call_operand.vmem [shape: f32[1,32], index: 2, kind: input, shape index: {}]   ;;  %s556_s3 = inlined_call_operand.vmem [shape: bf16[32,32], index: 3, kind: input, shape index: {}]   ;;  %s557_s4 = inlined_call_operand.vmem [shape: f32[1,32], index: 4, kind: input, shape index: {}]   ;;  %s558_s5 = inlined_call_operand.vmem [shape: bf16[2,4,5,8], index: 5, kind: output, shape index: {}]  }
   0x1 LB: > { %s409_s19 = sadd.s32 4294967295, %s468_s18   ;;  %p413_p0 = scmp.ge.s32.totalorder %s468_s18, 1  ;;  %s468_s18 = sphi %s505_s18, %s15_s18  }
   0x2   : > { %p186_p1 = scmp.lt.s32.totalorder %s468_s18, 3 }
   0x4   : > { %p187_p2 = pnand %p413_p0, %p186_p1 }
   0x5   : > { %p213_p3 = scmp.lt.s32.totalorder (!%p187_p2), %s409_s19, 1  ;;  %vm224_vm0 = vcmask (!%p187_p2), 258048   ;;  %v458_v7 = vld [vmem:[%s556_s3] sm:$0xff] (!%p187_p2)   ;;  %v470_v8 = vmov (!%p187_p2), 0.0   ;;  %vm471_vm1 = vmmov (!%p187_p2), 0   ;;  %v459_v9 = vld [vmem:[%s556_s3 + $0x8] sm:$0xff] (!%p187_p2)  }
   0x6   : > { %190 = sbr.rel (%p187_p2) target bundleno = 669 (0x29d), region = 40  ;;  %437 = vmatprep.subr.bf16.mxu0 (!%p187_p2), %v470_v8  ;;  %441 = vmatprep.mubr.msk.bf16.mxu0 (!%p187_p2), %vm471_vm1, %v470_v8  ;;  %v417_v14 = vld [vmem:[%s554_s1] ss:$0 sm:$0xff] (!%p187_p2)  ;;  %vm279_vm2 = vcmask (!%p187_p2), 261120   ;;  %vm324_vm3 = vcmask (!%p187_p2), 59392   ;;  %s472_s13 = smov (!%p187_p2), 104  }
   0x7   : > { %438 = vmatpush3.bf16.msra.mxu0 (!%p187_p2), %v458_v7  ;;  %v418_v16 = vld [vmem:[%s555_s2] ss:$0 sm:$0xff] (!%p187_p2)  ;;  %vm325_vm4 = vsmask.f32 (!%p187_p2), 2304  ;;  %s473_s14 = smov (!%p187_p2), 120   ;;  %s474_s15 = smov (!%p187_p2), 112  }
   0x8   : > { %439 = vmatprep.subr.bf16.mxu0 (!%p187_p2), %v470_v8  ;;  %v419_v20 = vld [vmem:[%s557_s4] ss:$0 sm:$0xff] (!%p187_p2)  ;;  %vm538_vm5 = vmand (!%p187_p2), %vm324_vm3, %vm325_vm4 }
   0xb   : > { %440 = vmatpush3.bf16.msra.mxu0 (!%p187_p2), %v459_v9 }
   0xd   : > { %s562_s19 = smov (!%p213_p3, %s409_s19), 1 }
   0xe   : > { %s414_s20 = sshll.u32 %s562_s19, 3  ;;  %s432_s7 = sshll.u32 %s562_s19, 4 }
   0xf   : > { %s216_s23 = scalar_lea.vmem %s553_s0, %s414_s20  ;;  %s221_s12 = scalar_lea.vmem %s558_s5, %s432_s7 }
  0x10   : > { %v223_v0 = vld [vmem:[%s216_s23] sm:$0x1f]  ;;  %v428_v30 = vld [vmem:[%s221_s12 + $0xc] sm:$0x7]  ;;  %v426_v36 = vld [vmem:[%s221_s12 + $0x8] sm:$0x7] }
  0x11   : > { %v225_v1 = vsel %vm224_vm0, %v223_v0, 0.0  ;;  %v327_v26 = vld [vmem:[%s221_s12] sm:$0x7]  ;;  %v424_v31 = vld [vmem:[%s221_s12 + $0x4] sm:$0x7] }
  0x12   : > { %226 = vadd.xlane.f32.xlu0 %v225_v1 }
  0x9f   : > { %v227_v2 = vpop.xlane.xlu0 %226 }
  0xa0   : > { %v229_v3 = vmul.f32 0.03125, %v227_v2 }
  0xa2   : > { %v230_v4 = vsub.f32 %v223_v0, %v229_v3 }
  0xa4   : > { %v231_v5 = vmul.f32 %v230_v4, %v230_v4 }
  0xa6   : > { %v232_v6 = vsel %vm224_vm0, %v231_v5, 0.0 }
  0xa7   : > { %233 = vadd.xlane.f32.xlu0 %v232_v6 }
 0x134   : > { %v234_v10 = vpop.xlane.xlu0 %233 }
 0x135   : > { %v235_v11 = vmul.f32 0.03125, %v234_v10 }
 0x137   : > { %v236_v12 = vadd.f32 1e-05, %v235_v11 }
 0x139   : > { %460 = vrsqrt.f32 %v236_v12 }
 0x143   : > { %v461_v13 = vpop.eup %460 }
 0x144   : > { %v238_v15 = vmul.f32 %v461_v13, %v230_v4 }
 0x146   : > { %v246_v17 = vmul.f32 %v417_v14, %v238_v15 }
 0x148   : > { %v254_v18 = vadd.f32 %v418_v16, %v246_v17 }
 0x14a   : > { %v255_v19 = vpack.c.bf16 %v254_v18, %v254_v18 }
 0x14c   : > { %442 = vmatmul.mubr.msk.bf16.vlgmr.msra.gmra.mrb[0].mxu0 %vm279_vm2, %v255_v19 }
 0x21f   : > { %v317_v21 = vpop.f32.mrb[0].mxu0 }
 0x220   : > { %v318_v22 = vadd.f32 %v419_v20, %v317_v21  ;;  %v443_v23 = vpop.f32.mrb[1].mxu0 }
 0x221   : > { %v320_v24 = vpop.f32.mrb[2].mxu0 }
 0x222   : > { %v323_v27 = vpack.c.bf16 %v318_v22, %v318_v22  ;;  %v444_v28 = vpop.f32.mrb[3].mxu0 }
 0x224   : > { %347 = vrot.lane.b32.xlu0 %v323_v27, %s472_s13  ;;  %333 = vrot.lane.b32.xlu1 %v323_v27, %s473_s14  ;;  %v328_v29 = vsel %vm538_vm5, %v323_v27, %v327_v26 }
 0x225   : > { %329 = vst [vmem:[%s221_s12] sm:$0x7] %v328_v29 }
 0x228   : > { %340 = vrot.lane.b32.xlu1 %v323_v27, %s474_s15 }
 0x296   : > { %v348_v32 = vpop.permute.xlu0 %347  ;;  %v334_v33 = vpop.permute.xlu1 %333 }
 0x297   : > { %v352_v34 = vsel %vm538_vm5, %v348_v32, %v428_v30  ;;  %v338_v35 = vsel %vm538_vm5, %v334_v33, %v424_v31 }
 0x298   : > { %429 = vst [vmem:[%s221_s12 + $0xc] sm:$0x7] %v352_v34  ;;  %425 = vst [vmem:[%s221_s12 + $0x4] sm:$0x7] %v338_v35 }
 0x29a   : > { %v341_v37 = vpop.permute.xlu1 %340 }
 0x29b   : > { %v345_v38 = vsel %vm538_vm5, %v341_v37, %v426_v36 }
 0x29c   : > { %427 = vst [vmem:[%s221_s12 + $0x8] sm:$0x7] %v345_v38 }
 0x29d PF: > { %s15_s18 = sadd.s32 1, %s468_s18  }
 0x29e   : > { %p12_p4 = scmp.ge.s32.totalorder %s15_s18, 4  }
 0x2a0   :  { %14 = sbr.rel (!%p12_p4) target bundleno = 1 (0x1), region = 73 }

// kernel: fireredasr_aed_forward.61
= control target key start
LH: loop header
LB: loop body
LE: loop exit
PB: predicated region body
PF: predicated region fallthrough
CT: control target
= control target key end

     0   :  { %s602_s15 = smov 0   ;;  %s653_s0 = inlined_call_operand.vmem [shape: f32[2,4,5,8], index: 0, kind: input, shape index: {}]   ;;  %s654_s1 = inlined_call_operand.vmem [shape: f32[2,5,32], index: 1, kind: input, shape index: {}]   ;;  %s655_s2 = inlined_call_operand.vmem [shape: bf16[4,8,32], index: 2, kind: input, shape index: {}]   ;;  %s656_s3 = inlined_call_operand.vmem [shape: f32[1,32], index: 3, kind: input, shape index: {}]   ;;  %s657_s4 = inlined_call_operand.vmem [shape: f32[2,5,32], index: 4, kind: output, shape index: {}]  }
   0x1 LB: > { %s495_s16 = sadd.s32 4294967295, %s573_s15   ;;  %p499_p0 = scmp.ge.s32.totalorder %s573_s15, 1  ;;  %s573_s15 = sphi %s602_s15, %s14_s15  }
   0x2   : > { %p171_p1 = scmp.lt.s32.totalorder %s573_s15, 3 }
   0x4   : > { %p172_p2 = pnand %p499_p0, %p171_p1 }
   0x5   : > { %v228_v0 = vld [vmem:[%s655_s2] sm:$0xf] (!%p172_p2)  ;;  %vm233_vm0 = vcmask (!%p172_p2), 1043456   ;;  %v508_v1 = vld [vmem:[%s655_s2 + $0x8] sm:$0xf] (!%p172_p2)  ;;  %v575_v2 = vmov (!%p172_p2), 0.0  }
   0x6   : > { %175 = sbr.rel (%p172_p2) target bundleno = 248 (0xf8), region = 36  ;;  %523 = vmatprep.subr.bf16.mxu1 (!%p172_p2), %v575_v2  ;;  %v235_v3 = vsel (!%p172_p2), %vm233_vm0, %v228_v0, 0  ;;  %535 = vmatprep.subr.bf16.mxu0 (!%p172_p2), %v575_v2  ;;  %v335_v4 = vsel (!%p172_p2), %vm233_vm0, %v508_v1, 0  ;;  %p200_p3 = scmp.lt.s32.totalorder (!%p172_p2), %s495_s16, 1  ;;  %vm576_vm1 = vmmov (!%p172_p2), 0   ;;  %vm229_vm2 = vcmask (!%p172_p2), 64512  }
   0x7   : > { %524 = vmatpush3.bf16.msra.mxu1 (!%p172_p2), %v235_v3  ;;  %536 = vmatpush3.bf16.msra.mxu0 (!%p172_p2), %v335_v4  ;;  %v506_v5 = vld [vmem:[%s655_s2 + $0x4] sm:$0xf] (!%p172_p2)  ;;  %v510_v6 = vld [vmem:[%s655_s2 + $0xc] sm:$0xf] (!%p172_p2)  ;;  %v504_v18 = vld [vmem:[%s656_s3] ss:$0 sm:$0xff] (!%p172_p2) }
   0x8   : > { %525 = vmatprep.mubr.msk.bf16.mxu1 (!%p172_p2), %vm576_vm1, %v575_v2  ;;  %529 = vmatprep.subr.bf16.mxu1 (!%p172_p2), %v575_v2  ;;  %v285_v10 = vsel (!%p172_p2), %vm233_vm0, %v506_v5, 0  ;;  %v385_v12 = vsel (!%p172_p2), %vm233_vm0, %v510_v6, 0  ;;  %vm428_vm3 = vcmask (!%p172_p2), 258048  }
   0x9   : > { %537 = vmatprep.mubr.msk.bf16.mxu0 (!%p172_p2), %vm576_vm1, %v575_v2  ;;  %541 = vmatprep.subr.bf16.mxu0 (!%p172_p2), %v575_v2 }
   0xd   : > { %s659_s16 = smov (!%p200_p3, %s495_s16), 1 }
   0xe   : > { %s514_s21 = sshll.u32 %s659_s16, 5  ;;  %s502_s29 = sshll.u32 %s659_s16, 3 }
   0xf   : > { %s204_s28 = scalar_lea.vmem %s653_s0, %s514_s21  ;;  %s208_s6 = scalar_lea.vmem %s654_s1, %s502_s29 }
  0x10   : > { %v223_v7 = vld [vmem:[%s204_s28] sm:$0x1f]  ;;  %v225_v8 = vld [vmem:[%s204_s28 + $0x10] sm:$0x1f]  ;;  %v224_v13 = vld [vmem:[%s204_s28 + $0x8] sm:$0x1f]  ;;  %s212_s11 = scalar_lea.vmem %s657_s4, %s502_s29 }
  0x11   : > { %v227_v9 = vpack.c.bf16 %v223_v7, %v223_v7  ;;  %v328_v11 = vpack.c.bf16 %v225_v8, %v225_v8  ;;  %v226_v14 = vld [vmem:[%s204_s28 + $0x18] sm:$0x1f]  ;;  %v278_v15 = vpack.c.bf16 %v224_v13, %v224_v13  ;;  %v214_v17 = vld [vmem:[%s208_s6] sm:$0x1f] }
  0x12   : > { %v378_v16 = vpack.c.bf16 %v226_v14, %v226_v14  ;;  %v222_v19 = vadd.f32 %v504_v18, %v214_v17 }
  0x13   : > { %526 = vmatmul.mubr.msk.bf16.vlgmr.msra.gmra.mrb[0].mxu1 %vm229_vm2, %v227_v9  ;;  %538 = vmatmul.mubr.msk.bf16.vlgmr.msra.gmra.mrb[0].mxu0 %vm229_vm2, %v328_v11 }
  0x14   : > { %530 = vmatpush3.bf16.msra.mxu1 %v285_v10  ;;  %542 = vmatpush3.bf16.msra.mxu0 %v385_v12 }
  0x15   : > { %531 = vmatprep.mubr.msk.bf16.mxu1 %vm576_vm1, %v575_v2  ;;  %543 = vmatprep.mubr.msk.bf16.mxu0 %vm576_vm1, %v575_v2 }
  0x1f   : > { %532 = vmatmul.mubr.msk.bf16.vlgmr.msra.gmra.mrb[0].mxu1 %vm229_vm2, %v278_v15  ;;  %544 = vmatmul.mubr.msk.bf16.vlgmr.msra.gmra.mrb[0].mxu0 %vm229_vm2, %v378_v16 }
  0xf2   : > { %v321_v20 = vpop.f32.mrb[0].mxu1  ;;  %v421_v21 = vpop.f32.mrb[0].mxu0 }
  0xf3   : > { %v547_v22 = vadd.f32 %v321_v20, %v222_v19  ;;  %v533_v23 = vpop.f32.mrb[1].mxu1  ;;  %v545_v24 = vpop.f32.mrb[1].mxu0 }
  0xf4   : > { %v324_v25 = vpop.f32.mrb[2].mxu1  ;;  %v424_v26 = vpop.f32.mrb[2].mxu0 }
  0xf5   : > { %v548_v27 = vadd.f32 %v547_v22, %v421_v21  ;;  %v534_v28 = vpop.f32.mrb[3].mxu1  ;;  %v546_v29 = vpop.f32.mrb[3].mxu0 }
  0xf7   : > { %429 = vst.msk [vmem:[%s212_s11] sm:$0x1f] %vm428_vm3, %v548_v27 }
  0xf8 PF: > { %s14_s15 = sadd.s32 1, %s573_s15  }
  0xf9   : > { %p11_p4 = scmp.ge.s32.totalorder %s14_s15, 4  }
  0xfb   :  { %13 = sbr.rel (!%p11_p4) target bundleno = 1 (0x1), region = 72 }

// kernel: fireredasr_aed_forward.59
= control target key start
LH: loop header
LB: loop body
LE: loop exit
PB: predicated region body
PF: predicated region fallthrough
CT: control target
= control target key end

     0   :  { %s748_s24 = smov 0   ;;  %s843_s0 = inlined_call_operand.vmem [shape: f32[2,5,32], index: 0, kind: input, shape index: {}]   ;;  %s844_s1 = inlined_call_operand.vmem [shape: f32[1,32], index: 1, kind: input, shape index: {}]   ;;  %s845_s2 = inlined_call_operand.vmem [shape: f32[1,32], index: 2, kind: input, shape index: {}]   ;;  %s846_s3 = inlined_call_operand.vmem [shape: bf16[32,96], index: 3, kind: input, shape index: {}]   ;;  %s847_s4 = inlined_call_operand.vmem [shape: f32[1,96], index: 4, kind: input, shape index: {}]   ;;  %s848_s5 = inlined_call_operand.vmem [shape: bf16[2,4,5,8], index: 5, kind: output, shape index: {0}]   ;;  %s849_s6 = inlined_call_operand.vmem [shape: bf16[2,4,5,8], index: 6, kind: output, shape index: {1}]   ;;  %s850_s7 = inlined_call_operand.vmem [shape: bf16[2,4,5,8], index: 7, kind: output, shape index: {2}]  }
   0x1 LB: > { %s608_s25 = sadd.s32 4294967295, %s693_s24   ;;  %p612_p0 = scmp.ge.s32.totalorder %s693_s24, 1  ;;  %s693_s24 = sphi %s748_s24, %s18_s24  }
   0x2   : > { %p241_p1 = scmp.lt.s32.totalorder %s693_s24, 3 }
   0x4   : > { %p242_p2 = pnand %p612_p0, %p241_p1 }
   0x5   : > { %p282_p3 = scmp.lt.s32.totalorder (!%p242_p2), %s608_s25, 1  ;;  %vm303_vm0 = vcmask (!%p242_p2), 258048   ;;  %v683_v7 = vld [vmem:[%s846_s3] sm:$0xff] (!%p242_p2)   ;;  %v695_v8 = vmov (!%p242_p2), 0.0   ;;  %vm696_vm1 = vmmov (!%p242_p2), 0   ;;  %v684_v9 = vld [vmem:[%s846_s3 + $0x8] sm:$0xff] (!%p242_p2)  }
   0x6   : > { %245 = sbr.rel (%p242_p2) target bundleno = 697 (0x2b9), region = 40  ;;  %654 = vmatprep.subr.bf16.mxu0 (!%p242_p2), %v695_v8  ;;  %658 = vmatprep.mubr.msk.bf16.mxu0 (!%p242_p2), %vm696_vm1, %v695_v8  ;;  %v620_v14 = vld [vmem:[%s844_s1] ss:$0 sm:$0xff] (!%p242_p2)  ;;  %vm358_vm2 = vcmask (!%p242_p2), 261120   ;;  %vm403_vm3 = vcmask (!%p242_p2), 59392   ;;  %s697_s21 = smov (!%p242_p2), 104  }
   0x7   : > { %655 = vmatpush3.bf16.msra.mxu0 (!%p242_p2), %v683_v7  ;;  %v621_v16 = vld [vmem:[%s845_s2] ss:$0 sm:$0xff] (!%p242_p2)  ;;  %vm404_vm4 = vsmask.f32 (!%p242_p2), 2304  ;;  %s698_s22 = smov (!%p242_p2), 120   ;;  %s699_s23 = smov (!%p242_p2), 48  }
   0x8   : > { %656 = vmatprep.subr.bf16.mxu0 (!%p242_p2), %v695_v8  ;;  %v622_v20 = vld [vmem:[%s847_s4] ss:$0 sm:$0xff] (!%p242_p2)  ;;  %vm787_vm5 = vmand (!%p242_p2), %vm403_vm3, %vm404_vm4  ;;  %s702_s27 = smov (!%p242_p2), 88   ;;  %s703_s28 = smov (!%p242_p2), 80  }
   0x9   : > { %s705_s30 = smov (!%p242_p2), 64   ;;  %s706_s8 = smov (!%p242_p2), 56  }
   0xa   : > { %s707_s9 = smov (!%p242_p2), 40  }
   0xb   : > { %657 = vmatpush3.bf16.msra.mxu0 (!%p242_p2), %v684_v9 }
   0xd   : > { %s854_s25 = smov (!%p282_p3, %s608_s25), 1 }
   0xe   : > { %s613_s26 = sshll.u32 %s854_s25, 3  ;;  %s775_s15 = sshll.u32 %s854_s25, 4 }
   0xf   : > { %s285_s29 = scalar_lea.vmem %s843_s0, %s613_s26  ;;  %s784_s20 = scalar_lea.vmem %s848_s5, %s775_s15 }
  0x10   : > { %v302_v0 = vld [vmem:[%s285_s29] sm:$0x1f]  ;;  %s700_s25 = smov 112   ;;  %s701_s26 = smov 96   ;;  %v631_v30 = vld [vmem:[%s784_s20 + $0xc] sm:$0x7] }
  0x11   : > { %v304_v1 = vsel %vm303_vm0, %v302_v0, 0.0  ;;  %v406_v24 = vld [vmem:[%s784_s20] sm:$0x7]  ;;  %s704_s29 = smov 72   ;;  %v627_v31 = vld [vmem:[%s784_s20 + $0x4] sm:$0x7]  ;;  %s800_s12 = scalar_lea.vmem %s850_s7, %s775_s15 }
  0x12   : > { %305 = vadd.xlane.f32.xlu0 %v304_v1  ;;  %v641_v36 = vld [vmem:[%s800_s12 + $0x8] sm:$0x7]  ;;  %s295_s16 = scalar_lea.vmem %s849_s6, %s775_s15  ;;  %v463_v54 = vld [vmem:[%s800_s12] sm:$0x7]  ;;  %v639_v57 = vld [vmem:[%s800_s12 + $0x4] sm:$0x7] }
  0x13   : > { %v629_v37 = vld [vmem:[%s784_s20 + $0x8] sm:$0x7]  ;;  %v436_v42 = vld [vmem:[%s295_s16] sm:$0x7]  ;;  %v633_v45 = vld [vmem:[%s295_s16 + $0x4] sm:$0x7] }
  0x14   : > { %v635_v48 = vld [vmem:[%s295_s16 + $0x8] sm:$0x7]  ;;  %v637_v51 = vld [vmem:[%s295_s16 + $0xc] sm:$0x7] }
  0x15   : > { %v643_v60 = vld [vmem:[%s800_s12 + $0xc] sm:$0x7] }
  0x9f   : > { %v306_v2 = vpop.xlane.xlu0 %305 }
  0xa0   : > { %v308_v3 = vmul.f32 0.03125, %v306_v2 }
  0xa2   : > { %v309_v4 = vsub.f32 %v302_v0, %v308_v3 }
  0xa4   : > { %v310_v5 = vmul.f32 %v309_v4, %v309_v4 }
  0xa6   : > { %v311_v6 = vsel %vm303_vm0, %v310_v5, 0.0 }
  0xa7   : > { %312 = vadd.xlane.f32.xlu0 %v311_v6 }
 0x134   : > { %v313_v10 = vpop.xlane.xlu0 %312 }
 0x135   : > { %v314_v11 = vmul.f32 0.03125, %v313_v10 }
 0x137   : > { %v315_v12 = vadd.f32 1e-05, %v314_v11 }
 0x139   : > { %685 = vrsqrt.f32 %v315_v12 }
 0x143   : > { %v686_v13 = vpop.eup %685 }
 0x144   : > { %v317_v15 = vmul.f32 %v686_v13, %v309_v4 }
 0x146   : > { %v325_v17 = vmul.f32 %v620_v14, %v317_v15 }
 0x148   : > { %v333_v18 = vadd.f32 %v621_v16, %v325_v17 }
 0x14a   : > { %v334_v19 = vpack.c.bf16 %v333_v18, %v333_v18 }
 0x14c   : > { %659 = vmatmul.mubr.msk.bf16.vlgmr.msra.gmra.mrb[0].mxu0 %vm358_vm2, %v334_v19 }
 0x21f   : > { %v396_v21 = vpop.f32.mrb[0].mxu0 }
 0x220   : > { %v397_v22 = vadd.f32 %v622_v20, %v396_v21  ;;  %v660_v23 = vpop.f32.mrb[1].mxu0 }
 0x221   : > { %v399_v25 = vpop.f32.mrb[2].mxu0 }
 0x222   : > { %v402_v27 = vpack.c.bf16 %v397_v22, %v397_v22  ;;  %v661_v28 = vpop.f32.mrb[3].mxu0 }
 0x224   : > { %426 = vrot.lane.b32.xlu0 %v402_v27, %s697_s21  ;;  %412 = vrot.lane.b32.xlu1 %v402_v27, %s698_s22  ;;  %v407_v29 = vsel %vm787_vm5, %v402_v27, %v406_v24 }
 0x225   : > { %408 = vst [vmem:[%s784_s20] sm:$0x7] %v407_v29 }
 0x228   : > { %473 = vrot.lane.b32.xlu0 %v402_v27, %s699_s23  ;;  %419 = vrot.lane.b32.xlu1 %v402_v27, %s700_s25 }
 0x22c   : > { %433 = vrot.lane.b32.xlu1 %v402_v27, %s701_s26 }
 0x230   : > { %439 = vrot.lane.b32.xlu1 %v402_v27, %s702_s27 }
 0x234   : > { %446 = vrot.lane.b32.xlu1 %v402_v27, %s703_s28 }
 0x238   : > { %453 = vrot.lane.b32.xlu1 %v402_v27, %s704_s29 }
 0x23c   : > { %460 = vrot.lane.b32.xlu1 %v402_v27, %s705_s30 }
 0x240   : > { %466 = vrot.lane.b32.xlu1 %v402_v27, %s706_s8 }
 0x244   : > { %480 = vrot.lane.b32.xlu1 %v402_v27, %s707_s9 }
 0x296   : > { %v427_v32 = vpop.permute.xlu0 %426  ;;  %v413_v33 = vpop.permute.xlu1 %412 }
 0x297   : > { %v431_v34 = vsel %vm787_vm5, %v427_v32, %v631_v30  ;;  %v417_v35 = vsel %vm787_vm5, %v413_v33, %v627_v31 }
 0x298   : > { %632 = vst [vmem:[%s784_s20 + $0xc] sm:$0x7] %v431_v34  ;;  %628 = vst [vmem:[%s784_s20 + $0x4] sm:$0x7] %v417_v35 }
 0x29a   : > { %v474_v38 = vpop.permute.xlu0 %473  ;;  %v420_v39 = vpop.permute.xlu1 %419 }
 0x29b   : > { %v478_v40 = vsel %vm787_vm5, %v474_v38, %v641_v36  ;;  %v424_v41 = vsel %vm787_vm5, %v420_v39, %v629_v37 }
 0x29c   : > { %642 = vst [vmem:[%s800_s12 + $0x8] sm:$0x7] %v478_v40  ;;  %630 = vst [vmem:[%s784_s20 + $0x8] sm:$0x7] %v424_v41 }
 0x29e   : > { %v434_v43 = vpop.permute.xlu1 %433 }
 0x29f   : > { %v437_v44 = vsel %vm787_vm5, %v434_v43, %v436_v42 }
 0x2a0   : > { %438 = vst [vmem:[%s295_s16] sm:$0x7] %v437_v44 }
 0x2a2   : > { %v440_v46 = vpop.permute.xlu1 %439 }
 0x2a3   : > { %v444_v47 = vsel %vm787_vm5, %v440_v46, %v633_v45 }
 0x2a4   : > { %634 = vst [vmem:[%s295_s16 + $0x4] sm:$0x7] %v444_v47 }
 0x2a6   : > { %v447_v49 = vpop.permute.xlu1 %446 }
 0x2a7   : > { %v451_v50 = vsel %vm787_vm5, %v447_v49, %v635_v48 }
 0x2a8   : > { %636 = vst [vmem:[%s295_s16 + $0x8] sm:$0x7] %v451_v50 }
 0x2aa   : > { %v454_v52 = vpop.permute.xlu1 %453 }
 0x2ab   : > { %v458_v53 = vsel %vm787_vm5, %v454_v52, %v637_v51 }
 0x2ac   : > { %638 = vst [vmem:[%s295_s16 + $0xc] sm:$0x7] %v458_v53 }
 0x2ae   : > { %v461_v55 = vpop.permute.xlu1 %460 }
 0x2af   : > { %v464_v56 = vsel %vm787_vm5, %v461_v55, %v463_v54 }
 0x2b0   : > { %465 = vst [vmem:[%s800_s12] sm:$0x7] %v464_v56 }
 0x2b2   : > { %v467_v58 = vpop.permute.xlu1 %466 }
 0x2b3   : > { %v471_v59 = vsel %vm787_vm5, %v467_v58, %v639_v57 }
 0x2b4   : > { %640 = vst [vmem:[%s800_s12 + $0x4] sm:$0x7] %v471_v59 }
 0x2b6   : > { %v481_v61 = vpop.permute.xlu1 %480 }
 0x2b7   : > { %v485_v62 = vsel %vm787_vm5, %v481_v61, %v643_v60 }
 0x2b8   : > { %644 = vst [vmem:[%s800_s12 + $0xc] sm:$0x7] %v485_v62 }
 0x2b9 PF: > { %s18_s24 = sadd.s32 1, %s693_s24  }
 0x2ba   : > { %p15_p4 = scmp.ge.s32.totalorder %s18_s24, 4  }
 0x2bc   :  { %17 = sbr.rel (!%p15_p4) target bundleno = 1 (0x1), region = 103 }

// kernel: fireredasr_aed_forward.64
= control target key start
LH: loop header
LB: loop body
LE: loop exit
PB: predicated region body
PF: predicated region fallthrough
CT: control target
= control target key end

     0   :  { %s947_s15 = smov 0   ;;  %s1031_s0 = inlined_call_operand.vmem [shape: bf16[2,4,5,8], index: 0, kind: input, shape index: {}]   ;;  %s1032_s1 = inlined_call_operand.vmem [shape: bf16[2,4,4,8], index: 1, kind: input, shape index: {}]   ;;  %s1033_s2 = inlined_call_operand.vmem [shape: bf16[2,4,4,8], index: 2, kind: input, shape index: {}]   ;;  %s1034_s3 = inlined_call_operand.vmem [shape: f32[2,1,4], index: 3, kind: input, shape index: {}]   ;;  %s1035_s4 = inlined_call_operand.vmem [shape: f32[2,4,5,8], index: 4, kind: output, shape index: {}]  }
   0x1 LB: > { %s795_s16 = sadd.s32 4294967295, %s918_s15   ;;  %p799_p0 = scmp.ge.s32.totalorder %s918_s15, 1  ;;  %s918_s15 = sphi %s947_s15, %s14_s15  }
   0x2   : > { %p190_p1 = scmp.lt.s32.totalorder %s918_s15, 3 }
   0x4   : > { %p191_p2 = pnand %p799_p0, %p190_p1 }
   0x5   : > { %p229_p3 = scmp.lt.s32.totalorder (!%p191_p2), %s795_s16, 1  ;;  %v920_v0 = vmov (!%p191_p2), 0.0   ;;  %vm921_vm0 = vmmov (!%p191_p2), 0   ;;  %vm265_vm1 = vcmask (!%p191_p2), 64512   ;;  %v458_v13 = vlaneseq (!%p191_p2) }
   0x6   : > { %194 = sbr.rel (%p191_p2) target bundleno = 784 (0x310), region = 36  ;;  %838 = vmatprep.subr.bf16.mxu0 (!%p191_p2), %v920_v0  ;;  %844 = vmatprep.subr.bf16.mxu1 (!%p191_p2), %v920_v0  ;;  %vm467_vm2 = vcmask (!%p191_p2), 28672   ;;  %vm520_vm3 = vcmask (!%p191_p2), 1041408   ;;  %vm516_vm4 = vcmask (!%p191_p2), 31744   ;;  %vm702_vm5 = vcmask (!%p191_p2), 61440  }
   0x7   : > { %840 = vmatprep.mubr.msk.bf16.mxu0 (!%p191_p2), %vm921_vm0, %v920_v0  ;;  %846 = vmatprep.mubr.msk.bf16.mxu1 (!%p191_p2), %vm921_vm0, %v920_v0  ;;  %v459_v16 = vshrl.u32 (!%p191_p2), %v458_v13, 7 }
   0x9   : > { %v460_v18 = vsub.s32 (!%p191_p2), 0, %v459_v16 }
   0xd   : > { %s1037_s16 = smov (!%p229_p3, %s795_s16), 1 }
   0xe   : > { %s819_s17 = sshll.u32 %s1037_s16, 3  ;;  %s818_s21 = sshll.u32 %s1037_s16, 4 }
   0xf   : > { %s238_s20 = scalar_lea.vmem %s1032_s1, %s819_s17  ;;  %s233_s24 = scalar_lea.vmem %s1031_s0, %s818_s21 }
  0x10   : > { %v257_v1 = vld [vmem:[%s238_s20] sm:$0x3]  ;;  %v258_v2 = vld [vmem:[%s238_s20 + $0x2] sm:$0x3]  ;;  %v259_v5 = vld [vmem:[%s238_s20 + $0x4] sm:$0x3]  ;;  %s246_s27 = scalar_lea.vmem %s1034_s3, %s1037_s16  ;;  %s243_s30 = scalar_lea.vmem %s1033_s2, %s819_s17 }
  0x11   : > { %v270_v3 = vsel %vm265_vm1, %v257_v1, 0  ;;  %v316_v4 = vsel %vm265_vm1, %v258_v2, 0  ;;  %v260_v6 = vld [vmem:[%s238_s20 + $0x6] sm:$0x3]  ;;  %v253_v7 = vld [vmem:[%s233_s24] sm:$0x7] }
  0x12   : > { %839 = vmatpush3.bf16.xpose.msra.mxu0 %v270_v3  ;;  %845 = vmatpush3.bf16.xpose.msra.mxu1 %v316_v4  ;;  %v254_v8 = vld [vmem:[%s233_s24 + $0x4] sm:$0x7]  ;;  %v362_v9 = vsel %vm265_vm1, %v259_v5, 0  ;;  %v408_v10 = vsel %vm265_vm1, %v260_v6, 0  ;;  %v255_v11 = vld [vmem:[%s233_s24 + $0x8] sm:$0x7] }
  0x13   : > { %850 = vmatprep.subr.bf16.mxu0 %v920_v0  ;;  %856 = vmatprep.subr.bf16.mxu1 %v920_v0  ;;  %v256_v12 = vld [vmem:[%s233_s24 + $0xc] sm:$0x7]  ;;  %v454_v14 = vld [vmem:[%s246_s27] sm:$0x1]  ;;  %s821_s5 = sshll.u32 %s1037_s16, 5 }
  0x14   : > { %v455_v15 = vsub.f32 1.0, %v454_v14  ;;  %v261_v5 = vld [vmem:[%s243_s30] sm:$0x3]  ;;  %s251_s8 = scalar_lea.vmem %s1035_s4, %s821_s5 }
  0x15   : > { %v522_v6 = vsel %vm520_vm3, %v261_v5, 0 }
  0x16   : > { %v456_v17 = vmul.f32 -1e+09, %v455_v15 }
  0x18   : > { %v461_v19 = vrot.slane %v456_v17, %v460_v18 }
  0x19   : > { %841 = vmatmul.mubr.msk.bf16.vlgmr.msra.gmra.mrb[0].mxu0 %vm265_vm1, %v253_v7  ;;  %847 = vmatmul.mubr.msk.bf16.vlgmr.msra.gmra.mrb[0].mxu1 %vm265_vm1, %v254_v8  ;;  %v262_v7 = vld [vmem:[%s243_s30 + $0x2] sm:$0x3] }
  0x1a   : > { %851 = vmatpush3.bf16.xpose.msra.mxu0 %v362_v9  ;;  %857 = vmatpush3.bf16.xpose.msra.mxu1 %v408_v10  ;;  %v568_v8 = vsel %vm520_vm3, %v262_v7, 0  ;;  %v263_v9 = vld [vmem:[%s243_s30 + $0x4] sm:$0x3] }
  0x1b   : > { %852 = vmatprep.mubr.msk.bf16.mxu0 %vm921_vm0, %v920_v0  ;;  %858 = vmatprep.mubr.msk.bf16.mxu1 %vm921_vm0, %v920_v0  ;;  %v614_v10 = vsel %vm520_vm3, %v263_v9, 0 }
  0x1c   : > { %862 = vmatprep.subr.bf16.mxu0 %v920_v0  ;;  %868 = vmatprep.subr.bf16.mxu1 %v920_v0 }
  0x21   : > { %853 = vmatmul.mubr.msk.bf16.vlgmr.msra.gmra.mrb[4].mxu0 %vm265_vm1, %v255_v11  ;;  %859 = vmatmul.mubr.msk.bf16.vlgmr.msra.gmra.mrb[4].mxu1 %vm265_vm1, %v256_v12  ;;  %v264_v11 = vld [vmem:[%s243_s30 + $0x6] sm:$0x3] }
  0x22   : > { %864 = vmatprep.mubr.msk.bf16.mxu0 %vm921_vm0, %v920_v0  ;;  %870 = vmatprep.mubr.msk.bf16.mxu1 %vm921_vm0, %v920_v0  ;;  %v660_v12 = vsel %vm520_vm3, %v264_v11, 0 }
  0x23   : > { %863 = vmatpush3.bf16.msra.mxu0 %v522_v6  ;;  %869 = vmatpush3.bf16.msra.mxu1 %v568_v8 }
  0x24   : > { %874 = vmatprep.subr.bf16.mxu0 %v920_v0  ;;  %880 = vmatprep.subr.bf16.mxu1 %v920_v0 }
  0xec   : > { %v306_v20 = vpop.f32.mrb[0].mxu0  ;;  %v352_v21 = vpop.f32.mrb[0].mxu1 }
  0xed   : > { %v450_v22 = vmul.f32 0.35355338, %v306_v20  ;;  %v842_v23 = vpop.f32.mrb[1].mxu0  ;;  %v451_v24 = vmul.f32 0.35355338, %v352_v21  ;;  %v848_v25 = vpop.f32.mrb[1].mxu1 }
  0xee   : > { %v309_v26 = vpop.f32.mrb[2].mxu0  ;;  %v355_v27 = vpop.f32.mrb[2].mxu1 }
  0xef   : > { %v843_v28 = vpop.f32.mrb[3].mxu0  ;;  %v849_v29 = vpop.f32.mrb[3].mxu1  ;;  %v463_v30 = vadd.f32 %v461_v19, %v450_v22  ;;  %v464_v31 = vadd.f32 %v461_v19, %v451_v24 }
  0xf1   : > { %v468_v32 = vsel %vm467_vm2, %v463_v30, -inf  ;;  %v471_v33 = vsel %vm467_vm2, %v464_v31, -inf }
  0xf2   : > { %469 = vmax.xlane.f32.xlu0 %v468_v32 }
  0xf4   : > { %v398_v34 = vpop.f32.mrb[4].mxu0  ;;  %v444_v35 = vpop.f32.mrb[4].mxu1 }
  0xf5   : > { %v452_v36 = vmul.f32 0.35355338, %v398_v34  ;;  %v854_v37 = vpop.f32.mrb[5].mxu0  ;;  %v453_v38 = vmul.f32 0.35355338, %v444_v35  ;;  %v860_v39 = vpop.f32.mrb[5].mxu1 }
  0xf6   : > { %472 = vmax.xlane.f32.xlu0 %v471_v33  ;;  %v401_v40 = vpop.f32.mrb[6].mxu0  ;;  %v447_v41 = vpop.f32.mrb[6].mxu1 }
  0xf7   : > { %v855_v42 = vpop.f32.mrb[7].mxu0  ;;  %v861_v43 = vpop.f32.mrb[7].mxu1  ;;  %v465_v44 = vadd.f32 %v461_v19, %v452_v36  ;;  %v466_v45 = vadd.f32 %v461_v19, %v453_v38 }
  0xf9   : > { %v474_v46 = vsel %vm467_vm2, %v465_v44, -inf  ;;  %v477_v47 = vsel %vm467_vm2, %v466_v45, -inf }
  0xfa   : > { %475 = vmax.xlane.f32.xlu1 %v474_v46 }
  0xfe   : > { %478 = vmax.xlane.f32.xlu1 %v477_v47 }
 0x17f   : > { %v470_v48 = vpop.xlane.xlu0 %469 }
 0x180   : > { %v480_v49 = vsub.f32 %v463_v30, %v470_v48 }
 0x182   : > { %v484_v50 = vmul.f32 1.442695, %v480_v49 }
 0x183   : > { %v473_v51 = vpop.xlane.xlu0 %472 }
 0x184   : > { %896 = vpow2.f32 %v484_v50  ;;  %v481_v52 = vsub.f32 %v464_v31, %v473_v51 }
 0x186   : > { %v486_v53 = vmul.f32 1.442695, %v481_v52 }
 0x187   : > { %v476_v54 = vpop.xlane.xlu1 %475 }
 0x188   : > { %898 = vpow2.f32 %v486_v53  ;;  %v482_v55 = vsub.f32 %v465_v44, %v476_v54 }
 0x18a   : > { %v488_v56 = vmul.f32 1.442695, %v482_v55 }
 0x18b   : > { %v479_v57 = vpop.xlane.xlu1 %478 }
 0x18c   : > { %900 = vpow2.f32 %v488_v56  ;;  %v483_v58 = vsub.f32 %v466_v45, %v479_v57 }
 0x18e   : > { %v897_v59 = vpop.eup %896  ;;  %v490_v60 = vmul.f32 1.442695, %v483_v58 }
 0x18f   : > { %v492_v61 = vsel %vm467_vm2, %v897_v59, 0.0 }
 0x190   : > { %902 = vpow2.f32 %v490_v60  ;;  %493 = vadd.xlane.f32.xlu0 %v492_v61 }
 0x192   : > { %v899_v62 = vpop.eup %898 }
 0x193   : > { %v495_v63 = vsel %vm467_vm2, %v899_v62, 0.0 }
 0x194   : > { %496 = vadd.xlane.f32.xlu1 %v495_v63 }
 0x196   : > { %v901_v1 = vpop.eup %900 }
 0x197   : > { %v498_v2 = vsel %vm467_vm2, %v901_v1, 0.0 }
 0x198   : > { %499 = vadd.xlane.f32.xlu0 %v498_v2 }
 0x19a   : > { %v903_v3 = vpop.eup %902 }
 0x19b   : > { %v501_v4 = vsel %vm467_vm2, %v903_v3, 0.0 }
 0x19c   : > { %502 = vadd.xlane.f32.xlu1 %v501_v4 }
 0x21d   : > { %v494_v13 = vpop.xlane.xlu0 %493 }
 0x21e   : > { %904 = vrcp.f32 %v494_v13 }
 0x221   : > { %v497_v14 = vpop.xlane.xlu1 %496 }
 0x222   : > { %906 = vrcp.f32 %v497_v14 }
 0x225   : > { %v500_v15 = vpop.xlane.xlu0 %499 }
 0x226   : > { %908 = vrcp.f32 %v500_v15 }
 0x228   : > { %v905_v16 = vpop.eup %904 }
 0x229   : > { %v508_v17 = vmul.f32 %v905_v16, %v897_v59  ;;  %v503_v18 = vpop.xlane.xlu1 %502 }
 0x22a   : > { %910 = vrcp.f32 %v503_v18 }
 0x22b   : > { %v512_v19 = vpack.c.bf16 %v508_v17, %v508_v17 }
 0x22c   : > { %v907_v20 = vpop.eup %906 }
 0x22d   : > { %v509_v21 = vmul.f32 %v907_v20, %v899_v62  ;;  %865 = vmatmul.mubr.msk.bf16.vlgmr.msra.gmra.mrb[8].mxu0 %vm516_vm4, %v512_v19 }
 0x22e   : > { %875 = vmatpush3.bf16.msra.mxu0 %v614_v10  ;;  %876 = vmatprep.mubr.msk.bf16.mxu0 %vm921_vm0, %v920_v0 }
 0x22f   : > { %v513_v22 = vpack.c.bf16 %v509_v21, %v509_v21 }
 0x230   : > { %v909_v23 = vpop.eup %908 }
 0x231   : > { %v510_v24 = vmul.f32 %v909_v23, %v901_v1  ;;  %871 = vmatmul.mubr.msk.bf16.vlgmr.msra.gmra.mrb[8].mxu1 %vm516_vm4, %v513_v22 }
 0x232   : > { %881 = vmatpush3.bf16.msra.mxu1 %v660_v12  ;;  %882 = vmatprep.mubr.msk.bf16.mxu1 %vm921_vm0, %v920_v0 }
 0x233   : > { %v514_v25 = vpack.c.bf16 %v510_v24, %v510_v24 }
 0x234   : > { %v911_v26 = vpop.eup %910 }
 0x235   : > { %v511_v27 = vmul.f32 %v911_v26, %v903_v3  ;;  %877 = vmatmul.mubr.msk.bf16.vlgmr.msra.gmra.mrb[12].mxu0 %vm516_vm4, %v514_v25 }
 0x237   : > { %v515_v28 = vpack.c.bf16 %v511_v27, %v511_v27 }
 0x239   : > { %883 = vmatmul.mubr.msk.bf16.vlgmr.msra.gmra.mrb[12].mxu1 %vm516_vm4, %v515_v28 }
 0x300   : > { %v558_v29 = vpop.f32.mrb[8].mxu0 }
 0x301   : > { %703 = vst.msk [vmem:[%s251_s8] sm:$0x1f] %vm702_vm5, %v558_v29  ;;  %v866_v30 = vpop.f32.mrb[9].mxu0 }
 0x302   : > { %v561_v31 = vpop.f32.mrb[10].mxu0 }
 0x303   : > { %v867_v0 = vpop.f32.mrb[11].mxu0 }
 0x304   : > { %v604_v32 = vpop.f32.mrb[8].mxu1 }
 0x305   : > { %704 = vst.msk [vmem:[%s251_s8 + $0x8] sm:$0x1f] %vm702_vm5, %v604_v32  ;;  %v872_v33 = vpop.f32.mrb[9].mxu1 }
 0x306   : > { %v607_v34 = vpop.f32.mrb[10].mxu1 }
 0x307   : > { %v873_v35 = vpop.f32.mrb[11].mxu1 }
 0x308   : > { %v650_v36 = vpop.f32.mrb[12].mxu0 }
 0x309   : > { %705 = vst.msk [vmem:[%s251_s8 + $0x10] sm:$0x1f] %vm702_vm5, %v650_v36  ;;  %v878_v37 = vpop.f32.mrb[13].mxu0 }
 0x30a   : > { %v653_v38 = vpop.f32.mrb[14].mxu0 }
 0x30b   : > { %v879_v39 = vpop.f32.mrb[15].mxu0 }
 0x30c   : > { %v696_v40 = vpop.f32.mrb[12].mxu1 }
 0x30d   : > { %706 = vst.msk [vmem:[%s251_s8 + $0x18] sm:$0x1f] %vm702_vm5, %v696_v40  ;;  %v884_v41 = vpop.f32.mrb[13].mxu1 }
 0x30e   : > { %v699_v42 = vpop.f32.mrb[14].mxu1 }
 0x30f   : > { %v885_v43 = vpop.f32.mrb[15].mxu1 }
 0x310 PF: > { %s14_s15 = sadd.s32 1, %s918_s15  }
 0x311   : > { %p11_p4 = scmp.ge.s32.totalorder %s14_s15, 4  }
 0x313   :  { %13 = sbr.rel (!%p11_p4) target bundleno = 1 (0x1), region = 75 }

// kernel: fireredasr_aed_forward.75
= control target key start
LH: loop header
LB: loop body
LE: loop exit
PB: predicated region body
PF: predicated region fallthrough
CT: control target
= control target key end

     0   :  { %vm23_vm0 = vcmask 261120   ;;  %v169_v15 = vmov 0.0   ;;  %vm170_vm1 = vmmov 0   ;;  %vm137_vm2 = vcmask 408576   ;;  %s233_s0 = inlined_call_operand.vmem [shape: f32[16,32], index: 0, kind: input, shape index: {}]   ;;  %s234_s3 = inlined_call_operand.vmem [shape: bf16[32,50], index: 3, kind: input, shape index: {}]   ;;  %s235_s1 = inlined_call_operand.vmem [shape: f32[1,32], index: 1, kind: input, shape index: {}]   ;;  %s236_s2 = inlined_call_operand.vmem [shape: f32[1,32], index: 2, kind: input, shape index: {}]   ;;  %s237_s4 = inlined_call_operand.vmem [shape: f32[1,50], index: 4, kind: input, shape index: {}]   ;;  %s238_s5 = inlined_call_operand.vmem [shape: f32[16,50], index: 5, kind: output, shape index: {}]  }
   0x1   :  { %v21_v0 = vld [vmem:[%s233_s0] sm:$0xff]  ;;  %v22_v1 = vld [vmem:[%s233_s0 + $0x8] sm:$0xff]  ;;  %153 = vmatprep.subr.bf16.mxu0 %v169_v15  ;;  %157 = vmatprep.mubr.msk.bf16.mxu0 %vm170_vm1, %v169_v15 }
   0x2   :  { %v24_v2 = vsel %vm23_vm0, %v21_v0, 0.0  ;;  %v27_v3 = vsel %vm23_vm0, %v22_v1, 0.0  ;;  %v163_v14 = vld [vmem:[%s234_s3] sm:$0xff]   ;;  %v164_v16 = vld [vmem:[%s234_s3 + $0x8] sm:$0xff]  }
   0x3   :  { %25 = vadd.xlane.f32.xlu0 %v24_v2  ;;  %154 = vmatpush3.bf16.msra.mxu0 %v163_v14  ;;  %v144_v25 = vld [vmem:[%s235_s1] ss:$0 sm:$0xff] }
   0x4   :  { %155 = vmatprep.subr.bf16.mxu0 %v169_v15  ;;  %v145_v29 = vld [vmem:[%s236_s2] ss:$0 sm:$0xff] }
   0x5   :  { %v146_v34 = vld [vmem:[%s237_s4] ss:$0 sm:$0xff] }
   0x7   :  { %28 = vadd.xlane.f32.xlu0 %v27_v3  ;;  %156 = vmatpush3.bf16.msra.mxu0 %v164_v16 }
  0x90   :  { %v26_v4 = vpop.xlane.xlu0 %25 }
  0x91   :  { %v31_v5 = vmul.f32 0.03125, %v26_v4 }
  0x93   :  { %v33_v6 = vsub.f32 %v21_v0, %v31_v5 }
  0x94   :  { %v29_v7 = vpop.xlane.xlu0 %28 }
  0x95   :  { %v32_v8 = vmul.f32 0.03125, %v29_v7  ;;  %v35_v9 = vmul.f32 %v33_v6, %v33_v6 }
  0x97   :  { %v34_v10 = vsub.f32 %v22_v1, %v32_v8  ;;  %v37_v11 = vsel %vm23_vm0, %v35_v9, 0.0 }
  0x98   :  { %38 = vadd.xlane.f32.xlu1 %v37_v11 }
  0x99   :  { %v36_v12 = vmul.f32 %v34_v10, %v34_v10 }
  0x9b   :  { %v40_v13 = vsel %vm23_vm0, %v36_v12, 0.0 }
  0x9c   :  { %41 = vadd.xlane.f32.xlu1 %v40_v13 }
 0x125   :  { %v39_v17 = vpop.xlane.xlu1 %38 }
 0x126   :  { %v43_v18 = vmul.f32 0.03125, %v39_v17 }
 0x128   :  { %v45_v19 = vadd.f32 1e-05, %v43_v18 }
 0x129   :  { %v42_v20 = vpop.xlane.xlu1 %41 }
 0x12a   :  { %165 = vrsqrt.f32 %v45_v19  ;;  %v44_v21 = vmul.f32 0.03125, %v42_v20 }
 0x12c   :  { %v46_v22 = vadd.f32 1e-05, %v44_v21 }
 0x12e   :  { %167 = vrsqrt.f32 %v46_v22 }
 0x134   :  { %v166_v23 = vpop.eup %165 }
 0x135   :  { %v49_v24 = vmul.f32 %v166_v23, %v33_v6 }
 0x137   :  { %v58_v28 = vmul.f32 %v144_v25, %v49_v24 }
 0x138   :  { %v168_v26 = vpop.eup %167 }
 0x139   :  { %v50_v27 = vmul.f32 %v168_v26, %v34_v10  ;;  %v67_v31 = vadd.f32 %v145_v29, %v58_v28 }
 0x13b   :  { %v59_v30 = vmul.f32 %v144_v25, %v50_v27 }
 0x13d   :  { %v68_v32 = vadd.f32 %v145_v29, %v59_v30 }
 0x13f   :  { %v69_v33 = vpack.c.bf16 %v68_v32, %v67_v31 }
 0x141   :  { %158 = vmatmul.mubr.msk.bf16.vlgmr.msra.gmra.mrb[0].mxu0 %vm23_vm0, %v69_v33 }
 0x214   :  { %v130_v35 = vpop.f32.mrb[0].mxu0 }
 0x215   :  { %v131_v36 = vadd.f32 %v146_v34, %v130_v35  ;;  %v159_v37 = vpop.f32.mrb[1].mxu0 }
 0x216   :  { %v133_v38 = vpop.f32.mrb[2].mxu0 }
 0x217   :  { %138 = vst.msk [vmem:[%s238_s5] sm:$0xff] %vm137_vm2, %v131_v36  ;;  %v134_v39 = vadd.f32 %v146_v34, %v133_v38  ;;  %v160_v40 = vpop.f32.mrb[3].mxu0 }
 0x219   :  { %139 = vst.msk [vmem:[%s238_s5 + $0x8] sm:$0xff] %vm137_vm2, %v134_v39 }

// kernel: fireredasr_aed_forward.66
= control target key start
LH: loop header
LB: loop body
LE: loop exit
PB: predicated region body
PF: predicated region fallthrough
CT: control target
= control target key end

     0   :  { %vm35_vm0 = vcmask 261120   ;;  %v343_v15 = vmov 0.0   ;;  %vm344_vm1 = vmmov 0   ;;  %s466_s0 = inlined_call_operand.vmem [shape: f32[16,32], index: 0, kind: input, shape index: {}]   ;;  %s467_s7 = inlined_call_operand.vmem [shape: f32[1,32], index: 7, kind: input, shape index: {}]   ;;  %s468_s8 = inlined_call_operand.vmem [shape: f32[1,32], index: 8, kind: input, shape index: {}]   ;;  %s469_s3 = inlined_call_operand.vmem [shape: bf16[32,128], index: 3, kind: input, shape index: {}]   ;;  %s470_s5 = inlined_call_operand.vmem [shape: bf16[128,32], index: 5, kind: input, shape index: {}]   ;;  %s471_s1 = inlined_call_operand.vmem [shape: f32[1,32], index: 1, kind: input, shape index: {}]   ;;  %s472_s2 = inlined_call_operand.vmem [shape: f32[1,32], index: 2, kind: input, shape index: {}]   ;;  %s473_s4 = inlined_call_operand.vmem [shape: f32[1,128], index: 4, kind: input, shape index: {}]   ;;  %s474_s6 = inlined_call_operand.vmem [shape: f32[1,32], index: 6, kind: input, shape index: {}]   ;;  %s475_s9 = inlined_call_operand.vmem [shape: f32[16,32], index: 9, kind: output, shape index: {}]  }
   0x1   :  { %v398_v0 = vld [vmem:[%s466_s0] sm:$0xff]  ;;  %v403_v1 = vld [vmem:[%s466_s0 + $0x8] sm:$0xff]  ;;  %299 = vmatprep.subr.bf16.mxu0 %v343_v15  ;;  %307 = vmatprep.subr.bf16.mxu1 %v343_v15  ;;  %v333_v19 = vld [vmem:[%s470_s5 + $0x10] sm:$0xff]  }
   0x2   :  { %v36_v2 = vsel %vm35_vm0, %v398_v0, 0.0  ;;  %v39_v3 = vsel %vm35_vm0, %v403_v1, 0.0  ;;  %v329_v14 = vld [vmem:[%s469_s3] sm:$0xff]   ;;  %v330_v16 = vld [vmem:[%s469_s3 + $0x8] sm:$0xff]   ;;  %303 = vmatprep.mubr.msk.bf16.mxu0 %vm344_vm1, %v343_v15  ;;  %323 = vmatprep.mubr.msk.bf16.mxu1 %vm344_vm1, %v343_v15  ;;  %v334_v20 = vld [vmem:[%s470_s5 + $0x18] sm:$0xff]  }
   0x3   :  { %37 = vadd.xlane.f32.xlu0 %v36_v2  ;;  %300 = vmatpush3.bf16.msra.mxu0 %v329_v14  ;;  %v331_v17 = vld [vmem:[%s470_s5] sm:$0xff]   ;;  %v332_v18 = vld [vmem:[%s470_s5 + $0x8] sm:$0xff]   ;;  %v337_v40 = vld [vmem:[%s470_s5 + $0x30] sm:$0xff]  }
   0x4   :  { %301 = vmatprep.subr.bf16.mxu0 %v343_v15  ;;  %308 = vmatpush3.bf16.msra.mxu1 %v331_v17  ;;  %v335_v21 = vld [vmem:[%s470_s5 + $0x20] sm:$0xff]   ;;  %v336_v22 = vld [vmem:[%s470_s5 + $0x28] sm:$0xff]   ;;  %v338_v41 = vld [vmem:[%s470_s5 + $0x38] sm:$0xff]  }
   0x5   :  { %309 = vmatprep.subr.bf16.mxu1 %v343_v15  ;;  %v272_v31 = vld [vmem:[%s471_s1] ss:$0 sm:$0xff] }
   0x6   :  { %v273_v35 = vld [vmem:[%s472_s2] ss:$0 sm:$0xff] }
   0x7   :  { %40 = vadd.xlane.f32.xlu0 %v39_v3  ;;  %302 = vmatpush3.bf16.msra.mxu0 %v330_v16  ;;  %v274_v42 = vld [vmem:[%s473_s4] ss:$0 sm:$0xff] }
   0x8   :  { %310 = vmatpush3.bf16.msra.mxu1 %v332_v18  ;;  %v278_v52 = vld [vmem:[%s474_s6] ss:$0 sm:$0xff] }
   0x9   :  { %311 = vmatprep.subr.bf16.mxu1 %v343_v15 }
   0xc   :  { %312 = vmatpush3.bf16.msra.mxu1 %v333_v19 }
   0xd   :  { %313 = vmatprep.subr.bf16.mxu1 %v343_v15 }
  0x10   :  { %314 = vmatpush3.bf16.msra.mxu1 %v334_v20 }
  0x11   :  { %315 = vmatprep.subr.bf16.mxu1 %v343_v15 }
  0x14   :  { %316 = vmatpush3.bf16.msra.mxu1 %v335_v21 }
  0x15   :  { %317 = vmatprep.subr.bf16.mxu1 %v343_v15 }
  0x18   :  { %318 = vmatpush3.bf16.msra.mxu1 %v336_v22 }
  0x19   :  { %319 = vmatprep.subr.bf16.mxu1 %v343_v15 }
  0x1c   :  { %320 = vmatpush3.bf16.msra.mxu1 %v337_v40 }
  0x1d   :  { %321 = vmatprep.subr.bf16.mxu1 %v343_v15 }
  0x20   :  { %322 = vmatpush3.bf16.msra.mxu1 %v338_v41 }
  0x90   :  { %v38_v4 = vpop.xlane.xlu0 %37 }
  0x91   :  { %v43_v5 = vmul.f32 0.03125, %v38_v4 }
  0x93   :  { %v45_v6 = vsub.f32 %v398_v0, %v43_v5 }
  0x94   :  { %v41_v7 = vpop.xlane.xlu0 %40 }
  0x95   :  { %v44_v8 = vmul.f32 0.03125, %v41_v7  ;;  %v47_v9 = vmul.f32 %v45_v6, %v45_v6 }
  0x97   :  { %v46_v10 = vsub.f32 %v403_v1, %v44_v8  ;;  %v49_v11 = vsel %vm35_vm0, %v47_v9, 0.0 }
  0x98   :  { %50 = vadd.xlane.f32.xlu1 %v49_v11 }
  0x99   :  { %v48_v12 = vmul.f32 %v46_v10, %v46_v10 }
  0x9b   :  { %v52_v13 = vsel %vm35_vm0, %v48_v12, 0.0 }
  0x9c   :  { %53 = vadd.xlane.f32.xlu1 %v52_v13 }
 0x125   :  { %v51_v23 = vpop.xlane.xlu1 %50 }
 0x126   :  { %v55_v24 = vmul.f32 0.03125, %v51_v23 }
 0x128   :  { %v57_v25 = vadd.f32 1e-05, %v55_v24 }
 0x129   :  { %v54_v26 = vpop.xlane.xlu1 %53 }
 0x12a   :  { %339 = vrsqrt.f32 %v57_v25  ;;  %v56_v27 = vmul.f32 0.03125, %v54_v26 }
 0x12c   :  { %v58_v28 = vadd.f32 1e-05, %v56_v27 }
 0x12e   :  { %341 = vrsqrt.f32 %v58_v28 }
 0x134   :  { %v340_v29 = vpop.eup %339 }
 0x135   :  { %v61_v30 = vmul.f32 %v340_v29, %v45_v6 }
 0x137   :  { %v70_v34 = vmul.f32 %v272_v31, %v61_v30 }
 0x138   :  { %v342_v32 = vpop.eup %341 }
 0x139   :  { %v62_v33 = vmul.f32 %v342_v32, %v46_v10  ;;  %v79_v37 = vadd.f32 %v273_v35, %v70_v34 }
 0x13b   :  { %v71_v36 = vmul.f32 %v272_v31, %v62_v33 }
 0x13d   :  { %v80_v38 = vadd.f32 %v273_v35, %v71_v36 }
 0x13f   :  { %v81_v39 = vpack.c.bf16 %v80_v38, %v79_v37 }
 0x141   :  { %304 = vmatmul.mubr.msk.bf16.vlgmr.msra.gmra.mrb[0].mxu0 %vm35_vm0, %v81_v39 }
 0x214   :  { %v142_v43 = vpop.f32.mrb[0].mxu0 }
 0x215   :  { %v143_v44 = vadd.f32 %v274_v42, %v142_v43  ;;  %v305_v45 = vpop.f32.mrb[1].mxu0 }
 0x216   :  { %v145_v46 = vpop.f32.mrb[2].mxu0 }
 0x217   :  { %v146_v47 = vadd.f32 %v274_v42, %v145_v46  ;;  %v306_v48 = vpop.f32.mrb[3].mxu0  ;;  %v149_v49 = vmax.f32 %v143_v44, 0.0 }
 0x219   :  { %v150_v50 = vmax.f32 %v146_v47, 0.0 }
 0x21b   :  { %v151_v51 = vpack.c.bf16 %v150_v50, %v149_v49 }
 0x21d   :  { %324 = vmatmul.mubr.bf16.vlgmr.msra.gmra.mrb[0].mxu1 %v151_v51 }
 0x2f0   :  { %v257_v53 = vpop.f32.mrb[0].mxu1 }
 0x2f1   :  { %v258_v54 = vadd.f32 %v278_v52, %v257_v53  ;;  %v325_v55 = vpop.f32.mrb[1].mxu1 }
 0x2f2   :  { %v260_v56 = vpop.f32.mrb[2].mxu1 }
 0x2f3   :  { %v264_v57 = vadd.f32 %v258_v54, %v398_v0  ;;  %v261_v58 = vadd.f32 %v278_v52, %v260_v56  ;;  %v326_v59 = vpop.f32.mrb[3].mxu1 }
 0x2f5   :  { %266 = vst.msk [vmem:[%s475_s9] sm:$0xff] %vm35_vm0, %v264_v57  ;;  %v265_v60 = vadd.f32 %v261_v58, %v403_v1 }
 0x2f7   :  { %267 = vst.msk [vmem:[%s475_s9 + $0x8] sm:$0xff] %vm35_vm0, %v265_v60 }

</bundles_post_ra>
